<compile_context>
chip_gen: v7x
topology: tpu7x:2x2x1
jax: 0.10.0
libtpu: 0.0.40
codegen_flags: <defaults>
</compile_context>

<pallas_src>
import functools

import jax
import jax.numpy as jnp
from jax import lax
from jax.experimental import pallas as pl
from jax.experimental.pallas import tpu as pltpu


# ----------------------------------------------------------------------------
# Fused SPPCSPC kernel: one grid step == one batch element, everything in VMEM.
# ----------------------------------------------------------------------------
def _sppcspc_kernel(x_ref, w12_ref, b12_ref, w3_ref, b3_ref, w4_ref, b4_ref,
                    w5_ref, b5_ref, w6_ref, b6_ref, w7_ref, b7_ref,
                    o_ref, conv_ref, *, H, W, c_):
    HW = H * W
    bf16 = jnp.bfloat16

    def matmul(a, w):
        # bf16 x bf16 -> f32 accumulation on the MXU.
        return jnp.dot(a, w, preferred_element_type=jnp.float32)

    def silu(a):
        # exp and the approximate reciprocal both live on the EUP slot.
        return a * pl.reciprocal(1.0 + jnp.exp(-a), approx=True)

    def act(a):
        return silu(a).astype(bf16)

    # Zero the two halo rows of the conv scratch once per grid step (cheap,
    # megacore-safe).  The interior is fully rewritten by every conv3x3 call.
    zero_row = jnp.zeros((1, W, 3 * c_), bf16)
    conv_ref[0:1] = zero_row
    conv_ref[H + 1:H + 2] = zero_row

    def conv3x3(v, w_taps_ref, b_ref):
        """3x3 'same' conv + BN + SiLU as 3 matmuls (K = 3*c_), one per ky."""
        v3 = v.reshape(H, W, c_)
        zcol = jnp.zeros((H, 1, c_), bf16)
        # Materialize only the 3 dx-shifted copies, stacked along the K axis.
        # All stores are full-sublane-range, lane-offset (aligned for c_ % 128
        # == 0 at production sizes).
        conv_ref[1:H + 1, :, 0:c_] = jnp.concatenate(
            [zcol, v3[:, :W - 1, :]], axis=1)                  # dx = 0 (left)
        conv_ref[1:H + 1, :, c_:2 * c_] = v3                   # dx = 1 (center)
        conv_ref[1:H + 1, :, 2 * c_:3 * c_] = jnp.concatenate(
            [v3[:, 1:, :], zcol], axis=1)                      # dx = 2 (right)
        # dy shifts are free outer-dim slices of the scratch.
        acc = matmul(conv_ref[0:H].reshape(HW, 3 * c_), w_taps_ref[0])
        acc = acc + matmul(conv_ref[1:H + 1].reshape(HW, 3 * c_), w_taps_ref[1])
        acc = acc + matmul(conv_ref[2:H + 2].reshape(HW, 3 * c_), w_taps_ref[2])
        return act(acc + b_ref[...])

    def pool5(v):
        """Separable k=5 / stride-1 / 'same' maxpool on register values."""
        v3 = v.reshape(H, W, c_)
        ninf_c = jnp.full((H, 2, c_), -jnp.inf, bf16)
        vw = jnp.concatenate([ninf_c, v3, ninf_c], axis=1)      # (H, W+4, c_)
        r = vw[:, 0:W, :]
        for dx in range(1, 5):
            r = jnp.maximum(r, vw[:, dx:dx + W, :])
        ninf_r = jnp.full((2, W, c_), -jnp.inf, bf16)
        vh = jnp.concatenate([ninf_r, r, ninf_r], axis=0)       # (H+4, W, c_)
        out = vh[0:H]
        for dy in range(1, 5):
            out = jnp.maximum(out, vh[dy:dy + H])
        return out.reshape(HW, c_)

    x = x_ref[0]                                                # (HW, c1) bf16

    # cv1 | cv2 fused (same input): one matmul with 2*c_ output lanes.
    y12 = act(matmul(x, w12_ref[...]) + b12_ref[...])
    x1 = y12[:, :c_]                                            # cv1(x)
    y2 = y12[:, c_:]                                            # cv2(x)

    # x1 = cv4(cv3(cv1(x)))
    x1 = conv3x3(x1, w3_ref, b3_ref)
    x1 = act(matmul(x1, w4_ref[...]) + b4_ref[...])

    # cv5 over cat([x1, pool5, pool9, pool13]) as a K-split accumulation,
    # interleaved with the cascaded pools (pool9 = pool5^2, pool13 = pool5^3)
    # so only one pooled tensor is live at a time.
    acc = matmul(x1, w5_ref[0])
    p = pool5(x1)
    acc = acc + matmul(p, w5_ref[1])
    p = pool5(p)
    acc = acc + matmul(p, w5_ref[2])
    p = pool5(p)
    acc = acc + matmul(p, w5_ref[3])
    y1 = act(acc + b5_ref[...])

    # y1 = cv6(y1)
    y1 = conv3x3(y1, w6_ref, b6_ref)

    # out = cv7(cat([y1, y2])) as a K-split accumulation (no concat), f32 out.
    out = silu(matmul(y1, w7_ref[0]) + matmul(y2, w7_ref[1]) + b7_ref[...])
    o_ref[0] = out


# ----------------------------------------------------------------------------
# Wrapper (PyTorch NCHW in/out; compute in NHWC flattened to (N, H*W, C))
# ----------------------------------------------------------------------------
def sppcspc_forward(x_nchw, kparams):
    (w12, b12, w3, b3, w4, b4, w5, b5, w6, b6, w7, b7) = kparams
    N, c1, H, W = x_nchw.shape
    c_ = w4.shape[0]
    c2 = w7.shape[2]
    HW = H * W

    # Boundary layout conversion (kept only to honour the PyTorch NCHW
    # interface); cast to bf16 *before* the transpose to halve its HBM traffic.
    # Drop entirely if the surrounding graph is already NHWC.
    x = jnp.transpose(x_nchw.astype(jnp.bfloat16), (0, 2, 3, 1)).reshape(N, HW, c1)

    kern = functools.partial(_sppcspc_kernel, H=H, W=W, c_=c_)

    def _const_spec(arr):
        zeros = (0,) * arr.ndim
        return pl.BlockSpec(arr.shape, lambda n: zeros)

    weight_args = [w12, b12, w3, b3, w4, b4, w5, b5, w6, b6, w7, b7]
    in_specs = ([pl.BlockSpec((1, HW, c1), lambda n: (n, 0, 0))]
                + [_const_spec(a) for a in weight_args])

    out = pl.pallas_call(
        kern,
        out_shape=jax.ShapeDtypeStruct((N, HW, c2), jnp.float32),
        grid=(N,),
        in_specs=in_specs,
        out_specs=pl.BlockSpec((1, HW, c2), lambda n: (n, 0, 0)),
        scratch_shapes=[pltpu.VMEM((H + 2, W, 3 * c_), jnp.bfloat16)],
        compiler_params=pltpu.CompilerParams(
            dimension_semantics=("parallel",),
            vmem_limit_bytes=48 * 1024 * 1024),
    )(x, *weight_args)

    return jnp.transpose(out.reshape(N, H, W, c2), (0, 3, 1, 2))


# ----------------------------------------------------------------------------
# Parameter creation: synthetic Conv2d + BN (eval), exactly folded; kernel
# (bf16, matmul-ready) layout and the reference OIHW layout share base params.
# ----------------------------------------------------------------------------
def _fold_conv_bn(key, cin, cout, ksize):
    kw, kg, kb, km, kv = jax.random.split(key, 5)
    w = jax.random.normal(kw, (cout, cin, ksize, ksize), jnp.float32) * 0.1
    gamma = jax.random.uniform(kg, (cout,), jnp.float32, 0.5, 1.5)
    beta = jax.random.normal(kb, (cout,), jnp.float32) * 0.1
    mean = jax.random.normal(km, (cout,), jnp.float32) * 0.1
    var = jax.random.uniform(kv, (cout,), jnp.float32, 0.5, 1.5)
    eps = 1e-5
    scale = gamma / jnp.sqrt(var + eps)
    w_fold = w * scale[:, None, None, None]            # (Cout, Cin, kh, kw)
    b_fold = beta - mean * scale                       # (Cout,)
    return w_fold, b_fold


def _mat1x1(w_fold):
    # (Cout, Cin, 1, 1) -> (Cin, Cout)
    return jnp.transpose(w_fold[:, :, 0, 0], (1, 0))


def _taps3x3_rows(w_fold):
    # (Cout, Cin, 3, 3) -> (3, 3*Cin, Cout): index is ky; the K axis stacks the
    # kx = 0, 1, 2 taps so one (HW, 3*Cin) x (3*Cin, Cout) matmul covers a row.
    rows = []
    for ky in range(3):
        rows.append(jnp.concatenate(
            [jnp.transpose(w_fold[:, :, ky, kx], (1, 0)) for kx in range(3)],
            axis=0))
    return jnp.stack(rows, axis=0)


def init_sppcspc_params(key, c1, c2, e=0.5):
    c_ = int(2 * c2 * e)
    ks = jax.random.split(key, 7)
    params = {
        "cv1": _fold_conv_bn(ks[0], c1, c_, 1),
        "cv2": _fold_conv_bn(ks[1], c1, c_, 1),
        "cv3": _fold_conv_bn(ks[2], c_, c_, 3),
        "cv4": _fold_conv_bn(ks[3], c_, c_, 1),
        "cv5": _fold_conv_bn(ks[4], 4 * c_, c_, 1),
        "cv6": _fold_conv_bn(ks[5], c_, c_, 3),
        "cv7": _fold_conv_bn(ks[6], 2 * c_, c2, 1),
    }
    return params, c_


def pack_kernel_params(params, c_, c2):
    w1, b1 = params["cv1"]; w2, b2 = params["cv2"]
    w3, b3 = params["cv3"]; w4, b4 = params["cv4"]
    w5, b5 = params["cv5"]; w6, b6 = params["cv6"]
    w7, b7 = params["cv7"]
    bf16 = jnp.bfloat16
    # cv1 | cv2 fused along the output-channel (lane) axis; weights in bf16 for
    # the MXU, biases stay f32 (added to the f32 accumulator).
    w12 = jnp.concatenate([_mat1x1(w1), _mat1x1(w2)], axis=1).astype(bf16)
    b12 = jnp.concatenate([b1, b2]).reshape(1, 2 * c_)
    # cv5 K-split chunks for [x1, pool5, pool9, pool13]; cv7 chunks for [y1, y2].
    w5m = _mat1x1(w5).reshape(4, c_, c_).astype(bf16)
    w7m = _mat1x1(w7).reshape(2, c_, c2).astype(bf16)
    return (w12, b12,
            _taps3x3_rows(w3).astype(bf16), b3.reshape(1, c_),
            _mat1x1(w4).astype(bf16), b4.reshape(1, c_),
            w5m, b5.reshape(1, c_),
            _taps3x3_rows(w6).astype(bf16), b6.reshape(1, c_),
            w7m, b7.reshape(1, c2))


# ----------------------------------------------------------------------------
# Pure-JAX f32 reference (for correctness check)
# ----------------------------------------------------------------------------
def _ref_conv(x, wb):
    w_fold, b = wb
    w_hwio = jnp.transpose(w_fold, (2, 3, 1, 0))
    y = lax.conv_general_dilated(
        x, w_hwio, window_strides=(1, 1), padding="SAME",
        dimension_numbers=("NHWC", "HWIO", "NHWC")) + b
    return y * jax.nn.sigmoid(y)


def _ref_maxpool(x, k):
    p = k // 2
    return lax.reduce_window(x, -jnp.inf, lax.max, (1, k, k, 1), (1, 1, 1, 1),
                             [(0, 0), (p, p), (p, p), (0, 0)])


def sppcspc_reference(x_nchw, params, pool_ks=(5, 9, 13)):
    x = jnp.transpose(x_nchw, (0, 2, 3, 1))
    x1 = _ref_conv(_ref_conv(_ref_conv(x, params["cv1"]), params["cv3"]),
                   params["cv4"])
    cat1 = jnp.concatenate([x1] + [_ref_maxpool(x1, k) for k in pool_ks], axis=-1)
    y1 = _ref_conv(_ref_conv(cat1, params["cv5"]), params["cv6"])
    y2 = _ref_conv(x, params["cv2"])
    out = _ref_conv(jnp.concatenate([y1, y2], axis=-1), params["cv7"])
    return jnp.transpose(out, (0, 3, 1, 2))


# ----------------------------------------------------------------------------
if __name__ == "__main__":
    key = jax.random.PRNGKey(0)
    k_x, k_p = jax.random.split(key)

    c1, c2 = 8, 8            # SPPCSPC(c1=8, c2=8, e=0.5) -> c_ = 8
    N, H, W = 2, 16, 16
    x = jax.random.normal(k_x, (N, c1, H, W), jnp.float32)   # NCHW like PyTorch

    params, c_ = init_sppcspc_params(k_p, c1, c2, e=0.5)
    kparams = pack_kernel_params(params, c_, c2)

    out = jax.block_until_ready(sppcspc_forward(x, kparams))
    assert out.shape == (N, c2, H, W), out.shape

    ref = jax.block_until_ready(sppcspc_reference(x, params))
    max_err = float(jnp.max(jnp.abs(out - ref)))
    # bf16 MXU operands -> bf16-level tolerance against the f32 reference.
    assert jnp.allclose(out, ref, atol=1e-1, rtol=1e-1), max_err

    print("KERNEL_OK")
</pallas_src>

<mosaic_0001>
module attributes {stable_mosaic.version = 11 : i64} {
  func.func @_sppcspc_kernel(%arg0: i32, %arg1: memref<1x256x8xbf16, #tpu.memory_space<vmem>>, %arg2: memref<8x16xbf16, #tpu.memory_space<vmem>>, %arg3: memref<1x16xf32, #tpu.memory_space<vmem>>, %arg4: memref<3x24x8xbf16, #tpu.memory_space<vmem>>, %arg5: memref<1x8xf32, #tpu.memory_space<vmem>>, %arg6: memref<8x8xbf16, #tpu.memory_space<vmem>>, %arg7: memref<1x8xf32, #tpu.memory_space<vmem>>, %arg8: memref<4x8x8xbf16, #tpu.memory_space<vmem>>, %arg9: memref<1x8xf32, #tpu.memory_space<vmem>>, %arg10: memref<3x24x8xbf16, #tpu.memory_space<vmem>>, %arg11: memref<1x8xf32, #tpu.memory_space<vmem>>, %arg12: memref<2x8x8xbf16, #tpu.memory_space<vmem>>, %arg13: memref<1x8xf32, #tpu.memory_space<vmem>>, %arg14: memref<1x256x8xf32, #tpu.memory_space<vmem>>, %arg15: memref<18x16x24xbf16, #tpu.memory_space<vmem>>) attributes {dimension_semantics = [#tpu.dimension_semantics<parallel>], iteration_bounds = array<i64: 2>, scalar_prefetch = 0 : i64, scratch_operands = 1 : i64, tpu.core_type = #tpu.core_type<tc>, window_params = [{transform_indices = @transform_0, window_bounds = array<i64: 1, 256, 8>}, {pipeline_mode = #tpu.pipeline_mode<synchronous>, transform_indices = @transform_1, window_bounds = array<i64: 8, 16>}, {pipeline_mode = #tpu.pipeline_mode<synchronous>, transform_indices = @transform_2, window_bounds = array<i64: 1, 16>}, {pipeline_mode = #tpu.pipeline_mode<synchronous>, transform_indices = @transform_3, window_bounds = array<i64: 3, 24, 8>}, {pipeline_mode = #tpu.pipeline_mode<synchronous>, transform_indices = @transform_4, window_bounds = array<i64: 1, 8>}, {pipeline_mode = #tpu.pipeline_mode<synchronous>, transform_indices = @transform_5, window_bounds = array<i64: 8, 8>}, {pipeline_mode = #tpu.pipeline_mode<synchronous>, transform_indices = @transform_6, window_bounds = array<i64: 1, 8>}, {pipeline_mode = #tpu.pipeline_mode<synchronous>, transform_indices = @transform_7, window_bounds = array<i64: 4, 8, 8>}, {pipeline_mode = #tpu.pipeline_mode<synchronous>, transform_indices = @transform_8, window_bounds = array<i64: 1, 8>}, {pipeline_mode = #tpu.pipeline_mode<synchronous>, transform_indices = @transform_9, window_bounds = array<i64: 3, 24, 8>}, {pipeline_mode = #tpu.pipeline_mode<synchronous>, transform_indices = @transform_10, window_bounds = array<i64: 1, 8>}, {pipeline_mode = #tpu.pipeline_mode<synchronous>, transform_indices = @transform_11, window_bounds = array<i64: 2, 8, 8>}, {pipeline_mode = #tpu.pipeline_mode<synchronous>, transform_indices = @transform_12, window_bounds = array<i64: 1, 8>}, {transform_indices = @transform_13, window_bounds = array<i64: 1, 256, 8>}]} {
    %cst = arith.constant 0.000000e+00 : bf16
    %0 = vector.broadcast %cst : bf16 to vector<1x16x24xbf16>
    %c0 = arith.constant 0 : index
    %c0_0 = arith.constant 0 : index
    %c0_1 = arith.constant 0 : index
    %1 = vector.load %arg15[%c0, %c0_0, %c0_1] : memref<18x16x24xbf16, #tpu.memory_space<vmem>>, vector<1x16x24xbf16>
    tpu.vector_store %arg15[%c0, %c0_0, %c0_1], %0 {strides = array<i32>} : memref<18x16x24xbf16, #tpu.memory_space<vmem>>, vector<1x16x24xbf16>,
    %c17 = arith.constant 17 : index
    %c0_2 = arith.constant 0 : index
    %c0_3 = arith.constant 0 : index
    %2 = vector.load %arg15[%c17, %c0_2, %c0_3] : memref<18x16x24xbf16, #tpu.memory_space<vmem>>, vector<1x16x24xbf16>
    tpu.vector_store %arg15[%c17, %c0_2, %c0_3], %0 {strides = array<i32>} : memref<18x16x24xbf16, #tpu.memory_space<vmem>>, vector<1x16x24xbf16>,
    %c0_4 = arith.constant 0 : index
    %c0_5 = arith.constant 0 : index
    %c0_6 = arith.constant 0 : index
    %3 = vector.load %arg1[%c0_4, %c0_5, %c0_6] : memref<1x256x8xbf16, #tpu.memory_space<vmem>>, vector<1x256x8xbf16>
    %4 = vector.shape_cast %3 : vector<1x256x8xbf16> to vector<256x8xbf16>
    %c0_7 = arith.constant 0 : index
    %c0_8 = arith.constant 0 : index
    %5 = vector.load %arg2[%c0_7, %c0_8] : memref<8x16xbf16, #tpu.memory_space<vmem>>, vector<8x16xbf16>
    %cst_9 = arith.constant dense<0.000000e+00> : vector<256x16xf32>
    %6 = tpu.matmul %4, %5, %cst_9 {dimension_numbers = #tpu.dot_dimension_numbers<[1], [0], [0], [1], [0, 0, 1, 1], [], []>} : vector<256x8xbf16>, vector<8x16xbf16>, vector<256x16xf32> -> vector<256x16xf32>
    %c0_10 = arith.constant 0 : index
    %c0_11 = arith.constant 0 : index
    %7 = vector.load %arg3[%c0_10, %c0_11] : memref<1x16xf32, #tpu.memory_space<vmem>>, vector<1x16xf32>
    %8 = vector.broadcast %7 : vector<1x16xf32> to vector<256x16xf32>
    %9 = arith.addf %6, %8 : vector<256x16xf32>
    %cst_12 = arith.constant 0.000000e+00 : f32
    %10 = vector.broadcast %cst_12 : f32 to vector<256x16xf32>
    %11 = arith.subf %10, %9 : vector<256x16xf32>
    %12 = math.exp %11 : vector<256x16xf32>
    %cst_13 = arith.constant 1.000000e+00 : f32
    %13 = vector.broadcast %cst_13 : f32 to vector<256x16xf32>
    %14 = arith.addf %13, %12 : vector<256x16xf32>
    %15 = tpu.reciprocal %14 {approx = true} : vector<256x16xf32> -> vector<256x16xf32>
    %16 = arith.mulf %9, %15 : vector<256x16xf32>
    %17 = arith.truncf %16 : vector<256x16xf32> to vector<256x16xbf16>
    %18 = vector.extract_strided_slice %17 {offsets = [0, 0], sizes = [256, 8], strides = [1, 1]} : vector<256x16xbf16> to vector<256x8xbf16>
    %19 = vector.extract_strided_slice %17 {offsets = [0, 8], sizes = [256, 8], strides = [1, 1]} : vector<256x16xbf16> to vector<256x8xbf16>
    %20 = vector.shape_cast %18 : vector<256x8xbf16> to vector<16x16x8xbf16>
    %cst_14 = arith.constant 0.000000e+00 : bf16
    %21 = vector.broadcast %cst_14 : bf16 to vector<16x1x8xbf16>
    %22 = vector.extract_strided_slice %20 {offsets = [0, 0, 0], sizes = [16, 15, 8], strides = [1, 1, 1]} : vector<16x16x8xbf16> to vector<16x15x8xbf16>
    %23 = tpu.concatenate %21, %22 in 1 : vector<16x1x8xbf16>, vector<16x15x8xbf16> -> vector<16x16x8xbf16>
    %c1 = arith.constant 1 : index
    %c0_15 = arith.constant 0 : index
    %c0_16 = arith.constant 0 : index
    %24 = vector.load %arg15[%c1, %c0_15, %c0_16] : memref<18x16x24xbf16, #tpu.memory_space<vmem>>, vector<16x16x8xbf16>
    tpu.vector_store %arg15[%c1, %c0_15, %c0_16], %23 {strides = array<i32>} : memref<18x16x24xbf16, #tpu.memory_space<vmem>>, vector<16x16x8xbf16>,
    %c1_17 = arith.constant 1 : index
    %c0_18 = arith.constant 0 : index
    %c8 = arith.constant 8 : index
    %25 = vector.load %arg15[%c1_17, %c0_18, %c8] : memref<18x16x24xbf16, #tpu.memory_space<vmem>>, vector<16x16x8xbf16>
    tpu.vector_store %arg15[%c1_17, %c0_18, %c8], %20 {strides = array<i32>} : memref<18x16x24xbf16, #tpu.memory_space<vmem>>, vector<16x16x8xbf16>,
    %26 = vector.extract_strided_slice %20 {offsets = [0, 1, 0], sizes = [16, 15, 8], strides = [1, 1, 1]} : vector<16x16x8xbf16> to vector<16x15x8xbf16>
    %27 = tpu.concatenate %26, %21 in 1 : vector<16x15x8xbf16>, vector<16x1x8xbf16> -> vector<16x16x8xbf16>
    %c1_19 = arith.constant 1 : index
    %c0_20 = arith.constant 0 : index
    %c16 = arith.constant 16 : index
    %28 = vector.load %arg15[%c1_19, %c0_20, %c16] : memref<18x16x24xbf16, #tpu.memory_space<vmem>>, vector<16x16x8xbf16>
    tpu.vector_store %arg15[%c1_19, %c0_20, %c16], %27 {strides = array<i32>} : memref<18x16x24xbf16, #tpu.memory_space<vmem>>, vector<16x16x8xbf16>,
    %c0_21 = arith.constant 0 : index
    %c0_22 = arith.constant 0 : index
    %c0_23 = arith.constant 0 : index
    %29 = vector.load %arg15[%c0_21, %c0_22, %c0_23] : memref<18x16x24xbf16, #tpu.memory_space<vmem>>, vector<16x16x24xbf16>
    %30 = vector.shape_cast %29 : vector<16x16x24xbf16> to vector<256x24xbf16>
    %c0_24 = arith.constant 0 : index
    %c0_25 = arith.constant 0 : index
    %c0_26 = arith.constant 0 : index
    %31 = vector.load %arg4[%c0_24, %c0_25, %c0_26] : memref<3x24x8xbf16, #tpu.memory_space<vmem>>, vector<1x24x8xbf16>
    %32 = vector.shape_cast %31 : vector<1x24x8xbf16> to vector<24x8xbf16>
    %cst_27 = arith.constant dense<0.000000e+00> : vector<256x8xf32>
    %33 = tpu.matmul %30, %32, %cst_27 {dimension_numbers = #tpu.dot_dimension_numbers<[1], [0], [0], [1], [0, 0, 1, 1], [], []>} : vector<256x24xbf16>, vector<24x8xbf16>, vector<256x8xf32> -> vector<256x8xf32>
    %c1_28 = arith.constant 1 : index
    %c0_29 = arith.constant 0 : index
    %c0_30 = arith.constant 0 : index
    %34 = vector.load %arg15[%c1_28, %c0_29, %c0_30] : memref<18x16x24xbf16, #tpu.memory_space<vmem>>, vector<16x16x24xbf16>
    %35 = vector.shape_cast %34 : vector<16x16x24xbf16> to vector<256x24xbf16>
    %c1_31 = arith.constant 1 : index
    %c0_32 = arith.constant 0 : index
    %c0_33 = arith.constant 0 : index
    %36 = vector.load %arg4[%c1_31, %c0_32, %c0_33] : memref<3x24x8xbf16, #tpu.memory_space<vmem>>, vector<1x24x8xbf16>
    %37 = vector.shape_cast %36 : vector<1x24x8xbf16> to vector<24x8xbf16>
    %cst_34 = arith.constant dense<0.000000e+00> : vector<256x8xf32>
    %38 = tpu.matmul %35, %37, %cst_34 {dimension_numbers = #tpu.dot_dimension_numbers<[1], [0], [0], [1], [0, 0, 1, 1], [], []>} : vector<256x24xbf16>, vector<24x8xbf16>, vector<256x8xf32> -> vector<256x8xf32>
    %39 = arith.addf %33, %38 : vector<256x8xf32>
    %c2 = arith.constant 2 : index
    %c0_35 = arith.constant 0 : index
    %c0_36 = arith.constant 0 : index
    %40 = vector.load %arg15[%c2, %c0_35, %c0_36] : memref<18x16x24xbf16, #tpu.memory_space<vmem>>, vector<16x16x24xbf16>
    %41 = vector.shape_cast %40 : vector<16x16x24xbf16> to vector<256x24xbf16>
    %c2_37 = arith.constant 2 : index
    %c0_38 = arith.constant 0 : index
    %c0_39 = arith.constant 0 : index
    %42 = vector.load %arg4[%c2_37, %c0_38, %c0_39] : memref<3x24x8xbf16, #tpu.memory_space<vmem>>, vector<1x24x8xbf16>
    %43 = vector.shape_cast %42 : vector<1x24x8xbf16> to vector<24x8xbf16>
    %cst_40 = arith.constant dense<0.000000e+00> : vector<256x8xf32>
    %44 = tpu.matmul %41, %43, %cst_40 {dimension_numbers = #tpu.dot_dimension_numbers<[1], [0], [0], [1], [0, 0, 1, 1], [], []>} : vector<256x24xbf16>, vector<24x8xbf16>, vector<256x8xf32> -> vector<256x8xf32>
    %45 = arith.addf %39, %44 : vector<256x8xf32>
    %c0_41 = arith.constant 0 : index
    %c0_42 = arith.constant 0 : index
    %46 = vector.load %arg5[%c0_41, %c0_42] : memref<1x8xf32, #tpu.memory_space<vmem>>, vector<1x8xf32>
    %47 = vector.broadcast %46 : vector<1x8xf32> to vector<256x8xf32>
    %48 = arith.addf %45, %47 : vector<256x8xf32>
    %cst_43 = arith.constant 0.000000e+00 : f32
    %49 = vector.broadcast %cst_43 : f32 to vector<256x8xf32>
    %50 = arith.subf %49, %48 : vector<256x8xf32>
    %51 = math.exp %50 : vector<256x8xf32>
    %cst_44 = arith.constant 1.000000e+00 : f32
    %52 = vector.broadcast %cst_44 : f32 to vector<256x8xf32>
    %53 = arith.addf %52, %51 : vector<256x8xf32>
    %54 = tpu.reciprocal %53 {approx = true} : vector<256x8xf32> -> vector<256x8xf32>
    %55 = arith.mulf %48, %54 : vector<256x8xf32>
    %56 = arith.truncf %55 : vector<256x8xf32> to vector<256x8xbf16>
    %c0_45 = arith.constant 0 : index
    %c0_46 = arith.constant 0 : index
    %57 = vector.load %arg6[%c0_45, %c0_46] : memref<8x8xbf16, #tpu.memory_space<vmem>>, vector<8x8xbf16>
    %cst_47 = arith.constant dense<0.000000e+00> : vector<256x8xf32>
    %58 = tpu.matmul %56, %57, %cst_47 {dimension_numbers = #tpu.dot_dimension_numbers<[1], [0], [0], [1], [0, 0, 1, 1], [], []>} : vector<256x8xbf16>, vector<8x8xbf16>, vector<256x8xf32> -> vector<256x8xf32>
    %c0_48 = arith.constant 0 : index
    %c0_49 = arith.constant 0 : index
    %59 = vector.load %arg7[%c0_48, %c0_49] : memref<1x8xf32, #tpu.memory_space<vmem>>, vector<1x8xf32>
    %60 = vector.broadcast %59 : vector<1x8xf32> to vector<256x8xf32>
    %61 = arith.addf %58, %60 : vector<256x8xf32>
    %cst_50 = arith.constant 0.000000e+00 : f32
    %62 = vector.broadcast %cst_50 : f32 to vector<256x8xf32>
    %63 = arith.subf %62, %61 : vector<256x8xf32>
    %64 = math.exp %63 : vector<256x8xf32>
    %cst_51 = arith.constant 1.000000e+00 : f32
    %65 = vector.broadcast %cst_51 : f32 to vector<256x8xf32>
    %66 = arith.addf %65, %64 : vector<256x8xf32>
    %67 = tpu.reciprocal %66 {approx = true} : vector<256x8xf32> -> vector<256x8xf32>
    %68 = arith.mulf %61, %67 : vector<256x8xf32>
    %69 = arith.truncf %68 : vector<256x8xf32> to vector<256x8xbf16>
    %c0_52 = arith.constant 0 : index
    %c0_53 = arith.constant 0 : index
    %c0_54 = arith.constant 0 : index
    %70 = vector.load %arg8[%c0_52, %c0_53, %c0_54] : memref<4x8x8xbf16, #tpu.memory_space<vmem>>, vector<1x8x8xbf16>
    %71 = vector.shape_cast %70 : vector<1x8x8xbf16> to vector<8x8xbf16>
    %cst_55 = arith.constant dense<0.000000e+00> : vector<256x8xf32>
    %72 = tpu.matmul %69, %71, %cst_55 {dimension_numbers = #tpu.dot_dimension_numbers<[1], [0], [0], [1], [0, 0, 1, 1], [], []>} : vector<256x8xbf16>, vector<8x8xbf16>, vector<256x8xf32> -> vector<256x8xf32>
    %73 = vector.shape_cast %69 : vector<256x8xbf16> to vector<16x16x8xbf16>
    %cst_56 = arith.constant 0xFF80 : bf16
    %74 = vector.broadcast %cst_56 : bf16 to vector<16x2x8xbf16>
    %75 = tpu.concatenate %74, %73, %74 in 1 : vector<16x2x8xbf16>, vector<16x16x8xbf16>, vector<16x2x8xbf16> -> vector<16x20x8xbf16>
    %76 = vector.extract_strided_slice %75 {offsets = [0, 0, 0], sizes = [16, 16, 8], strides = [1, 1, 1]} : vector<16x20x8xbf16> to vector<16x16x8xbf16>
    %77 = vector.extract_strided_slice %75 {offsets = [0, 1, 0], sizes = [16, 16, 8], strides = [1, 1, 1]} : vector<16x20x8xbf16> to vector<16x16x8xbf16>
    %78 = arith.maximumf %76, %77 : vector<16x16x8xbf16>
    %79 = vector.extract_strided_slice %75 {offsets = [0, 2, 0], sizes = [16, 16, 8], strides = [1, 1, 1]} : vector<16x20x8xbf16> to vector<16x16x8xbf16>
    %80 = arith.maximumf %78, %79 : vector<16x16x8xbf16>
    %81 = vector.extract_strided_slice %75 {offsets = [0, 3, 0], sizes = [16, 16, 8], strides = [1, 1, 1]} : vector<16x20x8xbf16> to vector<16x16x8xbf16>
    %82 = arith.maximumf %80, %81 : vector<16x16x8xbf16>
    %83 = vector.extract_strided_slice %75 {offsets = [0, 4, 0], sizes = [16, 16, 8], strides = [1, 1, 1]} : vector<16x20x8xbf16> to vector<16x16x8xbf16>
    %84 = arith.maximumf %82, %83 : vector<16x16x8xbf16>
    %cst_57 = arith.constant 0xFF80 : bf16
    %85 = vector.broadcast %cst_57 : bf16 to vector<2x16x8xbf16>
    %86 = tpu.concatenate %85, %84, %85 in 0 : vector<2x16x8xbf16>, vector<16x16x8xbf16>, vector<2x16x8xbf16> -> vector<20x16x8xbf16>
    %87 = vector.extract_strided_slice %86 {offsets = [0, 0, 0], sizes = [16, 16, 8], strides = [1, 1, 1]} : vector<20x16x8xbf16> to vector<16x16x8xbf16>
    %88 = vector.extract_strided_slice %86 {offsets = [1, 0, 0], sizes = [16, 16, 8], strides = [1, 1, 1]} : vector<20x16x8xbf16> to vector<16x16x8xbf16>
    %89 = arith.maximumf %87, %88 : vector<16x16x8xbf16>
    %90 = vector.extract_strided_slice %86 {offsets = [2, 0, 0], sizes = [16, 16, 8], strides = [1, 1, 1]} : vector<20x16x8xbf16> to vector<16x16x8xbf16>
    %91 = arith.maximumf %89, %90 : vector<16x16x8xbf16>
    %92 = vector.extract_strided_slice %86 {offsets = [3, 0, 0], sizes = [16, 16, 8], strides = [1, 1, 1]} : vector<20x16x8xbf16> to vector<16x16x8xbf16>
    %93 = arith.maximumf %91, %92 : vector<16x16x8xbf16>
    %94 = vector.extract_strided_slice %86 {offsets = [4, 0, 0], sizes = [16, 16, 8], strides = [1, 1, 1]} : vector<20x16x8xbf16> to vector<16x16x8xbf16>
    %95 = arith.maximumf %93, %94 : vector<16x16x8xbf16>
    %96 = vector.shape_cast %95 : vector<16x16x8xbf16> to vector<256x8xbf16>
    %c1_58 = arith.constant 1 : index
    %c0_59 = arith.constant 0 : index
    %c0_60 = arith.constant 0 : index
    %97 = vector.load %arg8[%c1_58, %c0_59, %c0_60] : memref<4x8x8xbf16, #tpu.memory_space<vmem>>, vector<1x8x8xbf16>
    %98 = vector.shape_cast %97 : vector<1x8x8xbf16> to vector<8x8xbf16>
    %cst_61 = arith.constant dense<0.000000e+00> : vector<256x8xf32>
    %99 = tpu.matmul %96, %98, %cst_61 {dimension_numbers = #tpu.dot_dimension_numbers<[1], [0], [0], [1], [0, 0, 1, 1], [], []>} : vector<256x8xbf16>, vector<8x8xbf16>, vector<256x8xf32> -> vector<256x8xf32>
    %100 = arith.addf %72, %99 : vector<256x8xf32>
    %101 = vector.shape_cast %96 : vector<256x8xbf16> to vector<16x16x8xbf16>
    %cst_62 = arith.constant 0xFF80 : bf16
    %102 = vector.broadcast %cst_62 : bf16 to vector<16x2x8xbf16>
    %103 = tpu.concatenate %102, %101, %102 in 1 : vector<16x2x8xbf16>, vector<16x16x8xbf16>, vector<16x2x8xbf16> -> vector<16x20x8xbf16>
    %104 = vector.extract_strided_slice %103 {offsets = [0, 0, 0], sizes = [16, 16, 8], strides = [1, 1, 1]} : vector<16x20x8xbf16> to vector<16x16x8xbf16>
    %105 = vector.extract_strided_slice %103 {offsets = [0, 1, 0], sizes = [16, 16, 8], strides = [1, 1, 1]} : vector<16x20x8xbf16> to vector<16x16x8xbf16>
    %106 = arith.maximumf %104, %105 : vector<16x16x8xbf16>
    %107 = vector.extract_strided_slice %103 {offsets = [0, 2, 0], sizes = [16, 16, 8], strides = [1, 1, 1]} : vector<16x20x8xbf16> to vector<16x16x8xbf16>
    %108 = arith.maximumf %106, %107 : vector<16x16x8xbf16>
    %109 = vector.extract_strided_slice %103 {offsets = [0, 3, 0], sizes = [16, 16, 8], strides = [1, 1, 1]} : vector<16x20x8xbf16> to vector<16x16x8xbf16>
    %110 = arith.maximumf %108, %109 : vector<16x16x8xbf16>
    %111 = vector.extract_strided_slice %103 {offsets = [0, 4, 0], sizes = [16, 16, 8], strides = [1, 1, 1]} : vector<16x20x8xbf16> to vector<16x16x8xbf16>
    %112 = arith.maximumf %110, %111 : vector<16x16x8xbf16>
    %cst_63 = arith.constant 0xFF80 : bf16
    %113 = vector.broadcast %cst_63 : bf16 to vector<2x16x8xbf16>
    %114 = tpu.concatenate %113, %112, %113 in 0 : vector<2x16x8xbf16>, vector<16x16x8xbf16>, vector<2x16x8xbf16> -> vector<20x16x8xbf16>
    %115 = vector.extract_strided_slice %114 {offsets = [0, 0, 0], sizes = [16, 16, 8], strides = [1, 1, 1]} : vector<20x16x8xbf16> to vector<16x16x8xbf16>
    %116 = vector.extract_strided_slice %114 {offsets = [1, 0, 0], sizes = [16, 16, 8], strides = [1, 1, 1]} : vector<20x16x8xbf16> to vector<16x16x8xbf16>
    %117 = arith.maximumf %115, %116 : vector<16x16x8xbf16>
    %118 = vector.extract_strided_slice %114 {offsets = [2, 0, 0], sizes = [16, 16, 8], strides = [1, 1, 1]} : vector<20x16x8xbf16> to vector<16x16x8xbf16>
    %119 = arith.maximumf %117, %118 : vector<16x16x8xbf16>
    %120 = vector.extract_strided_slice %114 {offsets = [3, 0, 0], sizes = [16, 16, 8], strides = [1, 1, 1]} : vector<20x16x8xbf16> to vector<16x16x8xbf16>
    %121 = arith.maximumf %119, %120 : vector<16x16x8xbf16>
    %122 = vector.extract_strided_slice %114 {offsets = [4, 0, 0], sizes = [16, 16, 8], strides = [1, 1, 1]} : vector<20x16x8xbf16> to vector<16x16x8xbf16>
    %123 = arith.maximumf %121, %122 : vector<16x16x8xbf16>
    %124 = vector.shape_cast %123 : vector<16x16x8xbf16> to vector<256x8xbf16>
    %c2_64 = arith.constant 2 : index
    %c0_65 = arith.constant 0 : index
    %c0_66 = arith.constant 0 : index
    %125 = vector.load %arg8[%c2_64, %c0_65, %c0_66] : memref<4x8x8xbf16, #tpu.memory_space<vmem>>, vector<1x8x8xbf16>
    %126 = vector.shape_cast %125 : vector<1x8x8xbf16> to vector<8x8xbf16>
    %cst_67 = arith.constant dense<0.000000e+00> : vector<256x8xf32>
    %127 = tpu.matmul %124, %126, %cst_67 {dimension_numbers = #tpu.dot_dimension_numbers<[1], [0], [0], [1], [0, 0, 1, 1], [], []>} : vector<256x8xbf16>, vector<8x8xbf16>, vector<256x8xf32> -> vector<256x8xf32>
    %128 = arith.addf %100, %127 : vector<256x8xf32>
    %129 = vector.shape_cast %124 : vector<256x8xbf16> to vector<16x16x8xbf16>
    %cst_68 = arith.constant 0xFF80 : bf16
    %130 = vector.broadcast %cst_68 : bf16 to vector<16x2x8xbf16>
    %131 = tpu.concatenate %130, %129, %130 in 1 : vector<16x2x8xbf16>, vector<16x16x8xbf16>, vector<16x2x8xbf16> -> vector<16x20x8xbf16>
    %132 = vector.extract_strided_slice %131 {offsets = [0, 0, 0], sizes = [16, 16, 8], strides = [1, 1, 1]} : vector<16x20x8xbf16> to vector<16x16x8xbf16>
    %133 = vector.extract_strided_slice %131 {offsets = [0, 1, 0], sizes = [16, 16, 8], strides = [1, 1, 1]} : vector<16x20x8xbf16> to vector<16x16x8xbf16>
    %134 = arith.maximumf %132, %133 : vector<16x16x8xbf16>
    %135 = vector.extract_strided_slice %131 {offsets = [0, 2, 0], sizes = [16, 16, 8], strides = [1, 1, 1]} : vector<16x20x8xbf16> to vector<16x16x8xbf16>
    %136 = arith.maximumf %134, %135 : vector<16x16x8xbf16>
    %137 = vector.extract_strided_slice %131 {offsets = [0, 3, 0], sizes = [16, 16, 8], strides = [1, 1, 1]} : vector<16x20x8xbf16> to vector<16x16x8xbf16>
    %138 = arith.maximumf %136, %137 : vector<16x16x8xbf16>
    %139 = vector.extract_strided_slice %131 {offsets = [0, 4, 0], sizes = [16, 16, 8], strides = [1, 1, 1]} : vector<16x20x8xbf16> to vector<16x16x8xbf16>
    %140 = arith.maximumf %138, %139 : vector<16x16x8xbf16>
    %cst_69 = arith.constant 0xFF80 : bf16
    %141 = vector.broadcast %cst_69 : bf16 to vector<2x16x8xbf16>
    %142 = tpu.concatenate %141, %140, %141 in 0 : vector<2x16x8xbf16>, vector<16x16x8xbf16>, vector<2x16x8xbf16> -> vector<20x16x8xbf16>
    %143 = vector.extract_strided_slice %142 {offsets = [0, 0, 0], sizes = [16, 16, 8], strides = [1, 1, 1]} : vector<20x16x8xbf16> to vector<16x16x8xbf16>
    %144 = vector.extract_strided_slice %142 {offsets = [1, 0, 0], sizes = [16, 16, 8], strides = [1, 1, 1]} : vector<20x16x8xbf16> to vector<16x16x8xbf16>
    %145 = arith.maximumf %143, %144 : vector<16x16x8xbf16>
    %146 = vector.extract_strided_slice %142 {offsets = [2, 0, 0], sizes = [16, 16, 8], strides = [1, 1, 1]} : vector<20x16x8xbf16> to vector<16x16x8xbf16>
    %147 = arith.maximumf %145, %146 : vector<16x16x8xbf16>
    %148 = vector.extract_strided_slice %142 {offsets = [3, 0, 0], sizes = [16, 16, 8], strides = [1, 1, 1]} : vector<20x16x8xbf16> to vector<16x16x8xbf16>
    %149 = arith.maximumf %147, %148 : vector<16x16x8xbf16>
    %150 = vector.extract_strided_slice %142 {offsets = [4, 0, 0], sizes = [16, 16, 8], strides = [1, 1, 1]} : vector<20x16x8xbf16> to vector<16x16x8xbf16>
    %151 = arith.maximumf %149, %150 : vector<16x16x8xbf16>
    %152 = vector.shape_cast %151 : vector<16x16x8xbf16> to vector<256x8xbf16>
    %c3 = arith.constant 3 : index
    %c0_70 = arith.constant 0 : index
    %c0_71 = arith.constant 0 : index
    %153 = vector.load %arg8[%c3, %c0_70, %c0_71] : memref<4x8x8xbf16, #tpu.memory_space<vmem>>, vector<1x8x8xbf16>
    %154 = vector.shape_cast %153 : vector<1x8x8xbf16> to vector<8x8xbf16>
    %cst_72 = arith.constant dense<0.000000e+00> : vector<256x8xf32>
    %155 = tpu.matmul %152, %154, %cst_72 {dimension_numbers = #tpu.dot_dimension_numbers<[1], [0], [0], [1], [0, 0, 1, 1], [], []>} : vector<256x8xbf16>, vector<8x8xbf16>, vector<256x8xf32> -> vector<256x8xf32>
    %156 = arith.addf %128, %155 : vector<256x8xf32>
    %c0_73 = arith.constant 0 : index
    %c0_74 = arith.constant 0 : index
    %157 = vector.load %arg9[%c0_73, %c0_74] : memref<1x8xf32, #tpu.memory_space<vmem>>, vector<1x8xf32>
    %158 = vector.broadcast %157 : vector<1x8xf32> to vector<256x8xf32>
    %159 = arith.addf %156, %158 : vector<256x8xf32>
    %cst_75 = arith.constant 0.000000e+00 : f32
    %160 = vector.broadcast %cst_75 : f32 to vector<256x8xf32>
    %161 = arith.subf %160, %159 : vector<256x8xf32>
    %162 = math.exp %161 : vector<256x8xf32>
    %cst_76 = arith.constant 1.000000e+00 : f32
    %163 = vector.broadcast %cst_76 : f32 to vector<256x8xf32>
    %164 = arith.addf %163, %162 : vector<256x8xf32>
    %165 = tpu.reciprocal %164 {approx = true} : vector<256x8xf32> -> vector<256x8xf32>
    %166 = arith.mulf %159, %165 : vector<256x8xf32>
    %167 = arith.truncf %166 : vector<256x8xf32> to vector<256x8xbf16>
    %168 = vector.shape_cast %167 : vector<256x8xbf16> to vector<16x16x8xbf16>
    %cst_77 = arith.constant 0.000000e+00 : bf16
    %169 = vector.broadcast %cst_77 : bf16 to vector<16x1x8xbf16>
    %170 = vector.extract_strided_slice %168 {offsets = [0, 0, 0], sizes = [16, 15, 8], strides = [1, 1, 1]} : vector<16x16x8xbf16> to vector<16x15x8xbf16>
    %171 = tpu.concatenate %169, %170 in 1 : vector<16x1x8xbf16>, vector<16x15x8xbf16> -> vector<16x16x8xbf16>
    %c1_78 = arith.constant 1 : index
    %c0_79 = arith.constant 0 : index
    %c0_80 = arith.constant 0 : index
    %172 = vector.load %arg15[%c1_78, %c0_79, %c0_80] : memref<18x16x24xbf16, #tpu.memory_space<vmem>>, vector<16x16x8xbf16>
    tpu.vector_store %arg15[%c1_78, %c0_79, %c0_80], %171 {strides = array<i32>} : memref<18x16x24xbf16, #tpu.memory_space<vmem>>, vector<16x16x8xbf16>,
    %c1_81 = arith.constant 1 : index
    %c0_82 = arith.constant 0 : index
    %c8_83 = arith.constant 8 : index
    %173 = vector.load %arg15[%c1_81, %c0_82, %c8_83] : memref<18x16x24xbf16, #tpu.memory_space<vmem>>, vector<16x16x8xbf16>
    tpu.vector_store %arg15[%c1_81, %c0_82, %c8_83], %168 {strides = array<i32>} : memref<18x16x24xbf16, #tpu.memory_space<vmem>>, vector<16x16x8xbf16>,
    %174 = vector.extract_strided_slice %168 {offsets = [0, 1, 0], sizes = [16, 15, 8], strides = [1, 1, 1]} : vector<16x16x8xbf16> to vector<16x15x8xbf16>
    %175 = tpu.concatenate %174, %169 in 1 : vector<16x15x8xbf16>, vector<16x1x8xbf16> -> vector<16x16x8xbf16>
    %c1_84 = arith.constant 1 : index
    %c0_85 = arith.constant 0 : index
    %c16_86 = arith.constant 16 : index
    %176 = vector.load %arg15[%c1_84, %c0_85, %c16_86] : memref<18x16x24xbf16, #tpu.memory_space<vmem>>, vector<16x16x8xbf16>
    tpu.vector_store %arg15[%c1_84, %c0_85, %c16_86], %175 {strides = array<i32>} : memref<18x16x24xbf16, #tpu.memory_space<vmem>>, vector<16x16x8xbf16>,
    %c0_87 = arith.constant 0 : index
    %c0_88 = arith.constant 0 : index
    %c0_89 = arith.constant 0 : index
    %177 = vector.load %arg15[%c0_87, %c0_88, %c0_89] : memref<18x16x24xbf16, #tpu.memory_space<vmem>>, vector<16x16x24xbf16>
    %178 = vector.shape_cast %177 : vector<16x16x24xbf16> to vector<256x24xbf16>
    %c0_90 = arith.constant 0 : index
    %c0_91 = arith.constant 0 : index
    %c0_92 = arith.constant 0 : index
    %179 = vector.load %arg10[%c0_90, %c0_91, %c0_92] : memref<3x24x8xbf16, #tpu.memory_space<vmem>>, vector<1x24x8xbf16>
    %180 = vector.shape_cast %179 : vector<1x24x8xbf16> to vector<24x8xbf16>
    %cst_93 = arith.constant dense<0.000000e+00> : vector<256x8xf32>
    %181 = tpu.matmul %178, %180, %cst_93 {dimension_numbers = #tpu.dot_dimension_numbers<[1], [0], [0], [1], [0, 0, 1, 1], [], []>} : vector<256x24xbf16>, vector<24x8xbf16>, vector<256x8xf32> -> vector<256x8xf32>
    %c1_94 = arith.constant 1 : index
    %c0_95 = arith.constant 0 : index
    %c0_96 = arith.constant 0 : index
    %182 = vector.load %arg15[%c1_94, %c0_95, %c0_96] : memref<18x16x24xbf16, #tpu.memory_space<vmem>>, vector<16x16x24xbf16>
    %183 = vector.shape_cast %182 : vector<16x16x24xbf16> to vector<256x24xbf16>
    %c1_97 = arith.constant 1 : index
    %c0_98 = arith.constant 0 : index
    %c0_99 = arith.constant 0 : index
    %184 = vector.load %arg10[%c1_97, %c0_98, %c0_99] : memref<3x24x8xbf16, #tpu.memory_space<vmem>>, vector<1x24x8xbf16>
    %185 = vector.shape_cast %184 : vector<1x24x8xbf16> to vector<24x8xbf16>
    %cst_100 = arith.constant dense<0.000000e+00> : vector<256x8xf32>
    %186 = tpu.matmul %183, %185, %cst_100 {dimension_numbers = #tpu.dot_dimension_numbers<[1], [0], [0], [1], [0, 0, 1, 1], [], []>} : vector<256x24xbf16>, vector<24x8xbf16>, vector<256x8xf32> -> vector<256x8xf32>
    %187 = arith.addf %181, %186 : vector<256x8xf32>
    %c2_101 = arith.constant 2 : index
    %c0_102 = arith.constant 0 : index
    %c0_103 = arith.constant 0 : index
    %188 = vector.load %arg15[%c2_101, %c0_102, %c0_103] : memref<18x16x24xbf16, #tpu.memory_space<vmem>>, vector<16x16x24xbf16>
    %189 = vector.shape_cast %188 : vector<16x16x24xbf16> to vector<256x24xbf16>
    %c2_104 = arith.constant 2 : index
    %c0_105 = arith.constant 0 : index
    %c0_106 = arith.constant 0 : index
    %190 = vector.load %arg10[%c2_104, %c0_105, %c0_106] : memref<3x24x8xbf16, #tpu.memory_space<vmem>>, vector<1x24x8xbf16>
    %191 = vector.shape_cast %190 : vector<1x24x8xbf16> to vector<24x8xbf16>
    %cst_107 = arith.constant dense<0.000000e+00> : vector<256x8xf32>
    %192 = tpu.matmul %189, %191, %cst_107 {dimension_numbers = #tpu.dot_dimension_numbers<[1], [0], [0], [1], [0, 0, 1, 1], [], []>} : vector<256x24xbf16>, vector<24x8xbf16>, vector<256x8xf32> -> vector<256x8xf32>
    %193 = arith.addf %187, %192 : vector<256x8xf32>
    %c0_108 = arith.constant 0 : index
    %c0_109 = arith.constant 0 : index
    %194 = vector.load %arg11[%c0_108, %c0_109] : memref<1x8xf32, #tpu.memory_space<vmem>>, vector<1x8xf32>
    %195 = vector.broadcast %194 : vector<1x8xf32> to vector<256x8xf32>
    %196 = arith.addf %193, %195 : vector<256x8xf32>
    %cst_110 = arith.constant 0.000000e+00 : f32
    %197 = vector.broadcast %cst_110 : f32 to vector<256x8xf32>
    %198 = arith.subf %197, %196 : vector<256x8xf32>
    %199 = math.exp %198 : vector<256x8xf32>
    %cst_111 = arith.constant 1.000000e+00 : f32
    %200 = vector.broadcast %cst_111 : f32 to vector<256x8xf32>
    %201 = arith.addf %200, %199 : vector<256x8xf32>
    %202 = tpu.reciprocal %201 {approx = true} : vector<256x8xf32> -> vector<256x8xf32>
    %203 = arith.mulf %196, %202 : vector<256x8xf32>
    %204 = arith.truncf %203 : vector<256x8xf32> to vector<256x8xbf16>
    %c0_112 = arith.constant 0 : index
    %c0_113 = arith.constant 0 : index
    %c0_114 = arith.constant 0 : index
    %205 = vector.load %arg12[%c0_112, %c0_113, %c0_114] : memref<2x8x8xbf16, #tpu.memory_space<vmem>>, vector<1x8x8xbf16>
    %206 = vector.shape_cast %205 : vector<1x8x8xbf16> to vector<8x8xbf16>
    %cst_115 = arith.constant dense<0.000000e+00> : vector<256x8xf32>
    %207 = tpu.matmul %204, %206, %cst_115 {dimension_numbers = #tpu.dot_dimension_numbers<[1], [0], [0], [1], [0, 0, 1, 1], [], []>} : vector<256x8xbf16>, vector<8x8xbf16>, vector<256x8xf32> -> vector<256x8xf32>
    %c1_116 = arith.constant 1 : index
    %c0_117 = arith.constant 0 : index
    %c0_118 = arith.constant 0 : index
    %208 = vector.load %arg12[%c1_116, %c0_117, %c0_118] : memref<2x8x8xbf16, #tpu.memory_space<vmem>>, vector<1x8x8xbf16>
    %209 = vector.shape_cast %208 : vector<1x8x8xbf16> to vector<8x8xbf16>
    %cst_119 = arith.constant dense<0.000000e+00> : vector<256x8xf32>
    %210 = tpu.matmul %19, %209, %cst_119 {dimension_numbers = #tpu.dot_dimension_numbers<[1], [0], [0], [1], [0, 0, 1, 1], [], []>} : vector<256x8xbf16>, vector<8x8xbf16>, vector<256x8xf32> -> vector<256x8xf32>
    %211 = arith.addf %207, %210 : vector<256x8xf32>
    %c0_120 = arith.constant 0 : index
    %c0_121 = arith.constant 0 : index
    %212 = vector.load %arg13[%c0_120, %c0_121] : memref<1x8xf32, #tpu.memory_space<vmem>>, vector<1x8xf32>
    %213 = vector.broadcast %212 : vector<1x8xf32> to vector<256x8xf32>
    %214 = arith.addf %211, %213 : vector<256x8xf32>
    %cst_122 = arith.constant 0.000000e+00 : f32
    %215 = vector.broadcast %cst_122 : f32 to vector<256x8xf32>
    %216 = arith.subf %215, %214 : vector<256x8xf32>
    %217 = math.exp %216 : vector<256x8xf32>
    %cst_123 = arith.constant 1.000000e+00 : f32
    %218 = vector.broadcast %cst_123 : f32 to vector<256x8xf32>
    %219 = arith.addf %218, %217 : vector<256x8xf32>
    %220 = tpu.reciprocal %219 {approx = true} : vector<256x8xf32> -> vector<256x8xf32>
    %221 = arith.mulf %214, %220 : vector<256x8xf32>
    %c0_124 = arith.constant 0 : index
    %c0_125 = arith.constant 0 : index
    %c0_126 = arith.constant 0 : index
    %222 = vector.load %arg14[%c0_124, %c0_125, %c0_126] : memref<1x256x8xf32, #tpu.memory_space<vmem>>, vector<1x256x8xf32>
    %223 = vector.shape_cast %222 : vector<1x256x8xf32> to vector<256x8xf32>
    %224 = vector.shape_cast %221 : vector<256x8xf32> to vector<1x256x8xf32>
    tpu.vector_store %arg14[%c0_124, %c0_125, %c0_126], %224 {strides = array<i32>} : memref<1x256x8xf32, #tpu.memory_space<vmem>>, vector<1x256x8xf32>,
    return
  }
  func.func @transform_0(%arg0: i32) -> (i32, i32, i32) {
    %c0_i32 = arith.constant 0 : i32
    %c0_i32_0 = arith.constant 0 : i32
    %c0_i32_1 = arith.constant 0 : i32
    return %arg0, %c0_i32, %c0_i32_0 : i32, i32, i32
  }
  func.func @transform_1(%arg0: i32) -> (i32, i32) {
    %c0_i32 = arith.constant 0 : i32
    %c0_i32_0 = arith.constant 0 : i32
    %c0_i32_1 = arith.constant 0 : i32
    return %c0_i32, %c0_i32_0 : i32, i32
  }
  func.func @transform_2(%arg0: i32) -> (i32, i32) {
    %c0_i32 = arith.constant 0 : i32
    %c0_i32_0 = arith.constant 0 : i32
    %c0_i32_1 = arith.constant 0 : i32
    return %c0_i32, %c0_i32_0 : i32, i32
  }
  func.func @transform_3(%arg0: i32) -> (i32, i32, i32) {
    %c0_i32 = arith.constant 0 : i32
    %c0_i32_0 = arith.constant 0 : i32
    %c0_i32_1 = arith.constant 0 : i32
    %c0_i32_2 = arith.constant 0 : i32
    return %c0_i32, %c0_i32_0, %c0_i32_1 : i32, i32, i32
  }
  func.func @transform_4(%arg0: i32) -> (i32, i32) {
    %c0_i32 = arith.constant 0 : i32
    %c0_i32_0 = arith.constant 0 : i32
    %c0_i32_1 = arith.constant 0 : i32
    return %c0_i32, %c0_i32_0 : i32, i32
  }
  func.func @transform_5(%arg0: i32) -> (i32, i32) {
    %c0_i32 = arith.constant 0 : i32
    %c0_i32_0 = arith.constant 0 : i32
    %c0_i32_1 = arith.constant 0 : i32
    return %c0_i32, %c0_i32_0 : i32, i32
  }
  func.func @transform_6(%arg0: i32) -> (i32, i32) {
    %c0_i32 = arith.constant 0 : i32
    %c0_i32_0 = arith.constant 0 : i32
    %c0_i32_1 = arith.constant 0 : i32
    return %c0_i32, %c0_i32_0 : i32, i32
  }
  func.func @transform_7(%arg0: i32) -> (i32, i32, i32) {
    %c0_i32 = arith.constant 0 : i32
    %c0_i32_0 = arith.constant 0 : i32
    %c0_i32_1 = arith.constant 0 : i32
    %c0_i32_2 = arith.constant 0 : i32
    return %c0_i32, %c0_i32_0, %c0_i32_1 : i32, i32, i32
  }
  func.func @transform_8(%arg0: i32) -> (i32, i32) {
    %c0_i32 = arith.constant 0 : i32
    %c0_i32_0 = arith.constant 0 : i32
    %c0_i32_1 = arith.constant 0 : i32
    return %c0_i32, %c0_i32_0 : i32, i32
  }
  func.func @transform_9(%arg0: i32) -> (i32, i32, i32) {
    %c0_i32 = arith.constant 0 : i32
    %c0_i32_0 = arith.constant 0 : i32
    %c0_i32_1 = arith.constant 0 : i32
    %c0_i32_2 = arith.constant 0 : i32
    return %c0_i32, %c0_i32_0, %c0_i32_1 : i32, i32, i32
  }
  func.func @transform_10(%arg0: i32) -> (i32, i32) {
    %c0_i32 = arith.constant 0 : i32
    %c0_i32_0 = arith.constant 0 : i32
    %c0_i32_1 = arith.constant 0 : i32
    return %c0_i32, %c0_i32_0 : i32, i32
  }
  func.func @transform_11(%arg0: i32) -> (i32, i32, i32) {
    %c0_i32 = arith.constant 0 : i32
    %c0_i32_0 = arith.constant 0 : i32
    %c0_i32_1 = arith.constant 0 : i32
    %c0_i32_2 = arith.constant 0 : i32
    return %c0_i32, %c0_i32_0, %c0_i32_1 : i32, i32, i32
  }
  func.func @transform_12(%arg0: i32) -> (i32, i32) {
    %c0_i32 = arith.constant 0 : i32
    %c0_i32_0 = arith.constant 0 : i32
    %c0_i32_1 = arith.constant 0 : i32
    return %c0_i32, %c0_i32_0 : i32, i32
  }
  func.func @transform_13(%arg0: i32) -> (i32, i32, i32) {
    %c0_i32 = arith.constant 0 : i32
    %c0_i32_0 = arith.constant 0 : i32
    %c0_i32_1 = arith.constant 0 : i32
    return %arg0, %c0_i32, %c0_i32_0 : i32, i32, i32
  }
}

</mosaic_0001>

<bundles_post_ra>
// kernel: tpu_custom_call.1
= control target key start
LH: loop header
LB: loop body
LE: loop exit
PB: predicated region body
PF: predicated region fallthrough
CT: control target
= control target key end

     0   :  { %s10451_s25 = smov 0   ;;  %s14213_s0 = inlined_call_operand.vmem [shape: bf16[2,256,8], index: 0, kind: input, shape index: {}]   ;;  %s14214_s1 = inlined_call_operand.vmem [shape: bf16[8,16], index: 1, kind: input, shape index: {}]   ;;  %s14215_s2 = inlined_call_operand.vmem [shape: f32[1,16], index: 2, kind: input, shape index: {}]   ;;  %s14216_s3 = inlined_call_operand.vmem [shape: bf16[3,24,8], index: 3, kind: input, shape index: {}]   ;;  %s14217_s4 = inlined_call_operand.vmem [shape: f32[1,8], index: 4, kind: input, shape index: {}]   ;;  %s14218_s5 = inlined_call_operand.vmem [shape: bf16[8,8], index: 5, kind: input, shape index: {}]   ;;  %s14219_s6 = inlined_call_operand.vmem [shape: f32[1,8], index: 6, kind: input, shape index: {}]   ;;  %s14220_s7 = inlined_call_operand.vmem [shape: bf16[4,8,8], index: 7, kind: input, shape index: {}]   ;;  %s14221_s8 = inlined_call_operand.vmem [shape: f32[1,8], index: 8, kind: input, shape index: {}]   ;;  %s14222_s9 = inlined_call_operand.vmem [shape: bf16[3,24,8], index: 9, kind: input, shape index: {}]   ;;  %s14223_s10 = inlined_call_operand.vmem [shape: f32[1,8], index: 10, kind: input, shape index: {}]   ;;  %s14224_s11 = inlined_call_operand.vmem [shape: bf16[2,8,8], index: 11, kind: input, shape index: {}]   ;;  %s14225_s12 = inlined_call_operand.vmem [shape: f32[1,8], index: 12, kind: input, shape index: {}]   ;;  %s14226_s13 = inlined_call_operand.vmem [shape: f32[2,256,8], index: 13, kind: output, shape index: {}]  }
   0x1 LB: > { %s8272_s26 = sadd.s32 4294967295, %s10375_s25   ;;  %p8276_p0 = scmp.ge.s32.totalorder %s10375_s25, 1  ;;  %s10375_s25 = sphi %s10451_s25, %s23_s25  }
   0x2   : > { %p387_p1 = scmp.lt.s32.totalorder %s10375_s25, 3 }
   0x4   : > { %p388_p2 = pnand %p8276_p0, %p387_p1 }
   0x6   : > { %391 = sbr.rel (%p388_p2) target bundleno = 2540 (0x9ec), region = 72 }
   0xd   : > { %v479_v0 = vld [vmem:[%s14214_s1] sm:$0xf]  ;;  %vm616_vm0 = vcmask 1043456   ;;  %p431_p3 = scmp.lt.s32.totalorder %s8272_s26, 1  ;;  %vm567_vm1 = vcmask 64512   ;;  %v9589_v18 = vld [vmem:[%s14216_s3 + $0xc] sm:$0xff]  }
   0xe   : > { %9547 = vmatprep.subr.msk.bf16.mxu1 %vm616_vm0, %v479_v0  ;;  %v618_v1 = vsel %vm616_vm0, %v479_v0, 0  ;;  %v9590_v19 = vld [vmem:[%s14216_s3 + $0x14] ss:$0 sps:$4 sm:$0xff]   ;;  %v10515_v21 = vld [vmem:[%s14215_s2] ss:$0 sm:$0xff]  ;;  %vm1282_vm2 = vcmask 1047552  }
   0xf   : > { %8804 = vmatpush3.bf16.msra.mxu1 %v618_v1  ;;  %s14639_s26 = smov (!%p431_p3, %s8272_s26), 1  ;;  %v1479_v20 = vsel %vm616_vm0, %v9590_v19, 0  ;;  %vm1283_vm3 = vsmask.f32 7424  ;;  %s10377_s22 = smov 8   ;;  %vm1117_vm5 = vcmask 1040384  }
  0x10   : > { %s8557_s29 = sshll.u32 %s14639_s26, 7  ;;  %8837 = vmatprep.subr.bf16.mxu1 %v9589_v18  ;;  %vm10637_vm4 = vmand %vm1282_vm2, %vm1283_vm3  ;;  %s10378_s23 = smov 16   ;;  %vm1118_vm6 = vsmask.f32 256  ;;  %vm443_vm8 = vcmask 195584   ;;  %vm1217_vm9 = vcmask 130112  }
  0x11   : > { %s10470_s15 = scalar_lea.vmem %s14213_s0, %s8557_s29  ;;  %vm10823_vm7 = vmand %vm1117_vm5, %vm1118_vm6  ;;  %vm1365_vm10 = vcmask 195712   ;;  %vm3135_vm11 = vcmask 1046528   ;;  %vm3393_vm12 = vcmask 1045504   ;;  %vm3216_vm13 = vsmask.f32 6400  ;;  %s8558_s30 = sshll.u32 %s14639_s26, 8 }
  0x12   : > { %v9573_v2 = vld [vmem:[%s10470_s15] sm:$0xff]   ;;  %v9574_v3 = vld [vmem:[%s10470_s15 + $0x8] sm:$0xff]   ;;  %v9575_v4 = vld [vmem:[%s10470_s15 + $0x10] sm:$0xff]  }
  0x13   : > { %8805 = vmatprep.mubr.msk.bf16.mxu1 %vm567_vm1, %v9573_v2  ;;  %v9576_v5 = vld [vmem:[%s10470_s15 + $0x18] sm:$0xff]   ;;  %v9577_v6 = vld [vmem:[%s10470_s15 + $0x20] sm:$0xff]   ;;  %v9578_v7 = vld [vmem:[%s10470_s15 + $0x28] sm:$0xff]  }
  0x14   : > { %8806 = vmatmul.mubr.msk.bf16.vlgmr.msra.gmra.mrb[0].mxu1 %vm567_vm1, %v9574_v3  ;;  %v9579_v8 = vld [vmem:[%s10470_s15 + $0x30] sm:$0xff]   ;;  %v9580_v9 = vld [vmem:[%s10470_s15 + $0x38] sm:$0xff]   ;;  %v9581_v10 = vld [vmem:[%s10470_s15 + $0x40] sm:$0xff]  }
  0x15   : > { %8809 = vmatprep.mubr.msk.bf16.mxu1 %vm567_vm1, %v9575_v4  ;;  %v9582_v11 = vld [vmem:[%s10470_s15 + $0x48] sm:$0xff]   ;;  %v9583_v12 = vld [vmem:[%s10470_s15 + $0x50] sm:$0xff]   ;;  %v9584_v13 = vld [vmem:[%s10470_s15 + $0x58] sm:$0xff]   ;;  %8838 = vmatpush3.bf16.msra.mxu1 %v9589_v18 }
  0x16   : > { %v9585_v14 = vld [vmem:[%s10470_s15 + $0x60] sm:$0xff]   ;;  %v9586_v15 = vld [vmem:[%s10470_s15 + $0x68] sm:$0xff]   ;;  %v9587_v16 = vld [vmem:[%s10470_s15 + $0x70] sm:$0xff]   ;;  %9548 = vmatprep.subr.msk.bf16.mxu1 %vm616_vm0, %v9590_v19 }
  0x17   : > { %v9588_v17 = vld [vmem:[%s10470_s15 + $0x78] sm:$0xff]   ;;  %s10380_s15 = smov 120  }
  0x19   : > { %8840 = vmatpush3.bf16.msra.mxu1 %v1479_v20 }
  0x1c   : > { %8810 = vmatmul.mubr.msk.bf16.gmra.mrb[4].mxu1 %vm567_vm1, %v9576_v5 }
  0x1d   : > { %8813 = vmatprep.mubr.msk.bf16.mxu1 %vm567_vm1, %v9577_v6 }
  0x24   : > { %8814 = vmatmul.mubr.msk.bf16.gmra.mrb[8].mxu1 %vm567_vm1, %v9578_v7 }
  0x25   : > { %8817 = vmatprep.mubr.msk.bf16.mxu1 %vm567_vm1, %v9579_v8 }
  0x2c   : > { %8818 = vmatmul.mubr.msk.bf16.gmra.mrb[12].mxu1 %vm567_vm1, %v9580_v9 }
  0x2d   : > { %8821 = vmatprep.mubr.msk.bf16.mxu1 %vm567_vm1, %v9581_v10 }
  0x34   : > { %8822 = vmatmul.mubr.msk.bf16.gmra.mrb[16].mxu1 %vm567_vm1, %v9582_v11 }
  0x35   : > { %8825 = vmatprep.mubr.msk.bf16.mxu1 %vm567_vm1, %v9583_v12 }
  0x3c   : > { %8826 = vmatmul.mubr.msk.bf16.gmra.mrb[20].mxu1 %vm567_vm1, %v9584_v13 }
  0x3d   : > { %8829 = vmatprep.mubr.msk.bf16.mxu1 %vm567_vm1, %v9585_v14 }
  0x44   : > { %8830 = vmatmul.mubr.msk.bf16.gmra.mrb[24].mxu1 %vm567_vm1, %v9586_v15 }
  0x45   : > { %8833 = vmatprep.mubr.msk.bf16.mxu1 %vm567_vm1, %v9587_v16 }
  0x4c   : > { %8834 = vmatmul.mubr.msk.bf16.gmra.mrb[28].mxu1 %vm567_vm1, %v9588_v17 }
  0xe7   : > { %v8807_v22 = vpop.f32.mrb[0].mxu1 }
  0xe8   : > { %v10518_v23 = vadd.f32 %v8807_v22, %v10515_v21  ;;  %v654_v24 = vpop.f32.mrb[1].mxu1 }
  0xe9   : > { %v10521_v25 = vadd.f32 %v10515_v21, %v654_v24  ;;  %v8808_v26 = vpop.f32.mrb[2].mxu1 }
  0xea   : > { %v783_v27 = vsub.f32 0.0, %v10518_v23  ;;  %v10525_v28 = vadd.f32 %v8808_v26, %v10515_v21  ;;  %v657_v29 = vpop.f32.mrb[3].mxu1 }
  0xeb   : > { %v781_v30 = vsub.f32 0.0, %v10521_v25  ;;  %v10529_v31 = vadd.f32 %v10515_v21, %v657_v29 }
  0xec   : > { %v817_v32 = vmul.f32 1.442695, %v783_v27  ;;  %v784_v33 = vsub.f32 0.0, %v10525_v28 }
  0xed   : > { %v813_v34 = vmul.f32 1.442695, %v781_v30  ;;  %v782_v35 = vsub.f32 0.0, %v10529_v31 }
  0xee   : > { %9601 = vpow2.f32 %v817_v32  ;;  %v819_v36 = vmul.f32 1.442695, %v784_v33 }
  0xef   : > { %9603 = vpow2.f32 %v813_v34  ;;  %v815_v37 = vmul.f32 1.442695, %v782_v35  ;;  %v8811_v38 = vpop.f32.mrb[4].mxu1 }
  0xf0   : > { %9605 = vpow2.f32 %v819_v36  ;;  %v10534_v39 = vadd.f32 %v8811_v38, %v10515_v21  ;;  %v670_v40 = vpop.f32.mrb[5].mxu1 }
  0xf1   : > { %9607 = vpow2.f32 %v815_v37  ;;  %v10537_v41 = vadd.f32 %v10515_v21, %v670_v40  ;;  %v8812_v42 = vpop.f32.mrb[6].mxu1 }
  0xf2   : > { %v787_v43 = vsub.f32 0.0, %v10534_v39  ;;  %v10541_v44 = vadd.f32 %v8812_v42, %v10515_v21  ;;  %v673_v45 = vpop.f32.mrb[7].mxu1 }
  0xf3   : > { %v785_v46 = vsub.f32 0.0, %v10537_v41  ;;  %v10545_v47 = vadd.f32 %v10515_v21, %v673_v45 }
  0xf4   : > { %v825_v48 = vmul.f32 1.442695, %v787_v43  ;;  %v788_v49 = vsub.f32 0.0, %v10541_v44 }
  0xf5   : > { %v821_v50 = vmul.f32 1.442695, %v785_v46  ;;  %v786_v51 = vsub.f32 0.0, %v10545_v47 }
  0xf6   : > { %9609 = vpow2.f32 %v825_v48  ;;  %v827_v52 = vmul.f32 1.442695, %v788_v49 }
  0xf7   : > { %9611 = vpow2.f32 %v821_v50  ;;  %v823_v53 = vmul.f32 1.442695, %v786_v51  ;;  %v8815_v54 = vpop.f32.mrb[8].mxu1 }
  0xf8   : > { %v9602_v55 = vpop.eup %9601  ;;  %9613 = vpow2.f32 %v827_v52  ;;  %v10550_v56 = vadd.f32 %v8815_v54, %v10515_v21  ;;  %v686_v57 = vpop.f32.mrb[9].mxu1 }
  0xf9   : > { %v9604_v58 = vpop.eup %9603  ;;  %v879_v59 = vadd.f32 1.0, %v9602_v55  ;;  %9615 = vpow2.f32 %v823_v53  ;;  %v10553_v60 = vadd.f32 %v10515_v21, %v686_v57  ;;  %v8816_v61 = vpop.f32.mrb[10].mxu1 }
  0xfa   : > { %v9606_v62 = vpop.eup %9605  ;;  %v877_v63 = vadd.f32 1.0, %v9604_v58  ;;  %v791_v0 = vsub.f32 0.0, %v10550_v56  ;;  %v10557_v1 = vadd.f32 %v8816_v61, %v10515_v21  ;;  %v689_v2 = vpop.f32.mrb[11].mxu1 }
  0xfb   : > { %v9608_v3 = vpop.eup %9607  ;;  %9617 = vrcp.f32 %v879_v59  ;;  %v880_v4 = vadd.f32 1.0, %v9606_v62  ;;  %v789_v5 = vsub.f32 0.0, %v10553_v60  ;;  %v10561_v6 = vadd.f32 %v10515_v21, %v689_v2 }
  0xfc   : > { %9619 = vrcp.f32 %v877_v63  ;;  %v878_v7 = vadd.f32 1.0, %v9608_v3  ;;  %v833_v8 = vmul.f32 1.442695, %v791_v0  ;;  %v792_v9 = vsub.f32 0.0, %v10557_v1 }
  0xfd   : > { %9621 = vrcp.f32 %v880_v4  ;;  %v829_v10 = vmul.f32 1.442695, %v789_v5  ;;  %v790_v11 = vsub.f32 0.0, %v10561_v6 }
  0xfe   : > { %9623 = vrcp.f32 %v878_v7  ;;  %v835_v12 = vmul.f32 1.442695, %v792_v9 }
  0xff   : > { %9625 = vpow2.f32 %v833_v8  ;;  %v831_v13 = vmul.f32 1.442695, %v790_v11  ;;  %v8819_v14 = vpop.f32.mrb[12].mxu1 }
 0x100   : > { %v9610_v15 = vpop.eup %9609  ;;  %9627 = vpow2.f32 %v829_v10  ;;  %v10566_v16 = vadd.f32 %v8819_v14, %v10515_v21  ;;  %v702_v17 = vpop.f32.mrb[13].mxu1 }
 0x101   : > { %v9612_v18 = vpop.eup %9611  ;;  %v883_v19 = vadd.f32 1.0, %v9610_v15  ;;  %9629 = vpow2.f32 %v835_v12  ;;  %v10569_v20 = vadd.f32 %v10515_v21, %v702_v17  ;;  %v8820_v22 = vpop.f32.mrb[14].mxu1 }
 0x102   : > { %v9614_v24 = vpop.eup %9613  ;;  %v881_v26 = vadd.f32 1.0, %v9612_v18  ;;  %9631 = vpow2.f32 %v831_v13  ;;  %v795_v27 = vsub.f32 0.0, %v10566_v16  ;;  %v10573_v29 = vadd.f32 %v8820_v22, %v10515_v21  ;;  %v705_v30 = vpop.f32.mrb[15].mxu1 }
 0x103   : > { %v9616_v32 = vpop.eup %9615  ;;  %9633 = vrcp.f32 %v883_v19  ;;  %v884_v33 = vadd.f32 1.0, %v9614_v24  ;;  %v793_v34 = vsub.f32 0.0, %v10569_v20  ;;  %v10577_v35 = vadd.f32 %v10515_v21, %v705_v30 }
 0x104   : > { %9635 = vrcp.f32 %v881_v26  ;;  %v882_v36 = vadd.f32 1.0, %v9616_v32  ;;  %v841_v37 = vmul.f32 1.442695, %v795_v27  ;;  %v796_v38 = vsub.f32 0.0, %v10573_v29 }
 0x105   : > { %v9618_v40 = vpop.eup %9617  ;;  %9637 = vrcp.f32 %v884_v33  ;;  %v837_v42 = vmul.f32 1.442695, %v793_v34  ;;  %v794_v43 = vsub.f32 0.0, %v10577_v35 }
 0x106   : > { %v9620_v45 = vpop.eup %9619  ;;  %9639 = vrcp.f32 %v882_v36  ;;  %v843_v46 = vmul.f32 1.442695, %v796_v38  ;;  %v943_v52 = vmul.f32 %v9618_v40, %v10518_v23 }
 0x107   : > { %v9622_v48 = vpop.eup %9621  ;;  %9641 = vpow2.f32 %v841_v37  ;;  %v839_v49 = vmul.f32 1.442695, %v794_v43  ;;  %v8823_v50 = vpop.f32.mrb[16].mxu1  ;;  %v941_v58 = vmul.f32 %v9620_v45, %v10521_v25 }
 0x108   : > { %v9624_v51 = vpop.eup %9623  ;;  %v944_v53 = vmul.f32 %v9622_v48, %v10525_v28  ;;  %9643 = vpow2.f32 %v837_v42  ;;  %v10584_v54 = vadd.f32 %v8823_v50, %v10515_v21  ;;  %v718_v55 = vpop.f32.mrb[17].mxu1 }
 0x109   : > { %v9626_v57 = vpop.eup %9625  ;;  %v942_v59 = vmul.f32 %v9624_v51, %v10529_v31  ;;  %9645 = vpow2.f32 %v843_v46  ;;  %v10589_v61 = vadd.f32 %v10515_v21, %v718_v55  ;;  %v8824_v62 = vpop.f32.mrb[18].mxu1 }
 0x10a   : > { %v9628_v63 = vpop.eup %9627  ;;  %v10591_v0 = vpack.c.bf16 %v944_v53, %v943_v52  ;;  %v887_v23 = vadd.f32 1.0, %v9626_v57  ;;  %9647 = vpow2.f32 %v839_v49  ;;  %v799_v28 = vsub.f32 0.0, %v10584_v54  ;;  %v721_v2 = vpop.f32.mrb[19].mxu1 }
 0x10b   : > { %v9630_v3 = vpop.eup %9629  ;;  %v10594_v4 = vpack.c.bf16 %v942_v59, %v941_v58  ;;  %v885_v25 = vadd.f32 1.0, %v9628_v63  ;;  %v797_v31 = vsub.f32 0.0, %v10589_v61  ;;  %v10598_v5 = vadd.f32 %v8824_v62, %v10515_v21 }
 0x10c   : > { %14326 = vst [vmem:[#allocation3_spill] sm:$0xff] %v10591_v0  ;;  %v9632_v7 = vpop.eup %9631  ;;  %9649 = vrcp.f32 %v887_v23  ;;  %v888_v8 = vadd.f32 1.0, %v9630_v3  ;;  %v849_v9 = vmul.f32 1.442695, %v799_v28  ;;  %v10601_v10 = vadd.f32 %v10515_v21, %v721_v2 }
 0x10d   : > { %14327 = vst [vmem:[#allocation4_spill] sm:$0xff] %v10594_v4  ;;  %v9634_v11 = vpop.eup %9633  ;;  %9651 = vrcp.f32 %v885_v25  ;;  %v886_v12 = vadd.f32 1.0, %v9632_v7  ;;  %v845_v13 = vmul.f32 1.442695, %v797_v31  ;;  %v800_v14 = vsub.f32 0.0, %v10598_v5  ;;  %1169 = vrot.lane.b32.xlu0 %v10594_v4, %s10377_s22 }
 0x10e   : > { %v9636_v15 = vpop.eup %9635  ;;  %v947_v17 = vmul.f32 %v9634_v11, %v10534_v39  ;;  %9653 = vrcp.f32 %v888_v8  ;;  %v798_v18 = vsub.f32 0.0, %v10601_v10  ;;  %v990_v19 = vshrl.u32 %v10594_v4, 16 }
 0x10f   : > { %v9638_v22 = vpop.eup %9637  ;;  %v945_v24 = vmul.f32 %v9636_v15, %v10537_v41  ;;  %9655 = vrcp.f32 %v886_v12  ;;  %v851_v26 = vmul.f32 1.442695, %v800_v14  ;;  %v8827_v27 = vpop.f32.mrb[20].mxu1  ;;  %v993_v30 = vshll.u32 %v10594_v4, 16 }
 0x110   : > { %v9640_v32 = vpop.eup %9639  ;;  %v948_v33 = vmul.f32 %v9638_v22, %v10541_v44  ;;  %9657 = vpow2.f32 %v849_v9  ;;  %v847_v34 = vmul.f32 1.442695, %v798_v18  ;;  %v10613_v39 = vadd.f32 %v8827_v27, %v10515_v21  ;;  %v734_v36 = vpop.f32.mrb[21].mxu1 }
 0x111   : > { %v9642_v37 = vpop.eup %9641  ;;  %v946_v38 = vmul.f32 %v9640_v32, %v10545_v47  ;;  %9659 = vpow2.f32 %v845_v13  ;;  %v10617_v41 = vadd.f32 %v10515_v21, %v734_v36  ;;  %v8828_v40 = vpop.f32.mrb[22].mxu1  ;;  %1171 = vrot.lane.b32.xlu0 %v10591_v0, %s10377_s22  ;;  %v1234_v44 = vrot.slane %v993_v30, 1 }
 0x112   : > { %v9644_v42 = vpop.eup %9643  ;;  %v10623_v43 = vpack.c.bf16 %v948_v33, %v947_v17  ;;  %v891_v45 = vadd.f32 1.0, %v9642_v37  ;;  %9661 = vpow2.f32 %v851_v26  ;;  %v803_v46 = vsub.f32 0.0, %v10613_v39  ;;  %v737_v48 = vpop.f32.mrb[23].mxu1 }
 0x113   : > { %v9646_v47 = vpop.eup %9645  ;;  %v10626_v49 = vpack.c.bf16 %v946_v38, %v945_v24  ;;  %v889_v50 = vadd.f32 1.0, %v9644_v42  ;;  %9663 = vpow2.f32 %v847_v34  ;;  %v801_v51 = vsub.f32 0.0, %v10617_v41 }
 0x114   : > { %14328 = vst [vmem:[#allocation5_spill] sm:$0xff] %v10623_v43  ;;  %v9648_v52 = vpop.eup %9647  ;;  %9665 = vrcp.f32 %v891_v45  ;;  %v892_v53 = vadd.f32 1.0, %v9646_v47  ;;  %v857_v55 = vmul.f32 1.442695, %v803_v46  ;;  %v10630_v57 = vadd.f32 %v8828_v40, %v10515_v21 }
 0x115   : > { %14329 = vst [vmem:[#allocation6_spill] sm:$0xff] %v10626_v49  ;;  %9667 = vrcp.f32 %v889_v50  ;;  %v890_v58 = vadd.f32 1.0, %v9648_v52  ;;  %v853_v59 = vmul.f32 1.442695, %v801_v51  ;;  %v10633_v62 = vadd.f32 %v10515_v21, %v737_v48  ;;  %1173 = vrot.lane.b32.xlu0 %v10626_v49, %s10377_s22  ;;  %v10676_v52 = vld [vmem:[%s14216_s3] sm:$0xff]  }
 0x116   : > { %v14330_v63 = vmov 0  ;;  %v9650_v23 = vpop.eup %9649  ;;  %9669 = vrcp.f32 %v892_v53  ;;  %v804_v28 = vsub.f32 0.0, %v10630_v57  ;;  %v1235_v2 = vor.u32 %v1234_v44, %v990_v19  ;;  %8873 = vmatprep.subr.bf16.mxu1 %v10676_v52 }
 0x117   : > { %v14331_v63 = vsel %vm10637_vm4, 4294967295, %v14330_v63  ;;  %v9652_v3 = vpop.eup %9651  ;;  %v951_v25 = vmul.f32 %v9650_v23, %v10550_v56  ;;  %9671 = vrcp.f32 %v890_v58  ;;  %v802_v31 = vsub.f32 0.0, %v10633_v62  ;;  %v8831_v7 = vpop.f32.mrb[24].mxu1 }
 0x118   : > { %14332 = vst [vmem:[#allocation7_spill] sm:$0xff] %v14331_v63  ;;  %v9654_v8 = vpop.eup %9653  ;;  %9673 = vpow2.f32 %v857_v55  ;;  %v859_v9 = vmul.f32 1.442695, %v804_v28  ;;  %v1285_v11 = vsel %vm10637_vm4, %v1235_v2, 0  ;;  %v750_v12 = vpop.f32.mrb[25].mxu1  ;;  %v997_v13 = vshrl.u32 %v10591_v0, 16 }
 0x119   : > { %v9656_v14 = vpop.eup %9655  ;;  %v952_v15 = vmul.f32 %v9654_v8, %v10557_v1  ;;  %9675 = vpow2.f32 %v853_v59  ;;  %v855_v17 = vmul.f32 1.442695, %v802_v31  ;;  %1317 = vrot.lane.b32.xlu1 %v1285_v11, %s10378_s23  ;;  %v10654_v56 = vadd.f32 %v8831_v7, %v10515_v21  ;;  %v8832_v18 = vpop.f32.mrb[26].mxu1 }
 0x11a   : > { %v9658_v22 = vpop.eup %9657  ;;  %v949_v24 = vmul.f32 %v9652_v3, %v10553_v60  ;;  %v950_v26 = vmul.f32 %v9656_v14, %v10561_v6  ;;  %9677 = vpow2.f32 %v859_v9  ;;  %v10659_v27 = vadd.f32 %v10515_v21, %v750_v12  ;;  %v753_v32 = vpop.f32.mrb[27].mxu1 }
 0x11b   : > { %v9660_v1 = vpop.eup %9659  ;;  %v10661_v33 = vpack.c.bf16 %v952_v15, %v951_v25  ;;  %v895_v34 = vadd.f32 1.0, %v9658_v22  ;;  %9679 = vpow2.f32 %v855_v17  ;;  %v807_v36 = vsub.f32 0.0, %v10654_v56 }
 0x11c   : > { %v9662_v37 = vpop.eup %9661  ;;  %v10664_v38 = vpack.c.bf16 %v950_v26, %v949_v24  ;;  %v893_v40 = vadd.f32 1.0, %v9660_v1  ;;  %v805_v60 = vsub.f32 0.0, %v10659_v27  ;;  %v1000_v6 = vshll.u32 %v10591_v0, 16 }
 0x11d   : > { %14333 = vst [vmem:[#allocation8_spill] sm:$0xff] %v10661_v33  ;;  %v9664_v44 = vpop.eup %9663  ;;  %9681 = vrcp.f32 %v895_v34  ;;  %v896_v42 = vadd.f32 1.0, %v9662_v37  ;;  %v865_v45 = vmul.f32 1.442695, %v807_v36  ;;  %v10669_v46 = vadd.f32 %v8832_v18, %v10515_v21 }
 0x11e   : > { %14334 = vst [vmem:[#allocation9_spill] sm:$0xff] %v10664_v38  ;;  %v9666_v48 = vpop.eup %9665  ;;  %9683 = vrcp.f32 %v893_v40  ;;  %v894_v47 = vadd.f32 1.0, %v9664_v44  ;;  %v861_v50 = vmul.f32 1.442695, %v805_v60  ;;  %v1236_v51 = vrot.slane %v1000_v6, 1 }
 0x11f   : > { %v9668_v53 = vpop.eup %9667  ;;  %9685 = vrcp.f32 %v896_v42  ;;  %v808_v55 = vsub.f32 0.0, %v10669_v46  ;;  %v10680_v58 = vadd.f32 %v10515_v21, %v753_v32  ;;  %v8835_v59 = vpop.f32.mrb[28].mxu1  ;;  %v955_v28 = vmul.f32 %v9666_v48, %v10566_v16 }
 0x120   : > { %v9670_v23 = vpop.eup %9669  ;;  %9687 = vrcp.f32 %v894_v47  ;;  %v1237_v2 = vor.u32 %v1236_v51, %v997_v13  ;;  %v766_v3 = vpop.f32.mrb[29].mxu1  ;;  %v953_v12 = vmul.f32 %v9668_v53, %v10569_v20  ;;  %v10700_v32 = vadd.f32 %v8835_v59, %v10515_v21 }
 0x121   : > { %v9672_v25 = vpop.eup %9671  ;;  %v956_v31 = vmul.f32 %v9670_v23, %v10573_v29  ;;  %9689 = vpow2.f32 %v865_v45  ;;  %v867_v7 = vmul.f32 1.442695, %v808_v55  ;;  %v806_v8 = vsub.f32 0.0, %v10680_v58  ;;  %v8836_v9 = vpop.f32.mrb[30].mxu1 }
 0x122   : > { %v9674_v11 = vpop.eup %9673  ;;  %v954_v16 = vmul.f32 %v9672_v25, %v10577_v35  ;;  %9691 = vpow2.f32 %v861_v50  ;;  %v1286_v14 = vsel %vm10637_vm4, %v1237_v2, 0  ;;  %v769_v15 = vpop.f32.mrb[31].mxu1  ;;  %v1004_v29 = vshrl.u32 %v10626_v49, 16 }
 0x123   : > { %v9676_v17 = vpop.eup %9675  ;;  %v10692_v18 = vpack.c.bf16 %v956_v31, %v955_v28  ;;  %v899_v22 = vadd.f32 1.0, %v9674_v11  ;;  %1319 = vrot.lane.b32.xlu1 %v1286_v14, %s10378_s23  ;;  %9693 = vpow2.f32 %v867_v7  ;;  %v1007_v35 = vshll.u32 %v10626_v49, 16 }
 0x124   : > { %v9678_v24 = vpop.eup %9677  ;;  %v10696_v26 = vpack.c.bf16 %v954_v16, %v953_v12  ;;  %v897_v20 = vadd.f32 1.0, %v9676_v17  ;;  %v863_v36 = vmul.f32 1.442695, %v806_v8  ;;  %v10703_v37 = vadd.f32 %v10515_v21, %v766_v3 }
 0x125   : > { %14335 = vst [vmem:[#allocation10_spill] sm:$0xff] %v10692_v18  ;;  %v9680_v1 = vpop.eup %9679  ;;  %9695 = vrcp.f32 %v899_v22  ;;  %v900_v34 = vadd.f32 1.0, %v9678_v24  ;;  %v1238_v60 = vrot.slane %v1007_v35, 1  ;;  %v811_v44 = vsub.f32 0.0, %v10700_v32 }
 0x126   : > { %14336 = vst [vmem:[#allocation11_spill] sm:$0xff] %v10696_v26  ;;  %9697 = vrcp.f32 %v897_v20  ;;  %v898_v40 = vadd.f32 1.0, %v9680_v1  ;;  %v809_v45 = vsub.f32 0.0, %v10703_v37  ;;  %v1011_v48 = vshrl.u32 %v10623_v43, 16 }
 0x127   : > { %v9682_v42 = vpop.eup %9681  ;;  %9699 = vrcp.f32 %v900_v34  ;;  %1175 = vrot.lane.b32.xlu1 %v10623_v43, %s10377_s22  ;;  %v1014_v47 = vshll.u32 %v10623_v43, 16  ;;  %v1239_v53 = vor.u32 %v1238_v60, %v1004_v29  ;;  %v873_v55 = vmul.f32 1.442695, %v811_v44 }
 0x128   : > { %v9684_v50 = vpop.eup %9683  ;;  %v959_v51 = vmul.f32 %v9682_v42, %v10584_v54  ;;  %9701 = vrcp.f32 %v898_v40  ;;  %v869_v28 = vmul.f32 1.442695, %v809_v45  ;;  %v10723_v54 = vadd.f32 %v8836_v9, %v10515_v21 }
 0x129   : > { %v9686_v59 = vpop.eup %9685  ;;  %v957_v23 = vmul.f32 %v9684_v50, %v10589_v61  ;;  %9703 = vpow2.f32 %v863_v36  ;;  %v1240_v2 = vrot.slane %v1014_v47, 1  ;;  %v1287_v31 = vsel %vm10637_vm4, %v1239_v53, 0 }
 0x12a   : > { %v9688_v3 = vpop.eup %9687  ;;  %v960_v25 = vmul.f32 %v9686_v59, %v10598_v5  ;;  %9705 = vpow2.f32 %v873_v55  ;;  %1321 = vrot.lane.b32.xlu0 %v1287_v31, %s10378_s23  ;;  %v10730_v11 = vadd.f32 %v10515_v21, %v769_v15  ;;  %v812_v14 = vsub.f32 0.0, %v10723_v54 }
 0x12b   : > { %v9690_v7 = vpop.eup %9689  ;;  %v958_v8 = vmul.f32 %v9688_v3, %v10601_v10  ;;  %9707 = vpow2.f32 %v869_v28  ;;  %v1241_v61 = vor.u32 %v1240_v2, %v1011_v48  ;;  %v1021_v34 = vshll.u32 %v10664_v38, 16 }
 0x12c   : > { %v9692_v5 = vpop.eup %9691  ;;  %v10732_v12 = vpack.c.bf16 %v960_v25, %v959_v51  ;;  %v903_v16 = vadd.f32 1.0, %v9690_v7  ;;  %v810_v24 = vsub.f32 0.0, %v10730_v11  ;;  %v875_v21 = vmul.f32 1.442695, %v812_v14 }
 0x12d   : > { %v9694_v9 = vpop.eup %9693  ;;  %v10735_v17 = vpack.c.bf16 %v958_v8, %v957_v23  ;;  %v901_v22 = vadd.f32 1.0, %v9692_v5  ;;  %v1288_v10 = vsel %vm10637_vm4, %v1241_v61, 0  ;;  %v10746_v40 = vrot.slane %v990_v19, 7 }
 0x12e   : > { %14337 = vst [vmem:[#allocation12_spill] sm:$0xff] %v10732_v12  ;;  %9709 = vrcp.f32 %v903_v16  ;;  %v904_v20 = vadd.f32 1.0, %v9694_v9  ;;  %1323 = vrot.lane.b32.xlu1 %v1288_v10, %s10378_s23  ;;  %1177 = vrot.lane.b32.xlu0 %v10664_v38, %s10377_s22  ;;  %v871_v1 = vmul.f32 1.442695, %v810_v24  ;;  %v1018_v60 = vshrl.u32 %v10664_v38, 16 }
 0x12f   : > { %14338 = vst [vmem:[#allocation13_spill] sm:$0xff] %v10735_v17  ;;  %v9696_v15 = vpop.eup %9695  ;;  %9711 = vrcp.f32 %v901_v22  ;;  %v1028_v44 = vshll.u32 %v10661_v33, 16  ;;  %v1242_v50 = vrot.slane %v1021_v34, 1  ;;  %v1025_v51 = vshrl.u32 %v10661_v33, 16 }
 0x130   : > { %v9698_v36 = vpop.eup %9697  ;;  %9713 = vrcp.f32 %v904_v20  ;;  %v963_v45 = vmul.f32 %v9696_v15, %v10613_v39  ;;  %v1032_v59 = vshrl.u32 %v10696_v26, 16  ;;  %v1035_v3 = vshll.u32 %v10696_v26, 16 }
 0x131   : > { %v9700_v42 = vpop.eup %9699  ;;  %9715 = vpow2.f32 %v875_v21  ;;  %v1244_v19 = vrot.slane %v1028_v44, 1  ;;  %v961_v39 = vmul.f32 %v9698_v36, %v10617_v41  ;;  %v1243_v2 = vor.u32 %v1242_v50, %v1018_v60 }
 0x132   : > { %v9702_v53 = vpop.eup %9701  ;;  %v964_v55 = vmul.f32 %v9700_v42, %v10630_v57  ;;  %9717 = vpow2.f32 %v871_v1  ;;  %1179 = vrot.lane.b32.xlu1 %v10661_v33, %s10377_s22  ;;  %v1042_v8 = vshll.u32 %v10692_v18, 16  ;;  %v999_v14 = vrot.slane %v997_v13, 7 }
 0x133   : > { %v9704_v23 = vpop.eup %9703  ;;  %v962_v28 = vmul.f32 %v9702_v53, %v10633_v62  ;;  %v1245_v7 = vor.u32 %v1244_v19, %v1025_v51  ;;  %v1289_v41 = vsel %vm10637_vm4, %v1243_v2, 0  ;;  %v1246_v62 = vrot.slane %v1035_v3, 1 }
 0x134   : > { %v9706_v25 = vpop.eup %9705  ;;  %v10763_v31 = vpack.c.bf16 %v964_v55, %v963_v45  ;;  %v902_v57 = vadd.f32 1.0, %v9704_v23  ;;  %1325 = vrot.lane.b32.xlu0 %v1289_v41, %s10378_s23  ;;  %v1006_v10 = vrot.slane %v1004_v29, 7  ;;  %v1039_v20 = vshrl.u32 %v10692_v18, 16 }
 0x135   : > { %v9708_v61 = vpop.eup %9707  ;;  %v10766_v5 = vpack.c.bf16 %v962_v28, %v961_v39  ;;  %v907_v16 = vadd.f32 1.0, %v9706_v25  ;;  %v1290_v22 = vsel %vm10637_vm4, %v1245_v7, 0  ;;  %v1247_v24 = vor.u32 %v1246_v62, %v1032_v59 }
 0x136   : > { %14339 = vst [vmem:[#allocation14_spill] sm:$0xff] %v10763_v31  ;;  %9719 = vrcp.f32 %v902_v57  ;;  %v905_v9 = vadd.f32 1.0, %v9708_v61  ;;  %1327 = vrot.lane.b32.xlu1 %v1290_v22, %s10378_s23  ;;  %v1248_v21 = vrot.slane %v1042_v8, 1  ;;  %v1046_v13 = vshrl.u32 %v10735_v17, 16 }
 0x137   : > { %14340 = vst [vmem:[#allocation15_spill] sm:$0xff] %v10766_v5  ;;  %9721 = vrcp.f32 %v907_v16  ;;  %v1049_v1 = vshll.u32 %v10735_v17, 16  ;;  %v1056_v36 = vshll.u32 %v10732_v12, 16  ;;  %v1013_v29 = vrot.slane %v1011_v48, 7 }
 0x138   : > { %v9710_v15 = vpop.eup %9709  ;;  %9723 = vrcp.f32 %v905_v9  ;;  %v1020_v45 = vrot.slane %v1018_v60, 7  ;;  %v10788_v50 = vrot.slane %v1025_v51, 7  ;;  %1181 = vrot.lane.b32.xlu0 %v10696_v26, %s10377_s22  ;;  %v10792_v55 = vrot.slane %v1032_v59, 7 }
 0x139   : > { %v9712_v42 = vpop.eup %9711  ;;  %v1249_v19 = vor.u32 %v1248_v21, %v1039_v20  ;;  %v1250_v23 = vrot.slane %v1049_v1, 1  ;;  %v1252_v39 = vrot.slane %v1056_v36, 1  ;;  %v967_v2 = vmul.f32 %v9710_v15, %v10654_v56 }
 0x13a   : > { %v9714_v53 = vpop.eup %9713  ;;  %v1291_v60 = vsel %vm10637_vm4, %v1247_v24, 0  ;;  %1183 = vrot.lane.b32.xlu1 %v10692_v18, %s10377_s22  ;;  %v1063_v51 = vshll.u32 %v10766_v5, 16  ;;  %v1041_v57 = vrot.slane %v1039_v20, 7  ;;  %v10805_v7 = vrot.slane %v1046_v13, 7 }
 0x13b   : > { %v9716_v28 = vpop.eup %9715  ;;  %v968_v48 = vmul.f32 %v9714_v53, %v10669_v46  ;;  %v1053_v61 = vshrl.u32 %v10732_v12, 16  ;;  %v1060_v46 = vshrl.u32 %v10766_v5, 16  ;;  %v1292_v62 = vsel %vm10637_vm4, %v1249_v19, 0 }
 0x13c   : > { %v9718_v59 = vpop.eup %9717  ;;  %v908_v25 = vadd.f32 1.0, %v9716_v28  ;;  %v1254_v41 = vrot.slane %v1063_v51, 1  ;;  %1329 = vrot.lane.b32.xlu0 %v1291_v60, %s10378_s23  ;;  %v1251_v9 = vor.u32 %v1250_v23, %v1046_v13  ;;  %v965_v24 = vmul.f32 %v9712_v42, %v10659_v27 }
 0x13d   : > { %v10808_v16 = vpack.c.bf16 %v968_v48, %v967_v2  ;;  %v906_v56 = vadd.f32 1.0, %v9718_v59  ;;  %v1253_v22 = vor.u32 %v1252_v39, %v1053_v61  ;;  %v1067_v21 = vshrl.u32 %v10763_v31, 16 }
 0x13e   : > { %9725 = vrcp.f32 %v908_v25  ;;  %1331 = vrot.lane.b32.xlu1 %v1292_v62, %s10378_s23  ;;  %v10818_v20 = vor.u32 %v1254_v41, %v1060_v46  ;;  %v14342_v15 = vmov 0  ;;  %v1070_v19 = vshll.u32 %v10763_v31, 16 }
 0x13f   : > { %14341 = vst [vmem:[#allocation16_spill] sm:$0xff] %v10808_v16  ;;  %9727 = vrcp.f32 %v906_v56  ;;  %v14343_v15 = vsel %vm10823_vm7, 4294967295, %v14342_v15  ;;  %v995_v27 = vor.u32 %v993_v30, %v10746_v40  ;;  %v1002_v13 = vor.u32 %v1000_v6, %v999_v14 }
 0x140   : > { %14344 = vst [vmem:[#allocation17_spill] sm:$0xff] %v14343_v15  ;;  %v9720_v53 = vpop.eup %9719  ;;  %v1009_v42 = vor.u32 %v1007_v35, %v1006_v10  ;;  %v1055_v39 = vrot.slane %v1053_v61, 7  ;;  %v1062_v28 = vrot.slane %v1060_v46, 7  ;;  %v1081_v2 = vshrl.u32 %v10808_v16, 16  ;;  %1185 = vrot.lane.b32.xlu0 %v10735_v17, %s10377_s22 }
 0x141   : > { %v966_v23 = vmul.f32 %v9720_v53, %v10680_v58  ;;  %v9722_v48 = vpop.eup %9721  ;;  %v1293_v60 = vsel %vm10637_vm4, %v1251_v9, 0  ;;  %v1294_v30 = vsel %vm10637_vm4, %v1253_v22, 0  ;;  %v1120_v6 = vsel %vm10823_vm7, 0, %v995_v27 }
 0x142   : > { %v1121_v58 = vsel %vm10823_vm7, 0, %v1002_v13  ;;  %v9724_v35 = vpop.eup %9723  ;;  %1187 = vrot.lane.b32.xlu1 %v10732_v12, %s10377_s22  ;;  %v1069_v14 = vrot.slane %v1067_v21, 7  ;;  %v1084_v10 = vshll.u32 %v10808_v16, 16  ;;  %1137 = vst.msk [vmem:[#allocation2 + $0x8] sm:$0xff] %vm567_vm1, %v1120_v6  ;;  %v1122_v59 = vsel %vm10823_vm7, 0, %v1009_v42 }
 0x143   : > { %v10847_v40 = vpack.c.bf16 %v966_v23, %v965_v24  ;;  %1138 = vst.msk [vmem:[#allocation2 + $0x10] sm:$0xff] %vm567_vm1, %v1121_v58  ;;  %v1295_v25 = vsel %vm10637_vm4, %v10818_v20, 0  ;;  %v1256_v61 = vrot.slane %v1070_v19, 1  ;;  %1139 = vst.msk [vmem:[#allocation2 + $0x18] sm:$0xff] %vm567_vm1, %v1122_v59  ;;  %v1016_v56 = vor.u32 %v1014_v47, %v1013_v29 }
 0x144   : > { %v1023_v46 = vor.u32 %v1021_v34, %v1020_v45  ;;  %v971_v41 = vmul.f32 %v9722_v48, %v10700_v32  ;;  %v1083_v9 = vrot.slane %v1081_v2, 7  ;;  %v1030_v22 = vor.u32 %v1028_v44, %v10788_v50  ;;  %1333 = vrot.lane.b32.xlu0 %v1293_v60, %s10378_s23 }
 0x145   : > { %14345 = vst [vmem:[#allocation18_spill] sm:$0xff] %v10847_v40  ;;  %v1074_v62 = vshrl.u32 %v10847_v40, 16  ;;  %v969_v24 = vmul.f32 %v9724_v35, %v10703_v37  ;;  %v1123_v47 = vsel %vm10823_vm7, 0, %v1016_v56  ;;  %v1037_v32 = vor.u32 %v1035_v3, %v10792_v55 }
 0x146   : > { %v1124_v34 = vsel %vm10823_vm7, 0, %v1023_v46  ;;  %1335 = vrot.lane.b32.xlu1 %v1294_v30, %s10378_s23  ;;  %v1077_v45 = vshll.u32 %v10847_v40, 16  ;;  %1140 = vst.msk [vmem:[#allocation2 + $0x20] sm:$0xff] %vm567_vm1, %v1123_v47  ;;  %v1125_v37 = vsel %vm10823_vm7, 0, %v1030_v22  ;;  %v1044_v44 = vor.u32 %v1042_v8, %v1041_v57 }
 0x147   : > { %v1076_v29 = vrot.slane %v1074_v62, 7  ;;  %1141 = vst.msk [vmem:[#allocation2 + $0x28] sm:$0xff] %vm567_vm1, %v1124_v34  ;;  %1142 = vst.msk [vmem:[#allocation2 + $0x30] sm:$0xff] %vm567_vm1, %v1125_v37  ;;  %v1126_v3 = vsel %vm10823_vm7, 0, %v1037_v32  ;;  %v1051_v55 = vor.u32 %v1049_v1, %v10805_v7  ;;  %v1058_v20 = vor.u32 %v1056_v36, %v1055_v39 }
 0x148   : > { %v9726_v50 = vpop.eup %9725  ;;  %v1065_v53 = vor.u32 %v1063_v51, %v1062_v28  ;;  %v1257_v8 = vor.u32 %v1256_v61, %v1067_v21  ;;  %1143 = vst.msk [vmem:[#allocation2 + $0x38] sm:$0xff] %vm567_vm1, %v1126_v3  ;;  %v1127_v57 = vsel %vm10823_vm7, 0, %v1044_v44  ;;  %v1072_v42 = vor.u32 %v1070_v19, %v1069_v14  ;;  %1189 = vrot.lane.b32.xlu0 %v10766_v5, %s10377_s22 }
 0x149   : > { %v9728_v27 = vpop.eup %9727  ;;  %v972_v13 = vmul.f32 %v9726_v50, %v10723_v54  ;;  %1144 = vst.msk [vmem:[#allocation2 + $0x40] sm:$0xff] %vm567_vm1, %v1127_v57  ;;  %v1128_v1 = vsel %vm10823_vm7, 0, %v1051_v55  ;;  %v1129_v54 = vsel %vm10823_vm7, 0, %v1058_v20  ;;  %v1079_v21 = vor.u32 %v1077_v45, %v1076_v29 }
 0x14a   : > { %v970_v23 = vmul.f32 %v9728_v27, %v10730_v11  ;;  %v1130_v36 = vsel %vm10823_vm7, 0, %v1065_v53  ;;  %1191 = vrot.lane.b32.xlu1 %v10763_v31, %s10377_s22  ;;  %v1258_v11 = vrot.slane %v1077_v45, 1  ;;  %1145 = vst.msk [vmem:[#allocation2 + $0x48] sm:$0xff] %vm567_vm1, %v1128_v1  ;;  %1146 = vst.msk [vmem:[#allocation2 + $0x50] sm:$0xff] %vm567_vm1, %v1129_v54  ;;  %v1131_v7 = vsel %vm10823_vm7, 0, %v1072_v42 }
 0x14b   : > { %v10912_v51 = vpack.c.bf16 %v972_v13, %v971_v41  ;;  %1147 = vst.msk [vmem:[#allocation2 + $0x58] sm:$0xff] %vm567_vm1, %v1130_v36  ;;  %1148 = vst.msk [vmem:[#allocation2 + $0x60] sm:$0xff] %vm567_vm1, %v1131_v7  ;;  %v1086_v39 = vor.u32 %v1084_v10, %v1083_v9  ;;  %v1132_v48 = vsel %vm10823_vm7, 0, %v1079_v21  ;;  %v1296_v60 = vsel %vm10637_vm4, %v1257_v8, 0  ;;  %v9592_v27 = vld [vmem:[%s14216_s3 + $0x8] ss:$0 sps:$4 sm:$0xff]  }
 0x14c   : > { %v10921_v19 = vpack.c.bf16 %v970_v23, %v969_v24  ;;  %1337 = vrot.lane.b32.xlu0 %v1295_v25, %s10378_s23  ;;  %v1260_v30 = vrot.slane %v1084_v10, 1  ;;  %1149 = vst.msk [vmem:[#allocation2 + $0x68] sm:$0xff] %vm567_vm1, %v1132_v48  ;;  %v1259_v35 = vor.u32 %v1258_v11, %v1074_v62  ;;  %v10379_v29 = vmov 0   ;;  %v10992_v23 = vld [vmem:[%s14216_s3 + $0x18] sm:$0xff]  }
 0x14d   : > { %14346 = vst [vmem:[#allocation19_spill] sm:$0xff] %v10912_v51  ;;  %v1095_v28 = vshrl.u32 %v10912_v51, 16  ;;  %v1133_v58 = vsel %vm10823_vm7, 0, %v1086_v39  ;;  %v1098_v61 = vshll.u32 %v10912_v51, 16  ;;  %444 = vst.msk [vmem:[#allocation2] sm:$0xff] %vm443_vm8, %v10379_v29  ;;  %v1700_v42 = vsel %vm616_vm0, %v9592_v27, 0 }
 0x14e   : > { %14347 = vst [vmem:[#allocation20_spill] sm:$0xff] %v10921_v19  ;;  %v1088_v6 = vshrl.u32 %v10921_v19, 16  ;;  %1339 = vrot.lane.b32.xlu1 %v1296_v60, %s10378_s23  ;;  %v1091_v14 = vshll.u32 %v10921_v19, 16  ;;  %1150 = vst.msk [vmem:[#allocation2 + $0x70] sm:$0xff] %vm567_vm1, %v1133_v58  ;;  %v1261_v10 = vor.u32 %v1260_v30, %v1081_v2  ;;  %v1297_v41 = vsel %vm10637_vm4, %v1259_v35, 0 }
 0x14f   : > { %v1097_v59 = vrot.slane %v1095_v28, 7  ;;  %v1264_v24 = vrot.slane %v1098_v61, 1  ;;  %446 = vst.msk [vmem:[#allocation2 + $0x88] sm:$0xff] %vm443_vm8, %v10379_v29 }
 0x150   : > { %v1090_v25 = vrot.slane %v1088_v6, 7  ;;  %1193 = vrot.lane.b32.xlu0 %v10847_v40, %s10377_s22  ;;  %v1262_v62 = vrot.slane %v1091_v14, 1  ;;  %v1298_v2 = vsel %vm10637_vm4, %v1261_v10, 0 }
 0x151   : > { %v1100_v56 = vor.u32 %v1098_v61, %v1097_v59  ;;  %v1265_v34 = vor.u32 %v1264_v24, %v1095_v28 }
 0x152   : > { %v1093_v46 = vor.u32 %v1091_v14, %v1090_v25  ;;  %1195 = vrot.lane.b32.xlu1 %v10808_v16, %s10377_s22  ;;  %v1263_v47 = vor.u32 %v1262_v62, %v1088_v6 }
 0x153   : > { %v1135_v9 = vsel %vm10823_vm7, 0, %v1100_v56  ;;  %v1300_v45 = vsel %vm10637_vm4, %v1265_v34, 0 }
 0x154   : > { %v1134_v22 = vsel %vm10823_vm7, 0, %v1093_v46  ;;  %1152 = vst.msk [vmem:[#allocation2 + $0x80] sm:$0xff] %vm567_vm1, %v1135_v9  ;;  %1341 = vrot.lane.b32.xlu0 %v1297_v41, %s10378_s23  ;;  %v1299_v32 = vsel %vm10637_vm4, %v1263_v47, 0 }
 0x155   : > { %1151 = vst.msk [vmem:[#allocation2 + $0x78] sm:$0xff] %vm567_vm1, %v1134_v22 }
 0x156   : > { %1343 = vrot.lane.b32.xlu1 %v1298_v2, %s10378_s23 }
 0x158   : > { %1197 = vrot.lane.b32.xlu0 %v10921_v19, %s10377_s22 }
 0x15a   : > { %1199 = vrot.lane.b32.xlu1 %v10912_v51, %s10377_s22 }
 0x15c   : > { %1345 = vrot.lane.b32.xlu0 %v1299_v32, %s10378_s23 }
 0x15e   : > { %1347 = vrot.lane.b32.xlu1 %v1300_v45, %s10378_s23 }
 0x17f   : > { %v1170_v37 = vpop.permute.xlu0 %1169 }
 0x180   : > { %1218 = vst.msk [vmem:[#allocation2 + $0x8] sm:$0xff] %vm1217_vm9, %v1170_v37 }
 0x183   : > { %v1172_v44 = vpop.permute.xlu0 %1171 }
 0x184   : > { %1219 = vst.msk [vmem:[#allocation2 + $0x10] sm:$0xff] %vm1217_vm9, %v1172_v44 }
 0x187   : > { %v1174_v50 = vpop.permute.xlu0 %1173 }
 0x188   : > { %1220 = vst.msk [vmem:[#allocation2 + $0x18] sm:$0xff] %vm1217_vm9, %v1174_v50 }
 0x18b   : > { %v1318_v3 = vpop.permute.xlu1 %1317 }
 0x18c   : > { %1366 = vst.msk [vmem:[#allocation2 + $0x8] sm:$0xff] %vm1365_vm10, %v1318_v3 }
 0x193   : > { %v10972_v55 = vld [vmem:[#allocation2 + $0x8] sm:$0xff] }
 0x194   : > { %8841 = vmatprep.mubr.msk.bf16.mxu1 %vm443_vm8, %v10972_v55 }
 0x195   : > { %v1320_v20 = vpop.permute.xlu1 %1319 }
 0x196   : > { %1367 = vst.msk [vmem:[#allocation2 + $0x10] sm:$0xff] %vm1365_vm10, %v1320_v20  ;;  %v1382_v20 = vld [vmem:[#allocation2] sm:$0xff] }
 0x199   : > { %v1176_v53 = vpop.permute.xlu1 %1175 }
 0x19a   : > { %1221 = vst.msk [vmem:[#allocation2 + $0x20] sm:$0xff] %vm1217_vm9, %v1176_v53 }
 0x19c   : > { %v1322_v13 = vpop.permute.xlu0 %1321 }
 0x19d   : > { %v10981_v8 = vld [vmem:[#allocation2 + $0x10] sm:$0xff]  ;;  %1368 = vst.msk [vmem:[#allocation2 + $0x18] sm:$0xff] %vm1365_vm10, %v1322_v13 }
 0x19e   : > { %8842 = vmatmul.mubr.msk.bf16.vlgmr.msra.gmra.mrb[32].mxu1 %vm443_vm8, %v10981_v8 }
 0x19f   : > { %8874 = vmatpush3.bf16.msra.mxu1 %v10676_v52 }
 0x1a0   : > { %v1324_v57 = vpop.permute.xlu1 %1323  ;;  %9549 = vmatprep.subr.msk.bf16.mxu1 %vm616_vm0, %v9592_v27  ;;  %v1178_v1 = vpop.permute.xlu0 %1177  ;;  %v9594_v27 = vld [vmem:[%s14216_s3 + $0x20] ss:$0 sps:$4 sm:$0xff]  }
 0x1a1   : > { %1369 = vst.msk [vmem:[#allocation2 + $0x20] sm:$0xff] %vm1365_vm10, %v1324_v57  ;;  %v1942_v13 = vsel %vm616_vm0, %v9594_v27, 0 }
 0x1a2   : > { %1222 = vst.msk [vmem:[#allocation2 + $0x28] sm:$0xff] %vm1217_vm9, %v1178_v1 }
 0x1a3   : > { %8876 = vmatpush3.bf16.msra.mxu1 %v1700_v42  ;;  %v11118_v42 = vld [vmem:[%s14217_s4] ss:$0 sm:$0xff] }
 0x1a4   : > { %v1180_v54 = vpop.permute.xlu1 %1179  ;;  %8909 = vmatprep.subr.bf16.mxu1 %v10992_v23  ;;  %v10998_v52 = vld [vmem:[#allocation2 + $0x18] sm:$0xff] }
 0x1a5   : > { %1223 = vst.msk [vmem:[#allocation2 + $0x30] sm:$0xff] %vm1217_vm9, %v1180_v54  ;;  %8845 = vmatprep.mubr.msk.bf16.mxu1 %vm443_vm8, %v10998_v52 }
 0x1a6   : > { %v1326_v36 = vpop.permute.xlu0 %1325 }
 0x1a7   : > { %1370 = vst.msk [vmem:[#allocation2 + $0x28] sm:$0xff] %vm1365_vm10, %v1326_v36 }
 0x1a8   : > { %v11002_v11 = vld [vmem:[#allocation2 + $0x20] sm:$0xff]  ;;  %v1328_v7 = vpop.permute.xlu1 %1327 }
 0x1a9   : > { %8846 = vmatmul.mubr.msk.bf16.gmra.mrb[36].mxu1 %vm443_vm8, %v11002_v11  ;;  %1371 = vst.msk [vmem:[#allocation2 + $0x30] sm:$0xff] %vm1365_vm10, %v1328_v7 }
 0x1aa   : > { %v1182_v21 = vpop.permute.xlu0 %1181 }
 0x1ab   : > { %1224 = vst.msk [vmem:[#allocation2 + $0x38] sm:$0xff] %vm1217_vm9, %v1182_v21 }
 0x1ac   : > { %v1184_v39 = vpop.permute.xlu1 %1183 }
 0x1ad   : > { %1225 = vst.msk [vmem:[#allocation2 + $0x40] sm:$0xff] %vm1217_vm9, %v1184_v39 }
 0x1ae   : > { %v1330_v28 = vpop.permute.xlu0 %1329  ;;  %v11010_v48 = vld [vmem:[#allocation2 + $0x28] sm:$0xff] }
 0x1af   : > { %1372 = vst.msk [vmem:[#allocation2 + $0x38] sm:$0xff] %vm1365_vm10, %v1330_v28  ;;  %8849 = vmatprep.mubr.msk.bf16.mxu1 %vm443_vm8, %v11010_v48 }
 0x1b0   : > { %v1332_v60 = vpop.permute.xlu1 %1331  ;;  %v11015_v30 = vld [vmem:[#allocation2 + $0x30] sm:$0xff] }
 0x1b1   : > { %1373 = vst.msk [vmem:[#allocation2 + $0x40] sm:$0xff] %vm1365_vm10, %v1332_v60  ;;  %8850 = vmatmul.mubr.msk.bf16.gmra.mrb[40].mxu1 %vm443_vm8, %v11015_v30 }
 0x1b2   : > { %v1186_v6 = vpop.permute.xlu0 %1185 }
 0x1b3   : > { %1226 = vst.msk [vmem:[#allocation2 + $0x48] sm:$0xff] %vm1217_vm9, %v1186_v6 }
 0x1b4   : > { %v1188_v58 = vpop.permute.xlu1 %1187 }
 0x1b5   : > { %1227 = vst.msk [vmem:[#allocation2 + $0x50] sm:$0xff] %vm1217_vm9, %v1188_v58 }
 0x1b6   : > { %v1334_v35 = vpop.permute.xlu0 %1333  ;;  %v11022_v14 = vld [vmem:[#allocation2 + $0x38] sm:$0xff] }
 0x1b7   : > { %1374 = vst.msk [vmem:[#allocation2 + $0x48] sm:$0xff] %vm1365_vm10, %v1334_v35  ;;  %8853 = vmatprep.mubr.msk.bf16.mxu1 %vm443_vm8, %v11022_v14 }
 0x1b8   : > { %v1336_v59 = vpop.permute.xlu1 %1335  ;;  %v11027_v61 = vld [vmem:[#allocation2 + $0x40] sm:$0xff] }
 0x1b9   : > { %1375 = vst.msk [vmem:[#allocation2 + $0x50] sm:$0xff] %vm1365_vm10, %v1336_v59  ;;  %8854 = vmatmul.mubr.msk.bf16.gmra.mrb[44].mxu1 %vm443_vm8, %v11027_v61 }
 0x1ba   : > { %v1190_v25 = vpop.permute.xlu0 %1189 }
 0x1bb   : > { %1228 = vst.msk [vmem:[#allocation2 + $0x58] sm:$0xff] %vm1217_vm9, %v1190_v25 }
 0x1bc   : > { %v1192_v56 = vpop.permute.xlu1 %1191 }
 0x1bd   : > { %1229 = vst.msk [vmem:[#allocation2 + $0x60] sm:$0xff] %vm1217_vm9, %v1192_v56 }
 0x1be   : > { %v1338_v10 = vpop.permute.xlu0 %1337  ;;  %v11034_v46 = vld [vmem:[#allocation2 + $0x48] sm:$0xff] }
 0x1bf   : > { %1376 = vst.msk [vmem:[#allocation2 + $0x58] sm:$0xff] %vm1365_vm10, %v1338_v10  ;;  %8857 = vmatprep.mubr.msk.bf16.mxu1 %vm443_vm8, %v11034_v46 }
 0x1c0   : > { %v1340_v41 = vpop.permute.xlu1 %1339  ;;  %v1410_v62 = vld [vmem:[#allocation2 + $0x50] sm:$0xff] }
 0x1c1   : > { %1377 = vst.msk [vmem:[#allocation2 + $0x60] sm:$0xff] %vm1365_vm10, %v1340_v41  ;;  %8858 = vmatmul.mubr.msk.bf16.gmra.mrb[48].mxu1 %vm443_vm8, %v1410_v62 }
 0x1c2   : > { %v1194_v9 = vpop.permute.xlu0 %1193 }
 0x1c3   : > { %1230 = vst.msk [vmem:[#allocation2 + $0x68] sm:$0xff] %vm1217_vm9, %v1194_v9 }
 0x1c4   : > { %v1196_v22 = vpop.permute.xlu1 %1195 }
 0x1c5   : > { %1231 = vst.msk [vmem:[#allocation2 + $0x70] sm:$0xff] %vm1217_vm9, %v1196_v22 }
 0x1c6   : > { %v1342_v2 = vpop.permute.xlu0 %1341  ;;  %v1411_v24 = vld [vmem:[#allocation2 + $0x58] sm:$0xff] }
 0x1c7   : > { %1378 = vst.msk [vmem:[#allocation2 + $0x68] sm:$0xff] %vm1365_vm10, %v1342_v2  ;;  %8861 = vmatprep.mubr.msk.bf16.mxu1 %vm443_vm8, %v1411_v24 }
 0x1c8   : > { %v1344_v47 = vpop.permute.xlu1 %1343  ;;  %v1412_v34 = vld [vmem:[#allocation2 + $0x60] sm:$0xff] }
 0x1c9   : > { %1379 = vst.msk [vmem:[#allocation2 + $0x70] sm:$0xff] %vm1365_vm10, %v1344_v47  ;;  %8862 = vmatmul.mubr.msk.bf16.gmra.mrb[52].mxu1 %vm443_vm8, %v1412_v34 }
 0x1ca   : > { %v1198_v32 = vpop.permute.xlu0 %1197 }
 0x1cb   : > { %1232 = vst.msk [vmem:[#allocation2 + $0x78] sm:$0xff] %vm1217_vm9, %v1198_v32 }
 0x1cc   : > { %v1200_v29 = vpop.permute.xlu1 %1199 }
 0x1cd   : > { %1233 = vst.msk [vmem:[#allocation2 + $0x80] sm:$0xff] %vm1217_vm9, %v1200_v29 }
 0x1ce   : > { %v1346_v45 = vpop.permute.xlu0 %1345  ;;  %v1413_v37 = vld [vmem:[#allocation2 + $0x68] sm:$0xff] }
 0x1cf   : > { %1380 = vst.msk [vmem:[#allocation2 + $0x78] sm:$0xff] %vm1365_vm10, %v1346_v45  ;;  %8865 = vmatprep.mubr.msk.bf16.mxu1 %vm443_vm8, %v1413_v37 }
 0x1d0   : > { %v1348_v44 = vpop.permute.xlu1 %1347  ;;  %v1414_v50 = vld [vmem:[#allocation2 + $0x70] sm:$0xff] }
 0x1d1   : > { %1381 = vst.msk [vmem:[#allocation2 + $0x80] sm:$0xff] %vm1365_vm10, %v1348_v44  ;;  %8866 = vmatmul.mubr.msk.bf16.gmra.mrb[56].mxu1 %vm443_vm8, %v1414_v50 }
 0x1d6   : > { %v1415_v3 = vld [vmem:[#allocation2 + $0x78] sm:$0xff] }
 0x1d7   : > { %8869 = vmatprep.mubr.msk.bf16.mxu1 %vm443_vm8, %v1415_v3 }
 0x1d8   : > { %v1416_v53 = vld [vmem:[#allocation2 + $0x80] sm:$0xff] }
 0x1d9   : > { %8870 = vmatmul.mubr.msk.bf16.gmra.mrb[60].mxu1 %vm443_vm8, %v1416_v53 }
 0x1da   : > { %8877 = vmatprep.mubr.msk.bf16.mxu1 %vm443_vm8, %v1382_v20 }
 0x1e1   : > { %8878 = vmatmul.mubr.msk.bf16.vlgmr.msra.gmra.mrb[32].mxu1 %vm443_vm8, %v10972_v55  ;;  %v1879_v55 = vld [vmem:[#allocation2 + $0x88] sm:$0xff] }
 0x1e2   : > { %8910 = vmatpush3.bf16.msra.mxu1 %v10992_v23  ;;  %8881 = vmatprep.mubr.msk.bf16.mxu1 %vm443_vm8, %v10981_v8 }
 0x1e3   : > { %9550 = vmatprep.subr.msk.bf16.mxu1 %vm616_vm0, %v9594_v27 }
 0x1e6   : > { %8912 = vmatpush3.bf16.msra.mxu1 %v1942_v13 }
 0x1e9   : > { %8882 = vmatmul.mubr.msk.bf16.gmra.mrb[36].mxu1 %vm443_vm8, %v10998_v52 }
 0x1ea   : > { %8885 = vmatprep.mubr.msk.bf16.mxu1 %vm443_vm8, %v11002_v11 }
 0x1f1   : > { %8886 = vmatmul.mubr.msk.bf16.gmra.mrb[40].mxu1 %vm443_vm8, %v11010_v48 }
 0x1f2   : > { %8889 = vmatprep.mubr.msk.bf16.mxu1 %vm443_vm8, %v11015_v30 }
 0x1f9   : > { %8890 = vmatmul.mubr.msk.bf16.gmra.mrb[44].mxu1 %vm443_vm8, %v11022_v14 }
 0x1fa   : > { %8893 = vmatprep.mubr.msk.bf16.mxu1 %vm443_vm8, %v11027_v61 }
 0x201   : > { %8894 = vmatmul.mubr.msk.bf16.gmra.mrb[48].mxu1 %vm443_vm8, %v11034_v46 }
 0x202   : > { %8897 = vmatprep.mubr.msk.bf16.mxu1 %vm443_vm8, %v1410_v62 }
 0x209   : > { %8898 = vmatmul.mubr.msk.bf16.gmra.mrb[52].mxu1 %vm443_vm8, %v1411_v24 }
 0x20a   : > { %8901 = vmatprep.mubr.msk.bf16.mxu1 %vm443_vm8, %v1412_v34 }
 0x211   : > { %8902 = vmatmul.mubr.msk.bf16.gmra.mrb[56].mxu1 %vm443_vm8, %v1413_v37 }
 0x212   : > { %8905 = vmatprep.mubr.msk.bf16.mxu1 %vm443_vm8, %v1414_v50 }
 0x219   : > { %8906 = vmatmul.mubr.msk.bf16.gmra.mrb[60].mxu1 %vm443_vm8, %v1415_v3 }
 0x21a   : > { %8913 = vmatprep.mubr.msk.bf16.mxu1 %vm443_vm8, %v10981_v8  ;;  %v2384_v8 = vld [vmem:[%s14218_s5] sm:$0xf] }
 0x21b   : > { %9551 = vmatprep.subr.msk.bf16.mxu0 %vm616_vm0, %v2384_v8  ;;  %v2441_v57 = vsel %vm616_vm0, %v2384_v8, 0 }
 0x21c   : > { %8946 = vmatpush3.bf16.msra.mxu0 %v2441_v57 }
 0x221   : > { %8914 = vmatmul.mubr.msk.bf16.vlgmr.msra.gmra.mrb[32].mxu1 %vm443_vm8, %v10998_v52 }
 0x222   : > { %8917 = vmatprep.mubr.msk.bf16.mxu1 %vm443_vm8, %v11002_v11 }
 0x229   : > { %8918 = vmatmul.mubr.msk.bf16.gmra.mrb[36].mxu1 %vm443_vm8, %v11010_v48 }
 0x22a   : > { %8921 = vmatprep.mubr.msk.bf16.mxu1 %vm443_vm8, %v11015_v30 }
 0x231   : > { %8922 = vmatmul.mubr.msk.bf16.gmra.mrb[40].mxu1 %vm443_vm8, %v11022_v14 }
 0x232   : > { %8925 = vmatprep.mubr.msk.bf16.mxu1 %vm443_vm8, %v11027_v61 }
 0x239   : > { %8926 = vmatmul.mubr.msk.bf16.gmra.mrb[44].mxu1 %vm443_vm8, %v11034_v46 }
 0x23a   : > { %8929 = vmatprep.mubr.msk.bf16.mxu1 %vm443_vm8, %v1410_v62 }
 0x241   : > { %8930 = vmatmul.mubr.msk.bf16.gmra.mrb[48].mxu1 %vm443_vm8, %v1411_v24 }
 0x242   : > { %8933 = vmatprep.mubr.msk.bf16.mxu1 %vm443_vm8, %v1412_v34 }
 0x249   : > { %8934 = vmatmul.mubr.msk.bf16.gmra.mrb[52].mxu1 %vm443_vm8, %v1413_v37 }
 0x24a   : > { %8937 = vmatprep.mubr.msk.bf16.mxu1 %vm443_vm8, %v1414_v50 }
 0x251   : > { %8938 = vmatmul.mubr.msk.bf16.gmra.mrb[56].mxu1 %vm443_vm8, %v1415_v3 }
 0x252   : > { %8941 = vmatprep.mubr.msk.bf16.mxu1 %vm443_vm8, %v1416_v53 }
 0x259   : > { %8942 = vmatmul.mubr.msk.bf16.gmra.mrb[60].mxu1 %vm443_vm8, %v1879_v55 }
 0x2f4   : > { %v8915_v23 = vpop.f32.mrb[32].mxu1 }
 0x2f5   : > { %v11121_v1 = vadd.f32 %v8915_v23, %v11118_v42  ;;  %v1978_v54 = vpop.f32.mrb[33].mxu1 }
 0x2f6   : > { %v11124_v52 = vadd.f32 %v11118_v42, %v1978_v54  ;;  %v8916_v36 = vpop.f32.mrb[34].mxu1 }
 0x2f7   : > { %v2178_v11 = vsub.f32 0.0, %v11121_v1  ;;  %v11128_v7 = vadd.f32 %v8916_v36, %v11118_v42  ;;  %v1981_v21 = vpop.f32.mrb[35].mxu1 }
 0x2f8   : > { %v2176_v39 = vsub.f32 0.0, %v11124_v52  ;;  %v11132_v28 = vadd.f32 %v11118_v42, %v1981_v21 }
 0x2f9   : > { %v2212_v48 = vmul.f32 1.442695, %v2178_v11  ;;  %v2179_v60 = vsub.f32 0.0, %v11128_v7 }
 0x2fa   : > { %v2208_v30 = vmul.f32 1.442695, %v2176_v39  ;;  %v2177_v6 = vsub.f32 0.0, %v11132_v28 }
 0x2fb   : > { %9729 = vpow2.f32 %v2212_v48  ;;  %v2214_v58 = vmul.f32 1.442695, %v2179_v60 }
 0x2fc   : > { %9731 = vpow2.f32 %v2208_v30  ;;  %v2210_v35 = vmul.f32 1.442695, %v2177_v6  ;;  %v8919_v14 = vpop.f32.mrb[36].mxu1 }
 0x2fd   : > { %9733 = vpow2.f32 %v2214_v58  ;;  %v11137_v59 = vadd.f32 %v8919_v14, %v11118_v42  ;;  %v1994_v61 = vpop.f32.mrb[37].mxu1 }
 0x2fe   : > { %9735 = vpow2.f32 %v2210_v35  ;;  %v11140_v25 = vadd.f32 %v11118_v42, %v1994_v61  ;;  %v8920_v56 = vpop.f32.mrb[38].mxu1 }
 0x2ff   : > { %v2182_v10 = vsub.f32 0.0, %v11137_v59  ;;  %v11144_v46 = vadd.f32 %v8920_v56, %v11118_v42  ;;  %v1997_v41 = vpop.f32.mrb[39].mxu1 }
 0x300   : > { %v2180_v62 = vsub.f32 0.0, %v11140_v25  ;;  %v11148_v9 = vadd.f32 %v11118_v42, %v1997_v41 }
 0x301   : > { %v2220_v22 = vmul.f32 1.442695, %v2182_v10  ;;  %v2183_v2 = vsub.f32 0.0, %v11144_v46 }
 0x302   : > { %v2216_v24 = vmul.f32 1.442695, %v2180_v62  ;;  %v2181_v47 = vsub.f32 0.0, %v11148_v9 }
 0x303   : > { %9737 = vpow2.f32 %v2220_v22  ;;  %v2222_v34 = vmul.f32 1.442695, %v2183_v2 }
 0x304   : > { %9739 = vpow2.f32 %v2216_v24  ;;  %v2218_v32 = vmul.f32 1.442695, %v2181_v47  ;;  %v8923_v29 = vpop.f32.mrb[40].mxu1 }
 0x305   : > { %v9730_v45 = vpop.eup %9729  ;;  %9741 = vpow2.f32 %v2222_v34  ;;  %v11153_v37 = vadd.f32 %v8923_v29, %v11118_v42  ;;  %v2010_v44 = vpop.f32.mrb[41].mxu1 }
 0x306   : > { %v9732_v50 = vpop.eup %9731  ;;  %v2274_v3 = vadd.f32 1.0, %v9730_v45  ;;  %9743 = vpow2.f32 %v2218_v32  ;;  %v11156_v20 = vadd.f32 %v11118_v42, %v2010_v44  ;;  %v8924_v53 = vpop.f32.mrb[42].mxu1 }
 0x307   : > { %v9734_v27 = vpop.eup %9733  ;;  %v2272_v13 = vadd.f32 1.0, %v9732_v50  ;;  %v2186_v55 = vsub.f32 0.0, %v11153_v37  ;;  %v11160_v8 = vadd.f32 %v8924_v53, %v11118_v42  ;;  %v2013_v57 = vpop.f32.mrb[43].mxu1 }
 0x308   : > { %v9736_v23 = vpop.eup %9735  ;;  %9745 = vrcp.f32 %v2274_v3  ;;  %v2275_v54 = vadd.f32 1.0, %v9734_v27  ;;  %v2184_v36 = vsub.f32 0.0, %v11156_v20  ;;  %v11164_v11 = vadd.f32 %v11118_v42, %v2013_v57 }
 0x309   : > { %9747 = vrcp.f32 %v2272_v13  ;;  %v2273_v21 = vadd.f32 1.0, %v9736_v23  ;;  %v2228_v39 = vmul.f32 1.442695, %v2186_v55  ;;  %v2187_v48 = vsub.f32 0.0, %v11160_v8 }
 0x30a   : > { %9749 = vrcp.f32 %v2275_v54  ;;  %v2224_v60 = vmul.f32 1.442695, %v2184_v36  ;;  %v2185_v30 = vsub.f32 0.0, %v11164_v11 }
 0x30b   : > { %9751 = vrcp.f32 %v2273_v21  ;;  %v2230_v6 = vmul.f32 1.442695, %v2187_v48 }
 0x30c   : > { %9753 = vpow2.f32 %v2228_v39  ;;  %v2226_v58 = vmul.f32 1.442695, %v2185_v30  ;;  %v8927_v35 = vpop.f32.mrb[44].mxu1 }
 0x30d   : > { %v9738_v14 = vpop.eup %9737  ;;  %9755 = vpow2.f32 %v2224_v60  ;;  %v11169_v61 = vadd.f32 %v8927_v35, %v11118_v42  ;;  %v2026_v56 = vpop.f32.mrb[45].mxu1 }
 0x30e   : > { %v9740_v10 = vpop.eup %9739  ;;  %v2278_v41 = vadd.f32 1.0, %v9738_v14  ;;  %9757 = vpow2.f32 %v2230_v6  ;;  %v11172_v62 = vadd.f32 %v11118_v42, %v2026_v56  ;;  %v8928_v22 = vpop.f32.mrb[46].mxu1 }
 0x30f   : > { %v9742_v2 = vpop.eup %9741  ;;  %v2276_v24 = vadd.f32 1.0, %v9740_v10  ;;  %9759 = vpow2.f32 %v2226_v58  ;;  %v2190_v47 = vsub.f32 0.0, %v11169_v61  ;;  %v11176_v34 = vadd.f32 %v8928_v22, %v11118_v42  ;;  %v2029_v32 = vpop.f32.mrb[47].mxu1 }
 0x310   : > { %v9744_v29 = vpop.eup %9743  ;;  %9761 = vrcp.f32 %v2278_v41  ;;  %v2279_v45 = vadd.f32 1.0, %v9742_v2  ;;  %v2188_v44 = vsub.f32 0.0, %v11172_v62  ;;  %v11180_v50 = vadd.f32 %v11118_v42, %v2029_v32 }
 0x311   : > { %9763 = vrcp.f32 %v2276_v24  ;;  %v2277_v3 = vadd.f32 1.0, %v9744_v29  ;;  %v2236_v53 = vmul.f32 1.442695, %v2190_v47  ;;  %v2191_v27 = vsub.f32 0.0, %v11176_v34 }
 0x312   : > { %v9746_v13 = vpop.eup %9745  ;;  %9765 = vrcp.f32 %v2279_v45  ;;  %v2232_v55 = vmul.f32 1.442695, %v2188_v44  ;;  %v2189_v57 = vsub.f32 0.0, %v11180_v50 }
 0x313   : > { %v9748_v23 = vpop.eup %9747  ;;  %9767 = vrcp.f32 %v2277_v3  ;;  %v2238_v54 = vmul.f32 1.442695, %v2191_v27  ;;  %v2338_v60 = vmul.f32 %v9746_v13, %v11121_v1 }
 0x314   : > { %v9750_v36 = vpop.eup %9749  ;;  %9769 = vpow2.f32 %v2236_v53  ;;  %v2234_v21 = vmul.f32 1.442695, %v2189_v57  ;;  %v8931_v39 = vpop.f32.mrb[48].mxu1  ;;  %v2336_v14 = vmul.f32 %v9748_v23, %v11124_v52 }
 0x315   : > { %v9752_v48 = vpop.eup %9751  ;;  %v2339_v30 = vmul.f32 %v9750_v36, %v11128_v7  ;;  %9771 = vpow2.f32 %v2232_v55  ;;  %v11187_v6 = vadd.f32 %v8931_v39, %v11118_v42  ;;  %v2042_v58 = vpop.f32.mrb[49].mxu1 }
 0x316   : > { %v9754_v35 = vpop.eup %9753  ;;  %v2337_v56 = vmul.f32 %v9752_v48, %v11132_v28  ;;  %9773 = vpow2.f32 %v2238_v54  ;;  %v11192_v10 = vadd.f32 %v11118_v42, %v2042_v58  ;;  %v8932_v41 = vpop.f32.mrb[50].mxu1 }
 0x317   : > { %v9756_v22 = vpop.eup %9755  ;;  %v2369_v2 = vpack.c.bf16 %v2339_v30, %v2338_v60  ;;  %v2282_v1 = vadd.f32 1.0, %v9754_v35  ;;  %9775 = vpow2.f32 %v2234_v21  ;;  %v2194_v7 = vsub.f32 0.0, %v11187_v6  ;;  %v2045_v24 = vpop.f32.mrb[51].mxu1 }
 0x318   : > { %v9758_v47 = vpop.eup %9757  ;;  %v2280_v32 = vadd.f32 1.0, %v9756_v22  ;;  %v2192_v29 = vsub.f32 0.0, %v11192_v10  ;;  %v11197_v52 = vadd.f32 %v8932_v41, %v11118_v42  ;;  %v11200_v28 = vadd.f32 %v11118_v42, %v2045_v24 }
 0x319   : > { %v9760_v45 = vpop.eup %9759  ;;  %9777 = vrcp.f32 %v2282_v1  ;;  %v2283_v44 = vadd.f32 1.0, %v9758_v47  ;;  %v2244_v3 = vmul.f32 1.442695, %v2194_v7  ;;  %v2368_v53 = vpack.c.bf16 %v2337_v56, %v2336_v14 }
 0x31a   : > { %v9762_v27 = vpop.eup %9761  ;;  %9779 = vrcp.f32 %v2280_v32  ;;  %v2281_v13 = vadd.f32 1.0, %v9760_v45  ;;  %v2240_v55 = vmul.f32 1.442695, %v2192_v29  ;;  %v2195_v57 = vsub.f32 0.0, %v11197_v52 }
 0x31b   : > { %v9764_v23 = vpop.eup %9763  ;;  %9781 = vrcp.f32 %v2283_v44  ;;  %v2193_v54 = vsub.f32 0.0, %v11200_v28  ;;  %8947 = vmatprep.mubr.msk.bf16.mxu0 %vm567_vm1, %v2368_v53  ;;  %v2342_v21 = vmul.f32 %v9762_v27, %v11137_v59 }
 0x31c   : > { %v9766_v36 = vpop.eup %9765  ;;  %9783 = vrcp.f32 %v2281_v13  ;;  %v2246_v39 = vmul.f32 1.442695, %v2195_v57  ;;  %8948 = vmatmul.mubr.msk.bf16.vlgmr.msra.gmra.mrb[0].mxu0 %vm567_vm1, %v2369_v2  ;;  %v8935_v48 = vpop.f32.mrb[52].mxu1  ;;  %v2340_v41 = vmul.f32 %v9764_v23, %v11140_v25 }
 0x31d   : > { %v9768_v60 = vpop.eup %9767  ;;  %v2343_v30 = vmul.f32 %v9766_v36, %v11144_v46  ;;  %9785 = vpow2.f32 %v2244_v3  ;;  %v2242_v58 = vmul.f32 1.442695, %v2193_v54  ;;  %v11209_v35 = vadd.f32 %v8935_v48, %v11118_v42  ;;  %v2058_v14 = vpop.f32.mrb[53].mxu1 }
 0x31e   : > { %v9770_v56 = vpop.eup %9769  ;;  %v2341_v22 = vmul.f32 %v9768_v60, %v11148_v9  ;;  %9787 = vpow2.f32 %v2240_v55  ;;  %v11214_v59 = vadd.f32 %v11118_v42, %v2058_v14  ;;  %v8936_v2 = vpop.f32.mrb[54].mxu1 }
 0x31f   : > { %v9772_v1 = vpop.eup %9771  ;;  %v2371_v7 = vpack.c.bf16 %v2343_v30, %v2342_v21  ;;  %v2286_v24 = vadd.f32 1.0, %v9770_v56  ;;  %9789 = vpow2.f32 %v2246_v39  ;;  %v2198_v46 = vsub.f32 0.0, %v11209_v35  ;;  %v2061_v47 = vpop.f32.mrb[55].mxu1 }
 0x320   : > { %v9774_v32 = vpop.eup %9773  ;;  %v2370_v29 = vpack.c.bf16 %v2341_v22, %v2340_v41  ;;  %v2284_v45 = vadd.f32 1.0, %v9772_v1  ;;  %9791 = vpow2.f32 %v2242_v58  ;;  %v2196_v25 = vsub.f32 0.0, %v11214_v59 }
 0x321   : > { %v9776_v44 = vpop.eup %9775  ;;  %9793 = vrcp.f32 %v2286_v24  ;;  %v2287_v9 = vadd.f32 1.0, %v9774_v32  ;;  %v2252_v3 = vmul.f32 1.442695, %v2198_v46  ;;  %v11219_v53 = vadd.f32 %v8936_v2, %v11118_v42 }
 0x322   : > { %9795 = vrcp.f32 %v2284_v45  ;;  %v2285_v27 = vadd.f32 1.0, %v9776_v44  ;;  %v2248_v13 = vmul.f32 1.442695, %v2196_v25  ;;  %v11222_v55 = vadd.f32 %v11118_v42, %v2061_v47  ;;  %8951 = vmatprep.mubr.msk.bf16.mxu0 %vm567_vm1, %v2370_v29 }
 0x323   : > { %v9778_v57 = vpop.eup %9777  ;;  %9797 = vrcp.f32 %v2287_v9  ;;  %v2199_v23 = vsub.f32 0.0, %v11219_v53 }
 0x324   : > { %v9780_v54 = vpop.eup %9779  ;;  %v2346_v36 = vmul.f32 %v9778_v57, %v11153_v37  ;;  %9799 = vrcp.f32 %v2285_v27  ;;  %v2197_v21 = vsub.f32 0.0, %v11222_v55  ;;  %8952 = vmatmul.mubr.msk.bf16.gmra.mrb[4].mxu0 %vm567_vm1, %v2371_v7  ;;  %v8939_v39 = vpop.f32.mrb[56].mxu1 }
 0x325   : > { %v9782_v48 = vpop.eup %9781  ;;  %v2344_v60 = vmul.f32 %v9780_v54, %v11156_v20  ;;  %9801 = vpow2.f32 %v2252_v3  ;;  %v2254_v30 = vmul.f32 1.442695, %v2199_v23  ;;  %v11231_v58 = vadd.f32 %v8939_v39, %v11118_v42  ;;  %v2074_v14 = vpop.f32.mrb[57].mxu1 }
 0x326   : > { %v9784_v56 = vpop.eup %9783  ;;  %v2347_v41 = vmul.f32 %v9782_v48, %v11160_v8  ;;  %9803 = vpow2.f32 %v2248_v13  ;;  %v2250_v37 = vmul.f32 1.442695, %v2197_v21  ;;  %v11235_v22 = vadd.f32 %v11118_v42, %v2074_v14  ;;  %v8940_v2 = vpop.f32.mrb[58].mxu1 }
 0x327   : > { %v9786_v1 = vpop.eup %9785  ;;  %v2345_v7 = vmul.f32 %v9784_v56, %v11164_v11  ;;  %9805 = vpow2.f32 %v2254_v30  ;;  %v2202_v20 = vsub.f32 0.0, %v11231_v58  ;;  %v11240_v24 = vadd.f32 %v8940_v2, %v11118_v42  ;;  %v2077_v46 = vpop.f32.mrb[59].mxu1 }
 0x328   : > { %v9788_v47 = vpop.eup %9787  ;;  %v2373_v32 = vpack.c.bf16 %v2347_v41, %v2346_v36  ;;  %v2290_v29 = vadd.f32 1.0, %v9786_v1  ;;  %9807 = vpow2.f32 %v2250_v37  ;;  %v2200_v8 = vsub.f32 0.0, %v11235_v22 }
 0x329   : > { %v9790_v45 = vpop.eup %9789  ;;  %v2372_v25 = vpack.c.bf16 %v2345_v7, %v2344_v60  ;;  %v2288_v44 = vadd.f32 1.0, %v9788_v47  ;;  %v2203_v9 = vsub.f32 0.0, %v11240_v24  ;;  %v2260_v27 = vmul.f32 1.442695, %v2202_v20 }
 0x32a   : > { %v9792_v3 = vpop.eup %9791  ;;  %9809 = vrcp.f32 %v2290_v29  ;;  %v2291_v11 = vadd.f32 1.0, %v9790_v45  ;;  %v11245_v13 = vadd.f32 %v11118_v42, %v2077_v46  ;;  %v2256_v54 = vmul.f32 1.442695, %v2200_v8 }
 0x32b   : > { %v9794_v57 = vpop.eup %9793  ;;  %9811 = vrcp.f32 %v2288_v44  ;;  %v2289_v23 = vadd.f32 1.0, %v9792_v3  ;;  %8955 = vmatprep.mubr.msk.bf16.mxu0 %vm567_vm1, %v2372_v25  ;;  %v2262_v21 = vmul.f32 1.442695, %v2203_v9 }
 0x32c   : > { %v9796_v36 = vpop.eup %9795  ;;  %9813 = vrcp.f32 %v2291_v11  ;;  %v2201_v39 = vsub.f32 0.0, %v11245_v13  ;;  %8956 = vmatmul.mubr.msk.bf16.gmra.mrb[8].mxu0 %vm567_vm1, %v2373_v32  ;;  %v8943_v48 = vpop.f32.mrb[60].mxu1  ;;  %v2350_v30 = vmul.f32 %v9794_v57, %v11169_v61 }
 0x32d   : > { %v9798_v60 = vpop.eup %9797  ;;  %v2348_v14 = vmul.f32 %v9796_v36, %v11172_v62  ;;  %9815 = vrcp.f32 %v2289_v23  ;;  %v11253_v56 = vadd.f32 %v8943_v48, %v11118_v42  ;;  %v2090_v41 = vpop.f32.mrb[61].mxu1 }
 0x32e   : > { %v9800_v37 = vpop.eup %9799  ;;  %v2351_v2 = vmul.f32 %v9798_v60, %v11176_v34  ;;  %9817 = vpow2.f32 %v2260_v27  ;;  %v2258_v1 = vmul.f32 1.442695, %v2201_v39  ;;  %v11257_v7 = vadd.f32 %v11118_v42, %v2090_v41  ;;  %v8944_v20 = vpop.f32.mrb[62].mxu1 }
 0x32f   : > { %v9802_v46 = vpop.eup %9801  ;;  %v2349_v47 = vmul.f32 %v9800_v37, %v11180_v50  ;;  %9819 = vpow2.f32 %v2256_v54  ;;  %v2206_v61 = vsub.f32 0.0, %v11253_v56  ;;  %v11262_v62 = vadd.f32 %v8944_v20, %v11118_v42  ;;  %v2093_v32 = vpop.f32.mrb[63].mxu1 }
 0x330   : > { %v9804_v29 = vpop.eup %9803  ;;  %v2375_v8 = vpack.c.bf16 %v2351_v2, %v2350_v30  ;;  %v2294_v45 = vadd.f32 1.0, %v9802_v46  ;;  %9821 = vpow2.f32 %v2262_v21  ;;  %v2204_v34 = vsub.f32 0.0, %v11257_v7 }
 0x331   : > { %v9806_v25 = vpop.eup %9805  ;;  %v2374_v44 = vpack.c.bf16 %v2349_v47, %v2348_v14  ;;  %v2292_v9 = vadd.f32 1.0, %v9804_v29  ;;  %9823 = vpow2.f32 %v2258_v1  ;;  %v2268_v11 = vmul.f32 1.442695, %v2206_v61 }
 0x332   : > { %v9808_v3 = vpop.eup %9807  ;;  %9825 = vrcp.f32 %v2294_v45  ;;  %v2295_v50 = vadd.f32 1.0, %v9806_v25  ;;  %v2207_v27 = vsub.f32 0.0, %v11262_v62  ;;  %v2264_v23 = vmul.f32 1.442695, %v2204_v34 }
 0x333   : > { %9827 = vrcp.f32 %v2292_v9  ;;  %v2293_v57 = vadd.f32 1.0, %v9808_v3  ;;  %v11267_v54 = vadd.f32 %v11118_v42, %v2093_v32  ;;  %8959 = vmatprep.mubr.msk.bf16.mxu0 %vm567_vm1, %v2374_v44 }
 0x334   : > { %v9810_v36 = vpop.eup %9809  ;;  %9829 = vrcp.f32 %v2295_v50  ;;  %v2270_v21 = vmul.f32 1.442695, %v2207_v27  ;;  %8960 = vmatmul.mubr.msk.bf16.gmra.mrb[12].mxu0 %vm567_vm1, %v2375_v8 }
 0x335   : > { %v9812_v39 = vpop.eup %9811  ;;  %9831 = vrcp.f32 %v2293_v57  ;;  %v2205_v48 = vsub.f32 0.0, %v11267_v54  ;;  %v2354_v14 = vmul.f32 %v9810_v36, %v11187_v6 }
 0x336   : > { %v9814_v60 = vpop.eup %9813  ;;  %9833 = vpow2.f32 %v2268_v11  ;;  %v2352_v2 = vmul.f32 %v9812_v39, %v11192_v10 }
 0x337   : > { %v9816_v30 = vpop.eup %9815  ;;  %v2355_v41 = vmul.f32 %v9814_v60, %v11197_v52  ;;  %9835 = vpow2.f32 %v2264_v23  ;;  %v2266_v42 = vmul.f32 1.442695, %v2205_v48 }
 0x338   : > { %v9818_v37 = vpop.eup %9817  ;;  %v2353_v1 = vmul.f32 %v9816_v30, %v11200_v28  ;;  %9837 = vpow2.f32 %v2270_v21 }
 0x339   : > { %v9820_v20 = vpop.eup %9819  ;;  %v2377_v46 = vpack.c.bf16 %v2355_v41, %v2354_v14  ;;  %v2298_v47 = vadd.f32 1.0, %v9818_v37  ;;  %9839 = vpow2.f32 %v2266_v42 }
 0x33a   : > { %v9822_v61 = vpop.eup %9821  ;;  %v2376_v32 = vpack.c.bf16 %v2353_v1, %v2352_v2  ;;  %v2296_v29 = vadd.f32 1.0, %v9820_v20 }
 0x33b   : > { %v9824_v8 = vpop.eup %9823  ;;  %9841 = vrcp.f32 %v2298_v47  ;;  %v2299_v6 = vadd.f32 1.0, %v9822_v61 }
 0x33c   : > { %v9826_v45 = vpop.eup %9825  ;;  %9843 = vrcp.f32 %v2296_v29  ;;  %v2297_v52 = vadd.f32 1.0, %v9824_v8  ;;  %8963 = vmatprep.mubr.msk.bf16.mxu0 %vm567_vm1, %v2376_v32  ;;  %v8392_v29 = vld [vmem:[%s14220_s7 + $0x4] sm:$0xf] }
 0x33d   : > { %v9828_v34 = vpop.eup %9827  ;;  %9845 = vrcp.f32 %v2299_v6  ;;  %8964 = vmatmul.mubr.msk.bf16.gmra.mrb[16].mxu0 %vm567_vm1, %v2377_v46  ;;  %v2358_v25 = vmul.f32 %v9826_v45, %v11209_v35  ;;  %9552 = vmatprep.subr.msk.bf16.mxu0 %vm616_vm0, %v8392_v29 }
 0x33e   : > { %v9830_v10 = vpop.eup %9829  ;;  %9847 = vrcp.f32 %v2297_v52  ;;  %v2356_v3 = vmul.f32 %v9828_v34, %v11214_v59 }
 0x33f   : > { %v9832_v28 = vpop.eup %9831  ;;  %v2359_v44 = vmul.f32 %v9830_v10, %v11219_v53 }
 0x340   : > { %v9834_v9 = vpop.eup %9833  ;;  %v2357_v50 = vmul.f32 %v9832_v28, %v11222_v55 }
 0x341   : > { %v9836_v11 = vpop.eup %9835  ;;  %v2379_v27 = vpack.c.bf16 %v2359_v44, %v2358_v25  ;;  %v2302_v57 = vadd.f32 1.0, %v9834_v9 }
 0x342   : > { %v9838_v23 = vpop.eup %9837  ;;  %v2378_v36 = vpack.c.bf16 %v2357_v50, %v2356_v3  ;;  %v2300_v21 = vadd.f32 1.0, %v9836_v11 }
 0x343   : > { %v9840_v39 = vpop.eup %9839  ;;  %9849 = vrcp.f32 %v2302_v57  ;;  %v2303_v48 = vadd.f32 1.0, %v9838_v23 }
 0x344   : > { %9851 = vrcp.f32 %v2300_v21  ;;  %v2301_v60 = vadd.f32 1.0, %v9840_v39  ;;  %8967 = vmatprep.mubr.msk.bf16.mxu0 %vm567_vm1, %v2378_v36 }
 0x345   : > { %v9842_v35 = vpop.eup %9841  ;;  %9853 = vrcp.f32 %v2303_v48  ;;  %8968 = vmatmul.mubr.msk.bf16.gmra.mrb[20].mxu0 %vm567_vm1, %v2379_v27 }
 0x346   : > { %v9844_v59 = vpop.eup %9843  ;;  %9855 = vrcp.f32 %v2301_v60  ;;  %v2362_v30 = vmul.f32 %v9842_v35, %v11231_v58 }
 0x347   : > { %v9846_v53 = vpop.eup %9845  ;;  %v2360_v41 = vmul.f32 %v9844_v59, %v11235_v22 }
 0x348   : > { %v9848_v55 = vpop.eup %9847  ;;  %v2363_v14 = vmul.f32 %v9846_v53, %v11240_v24 }
 0x349   : > { %v2361_v42 = vmul.f32 %v9848_v55, %v11245_v13 }
 0x34a   : > { %v2381_v37 = vpack.c.bf16 %v2363_v14, %v2362_v30 }
 0x34b   : > { %v2380_v2 = vpack.c.bf16 %v2361_v42, %v2360_v41 }
 0x34d   : > { %v9850_v1 = vpop.eup %9849  ;;  %8971 = vmatprep.mubr.msk.bf16.mxu0 %vm567_vm1, %v2380_v2 }
 0x34e   : > { %v9852_v20 = vpop.eup %9851  ;;  %8972 = vmatmul.mubr.msk.bf16.gmra.mrb[24].mxu0 %vm567_vm1, %v2381_v37  ;;  %v2366_v61 = vmul.f32 %v9850_v1, %v11253_v56  ;;  %v3578_v56 = vsel %vm616_vm0, %v8392_v29, 0 }
 0x34f   : > { %v9854_v46 = vpop.eup %9853  ;;  %v2364_v24 = vmul.f32 %v9852_v20, %v11257_v7  ;;  %8980 = vmatpush3.bf16.msra.mxu0 %v3578_v56  ;;  %v11304_v7 = vld [vmem:[%s14219_s6] ss:$0 sm:$0xff] }
 0x350   : > { %v9856_v47 = vpop.eup %9855  ;;  %v2367_v58 = vmul.f32 %v9854_v46, %v11262_v62 }
 0x351   : > { %v2365_v22 = vmul.f32 %v9856_v47, %v11267_v54 }
 0x352   : > { %v2383_v32 = vpack.c.bf16 %v2367_v58, %v2366_v61 }
 0x353   : > { %v2382_v13 = vpack.c.bf16 %v2365_v22, %v2364_v24 }
 0x355   : > { %8975 = vmatprep.mubr.msk.bf16.mxu0 %vm567_vm1, %v2382_v13 }
 0x356   : > { %8976 = vmatmul.mubr.msk.bf16.gmra.mrb[28].mxu0 %vm567_vm1, %v2383_v32 }
 0x3ef   : > { %v8949_v62 = vpop.f32.mrb[0].mxu0 }
 0x3f0   : > { %v11307_v54 = vadd.f32 %v8949_v62, %v11304_v7  ;;  %v2477_v8 = vpop.f32.mrb[1].mxu0 }
 0x3f1   : > { %v11310_v6 = vadd.f32 %v11304_v7, %v2477_v8  ;;  %v8950_v45 = vpop.f32.mrb[2].mxu0 }
 0x3f2   : > { %v2606_v52 = vsub.f32 0.0, %v11307_v54  ;;  %v11314_v34 = vadd.f32 %v8950_v45, %v11304_v7  ;;  %v2480_v10 = vpop.f32.mrb[3].mxu0 }
 0x3f3   : > { %v2604_v28 = vsub.f32 0.0, %v11310_v6  ;;  %v11318_v25 = vadd.f32 %v11304_v7, %v2480_v10 }
 0x3f4   : > { %v2640_v44 = vmul.f32 1.442695, %v2606_v52  ;;  %v2607_v9 = vsub.f32 0.0, %v11314_v34 }
 0x3f5   : > { %v2636_v3 = vmul.f32 1.442695, %v2604_v28  ;;  %v2605_v50 = vsub.f32 0.0, %v11318_v25 }
 0x3f6   : > { %9857 = vpow2.f32 %v2640_v44  ;;  %v2642_v11 = vmul.f32 1.442695, %v2607_v9 }
 0x3f7   : > { %9859 = vpow2.f32 %v2636_v3  ;;  %v2638_v27 = vmul.f32 1.442695, %v2605_v50  ;;  %v8953_v57 = vpop.f32.mrb[4].mxu0 }
 0x3f8   : > { %9861 = vpow2.f32 %v2642_v11  ;;  %v11323_v23 = vadd.f32 %v8953_v57, %v11304_v7  ;;  %v2493_v36 = vpop.f32.mrb[5].mxu0 }
 0x3f9   : > { %9863 = vpow2.f32 %v2638_v27  ;;  %v11326_v21 = vadd.f32 %v11304_v7, %v2493_v36  ;;  %v8954_v39 = vpop.f32.mrb[6].mxu0 }
 0x3fa   : > { %v2610_v48 = vsub.f32 0.0, %v11323_v23  ;;  %v11330_v60 = vadd.f32 %v8954_v39, %v11304_v7  ;;  %v2496_v35 = vpop.f32.mrb[7].mxu0 }
 0x3fb   : > { %v2608_v59 = vsub.f32 0.0, %v11326_v21  ;;  %v11334_v53 = vadd.f32 %v11304_v7, %v2496_v35 }
 0x3fc   : > { %v2648_v55 = vmul.f32 1.442695, %v2610_v48  ;;  %v2611_v30 = vsub.f32 0.0, %v11330_v60 }
 0x3fd   : > { %v2644_v14 = vmul.f32 1.442695, %v2608_v59  ;;  %v2609_v41 = vsub.f32 0.0, %v11334_v53 }
 0x3fe   : > { %9865 = vpow2.f32 %v2648_v55  ;;  %v2650_v42 = vmul.f32 1.442695, %v2611_v30 }
 0x3ff   : > { %9867 = vpow2.f32 %v2644_v14  ;;  %v2646_v37 = vmul.f32 1.442695, %v2609_v41  ;;  %v8957_v2 = vpop.f32.mrb[8].mxu0 }
 0x400   : > { %v9858_v1 = vpop.eup %9857  ;;  %9869 = vpow2.f32 %v2650_v42  ;;  %v11339_v20 = vadd.f32 %v8957_v2, %v11304_v7  ;;  %v2509_v46 = vpop.f32.mrb[9].mxu0 }
 0x401   : > { %v9860_v47 = vpop.eup %9859  ;;  %v2702_v61 = vadd.f32 1.0, %v9858_v1  ;;  %9871 = vpow2.f32 %v2646_v37  ;;  %v11342_v58 = vadd.f32 %v11304_v7, %v2509_v46  ;;  %v8958_v24 = vpop.f32.mrb[10].mxu0 }
 0x402   : > { %v9862_v22 = vpop.eup %9861  ;;  %v2700_v32 = vadd.f32 1.0, %v9860_v47  ;;  %v2614_v13 = vsub.f32 0.0, %v11339_v20  ;;  %v11346_v29 = vadd.f32 %v8958_v24, %v11304_v7  ;;  %v2512_v56 = vpop.f32.mrb[11].mxu0 }
 0x403   : > { %v9864_v62 = vpop.eup %9863  ;;  %9873 = vrcp.f32 %v2702_v61  ;;  %v2703_v8 = vadd.f32 1.0, %v9862_v22  ;;  %v2612_v45 = vsub.f32 0.0, %v11342_v58  ;;  %v11350_v52 = vadd.f32 %v11304_v7, %v2512_v56 }
 0x404   : > { %9875 = vrcp.f32 %v2700_v32  ;;  %v2701_v10 = vadd.f32 1.0, %v9864_v62  ;;  %v2656_v28 = vmul.f32 1.442695, %v2614_v13  ;;  %v2615_v44 = vsub.f32 0.0, %v11346_v29 }
 0x405   : > { %9877 = vrcp.f32 %v2703_v8  ;;  %v2652_v9 = vmul.f32 1.442695, %v2612_v45  ;;  %v2613_v3 = vsub.f32 0.0, %v11350_v52 }
 0x406   : > { %9879 = vrcp.f32 %v2701_v10  ;;  %v2658_v50 = vmul.f32 1.442695, %v2615_v44 }
 0x407   : > { %9881 = vpow2.f32 %v2656_v28  ;;  %v2654_v11 = vmul.f32 1.442695, %v2613_v3  ;;  %v8961_v27 = vpop.f32.mrb[12].mxu0 }
 0x408   : > { %v9866_v57 = vpop.eup %9865  ;;  %9883 = vpow2.f32 %v2652_v9  ;;  %v11355_v36 = vadd.f32 %v8961_v27, %v11304_v7  ;;  %v2525_v39 = vpop.f32.mrb[13].mxu0 }
 0x409   : > { %v9868_v48 = vpop.eup %9867  ;;  %v2706_v35 = vadd.f32 1.0, %v9866_v57  ;;  %9885 = vpow2.f32 %v2658_v50  ;;  %v11358_v59 = vadd.f32 %v11304_v7, %v2525_v39  ;;  %v8962_v55 = vpop.f32.mrb[14].mxu0 }
 0x40a   : > { %v9870_v30 = vpop.eup %9869  ;;  %v2704_v14 = vadd.f32 1.0, %v9868_v48  ;;  %9887 = vpow2.f32 %v2654_v11  ;;  %v2618_v41 = vsub.f32 0.0, %v11355_v36  ;;  %v11362_v42 = vadd.f32 %v8962_v55, %v11304_v7  ;;  %v2528_v37 = vpop.f32.mrb[15].mxu0 }
 0x40b   : > { %v9872_v2 = vpop.eup %9871  ;;  %9889 = vrcp.f32 %v2706_v35  ;;  %v2707_v1 = vadd.f32 1.0, %v9870_v30  ;;  %v2616_v46 = vsub.f32 0.0, %v11358_v59  ;;  %v11366_v47 = vadd.f32 %v11304_v7, %v2528_v37 }
 0x40c   : > { %9891 = vrcp.f32 %v2704_v14  ;;  %v2705_v61 = vadd.f32 1.0, %v9872_v2  ;;  %v2664_v24 = vmul.f32 1.442695, %v2618_v41  ;;  %v2619_v22 = vsub.f32 0.0, %v11362_v42 }
 0x40d   : > { %v9874_v32 = vpop.eup %9873  ;;  %9893 = vrcp.f32 %v2707_v1  ;;  %v2660_v13 = vmul.f32 1.442695, %v2616_v46  ;;  %v2617_v56 = vsub.f32 0.0, %v11366_v47 }
 0x40e   : > { %v9876_v62 = vpop.eup %9875  ;;  %9895 = vrcp.f32 %v2705_v61  ;;  %v2666_v8 = vmul.f32 1.442695, %v2619_v22  ;;  %v2766_v44 = vmul.f32 %v9874_v32, %v11307_v54 }
 0x40f   : > { %v9878_v45 = vpop.eup %9877  ;;  %9897 = vpow2.f32 %v2664_v24  ;;  %v2662_v10 = vmul.f32 1.442695, %v2617_v56  ;;  %v2764_v11 = vmul.f32 %v9876_v62, %v11310_v6 }
 0x410   : > { %v9880_v28 = vpop.eup %9879  ;;  %v2767_v9 = vmul.f32 %v9878_v45, %v11314_v34  ;;  %9899 = vpow2.f32 %v2660_v13  ;;  %v8965_v3 = vpop.f32.mrb[16].mxu0 }
 0x411   : > { %v9882_v50 = vpop.eup %9881  ;;  %v2765_v27 = vmul.f32 %v9880_v28, %v11318_v25  ;;  %9901 = vpow2.f32 %v2666_v8  ;;  %v11375_v57 = vadd.f32 %v8965_v3, %v11304_v7  ;;  %v2541_v39 = vpop.f32.mrb[17].mxu0 }
 0x412   : > { %v9884_v48 = vpop.eup %9883  ;;  %v11377_v35 = vpack.c.bf16 %v2767_v9, %v2766_v44  ;;  %v2710_v55 = vadd.f32 1.0, %v9882_v50  ;;  %9903 = vpow2.f32 %v2662_v10  ;;  %v11380_v54 = vadd.f32 %v11304_v7, %v2541_v39  ;;  %v8966_v34 = vpop.f32.mrb[18].mxu0 }
 0x413   : > { %v9886_v30 = vpop.eup %9885  ;;  %v11382_v14 = vpack.c.bf16 %v2765_v27, %v2764_v11  ;;  %v2708_v6 = vadd.f32 1.0, %v9884_v48  ;;  %v2622_v25 = vsub.f32 0.0, %v11375_v57  ;;  %v11386_v41 = vadd.f32 %v8966_v34, %v11304_v7  ;;  %v11388_v37 = vpop.f32.mrb[19].mxu0 }
 0x414   : > { %14348 = vst [vmem:[#allocation21_spill] sm:$0xff] %v11377_v35  ;;  %v9888_v2 = vpop.eup %9887  ;;  %v2830_v1 = vrot.slane %v11377_v35, 7  ;;  %9905 = vrcp.f32 %v2710_v55  ;;  %v2711_v46 = vadd.f32 1.0, %v9886_v30 }
 0x415   : > { %14349 = vst [vmem:[#allocation22_spill] sm:$0xff] %v11382_v14  ;;  %v9890_v24 = vpop.eup %9889  ;;  %v2829_v22 = vrot.slane %v11382_v14, 7  ;;  %9907 = vrcp.f32 %v2708_v6  ;;  %v11393_v32 = vadd.f32 1.0, %v9888_v2  ;;  %v11395_v13 = vmul.f32 1.442695, %v2622_v25 }
 0x416   : > { %v9892_v56 = vpop.eup %9891  ;;  %v11398_v62 = vsel %vm1117_vm5, 4286644096, %v2830_v1  ;;  %v11401_v8 = vsel %vm1117_vm5, %v2830_v1, 4286644096  ;;  %v11404_v45 = vmul.f32 %v9890_v24, %v11323_v23  ;;  %9909 = vrcp.f32 %v2711_v46 }
 0x417   : > { %v9894_v10 = vpop.eup %9893  ;;  %v2921_v28 = vshrl.u32 %v11398_v62, 16  ;;  %v2923_v44 = vshll.u32 %v11398_v62, 16  ;;  %v2927_v9 = vshll.u32 %v11401_v8, 16  ;;  %v3229_v27 = vshrl.u32 %v11401_v8, 16 }
 0x418   : > { %v9896_v50 = vpop.eup %9895  ;;  %v11414_v48 = vpop.f32.mrb[20].mxu0  ;;  %v11427_v39 = vsel %vm1117_vm5, 4286644096, %v2829_v22  ;;  %v11430_v23 = vsel %vm1117_vm5, %v2829_v22, 4286644096  ;;  %v2768_v49 = vmul.f32 %v9892_v56, %v11326_v21  ;;  %9911 = vrcp.f32 %v11393_v32 }
 0x419   : > { %v9898_v55 = vpop.eup %9897  ;;  %v2925_v34 = vrot.slane %v2923_v44, 1  ;;  %v2929_v30 = vrot.slane %v2927_v9, 1  ;;  %v11416_v6 = vrot.slane %v2921_v28, 1  ;;  %v11418_v25 = vrot.slane %v2923_v44, 2  ;;  %v11420_v2 = vpop.f32.mrb[21].mxu0 }
 0x41a   : > { %v9900_v1 = vpop.eup %9899  ;;  %v11422_v46 = vrot.slane %v3229_v27, 1  ;;  %v11424_v24 = vrot.slane %v2927_v9, 2  ;;  %v2911_v44 = vshrl.u32 %v11427_v39, 16  ;;  %v2913_v19 = vshll.u32 %v11427_v39, 16  ;;  %v11436_v51 = vpop.f32.mrb[22].mxu0 }
 0x41b   : > { %14350 = vst [vmem:[#allocation23_spill] sm:$0xff] %v11416_v6  ;;  %14351 = vst [vmem:[#allocation24_spill] sm:$0xff] %v11418_v25  ;;  %v9902_v3 = vpop.eup %9901  ;;  %v2926_v11 = vor.u32 %v2925_v34, %v2921_v28  ;;  %v2917_v40 = vshll.u32 %v11430_v23, 16  ;;  %v11443_v28 = vpop.f32.mrb[23].mxu0  ;;  %v3220_v26 = vshrl.u32 %v11430_v23, 16  ;;  %v2771_v9 = vmul.f32 %v9894_v10, %v11330_v60 }
 0x41c   : > { %14352 = vst [vmem:[#allocation25_spill] sm:$0xff] %v11422_v46  ;;  %14353 = vst [vmem:[#allocation26_spill] sm:$0xff] %v11424_v24  ;;  %v9904_v27 = vpop.eup %9903  ;;  %v2915_v61 = vrot.slane %v2913_v19, 1  ;;  %v11448_v5 = vrot.slane %v2911_v44, 1  ;;  %v11450_v31 = vrot.slane %v2913_v19, 2  ;;  %v2769_v43 = vmul.f32 %v9896_v50, %v11334_v53 }
 0x41d   : > { %v11446_v34 = vsel %vm1283_vm3, %v2926_v11, %v2929_v30  ;;  %v2919_v12 = vrot.slane %v2917_v40, 1  ;;  %v11455_v22 = vrot.slane %v2917_v40, 2  ;;  %v11461_v33 = vrot.slane %v3220_v26, 1 }
 0x41e   : > { %14354 = vst [vmem:[#allocation27_spill] sm:$0xff] %v11448_v5  ;;  %14355 = vst [vmem:[#allocation28_spill] sm:$0xff] %v11450_v31  ;;  %v9906_v17 = vpop.eup %9905  ;;  %v2916_v18 = vor.u32 %v2915_v61, %v2911_v44  ;;  %v11494_v10 = vadd.f32 1.0, %v9902_v3  ;;  %v14361_v32 = vsub.f32 0.0, %v11380_v54 }
 0x41f   : > { %14356 = vst [vmem:[#allocation29_spill] sm:$0xff] %v11455_v22  ;;  %v9908_v16 = vpop.eup %9907  ;;  %14357 = vst [vmem:[#allocation30_spill] sm:$0xff] %v11461_v33  ;;  %v2774_v61 = vmul.f32 %v9906_v17, %v11339_v20  ;;  %v2712_v20 = vadd.f32 1.0, %v9900_v1 }
 0x420   : > { %v9910_v19 = vpop.eup %9909  ;;  %v11467_v40 = vsel %vm1283_vm3, %v2916_v18, %v2919_v12  ;;  %v11471_v44 = vmul.f32 %v9908_v16, %v11342_v58  ;;  %v11481_v18 = vpack.c.bf16 %v2771_v9, %v11404_v45  ;;  %v11483_v12 = vpack.c.bf16 %v2769_v43, %v2768_v49 }
 0x421   : > { %v2775_v30 = vmul.f32 %v9910_v19, %v11346_v29  ;;  %v11474_v26 = vpop.f32.mrb[24].mxu0  ;;  %v2714_v16 = vadd.f32 1.0, %v9898_v55  ;;  %v11496_v45 = vadd.f32 1.0, %v9904_v27  ;;  %v11503_v50 = vmul.f32 1.442695, %v14361_v32 }
 0x422   : > { %14358 = vst [vmem:[#allocation31_spill] sm:$0xff] %v11481_v18  ;;  %14359 = vst [vmem:[#allocation32_spill] sm:$0xff] %v11483_v12  ;;  %v11485_v53 = vpop.f32.mrb[25].mxu0  ;;  %v2832_v29 = vrot.slane %v11481_v18, 7  ;;  %v2831_v56 = vrot.slane %v11483_v12, 7 }
 0x423   : > { %v11487_v17 = vpack.c.bf16 %v2775_v30, %v2774_v61  ;;  %v11490_v58 = vpop.f32.mrb[26].mxu0  ;;  %9913 = vrcp.f32 %v2714_v16 }
 0x424   : > { %v11498_v43 = vpop.f32.mrb[27].mxu0  ;;  %v2857_v1 = vsel %vm1117_vm5, 4286644096, %v2832_v29  ;;  %v2898_v9 = vsel %vm1117_vm5, %v2832_v29, 4286644096  ;;  %9915 = vrcp.f32 %v2712_v20 }
 0x425   : > { %14360 = vst [vmem:[#allocation33_spill] sm:$0xff] %v11487_v17  ;;  %v2834_v49 = vrot.slane %v11487_v17, 7  ;;  %v11509_v3 = vsel %vm1117_vm5, 4286644096, %v2831_v56  ;;  %v2941_v27 = vshrl.u32 %v2857_v1, 16  ;;  %v2943_v30 = vshll.u32 %v2857_v1, 16 }
 0x426   : > { %v2947_v19 = vshll.u32 %v2898_v9, 16  ;;  %v3145_v61 = vrot.slane %v2857_v1, 1  ;;  %v3146_v38 = vrot.slane %v2898_v9, 1  ;;  %v3247_v16 = vshrl.u32 %v2898_v9, 16 }
 0x427   : > { %v3403_v11 = vrot.slane %v2857_v1, 2  ;;  %v3404_v60 = vrot.slane %v2898_v9, 2  ;;  %v2945_v32 = vrot.slane %v2943_v30, 1  ;;  %v3244_v4 = vrot.slane %v2941_v27, 1 }
 0x428   : > { %v2949_v21 = vrot.slane %v2947_v19, 1  ;;  %v3245_v55 = vrot.slane %v2943_v30, 2  ;;  %v3147_v29 = vsel %vm3135_vm11, %v3145_v61, %v3146_v38  ;;  %v3249_v63 = vrot.slane %v3247_v16, 1 }
 0x429   : > { %v11511_v0 = vpop.f32.mrb[28].mxu0  ;;  %v3250_v15 = vrot.slane %v2947_v19, 2  ;;  %v3405_v20 = vsel %vm3393_vm12, %v3403_v11, %v3404_v60  ;;  %v2946_v18 = vor.u32 %v2945_v32, %v2941_v27  ;;  %v11518_v35 = vsel %vm1117_vm5, %v2831_v56, 4286644096  ;;  %v9912_v11 = vpop.eup %9911 }
 0x42a   : > { %v11515_v17 = vpop.f32.mrb[29].mxu0  ;;  %v3246_v12 = vor.u32 %v3245_v55, %v3244_v4  ;;  %v2931_v9 = vshrl.u32 %v11509_v3, 16  ;;  %v2933_v6 = vshll.u32 %v11509_v3, 16  ;;  %v2937_v38 = vshll.u32 %v11518_v35, 16 }
 0x42b   : > { %v11521_v14 = vpop.f32.mrb[30].mxu0  ;;  %v3251_v30 = vor.u32 %v3250_v15, %v3249_v63  ;;  %v2950_v60 = vsel %vm1283_vm3, %v2946_v18, %v2949_v21  ;;  %v3238_v55 = vshrl.u32 %v11518_v35, 16  ;;  %9917 = vrcp.f32 %v11494_v10 }
 0x42c   : > { %v11526_v61 = vpop.f32.mrb[31].mxu0  ;;  %v11530_v56 = vrot.slane %v2931_v9, 1  ;;  %v3090_v27 = vmax.bf16 %v2950_v60, %v2857_v1  ;;  %v2935_v15 = vrot.slane %v2933_v6, 1  ;;  %v2939_v16 = vrot.slane %v2937_v38, 1 }
 0x42d   : > { %v3252_v63 = vsel %vm3216_vm13, %v3246_v12, %v3251_v30  ;;  %v9914_v32 = vpop.eup %9913  ;;  %v11534_v25 = vrot.slane %v2933_v6, 2  ;;  %v11536_v19 = vrot.slane %v3238_v55, 1  ;;  %v11538_v46 = vrot.slane %v2937_v38, 2 }
 0x42e   : > { %14362 = vst [vmem:[#allocation34_spill] sm:$0xff] %v11530_v56  ;;  %v9916_v18 = vpop.eup %9915  ;;  %v3203_v4 = vmax.bf16 %v3147_v29, %v3090_v27  ;;  %v2936_v24 = vor.u32 %v2935_v15, %v2931_v9  ;;  %v2863_v1 = vsel %vm1117_vm5, 4286644096, %v2834_v49  ;;  %v2900_v30 = vsel %vm1117_vm5, %v2834_v49, 4286644096 }
 0x42f   : > { %14363 = vst [vmem:[#allocation35_spill] sm:$0xff] %v11534_v25  ;;  %14364 = vst [vmem:[#allocation36_spill] sm:$0xff] %v11536_v19  ;;  %v2961_v60 = vshrl.u32 %v2863_v1, 16  ;;  %v2963_v21 = vshll.u32 %v2863_v1, 16  ;;  %v2967_v29 = vshll.u32 %v2900_v30, 16  ;;  %v3151_v27 = vrot.slane %v2863_v1, 1 }
 0x430   : > { %14365 = vst [vmem:[#allocation37_spill] sm:$0xff] %v11538_v46  ;;  %v3380_v38 = vmax.bf16 %v3252_v63, %v3203_v4  ;;  %v11549_v55 = vsel %vm1283_vm3, %v2936_v24, %v2939_v16  ;;  %v3152_v15 = vrot.slane %v2900_v30, 1  ;;  %v3265_v25 = vshrl.u32 %v2900_v30, 16 }
 0x431   : > { %v3262_v5 = vrot.slane %v2961_v60, 1  ;;  %v2965_v12 = vrot.slane %v2963_v21, 1  ;;  %v2969_v56 = vrot.slane %v2967_v29, 1  ;;  %v3263_v6 = vrot.slane %v2963_v21, 2 }
 0x432   : > { %v11553_v31 = vmax.bf16 %v3405_v20, %v3380_v38  ;;  %v3153_v49 = vsel %vm3135_vm11, %v3151_v27, %v3152_v15  ;;  %v3268_v4 = vrot.slane %v2967_v29, 2  ;;  %v3409_v63 = vrot.slane %v2863_v1, 2 }
 0x433   : > { %v2966_v24 = vor.u32 %v2965_v12, %v2961_v60  ;;  %v3264_v16 = vor.u32 %v3263_v6, %v3262_v5  ;;  %v3410_v19 = vrot.slane %v2900_v30, 2  ;;  %v2773_v46 = vmul.f32 %v9912_v11, %v11350_v52 }
 0x434   : > { %v3267_v33 = vrot.slane %v3265_v25, 1  ;;  %v2778_v9 = vmul.f32 %v9914_v32, %v11355_v36  ;;  %v2776_v22 = vmul.f32 %v9916_v18, %v11358_v59  ;;  %9919 = vrcp.f32 %v11496_v45 }
 0x435   : > { %v2970_v20 = vsel %vm1283_vm3, %v2966_v24, %v2969_v56  ;;  %v3411_v21 = vsel %vm3393_vm12, %v3409_v63, %v3410_v19  ;;  %v11563_v38 = vpack.c.bf16 %v2773_v46, %v11471_v44  ;;  %9921 = vpow2.f32 %v11395_v13  ;;  %v9918_v24 = vpop.eup %9917 }
 0x436   : > { %v3092_v5 = vmax.bf16 %v2970_v20, %v2863_v1  ;;  %v3269_v12 = vor.u32 %v3268_v4, %v3267_v33  ;;  %v14367_v52 = vsub.f32 0.0, %v11386_v41  ;;  %9923 = vpow2.f32 %v11503_v50  ;;  %v11582_v33 = vld [vmem:[%s14220_s7] sm:$0xf] }
 0x437   : > { %14366 = vst [vmem:[#allocation38_spill] sm:$0xff] %v11563_v38  ;;  %v2833_v59 = vrot.slane %v11563_v38, 7  ;;  %v11573_v25 = vadd.f32 %v11304_v7, %v11388_v37  ;;  %v11577_v46 = vadd.f32 %v11414_v48, %v11304_v7  ;;  %v11587_v10 = vadd.f32 %v11304_v7, %v11420_v2  ;;  %9553 = vmatprep.subr.msk.bf16.mxu0 %vm616_vm0, %v11582_v33 }
 0x438   : > { %v2674_v36 = vmul.f32 1.442695, %v14367_v52  ;;  %v3205_v13 = vmax.bf16 %v3153_v49, %v3092_v5  ;;  %v3270_v44 = vsel %vm3216_vm13, %v3264_v16, %v3269_v12 }
 0x439   : > { %v2860_v37 = vsel %vm1117_vm5, 4286644096, %v2833_v59  ;;  %v2899_v48 = vsel %vm1117_vm5, %v2833_v59, 4286644096  ;;  %v2621_v45 = vsub.f32 0.0, %v11573_v25  ;;  %v2626_v50 = vsub.f32 0.0, %v11577_v46 }
 0x43a   : > { %9925 = vpow2.f32 %v2674_v36  ;;  %v3382_v19 = vmax.bf16 %v3270_v44, %v3205_v13  ;;  %v2951_v11 = vshrl.u32 %v2860_v37, 16  ;;  %v2953_v56 = vshll.u32 %v2860_v37, 16 }
 0x43b   : > { %v2957_v32 = vshll.u32 %v2899_v48, 16  ;;  %v3148_v18 = vrot.slane %v2860_v37, 1  ;;  %v3149_v1 = vrot.slane %v2899_v48, 1  ;;  %v3256_v6 = vshrl.u32 %v2899_v48, 16 }
 0x43c   : > { %v3406_v2 = vrot.slane %v2860_v37, 2  ;;  %v11595_v30 = vmax.bf16 %v3411_v21, %v3382_v19  ;;  %v2955_v60 = vrot.slane %v2953_v56, 1  ;;  %v3253_v27 = vrot.slane %v2951_v11, 1 }
 0x43d   : > { %v2959_v29 = vrot.slane %v2957_v32, 1  ;;  %v3150_v15 = vsel %vm3135_vm11, %v3148_v18, %v3149_v1  ;;  %v3254_v49 = vrot.slane %v2953_v56, 2  ;;  %v3258_v4 = vrot.slane %v3256_v6, 1 }
 0x43e   : > { %v3259_v63 = vrot.slane %v2957_v32, 2  ;;  %v2956_v16 = vor.u32 %v2955_v60, %v2951_v11  ;;  %v3407_v20 = vrot.slane %v2899_v48, 2  ;;  %v2670_v5 = vmul.f32 1.442695, %v2621_v45  ;;  %v9920_v52 = vpop.eup %9919 }
 0x43f   : > { %v2680_v12 = vmul.f32 1.442695, %v2626_v50  ;;  %v3255_v36 = vor.u32 %v3254_v49, %v3253_v27  ;;  %v2779_v13 = vmul.f32 %v9918_v24, %v11362_v42  ;;  %v2624_v21 = vsub.f32 0.0, %v11587_v10  ;;  %v9922_v44 = vpop.eup %9921 }
 0x440   : > { %v3260_v59 = vor.u32 %v3259_v63, %v3258_v4  ;;  %v2960_v19 = vsel %vm1283_vm3, %v2956_v16, %v2959_v29  ;;  %v3408_v18 = vsel %vm3393_vm12, %v3406_v2, %v3407_v20  ;;  %v2777_v56 = vmul.f32 %v9920_v52, %v11366_v47  ;;  %v9924_v32 = vpop.eup %9923 }
 0x441   : > { %9927 = vpow2.f32 %v2670_v5  ;;  %v3091_v11 = vmax.bf16 %v2960_v19, %v2860_v37  ;;  %v11604_v45 = vpack.c.bf16 %v2779_v13, %v2778_v9  ;;  %v2718_v50 = vadd.f32 1.0, %v9922_v44 }
 0x442   : > { %v3261_v48 = vsel %vm3216_vm13, %v3255_v36, %v3260_v59  ;;  %v11606_v6 = vpack.c.bf16 %v2777_v56, %v2776_v22  ;;  %v2716_v42 = vadd.f32 1.0, %v9924_v32  ;;  %9929 = vpow2.f32 %v2680_v12 }
 0x443   : > { %14368 = vst [vmem:[#allocation39_spill] sm:$0xff] %v11604_v45  ;;  %v11608_v60 = vmul.f32 1.442695, %v2624_v21  ;;  %v3204_v29 = vmax.bf16 %v3150_v15, %v3091_v11  ;;  %v2836_v2 = vrot.slane %v11604_v45, 7  ;;  %9931 = vrcp.f32 %v2718_v50 }
 0x444   : > { %v9926_v1 = vpop.eup %9925  ;;  %14369 = vst [vmem:[#allocation40_spill] sm:$0xff] %v11606_v6  ;;  %v2835_v27 = vrot.slane %v11606_v6, 7  ;;  %9933 = vrcp.f32 %v2716_v42  ;;  %v11614_v9 = vadd.f32 %v11436_v51, %v11304_v7  ;;  %v11618_v22 = vadd.f32 %v11304_v7, %v11443_v28 }
 0x445   : > { %v2719_v47 = vadd.f32 1.0, %v9926_v1  ;;  %v3381_v37 = vmax.bf16 %v3261_v48, %v3204_v29  ;;  %v2869_v49 = vsel %vm1117_vm5, 4286644096, %v2836_v2  ;;  %v2902_v15 = vsel %vm1117_vm5, %v2836_v2, 4286644096 }
 0x446   : > { %v2981_v4 = vshrl.u32 %v2869_v49, 16  ;;  %v2983_v63 = vshll.u32 %v2869_v49, 16  ;;  %v2987_v24 = vshll.u32 %v2902_v15, 16  ;;  %v3157_v16 = vrot.slane %v2869_v49, 1 }
 0x447   : > { %9935 = vrcp.f32 %v2719_v47  ;;  %v11622_v20 = vmax.bf16 %v3408_v18, %v3381_v37  ;;  %v3158_v5 = vrot.slane %v2902_v15, 1  ;;  %v3283_v12 = vshrl.u32 %v2902_v15, 16 }
 0x448   : > { %v3415_v51 = vrot.slane %v2869_v49, 2  ;;  %v2985_v52 = vrot.slane %v2983_v63, 1  ;;  %v2989_v36 = vrot.slane %v2987_v24, 1  ;;  %v3280_v59 = vrot.slane %v2981_v4, 1 }
 0x449   : > { %v3281_v28 = vrot.slane %v2983_v63, 2  ;;  %v3159_v13 = vsel %vm3135_vm11, %v3157_v16, %v3158_v5  ;;  %v3285_v21 = vrot.slane %v3283_v12, 1  ;;  %v3286_v44 = vrot.slane %v2987_v24, 2 }
 0x44a   : > { %v3416_v19 = vrot.slane %v2902_v15, 2  ;;  %v2986_v32 = vor.u32 %v2985_v52, %v2981_v4  ;;  %v2866_v48 = vsel %vm1117_vm5, 4286644096, %v2835_v27  ;;  %v2901_v18 = vsel %vm1117_vm5, %v2835_v27, 4286644096 }
 0x44b   : > { %v9928_v56 = vpop.eup %9927  ;;  %v3282_v11 = vor.u32 %v3281_v28, %v3280_v59  ;;  %v3287_v50 = vor.u32 %v3286_v44, %v3285_v21  ;;  %v2971_v42 = vshrl.u32 %v2866_v48, 16  ;;  %v2973_v29 = vshll.u32 %v2866_v48, 16 }
 0x44c   : > { %v3417_v1 = vsel %vm3393_vm12, %v3415_v51, %v3416_v19  ;;  %v9930_v2 = vpop.eup %9929  ;;  %v2990_v47 = vsel %vm1283_vm3, %v2986_v32, %v2989_v36  ;;  %v2977_v37 = vshll.u32 %v2901_v18, 16  ;;  %v3154_v63 = vrot.slane %v2866_v48, 1 }
 0x44d   : > { %v3155_v16 = vrot.slane %v2901_v18, 1  ;;  %v9932_v24 = vpop.eup %9931  ;;  %v3094_v15 = vmax.bf16 %v2990_v47, %v2869_v49  ;;  %v3288_v4 = vsel %vm3216_vm13, %v3282_v11, %v3287_v50  ;;  %v2975_v5 = vrot.slane %v2973_v29, 1 }
 0x44e   : > { %v3271_v12 = vrot.slane %v2971_v42, 1  ;;  %v9934_v52 = vpop.eup %9933  ;;  %v2979_v59 = vrot.slane %v2977_v37, 1  ;;  %v3272_v28 = vrot.slane %v2973_v29, 2  ;;  %v3274_v51 = vshrl.u32 %v2901_v18, 16 }
 0x44f   : > { %v3156_v27 = vsel %vm3135_vm11, %v3154_v63, %v3155_v16  ;;  %v3207_v44 = vmax.bf16 %v3159_v13, %v3094_v15  ;;  %v2976_v19 = vor.u32 %v2975_v5, %v2971_v42  ;;  %v3277_v45 = vrot.slane %v2977_v37, 2 }
 0x450   : > { %v3412_v36 = vrot.slane %v2866_v48, 2  ;;  %v3273_v32 = vor.u32 %v3272_v28, %v3271_v12  ;;  %v3276_v6 = vrot.slane %v3274_v51, 1  ;;  %v3413_v38 = vrot.slane %v2901_v18, 2 }
 0x451   : > { %v9936_v21 = vpop.eup %9935  ;;  %v2782_v49 = vmul.f32 %v9932_v24, %v11375_v57  ;;  %v3384_v47 = vmax.bf16 %v3288_v4, %v3207_v44  ;;  %v2980_v11 = vsel %vm1283_vm3, %v2976_v19, %v2979_v59  ;;  %v11634_v50 = vmul.f32 %v9934_v52, %v11380_v54 }
 0x452   : > { %v2783_v63 = vmul.f32 %v9936_v21, %v11386_v41  ;;  %v3093_v29 = vmax.bf16 %v2980_v11, %v2866_v48  ;;  %v3278_v16 = vor.u32 %v3277_v45, %v3276_v6  ;;  %v3414_v13 = vsel %vm3393_vm12, %v3412_v36, %v3413_v38 }
 0x453   : > { %v2717_v42 = vadd.f32 1.0, %v9928_v56  ;;  %v11638_v37 = vmax.bf16 %v3417_v1, %v3384_v47  ;;  %v2722_v18 = vadd.f32 1.0, %v9930_v2  ;;  %9937 = vpow2.f32 %v11608_v60 }
 0x454   : > { %v11640_v15 = vpack.c.bf16 %v2783_v63, %v2782_v49  ;;  %v3206_v57 = vmax.bf16 %v3156_v27, %v3093_v29  ;;  %v3279_v24 = vsel %vm3216_vm13, %v3273_v32, %v3278_v16  ;;  %v2627_v54 = vsub.f32 0.0, %v11614_v9 }
 0x455   : > { %9939 = vrcp.f32 %v2717_v42  ;;  %v2625_v45 = vsub.f32 0.0, %v11618_v22  ;;  %v11649_v38 = vadd.f32 %v11474_v26, %v11304_v7  ;;  %v11653_v60 = vadd.f32 %v11304_v7, %v11485_v53 }
 0x456   : > { %14370 = vst [vmem:[#allocation41_spill] sm:$0xff] %v11640_v15  ;;  %v2838_v41 = vrot.slane %v11640_v15, 7  ;;  %9941 = vrcp.f32 %v2722_v18  ;;  %v3383_v6 = vmax.bf16 %v3279_v24, %v3206_v57  ;;  %v2682_v56 = vmul.f32 1.442695, %v2627_v54 }
 0x457   : > { %v11657_v48 = vadd.f32 %v11490_v58, %v11304_v7  ;;  %v2678_v4 = vmul.f32 1.442695, %v2625_v45  ;;  %v11663_v5 = vadd.f32 %v11304_v7, %v11498_v43  ;;  %v2630_v63 = vsub.f32 0.0, %v11649_v38 }
 0x458   : > { %v2875_v1 = vsel %vm1117_vm5, 4286644096, %v2838_v41  ;;  %v2904_v2 = vsel %vm1117_vm5, %v2838_v41, 4286644096  ;;  %v11665_v26 = vmax.bf16 %v3414_v13, %v3383_v6  ;;  %9943 = vpow2.f32 %v2682_v56 }
 0x459   : > { %v3001_v12 = vshrl.u32 %v2875_v1, 16  ;;  %v3003_v52 = vshll.u32 %v2875_v1, 16  ;;  %v3007_v59 = vshll.u32 %v2904_v2, 16  ;;  %v3163_v53 = vrot.slane %v2875_v1, 1 }
 0x45a   : > { %v3164_v27 = vrot.slane %v2904_v2, 1  ;;  %v3301_v28 = vshrl.u32 %v2904_v2, 16  ;;  %v3421_v51 = vrot.slane %v2875_v1, 2  ;;  %v3422_v47 = vrot.slane %v2904_v2, 2 }
 0x45b   : > { %v3005_v58 = vrot.slane %v3003_v52, 1  ;;  %v3009_v21 = vrot.slane %v3007_v59, 1  ;;  %v3298_v44 = vrot.slane %v3001_v12, 1  ;;  %v3299_v19 = vrot.slane %v3003_v52, 2 }
 0x45c   : > { %v3165_v36 = vsel %vm3135_vm11, %v3163_v53, %v3164_v27  ;;  %v3303_v32 = vrot.slane %v3301_v28, 1  ;;  %v3304_v49 = vrot.slane %v3007_v59, 2  ;;  %v3423_v13 = vsel %vm3393_vm12, %v3421_v51, %v3422_v47 }
 0x45d   : > { %v3006_v43 = vor.u32 %v3005_v58, %v3001_v12  ;;  %v3300_v11 = vor.u32 %v3299_v19, %v3298_v44  ;;  %v9938_v29 = vpop.eup %9937  ;;  %9945 = vpow2.f32 %v2678_v4  ;;  %v2628_v42 = vsub.f32 0.0, %v11653_v60 }
 0x45e   : > { %v3305_v16 = vor.u32 %v3304_v49, %v3303_v32  ;;  %v2720_v24 = vadd.f32 1.0, %v9938_v29  ;;  %v2688_v54 = vmul.f32 1.442695, %v2630_v63  ;;  %v2631_v41 = vsub.f32 0.0, %v11657_v48 }
 0x45f   : > { %v9940_v18 = vpop.eup %9939  ;;  %v3010_v57 = vsel %vm1283_vm3, %v3006_v43, %v3009_v21  ;;  %v2684_v12 = vmul.f32 1.442695, %v2628_v42  ;;  %v2629_v59 = vsub.f32 0.0, %v11663_v5  ;;  %v11700_v44 = vadd.f32 %v11304_v7, %v11526_v61 }
 0x460   : > { %v9942_v45 = vpop.eup %9941  ;;  %v3096_v6 = vmax.bf16 %v3010_v57, %v2875_v1  ;;  %v3306_v56 = vsel %vm3216_vm13, %v3300_v11, %v3305_v16  ;;  %v2781_v2 = vmul.f32 %v9940_v18, %v11573_v25  ;;  %9947 = vrcp.f32 %v2720_v24 }
 0x461   : > { %v11676_v52 = vmul.f32 %v9942_v45, %v11577_v46  ;;  %v2690_v4 = vmul.f32 1.442695, %v2631_v41  ;;  %9949 = vpow2.f32 %v2688_v54  ;;  %v11684_v1 = vadd.f32 %v11511_v0, %v11304_v7 }
 0x462   : > { %v3209_v53 = vmax.bf16 %v3165_v36, %v3096_v6  ;;  %v11680_v27 = vpack.c.bf16 %v2781_v2, %v11634_v50  ;;  %9951 = vpow2.f32 %v2684_v12  ;;  %v2686_v28 = vmul.f32 1.442695, %v2629_v59  ;;  %v9944_v32 = vpop.eup %9943 }
 0x463   : > { %v11688_v25 = vadd.f32 %v11304_v7, %v11515_v17  ;;  %v11692_v46 = vadd.f32 %v11521_v14, %v11304_v7  ;;  %9953 = vpow2.f32 %v2690_v4  ;;  %v2634_v50 = vsub.f32 0.0, %v11684_v1 }
 0x464   : > { %14371 = vst [vmem:[#allocation42_spill] sm:$0xff] %v11680_v27  ;;  %v3386_v51 = vmax.bf16 %v3306_v56, %v3209_v53  ;;  %v2837_v58 = vrot.slane %v11680_v27, 7  ;;  %9955 = vpow2.f32 %v2686_v28  ;;  %v2723_v12 = vadd.f32 1.0, %v9944_v32 }
 0x465   : > { %v2632_v0 = vsub.f32 0.0, %v11688_v25  ;;  %v2635_v21 = vsub.f32 0.0, %v11692_v46  ;;  %v2696_v36 = vmul.f32 1.442695, %v2634_v50 }
 0x466   : > { %v11702_v17 = vmax.bf16 %v3423_v13, %v3386_v51  ;;  %v2872_v14 = vsel %vm1117_vm5, 4286644096, %v2837_v58  ;;  %v2903_v19 = vsel %vm1117_vm5, %v2837_v58, 4286644096 }
 0x467   : > { %v2991_v49 = vshrl.u32 %v2872_v14, 16  ;;  %v2993_v47 = vshll.u32 %v2872_v14, 16  ;;  %v2997_v43 = vshll.u32 %v2903_v19, 16  ;;  %v3160_v11 = vrot.slane %v2872_v14, 1  ;;  %v9946_v63 = vpop.eup %9945 }
 0x468   : > { %v3161_v29 = vrot.slane %v2903_v19, 1  ;;  %v3292_v16 = vshrl.u32 %v2903_v19, 16  ;;  %v3418_v42 = vrot.slane %v2872_v14, 2  ;;  %v3419_v18 = vrot.slane %v2903_v19, 2 }
 0x469   : > { %v2995_v57 = vrot.slane %v2993_v47, 1  ;;  %v2999_v7 = vrot.slane %v2997_v43, 1  ;;  %v3289_v61 = vrot.slane %v2991_v49, 1  ;;  %v3290_v13 = vrot.slane %v2993_v47, 2 }
 0x46a   : > { %v3162_v24 = vsel %vm3135_vm11, %v3160_v11, %v3161_v29  ;;  %v3294_v54 = vrot.slane %v3292_v16, 1  ;;  %v3295_v41 = vrot.slane %v2997_v43, 2  ;;  %v3420_v45 = vsel %vm3393_vm12, %v3418_v42, %v3419_v18  ;;  %v9948_v6 = vpop.eup %9947 }
 0x46b   : > { %v2996_v56 = vor.u32 %v2995_v57, %v2991_v49  ;;  %v3291_v2 = vor.u32 %v3290_v13, %v3289_v61  ;;  %v2721_v4 = vadd.f32 1.0, %v9946_v63  ;;  %v9950_v59 = vpop.eup %9949  ;;  %v11709_v28 = vmul.f32 %v9948_v6, %v11587_v10 }
 0x46c   : > { %v3296_v53 = vor.u32 %v3295_v41, %v3294_v54  ;;  %9957 = vpow2.f32 %v2696_v36  ;;  %v2692_v51 = vmul.f32 1.442695, %v2632_v0  ;;  %v9952_v58 = vpop.eup %9951  ;;  %v2726_v19 = vadd.f32 1.0, %v9950_v59  ;;  %v14381_v59 = vld [vmem:[#allocation29_spill] sm:$0xff] }
 0x46d   : > { %v3000_v50 = vsel %vm1283_vm3, %v2996_v56, %v2999_v7  ;;  %9959 = vrcp.f32 %v2723_v12  ;;  %v2698_v47 = vmul.f32 1.442695, %v2635_v21  ;;  %v9954_v43 = vpop.eup %9953  ;;  %v2724_v32 = vadd.f32 1.0, %v9952_v58 }
 0x46e   : > { %v3095_v11 = vmax.bf16 %v3000_v50, %v2872_v14  ;;  %v3297_v49 = vsel %vm3216_vm13, %v3291_v2, %v3296_v53  ;;  %9961 = vrcp.f32 %v2721_v4  ;;  %v9956_v63 = vpop.eup %9955  ;;  %v2727_v29 = vadd.f32 1.0, %v9954_v43  ;;  %v14382_v53 = vld [vmem:[#allocation30_spill] sm:$0xff]  ;;  %v14384_v50 = vld [vmem:[#allocation28_spill] sm:$0xff] }
 0x46f   : > { %9963 = vrcp.f32 %v2726_v19  ;;  %v2633_v10 = vsub.f32 0.0, %v11700_v44  ;;  %v14372_v36 = vrot.slane %v11430_v23, 1  ;;  %v14373_v0 = vrot.slane %v11427_v39, 1  ;;  %v14385_v19 = vld [vmem:[#allocation27_spill] sm:$0xff] }
 0x470   : > { %v3208_v42 = vmax.bf16 %v3162_v24, %v3095_v11  ;;  %9965 = vrcp.f32 %v2724_v32  ;;  %v2725_v21 = vadd.f32 1.0, %v9956_v63  ;;  %v14374_v14 = vrot.slane %v11401_v8, 1  ;;  %v14387_v11 = vld [vmem:[#allocation26_spill] sm:$0xff]  ;;  %v14390_v63 = vld [vmem:[#allocation24_spill] sm:$0xff] }
 0x471   : > { %v3138_v16 = vsel %vm3135_vm11, %v14373_v0, %v14372_v36  ;;  %v14375_v18 = vrot.slane %v11398_v62, 1  ;;  %9967 = vrcp.f32 %v2727_v29  ;;  %v2694_v7 = vmul.f32 1.442695, %v2633_v10  ;;  %v14391_v29 = vld [vmem:[#allocation23_spill] sm:$0xff]  ;;  %v14393_v36 = vld [vmem:[#allocation37_spill] sm:$0xff] }
 0x472   : > { %v14376_v61 = vrot.slane %v11518_v35, 1  ;;  %v14377_v13 = vrot.slane %v11509_v3, 1  ;;  %v14378_v41 = vmax.bf16 %v11467_v40, %v11427_v39  ;;  %v3385_v6 = vmax.bf16 %v3297_v49, %v3208_v42  ;;  %v14388_v49 = vld [vmem:[#allocation25_spill] sm:$0xff] }
 0x473   : > { %v3141_v57 = vsel %vm3135_vm11, %v14375_v18, %v14374_v14  ;;  %9969 = vrcp.f32 %v2725_v21  ;;  %v14379_v56 = vmax.bf16 %v11446_v34, %v11398_v62  ;;  %v14380_v12 = vmax.bf16 %v11549_v55, %v11509_v3  ;;  %v14394_v55 = vld [vmem:[#allocation36_spill] sm:$0xff] }
 0x474   : > { %v3144_v54 = vsel %vm3135_vm11, %v14377_v13, %v14376_v61  ;;  %v3200_v24 = vmax.bf16 %v3138_v16, %v14378_v41  ;;  %9971 = vpow2.f32 %v2692_v51  ;;  %v14383_v58 = vor.u32 %v14381_v59, %v14382_v53  ;;  %v14396_v51 = vld [vmem:[#allocation35_spill] sm:$0xff]  ;;  %v14397_v16 = vld [vmem:[#allocation34_spill] sm:$0xff] }
 0x475   : > { %v3201_v2 = vmax.bf16 %v3141_v57, %v14379_v56  ;;  %v3202_v4 = vmax.bf16 %v3144_v54, %v14380_v12  ;;  %v14386_v43 = vor.u32 %v14384_v50, %v14385_v19  ;;  %v14389_v32 = vor.u32 %v14387_v11, %v14388_v49 }
 0x476   : > { %v14392_v34 = vor.u32 %v14390_v63, %v14391_v29  ;;  %v14395_v0 = vor.u32 %v14393_v36, %v14394_v55  ;;  %v14398_v42 = vor.u32 %v14396_v51, %v14397_v16  ;;  %v11759_v14 = vmax.bf16 %v3420_v45, %v3385_v6  ;;  %v9958_v53 = vpop.eup %9957 }
 0x477   : > { %v3225_v40 = vsel %vm3216_vm13, %v14386_v43, %v14383_v58  ;;  %9973 = vpow2.f32 %v2698_v47  ;;  %v14399_v13 = vrot.slane %v11430_v23, 2  ;;  %v14400_v54 = vrot.slane %v11427_v39, 2  ;;  %v9960_v23 = vpop.eup %9959 }
 0x478   : > { %v3234_v10 = vsel %vm3216_vm13, %v14392_v34, %v14389_v32  ;;  %v3243_v21 = vsel %vm3216_vm13, %v14398_v42, %v14395_v0  ;;  %v3377_v18 = vmax.bf16 %v3225_v40, %v3200_v24  ;;  %9975 = vpow2.f32 %v2694_v7  ;;  %v9962_v58 = vpop.eup %9961 }
 0x479   : > { %v3378_v57 = vmax.bf16 %v3234_v10, %v3201_v2  ;;  %v3379_v61 = vmax.bf16 %v3243_v21, %v3202_v4  ;;  %v3396_v41 = vsel %vm3393_vm12, %v14400_v54, %v14399_v13  ;;  %v14401_v56 = vrot.slane %v11401_v8, 2 }
 0x47a   : > { %v14402_v12 = vrot.slane %v11398_v62, 2  ;;  %v14403_v45 = vrot.slane %v11518_v35, 2  ;;  %v14404_v47 = vrot.slane %v11509_v3, 2  ;;  %v3458_v24 = vmax.bf16 %v3396_v41, %v3377_v18 }
 0x47b   : > { %v3790_v39 = vsel %vm616_vm0, %v11582_v33, 0  ;;  %v2730_v2 = vadd.f32 1.0, %v9958_v53  ;;  %v3477_v62 = vmax.bf16 %v11622_v20, %v11553_v31  ;;  %v3478_v8 = vmax.bf16 %v11595_v30, %v11622_v20  ;;  %v9964_v33 = vpop.eup %9963 }
 0x47c   : > { %v3399_v59 = vsel %vm3393_vm12, %v14402_v12, %v14401_v56  ;;  %v3402_v7 = vsel %vm3393_vm12, %v14404_v47, %v14403_v45  ;;  %v2787_v35 = vmul.f32 %v9960_v23, %v11614_v9  ;;  %v3479_v50 = vmax.bf16 %v11665_v26, %v11595_v30  ;;  %v9966_v49 = vpop.eup %9965 }
 0x47d   : > { %v3459_v6 = vmax.bf16 %v3399_v59, %v3378_v57  ;;  %v3460_v4 = vmax.bf16 %v3402_v7, %v3379_v61  ;;  %v2785_v43 = vmul.f32 %v9962_v58, %v11618_v22  ;;  %9977 = vrcp.f32 %v2730_v2  ;;  %v9968_v34 = vpop.eup %9967 }
 0x47e   : > { %v11790_v32 = vpack.c.bf16 %v2787_v35, %v11676_v52  ;;  %v2790_v9 = vmul.f32 %v9964_v33, %v11649_v38  ;;  %v11796_v29 = vmax.bf16 %v3477_v62, %v11595_v30  ;;  %v11802_v22 = vmul.f32 %v9966_v49, %v11653_v60  ;;  %v9970_v55 = vpop.eup %9969 }
 0x47f   : > { %v3474_v3 = vmax.bf16 %v3459_v6, %v3458_v24  ;;  %v3475_v40 = vmax.bf16 %v3460_v4, %v3459_v6  ;;  %v3476_v11 = vmax.bf16 %v11553_v31, %v3460_v4  ;;  %v11799_v10 = vpack.c.bf16 %v2785_v43, %v11709_v28  ;;  %v9972_v28 = vpop.eup %9971 }
 0x480   : > { %14405 = vst [vmem:[#allocation29_spill] sm:$0xff] %v11790_v32  ;;  %v2840_v38 = vrot.slane %v11790_v32, 7  ;;  %v2791_v0 = vmul.f32 %v9968_v34, %v11657_v48  ;;  %v2789_v42 = vmul.f32 %v9970_v55, %v11663_v5  ;;  %v11831_v13 = vadd.f32 1.0, %v9972_v28 }
 0x481   : > { %v11793_v63 = vmax.bf16 %v3474_v3, %v3460_v4  ;;  %14406 = vst [vmem:[#allocation30_spill] sm:$0xff] %v11799_v10  ;;  %v11805_v36 = vmax.bf16 %v3475_v40, %v11553_v31  ;;  %v11808_v52 = vmax.bf16 %v3476_v11, %v11622_v20  ;;  %v2839_v16 = vrot.slane %v11799_v10, 7  ;;  %v11825_v18 = vpop.eup %9973 }
 0x482   : > { %v2906_v57 = vsel %vm1117_vm5, %v2840_v38, 4286644096  ;;  %v11829_v61 = vpack.c.bf16 %v2791_v0, %v2790_v9  ;;  %v11835_v5 = vpop.eup %9975  ;;  %9979 = vrcp.f32 %v11831_v13 }
 0x483   : > { %v11814_v51 = vmax.bf16 %v11793_v63, %v11553_v31  ;;  %8981 = vmatprep.mubr.msk.bf16.mxu0 %vm567_vm1, %v11793_v63  ;;  %v3969_v60 = vrot.slane %v11793_v63, 7  ;;  %v3503_v21 = vmax.bf16 %v11805_v36, %v11622_v20  ;;  %v3504_v48 = vmax.bf16 %v11808_v52, %v11595_v30 }
 0x484   : > { %v2881_v31 = vsel %vm1117_vm5, 4286644096, %v2840_v38  ;;  %14407 = vst [vmem:[#allocation28_spill] sm:$0xff] %v11829_v61  ;;  %v3027_v56 = vshll.u32 %v2906_v57, 16  ;;  %v3170_v59 = vrot.slane %v2906_v57, 1  ;;  %v3319_v53 = vshrl.u32 %v2906_v57, 16 }
 0x485   : > { %8982 = vmatmul.mubr.msk.bf16.vlgmr.msra.gmra.mrb[32].mxu0 %vm567_vm1, %v11814_v51  ;;  %v3021_v54 = vshrl.u32 %v2881_v31, 16  ;;  %v3023_v41 = vshll.u32 %v2881_v31, 16  ;;  %v3169_v12 = vrot.slane %v2881_v31, 1  ;;  %v3427_v45 = vrot.slane %v2881_v31, 2 }
 0x486   : > { %9014 = vmatpush3.bf16.msra.mxu0 %v3790_v39  ;;  %v3428_v47 = vrot.slane %v2906_v57, 2  ;;  %v3029_v24 = vrot.slane %v3027_v56, 1  ;;  %v3321_v4 = vrot.slane %v3319_v53, 1  ;;  %v3322_v62 = vrot.slane %v3027_v56, 2 }
 0x487   : > { %v3025_v7 = vrot.slane %v3023_v41, 1  ;;  %v3316_v6 = vrot.slane %v3021_v54, 1  ;;  %v3317_v23 = vrot.slane %v3023_v41, 2  ;;  %v3171_v2 = vsel %vm3135_vm11, %v3169_v12, %v3170_v59  ;;  %v9978_v35 = vpop.eup %9977 }
 0x488   : > { %v3429_v58 = vsel %vm3393_vm12, %v3427_v45, %v3428_v47  ;;  %v2878_v43 = vsel %vm1117_vm5, 4286644096, %v2839_v16  ;;  %v2905_v39 = vsel %vm1117_vm5, %v2839_v16, 4286644096  ;;  %v3323_v40 = vor.u32 %v3322_v62, %v3321_v4 }
 0x489   : > { %v3026_v3 = vor.u32 %v3025_v7, %v3021_v54  ;;  %v3318_v33 = vor.u32 %v3317_v23, %v3316_v6  ;;  %v3011_v11 = vshrl.u32 %v2878_v43, 16  ;;  %v3013_v49 = vshll.u32 %v2878_v43, 16 }
 0x48a   : > { %v3017_v9 = vshll.u32 %v2905_v39, 16  ;;  %v3166_v55 = vrot.slane %v2878_v43, 1  ;;  %v3167_v38 = vrot.slane %v2905_v39, 1  ;;  %v3310_v0 = vshrl.u32 %v2905_v39, 16 }
 0x48b   : > { %v3030_v34 = vsel %vm1283_vm3, %v3026_v3, %v3029_v24  ;;  %v3324_v57 = vsel %vm3216_vm13, %v3318_v33, %v3323_v40  ;;  %v3015_v41 = vrot.slane %v3013_v49, 1  ;;  %v3307_v12 = vrot.slane %v3011_v11, 1 }
 0x48c   : > { %v3098_v28 = vmax.bf16 %v3030_v34, %v2881_v31  ;;  %v3019_v56 = vrot.slane %v3017_v9, 1  ;;  %v3168_v54 = vsel %vm3135_vm11, %v3166_v55, %v3167_v38  ;;  %v3308_v59 = vrot.slane %v3013_v49, 2 }
 0x48d   : > { %v3312_v53 = vrot.slane %v3310_v0, 1  ;;  %v3016_v45 = vor.u32 %v3015_v41, %v3011_v11  ;;  %v3313_v47 = vrot.slane %v3017_v9, 2  ;;  %v3424_v7 = vrot.slane %v2878_v43, 2 }
 0x48e   : > { %v3211_v16 = vmax.bf16 %v3171_v2, %v3098_v28  ;;  %v3309_v6 = vor.u32 %v3308_v59, %v3307_v12  ;;  %v3425_v23 = vrot.slane %v2905_v39, 2  ;;  %v2842_v24 = vrot.slane %v11829_v61, 7 }
 0x48f   : > { %v11846_v4 = vpack.c.bf16 %v2789_v42, %v11802_v22  ;;  %v3020_v62 = vsel %vm1283_vm3, %v3016_v45, %v3019_v56  ;;  %v3314_v3 = vor.u32 %v3313_v47, %v3312_v53  ;;  %v11850_v33 = vmul.f32 %v9978_v35, %v11684_v1 }
 0x490   : > { %v3388_v31 = vmax.bf16 %v3324_v57, %v3211_v16  ;;  %v3097_v40 = vmax.bf16 %v3020_v62, %v2878_v43  ;;  %v3426_v2 = vsel %vm3393_vm12, %v3424_v7, %v3425_v23  ;;  %v2887_v11 = vsel %vm1117_vm5, 4286644096, %v2842_v24 }
 0x491   : > { %14408 = vst [vmem:[#allocation27_spill] sm:$0xff] %v11846_v4  ;;  %v2908_v49 = vsel %vm1117_vm5, %v2842_v24, 4286644096  ;;  %v3315_v9 = vsel %vm3216_vm13, %v3309_v6, %v3314_v3  ;;  %v3041_v22 = vshrl.u32 %v2887_v11, 16  ;;  %v3043_v42 = vshll.u32 %v2887_v11, 16 }
 0x492   : > { %v11855_v39 = vmax.bf16 %v3429_v58, %v3388_v31  ;;  %v3210_v34 = vmax.bf16 %v3168_v54, %v3097_v40  ;;  %v3047_v55 = vshll.u32 %v2908_v49, 16  ;;  %v3175_v38 = vrot.slane %v2887_v11, 1 }
 0x493   : > { %v3176_v0 = vrot.slane %v2908_v49, 1  ;;  %v3045_v28 = vrot.slane %v3043_v42, 1  ;;  %v3334_v1 = vrot.slane %v3041_v22, 1  ;;  %v3335_v35 = vrot.slane %v3043_v42, 2 }
 0x494   : > { %v3337_v43 = vshrl.u32 %v2908_v49, 16  ;;  %v3387_v57 = vmax.bf16 %v3315_v9, %v3210_v34  ;;  %v3049_v41 = vrot.slane %v3047_v55, 1  ;;  %v3340_v12 = vrot.slane %v3047_v55, 2 }
 0x495   : > { %v3177_v56 = vsel %vm3135_vm11, %v3175_v38, %v3176_v0  ;;  %v3046_v59 = vor.u32 %v3045_v28, %v3041_v22  ;;  %v3336_v58 = vor.u32 %v3335_v35, %v3334_v1  ;;  %v3433_v16 = vrot.slane %v2887_v11, 2 }
 0x496   : > { %v3339_v53 = vrot.slane %v3337_v43, 1  ;;  %v11859_v45 = vmax.bf16 %v3426_v2, %v3387_v57  ;;  %v3434_v47 = vrot.slane %v2908_v49, 2  ;;  %v2841_v54 = vrot.slane %v11846_v4, 7 }
 0x497   : > { %v3050_v7 = vsel %vm1283_vm3, %v3046_v59, %v3049_v41  ;;  %v2731_v23 = vadd.f32 1.0, %v11825_v18  ;;  %v2729_v24 = vadd.f32 1.0, %v11835_v5 }
 0x498   : > { %v3341_v6 = vor.u32 %v3340_v12, %v3339_v53  ;;  %v3100_v31 = vmax.bf16 %v3050_v7, %v2887_v11  ;;  %v3435_v62 = vsel %vm3393_vm12, %v3433_v16, %v3434_v47  ;;  %v2884_v3 = vsel %vm1117_vm5, 4286644096, %v2841_v54  ;;  %v11873_v11 = vld [vmem:[%s14220_s7 + $0x8] sm:$0xf]  ;;  %v9980_v7 = vpop.eup %9979 }
 0x499   : > { %v2907_v40 = vsel %vm1117_vm5, %v2841_v54, 4286644096  ;;  %v3031_v49 = vshrl.u32 %v2884_v3, 16  ;;  %v3033_v9 = vshll.u32 %v2884_v3, 16  ;;  %v3172_v42 = vrot.slane %v2884_v3, 1  ;;  %9554 = vmatprep.subr.msk.bf16.mxu0 %vm616_vm0, %v11873_v11 }
 0x49a   : > { %v3342_v2 = vsel %vm3216_vm13, %v3336_v58, %v3341_v6  ;;  %v3037_v22 = vshll.u32 %v2907_v40, 16  ;;  %v3213_v13 = vmax.bf16 %v3177_v56, %v3100_v31  ;;  %v3173_v34 = vrot.slane %v2907_v40, 1 }
 0x49b   : > { %v3328_v55 = vshrl.u32 %v2907_v40, 16  ;;  %v3035_v38 = vrot.slane %v3033_v9, 1  ;;  %v3325_v0 = vrot.slane %v3031_v49, 1  ;;  %v3326_v5 = vrot.slane %v3033_v9, 2 }
 0x49c   : > { %v3039_v18 = vrot.slane %v3037_v22, 1  ;;  %v3390_v28 = vmax.bf16 %v3342_v2, %v3213_v13  ;;  %v3174_v1 = vsel %vm3135_vm11, %v3172_v42, %v3173_v34  ;;  %v3331_v43 = vrot.slane %v3037_v22, 2 }
 0x49d   : > { %v3330_v35 = vrot.slane %v3328_v55, 1  ;;  %v3036_v57 = vor.u32 %v3035_v38, %v3031_v49  ;;  %v3327_v41 = vor.u32 %v3326_v5, %v3325_v0  ;;  %v3430_v56 = vrot.slane %v2884_v3, 2 }
 0x49e   : > { %v3431_v12 = vrot.slane %v2907_v40, 2  ;;  %v11878_v59 = vmax.bf16 %v3435_v62, %v3390_v28  ;;  %9981 = vrcp.f32 %v2731_v23  ;;  %v3970_v53 = vrot.slane %v11814_v51, 7 }
 0x49f   : > { %v3332_v58 = vor.u32 %v3331_v43, %v3330_v35  ;;  %v3040_v16 = vsel %vm1283_vm3, %v3036_v57, %v3039_v18  ;;  %9983 = vrcp.f32 %v2729_v24  ;;  %v11886_v54 = vsel %vm1117_vm5, 4286644096, %v3969_v60 }
 0x4a0   : > { %v3432_v47 = vsel %vm3393_vm12, %v3430_v56, %v3431_v12  ;;  %v3099_v6 = vmax.bf16 %v3040_v16, %v2884_v3  ;;  %v11890_v62 = vsel %vm1117_vm5, 4286644096, %v3970_v53  ;;  %v11895_v23 = vsel %vm1117_vm5, %v3969_v60, 4286644096 }
 0x4a1   : > { %v3333_v31 = vsel %vm3216_vm13, %v3327_v41, %v3332_v58  ;;  %v2792_v40 = vmul.f32 %v9980_v7, %v11688_v25  ;;  %v11899_v24 = vsel %vm1117_vm5, %v3970_v53, 4286644096  ;;  %v14268_v2 = vshrl.u32 %v11886_v54, 16 }
 0x4a2   : > { %v14267_v49 = vshll.u32 %v11886_v54, 16  ;;  %v3212_v3 = vmax.bf16 %v3174_v1, %v3099_v6  ;;  %v4055_v9 = vshll.u32 %v11895_v23, 16  ;;  %v4356_v25 = vshrl.u32 %v11895_v23, 16 }
 0x4a3   : > { %v3515_v42 = vmax.bf16 %v11814_v51, %v11622_v20  ;;  %v3516_v18 = vmax.bf16 %v3503_v21, %v11595_v30  ;;  %v11931_v51 = vmax.bf16 %v3504_v48, %v11665_v26  ;;  %v11942_v35 = vmax.bf16 %v3478_v8, %v11665_v26 }
 0x4a4   : > { %v4053_v63 = vrot.slane %v14267_v49, 1  ;;  %v3389_v34 = vmax.bf16 %v3333_v31, %v3212_v3  ;;  %v11912_v55 = vrot.slane %v4055_v9, 1  ;;  %v11914_v38 = vrot.slane %v4055_v9, 2 }
 0x4a5   : > { %v11924_v5 = vrot.slane %v4356_v25, 1  ;;  %8985 = vmatprep.mubr.msk.bf16.mxu0 %vm567_vm1, %v3515_v42  ;;  %v3971_v28 = vrot.slane %v3515_v42, 7  ;;  %v3972_v36 = vrot.slane %v3516_v18, 7  ;;  %v11957_v57 = vmax.bf16 %v3479_v50, %v11638_v37 }
 0x4a6   : > { %v11922_v0 = vor.u32 %v4053_v63, %v14268_v2  ;;  %v11933_v1 = vmax.bf16 %v3432_v47, %v3389_v34  ;;  %8986 = vmatmul.mubr.msk.bf16.gmra.mrb[36].mxu0 %vm567_vm1, %v3516_v18 }
 0x4a7   : > { %v11945_v43 = vsel %vm1117_vm5, 4286644096, %v3971_v28  ;;  %v11948_v52 = vsel %vm1117_vm5, %v3971_v28, 4286644096  ;;  %8989 = vmatprep.mubr.msk.bf16.mxu0 %vm567_vm1, %v11931_v51  ;;  %v11982_v34 = vsel %vm1117_vm5, 4286644096, %v3972_v36 }
 0x4a8   : > { %v9982_v20 = vpop.eup %9981  ;;  %v4069_v8 = vshrl.u32 %v11945_v43, 16  ;;  %v4071_v41 = vshll.u32 %v11945_v43, 16  ;;  %v4075_v56 = vshll.u32 %v11948_v52, 16  ;;  %v4374_v47 = vshrl.u32 %v11948_v52, 16 }
 0x4a9   : > { %v9984_v58 = vpop.eup %9983  ;;  %v2795_v53 = vmul.f32 %v9982_v20, %v11692_v46  ;;  %v4079_v28 = vshrl.u32 %v11982_v34, 16  ;;  %v4081_v20 = vshll.u32 %v11982_v34, 16 }
 0x4aa   : > { %v2793_v50 = vmul.f32 %v9984_v58, %v11700_v44  ;;  %v4073_v7 = vrot.slane %v4071_v41, 1  ;;  %v4077_v6 = vrot.slane %v4075_v56, 1  ;;  %v11968_v31 = vrot.slane %v4069_v8, 1 }
 0x4ab   : > { %v11971_v3 = vpack.c.bf16 %v2795_v53, %v11850_v33  ;;  %v11973_v9 = vrot.slane %v4071_v41, 2  ;;  %v11975_v63 = vrot.slane %v4374_v47, 1  ;;  %v11977_v46 = vrot.slane %v4075_v56, 2 }
 0x4ac   : > { %14409 = vst [vmem:[#allocation26_spill] sm:$0xff] %v11968_v31  ;;  %v11979_v25 = vpack.c.bf16 %v2793_v50, %v2792_v40  ;;  %v4074_v42 = vor.u32 %v4073_v7, %v4069_v8  ;;  %v11985_v44 = vsel %vm1117_vm5, %v3972_v36, 4286644096  ;;  %v4282_v56 = vrot.slane %v11982_v34, 1 }
 0x4ad   : > { %14410 = vst [vmem:[#allocation25_spill] sm:$0xff] %v11971_v3  ;;  %14411 = vst [vmem:[#allocation24_spill] sm:$0xff] %v11973_v9  ;;  %v2844_v18 = vrot.slane %v11971_v3, 7  ;;  %v4085_v8 = vshll.u32 %v11985_v44, 16  ;;  %v4083_v47 = vrot.slane %v4081_v20, 1  ;;  %v4381_v27 = vrot.slane %v4081_v20, 2 }
 0x4ae   : > { %14412 = vst [vmem:[#allocation23_spill] sm:$0xff] %v11975_v63  ;;  %14413 = vst [vmem:[#allocation37_spill] sm:$0xff] %v11977_v46  ;;  %v2843_v41 = vrot.slane %v11979_v25, 7  ;;  %v11994_v40 = vsel %vm1283_vm3, %v4074_v42, %v4077_v6 }
 0x4af   : > { %14414 = vst [vmem:[#allocation36_spill] sm:$0xff] %v11979_v25  ;;  %v11999_v36 = vsel %vm1117_vm5, 4286644096, %v2844_v18  ;;  %v12002_v58 = vsel %vm1117_vm5, %v2844_v18, 4286644096  ;;  %v4084_v10 = vor.u32 %v4083_v47, %v4079_v28  ;;  %v4087_v15 = vrot.slane %v4085_v8, 1 }
 0x4b0   : > { %v3061_v50 = vshrl.u32 %v11999_v36, 16  ;;  %v3063_v7 = vshll.u32 %v11999_v36, 16  ;;  %v3067_v6 = vshll.u32 %v12002_v58, 16  ;;  %v3355_v33 = vshrl.u32 %v12002_v58, 16 }
 0x4b1   : > { %v12023_v22 = vsel %vm1117_vm5, 4286644096, %v2843_v41  ;;  %v12026_v42 = vsel %vm1117_vm5, %v2843_v41, 4286644096  ;;  %v4386_v4 = vrot.slane %v4085_v8, 2 }
 0x4b2   : > { %v3065_v2 = vrot.slane %v3063_v7, 1  ;;  %v3069_v12 = vrot.slane %v3067_v6, 1  ;;  %v12014_v53 = vrot.slane %v3061_v50, 1  ;;  %v12016_v16 = vrot.slane %v3063_v7, 2 }
 0x4b3   : > { %v12018_v13 = vrot.slane %v3355_v33, 1  ;;  %v12020_v60 = vrot.slane %v3067_v6, 2  ;;  %v3051_v18 = vshrl.u32 %v12023_v22, 16  ;;  %v3053_v19 = vshll.u32 %v12023_v22, 16 }
 0x4b4   : > { %v3066_v30 = vor.u32 %v3065_v2, %v3061_v50  ;;  %v3057_v7 = vshll.u32 %v12026_v42, 16  ;;  %v3178_v6 = vrot.slane %v12023_v22, 1  ;;  %v3179_v21 = vrot.slane %v12026_v42, 1 }
 0x4b5   : > { %v3055_v2 = vrot.slane %v3053_v19, 1  ;;  %v12040_v50 = vrot.slane %v3051_v18, 1  ;;  %v12042_v49 = vrot.slane %v3053_v19, 2  ;;  %v3346_v25 = vshrl.u32 %v12026_v42, 16 }
 0x4b6   : > { %v12038_v41 = vsel %vm1283_vm3, %v3066_v30, %v3069_v12  ;;  %v3059_v3 = vrot.slane %v3057_v7, 1  ;;  %v3180_v33 = vsel %vm3135_vm11, %v3178_v6, %v3179_v21  ;;  %v12050_v32 = vrot.slane %v3057_v7, 2 }
 0x4b7   : > { %v3056_v61 = vor.u32 %v3055_v2, %v3051_v18  ;;  %v12053_v30 = vrot.slane %v3346_v25, 1  ;;  %v4283_v21 = vrot.slane %v11985_v44, 1  ;;  %v4380_v6 = vrot.slane %v4079_v28, 1 }
 0x4b8   : > { %v4088_v2 = vsel %vm1283_vm3, %v4084_v10, %v4087_v15  ;;  %v4383_v25 = vshrl.u32 %v11985_v44, 16  ;;  %v4538_v28 = vrot.slane %v11982_v34, 2  ;;  %v14416_v7 = vrot.slane %v11931_v51, 7 }
 0x4b9   : > { %v3060_v48 = vsel %vm1283_vm3, %v3056_v61, %v3059_v3  ;;  %v4228_v12 = vmax.bf16 %v4088_v2, %v11982_v34  ;;  %v4284_v47 = vsel %vm3135_vm11, %v4282_v56, %v4283_v21  ;;  %v4382_v19 = vor.u32 %v4381_v27, %v4380_v6 }
 0x4ba   : > { %v3101_v18 = vmax.bf16 %v3060_v48, %v12023_v22  ;;  %v4385_v3 = vrot.slane %v4383_v25, 1  ;;  %v4539_v48 = vrot.slane %v11985_v44, 2  ;;  %v3998_v15 = vsel %vm1117_vm5, 4286644096, %v14416_v7 }
 0x4bb   : > { %v12069_v20 = vmax.bf16 %v4284_v47, %v4228_v12  ;;  %v14417_v10 = vmov %v14416_v7  ;;  %v14418_v27 = vmax.bf16 %v11796_v29, %v11665_v26  ;;  %v4089_v44 = vshrl.u32 %v3998_v15, 16 }
 0x4bc   : > { %v12065_v61 = vmax.bf16 %v3180_v33, %v3101_v18  ;;  %v4037_v2 = vsel %vm1117_vm5, %v14417_v10, 4286644096  ;;  %v4387_v56 = vor.u32 %v4386_v4, %v4385_v3  ;;  %v12082_v34 = vsel %vm3393_vm12, %v4538_v28, %v4539_v48 }
 0x4bd   : > { %14415 = vst [vmem:[#allocation35_spill] sm:$0xff] %v12069_v20  ;;  %v3518_v8 = vmax.bf16 %v14418_v27, %v11638_v37  ;;  %14419 = vst [vmem:[#allocation34_spill] sm:$0xff] %v12082_v34  ;;  %v4091_v33 = vshll.u32 %v3998_v15, 16  ;;  %v4095_v12 = vshll.u32 %v4037_v2, 16  ;;  %v4285_v21 = vrot.slane %v3998_v15, 1 }
 0x4be   : > { %v4286_v6 = vrot.slane %v4037_v2, 1  ;;  %v4392_v18 = vshrl.u32 %v4037_v2, 16  ;;  %v12086_v51 = vsel %vm3216_vm13, %v4382_v19, %v4387_v56  ;;  %v4389_v25 = vrot.slane %v4089_v44, 1 }
 0x4bf   : > { %8990 = vmatmul.mubr.msk.bf16.gmra.mrb[40].mxu0 %vm567_vm1, %v3518_v8  ;;  %14420 = vst [vmem:[#allocation43_spill] sm:$0xff] %v12086_v51  ;;  %v4093_v7 = vrot.slane %v4091_v33, 1  ;;  %v4390_v47 = vrot.slane %v4091_v33, 2  ;;  %v4097_v4 = vrot.slane %v4095_v12, 1  ;;  %v4395_v27 = vrot.slane %v4095_v12, 2 }
 0x4c0   : > { %v4287_v3 = vsel %vm3135_vm11, %v4285_v21, %v4286_v6  ;;  %v4394_v28 = vrot.slane %v4392_v18, 1  ;;  %v4541_v34 = vrot.slane %v3998_v15, 2  ;;  %v4542_v63 = vrot.slane %v4037_v2, 2 }
 0x4c1   : > { %v4094_v48 = vor.u32 %v4093_v7, %v4089_v44  ;;  %v4391_v10 = vor.u32 %v4390_v47, %v4389_v25  ;;  %v3974_v46 = vrot.slane %v3518_v8, 7  ;;  %v3506_v19 = vmax.bf16 %v11942_v35, %v11638_v37 }
 0x4c2   : > { %v3507_v56 = vmax.bf16 %v11957_v57, %v11759_v14  ;;  %v4396_v9 = vor.u32 %v4395_v27, %v4394_v28  ;;  %v14421_v21 = vmax.bf16 %v11638_v37, %v11665_v26  ;;  %v3481_v44 = vmax.bf16 %v11759_v14, %v11638_v37 }
 0x4c3   : > { %v4098_v33 = vsel %vm1283_vm3, %v4094_v48, %v4097_v4  ;;  %v12103_v2 = vsel %vm3393_vm12, %v4541_v34, %v4542_v63  ;;  %v4001_v35 = vsel %vm1117_vm5, 4286644096, %v3974_v46  ;;  %v4038_v8 = vsel %vm1117_vm5, %v3974_v46, 4286644096 }
 0x4c4   : > { %v3494_v6 = vmax.bf16 %v14421_v21, %v11759_v14  ;;  %v4229_v12 = vmax.bf16 %v4098_v33, %v3998_v15  ;;  %14422 = vst [vmem:[#allocation44_spill] sm:$0xff] %v12103_v2  ;;  %v12108_v57 = vsel %vm3216_vm13, %v4391_v10, %v4396_v9  ;;  %v4099_v18 = vshrl.u32 %v4001_v35, 16 }
 0x4c5   : > { %14423 = vst [vmem:[#allocation45_spill] sm:$0xff] %v12108_v57  ;;  %v4101_v7 = vshll.u32 %v4001_v35, 16  ;;  %v4105_v25 = vshll.u32 %v4038_v8, 16  ;;  %v4288_v26 = vrot.slane %v4001_v35, 1  ;;  %v4289_v4 = vrot.slane %v4038_v8, 1 }
 0x4c6   : > { %v12110_v47 = vmax.bf16 %v4287_v3, %v4229_v12  ;;  %v4401_v28 = vshrl.u32 %v4038_v8, 16  ;;  %v4398_v48 = vrot.slane %v4099_v18, 1  ;;  %v4544_v21 = vrot.slane %v4001_v35, 2 }
 0x4c7   : > { %v4103_v37 = vrot.slane %v4101_v7, 1  ;;  %v4107_v15 = vrot.slane %v4105_v25, 1  ;;  %v4399_v63 = vrot.slane %v4101_v7, 2  ;;  %v4290_v46 = vsel %vm3135_vm11, %v4288_v26, %v4289_v4 }
 0x4c8   : > { %14424 = vst [vmem:[#allocation46_spill] sm:$0xff] %v12110_v47  ;;  %v4403_v27 = vrot.slane %v4401_v28, 1  ;;  %v4404_v9 = vrot.slane %v4105_v25, 2  ;;  %v4545_v29 = vrot.slane %v4038_v8, 2  ;;  %v3519_v12 = vmax.bf16 %v3506_v19, %v11759_v14 }
 0x4c9   : > { %v4104_v10 = vor.u32 %v4103_v37, %v4099_v18  ;;  %v4400_v33 = vor.u32 %v4399_v63, %v4398_v48  ;;  %v3520_v2 = vmax.bf16 %v3507_v56, %v11702_v17  ;;  %v3508_v20 = vmax.bf16 %v3494_v6, %v11702_v17 }
 0x4ca   : > { %v4405_v3 = vor.u32 %v4404_v9, %v4403_v27  ;;  %v12120_v51 = vsel %vm3393_vm12, %v4544_v21, %v4545_v29  ;;  %v3495_v26 = vmax.bf16 %v3481_v44, %v11702_v17  ;;  %v3482_v18 = vmax.bf16 %v11702_v17, %v11759_v14  ;;  %8993 = vmatprep.mubr.msk.bf16.mxu0 %vm567_vm1, %v3519_v12 }
 0x4cb   : > { %v4108_v7 = vsel %vm1283_vm3, %v4104_v10, %v4107_v15  ;;  %14425 = vst [vmem:[#allocation47_spill] sm:$0xff] %v12120_v51  ;;  %v3975_v19 = vrot.slane %v3519_v12, 7  ;;  %v3976_v56 = vrot.slane %v3520_v2, 7  ;;  %8994 = vmatmul.mubr.msk.bf16.gmra.mrb[44].mxu0 %vm567_vm1, %v3520_v2  ;;  %v3521_v6 = vmax.bf16 %v3508_v20, %v11859_v45 }
 0x4cc   : > { %v4230_v25 = vmax.bf16 %v4108_v7, %v4001_v35  ;;  %v12126_v8 = vsel %vm3216_vm13, %v4400_v33, %v4405_v3  ;;  %v3509_v29 = vmax.bf16 %v3495_v26, %v11859_v45  ;;  %v12133_v4 = vmax.bf16 %v3482_v18, %v11859_v45 }
 0x4cd   : > { %14426 = vst [vmem:[#allocation48_spill] sm:$0xff] %v12126_v8  ;;  %v4004_v35 = vsel %vm1117_vm5, 4286644096, %v3975_v19  ;;  %v4039_v28 = vsel %vm1117_vm5, %v3975_v19, 4286644096  ;;  %8997 = vmatprep.mubr.msk.bf16.mxu0 %vm567_vm1, %v3521_v6 }
 0x4ce   : > { %v12137_v44 = vmax.bf16 %v4290_v46, %v4230_v25  ;;  %v4007_v37 = vsel %vm1117_vm5, 4286644096, %v3976_v56  ;;  %v4109_v15 = vshrl.u32 %v4004_v35, 16  ;;  %v4111_v2 = vshll.u32 %v4004_v35, 16 }
 0x4cf   : > { %v4115_v48 = vshll.u32 %v4039_v28, 16  ;;  %v4291_v20 = vrot.slane %v4004_v35, 1  ;;  %v4292_v27 = vrot.slane %v4039_v28, 1  ;;  %v4410_v9 = vshrl.u32 %v4039_v28, 16 }
 0x4d0   : > { %14427 = vst [vmem:[#allocation49_spill] sm:$0xff] %v12137_v44  ;;  %v4547_v10 = vrot.slane %v4004_v35, 2  ;;  %v4113_v46 = vrot.slane %v4111_v2, 1  ;;  %v4407_v21 = vrot.slane %v4109_v15, 1  ;;  %v4408_v3 = vrot.slane %v4111_v2, 2 }
 0x4d1   : > { %v4117_v33 = vrot.slane %v4115_v48, 1  ;;  %v4293_v12 = vsel %vm3135_vm11, %v4291_v20, %v4292_v27  ;;  %v4412_v7 = vrot.slane %v4410_v9, 1  ;;  %v4413_v26 = vrot.slane %v4115_v48, 2 }
 0x4d2   : > { %v4548_v18 = vrot.slane %v4039_v28, 2  ;;  %v4114_v25 = vor.u32 %v4113_v46, %v4109_v15  ;;  %v4409_v19 = vor.u32 %v4408_v3, %v4407_v21  ;;  %v4040_v34 = vsel %vm1117_vm5, %v3976_v56, 4286644096 }
 0x4d3   : > { %v4119_v14 = vshrl.u32 %v4007_v37, 16  ;;  %v4414_v51 = vor.u32 %v4413_v26, %v4412_v7  ;;  %v4121_v44 = vshll.u32 %v4007_v37, 16  ;;  %v4125_v8 = vshll.u32 %v4040_v34, 16 }
 0x4d4   : > { %v12148_v63 = vsel %vm3393_vm12, %v4547_v10, %v4548_v18  ;;  %v4118_v47 = vsel %vm1283_vm3, %v4114_v25, %v4117_v33  ;;  %v4294_v57 = vrot.slane %v4007_v37, 1  ;;  %v4295_v2 = vrot.slane %v4040_v34, 1 }
 0x4d5   : > { %v4416_v31 = vrot.slane %v4119_v14, 1  ;;  %v4231_v20 = vmax.bf16 %v4118_v47, %v4004_v35  ;;  %v12152_v48 = vsel %vm3216_vm13, %v4409_v19, %v4414_v51  ;;  %v4123_v28 = vrot.slane %v4121_v44, 1 }
 0x4d6   : > { %v4127_v15 = vrot.slane %v4125_v8, 1  ;;  %v4296_v56 = vsel %vm3135_vm11, %v4294_v57, %v4295_v2  ;;  %v4417_v27 = vrot.slane %v4121_v44, 2  ;;  %v4419_v9 = vshrl.u32 %v4040_v34, 16 }
 0x4d7   : > { %v4422_v46 = vrot.slane %v4125_v8, 2  ;;  %v12155_v10 = vmax.bf16 %v4293_v12, %v4231_v20  ;;  %v4124_v21 = vor.u32 %v4123_v28, %v4119_v14  ;;  %v4550_v3 = vrot.slane %v4007_v37, 2 }
 0x4d8   : > { %v4551_v7 = vrot.slane %v4040_v34, 2  ;;  %v4418_v33 = vor.u32 %v4417_v27, %v4416_v31  ;;  %v4421_v26 = vrot.slane %v4419_v9, 1  ;;  %v3977_v18 = vrot.slane %v3521_v6, 7 }
 0x4d9   : > { %v3522_v47 = vmax.bf16 %v3509_v29, %v11855_v39  ;;  %v4128_v35 = vsel %vm1283_vm3, %v4124_v21, %v4127_v15  ;;  %v3510_v8 = vmax.bf16 %v12133_v4, %v11855_v39 }
 0x4da   : > { %v12162_v57 = vsel %vm3393_vm12, %v4550_v3, %v4551_v7  ;;  %v4232_v44 = vmax.bf16 %v4128_v35, %v4007_v37  ;;  %v4423_v14 = vor.u32 %v4422_v46, %v4421_v26  ;;  %v4010_v34 = vsel %vm1117_vm5, 4286644096, %v3977_v18 }
 0x4db   : > { %v4041_v31 = vsel %vm1117_vm5, %v3977_v18, 4286644096  ;;  %8998 = vmatmul.mubr.msk.bf16.gmra.mrb[48].mxu0 %vm567_vm1, %v3522_v47  ;;  %v4129_v6 = vshrl.u32 %v4010_v34, 16  ;;  %v4131_v29 = vshll.u32 %v4010_v34, 16  ;;  %v4297_v25 = vrot.slane %v4010_v34, 1 }
 0x4dc   : > { %v4135_v12 = vshll.u32 %v4041_v31, 16  ;;  %v12169_v19 = vmax.bf16 %v4296_v56, %v4232_v44  ;;  %v12172_v2 = vsel %vm3216_vm13, %v4418_v33, %v4423_v14  ;;  %v4298_v20 = vrot.slane %v4041_v31, 1 }
 0x4dd   : > { %v4428_v28 = vshrl.u32 %v4041_v31, 16  ;;  %v4133_v4 = vrot.slane %v4131_v29, 1  ;;  %v4425_v15 = vrot.slane %v4129_v6, 1  ;;  %v4426_v27 = vrot.slane %v4131_v29, 2 }
 0x4de   : > { %v4137_v37 = vrot.slane %v4135_v12, 1  ;;  %v4299_v46 = vsel %vm3135_vm11, %v4297_v25, %v4298_v20  ;;  %v4431_v3 = vrot.slane %v4135_v12, 2  ;;  %v4553_v56 = vrot.slane %v4010_v34, 2 }
 0x4df   : > { %v4430_v21 = vrot.slane %v4428_v28, 1  ;;  %v4134_v7 = vor.u32 %v4133_v4, %v4129_v6  ;;  %v4427_v26 = vor.u32 %v4426_v27, %v4425_v15  ;;  %v4554_v18 = vrot.slane %v4041_v31, 2 }
 0x4e0   : > { %v3978_v33 = vrot.slane %v3522_v47, 7  ;;  %v3523_v44 = vmax.bf16 %v3510_v8, %v11933_v1  ;;  %v14428_v14 = vmax.bf16 %v11859_v45, %v11702_v17  ;;  %v14429_v6 = vor.u32 %v12050_v32, %v12053_v30 }
 0x4e1   : > { %v4432_v35 = vor.u32 %v4431_v3, %v4430_v21  ;;  %v4138_v51 = vsel %vm1283_vm3, %v4134_v7, %v4137_v37  ;;  %v12184_v9 = vsel %vm3393_vm12, %v4553_v56, %v4554_v18  ;;  %v14430_v31 = vor.u32 %v12042_v49, %v12040_v50 }
 0x4e2   : > { %v3497_v29 = vmax.bf16 %v14428_v14, %v11855_v39  ;;  %v14431_v8 = vrot.slane %v12026_v42, 2  ;;  %v14432_v12 = vrot.slane %v12023_v22, 2  ;;  %v4233_v25 = vmax.bf16 %v4138_v51, %v4010_v34  ;;  %9001 = vmatprep.mubr.msk.bf16.mxu0 %vm567_vm1, %v3523_v44 }
 0x4e3   : > { %v3351_v47 = vsel %vm3216_vm13, %v14430_v31, %v14429_v6  ;;  %v12199_v20 = vsel %vm3216_vm13, %v4427_v26, %v4432_v35  ;;  %v4013_v28 = vsel %vm1117_vm5, 4286644096, %v3978_v33  ;;  %v4042_v4 = vsel %vm1117_vm5, %v3978_v33, 4286644096 }
 0x4e4   : > { %v3438_v17 = vsel %vm3393_vm12, %v14432_v12, %v14431_v8  ;;  %v4139_v32 = vshrl.u32 %v4013_v28, 16  ;;  %v4141_v49 = vshll.u32 %v4013_v28, 16  ;;  %v4145_v50 = vshll.u32 %v4042_v4, 16 }
 0x4e5   : > { %v4300_v30 = vrot.slane %v4013_v28, 1  ;;  %v12204_v37 = vmax.bf16 %v4299_v46, %v4233_v25  ;;  %v4301_v42 = vrot.slane %v4042_v4, 1  ;;  %v4437_v22 = vshrl.u32 %v4042_v4, 16 }
 0x4e6   : > { %v4556_v15 = vrot.slane %v4013_v28, 2  ;;  %v4143_v27 = vrot.slane %v4141_v49, 1  ;;  %v4147_v51 = vrot.slane %v4145_v50, 1  ;;  %v4434_v34 = vrot.slane %v4139_v32, 1 }
 0x4e7   : > { %v4435_v21 = vrot.slane %v4141_v49, 2  ;;  %v4302_v7 = vsel %vm3135_vm11, %v4300_v30, %v4301_v42  ;;  %v4439_v26 = vrot.slane %v4437_v22, 1  ;;  %v4440_v56 = vrot.slane %v4145_v50, 2 }
 0x4e8   : > { %v4144_v18 = vor.u32 %v4143_v27, %v4139_v32  ;;  %v4557_v33 = vrot.slane %v4042_v4, 2  ;;  %v3979_v14 = vrot.slane %v3523_v44, 7  ;;  %v3511_v6 = vmax.bf16 %v3497_v29, %v11933_v1 }
 0x4e9   : > { %v4436_v35 = vor.u32 %v4435_v21, %v4434_v34  ;;  %v4441_v46 = vor.u32 %v4440_v56, %v4439_v26  ;;  %v3391_v31 = vmax.bf16 %v3351_v47, %v12065_v61  ;;  %v3484_v8 = vmax.bf16 %v11855_v39, %v11859_v45 }
 0x4ea   : > { %v4148_v12 = vsel %vm1283_vm3, %v4144_v18, %v4147_v51  ;;  %v12215_v25 = vsel %vm3393_vm12, %v4556_v15, %v4557_v33  ;;  %v4016_v49 = vsel %vm1117_vm5, 4286644096, %v3979_v14  ;;  %v4043_v32 = vsel %vm1117_vm5, %v3979_v14, 4286644096 }
 0x4eb   : > { %v4234_v50 = vmax.bf16 %v4148_v12, %v4013_v28  ;;  %v12220_v44 = vsel %vm3216_vm13, %v4436_v35, %v4441_v46  ;;  %v4149_v4 = vshrl.u32 %v4016_v49, 16  ;;  %v4151_v29 = vshll.u32 %v4016_v49, 16 }
 0x4ec   : > { %v4155_v30 = vshll.u32 %v4043_v32, 16  ;;  %v4303_v61 = vrot.slane %v4016_v49, 1  ;;  %v4304_v47 = vrot.slane %v4043_v32, 1  ;;  %v4446_v42 = vshrl.u32 %v4043_v32, 16 }
 0x4ed   : > { %v12222_v45 = vmax.bf16 %v4302_v7, %v4234_v50  ;;  %v4153_v22 = vrot.slane %v4151_v29, 1  ;;  %v4443_v27 = vrot.slane %v4149_v4, 1  ;;  %v4444_v15 = vrot.slane %v4151_v29, 2 }
 0x4ee   : > { %v4157_v51 = vrot.slane %v4155_v30, 1  ;;  %v4305_v34 = vsel %vm3135_vm11, %v4303_v61, %v4304_v47  ;;  %v4448_v21 = vrot.slane %v4446_v42, 1  ;;  %v4449_v26 = vrot.slane %v4155_v30, 2 }
 0x4ef   : > { %v4154_v56 = vor.u32 %v4153_v22, %v4149_v4  ;;  %v4445_v18 = vor.u32 %v4444_v15, %v4443_v27  ;;  %v4559_v35 = vrot.slane %v4016_v49, 2  ;;  %v4560_v14 = vrot.slane %v4043_v32, 2 }
 0x4f0   : > { %v4450_v33 = vor.u32 %v4449_v26, %v4448_v21  ;;  %v3524_v46 = vmax.bf16 %v3511_v6, %v11878_v59  ;;  %v12228_v7 = vmax.bf16 %v3438_v17, %v3391_v31  ;;  %v3498_v50 = vmax.bf16 %v3484_v8, %v11933_v1 }
 0x4f1   : > { %v4158_v12 = vsel %vm1283_vm3, %v4154_v56, %v4157_v51  ;;  %v14433_v29 = vrot.slane %v12002_v58, 1  ;;  %v14434_v30 = vrot.slane %v11999_v36, 1  ;;  %v14435_v4 = vor.u32 %v12020_v60, %v12018_v13 }
 0x4f2   : > { %v14436_v32 = vor.u32 %v12016_v16, %v12014_v53  ;;  %v4235_v17 = vmax.bf16 %v4158_v12, %v4016_v49  ;;  %v12245_v31 = vsel %vm3216_vm13, %v4445_v18, %v4450_v33  ;;  %v12248_v8 = vsel %vm3393_vm12, %v4559_v35, %v4560_v14  ;;  %9002 = vmatmul.mubr.msk.bf16.gmra.mrb[52].mxu0 %vm567_vm1, %v3524_v46 }
 0x4f3   : > { %v3183_v61 = vsel %vm3135_vm11, %v14434_v30, %v14433_v29  ;;  %v3980_v47 = vrot.slane %v3524_v46, 7  ;;  %v3512_v42 = vmax.bf16 %v3498_v50, %v11878_v59  ;;  %v14437_v13 = vmax.bf16 %v12038_v41, %v11999_v36 }
 0x4f4   : > { %v3360_v6 = vsel %vm3216_vm13, %v14436_v32, %v14435_v4  ;;  %v14438_v16 = vrot.slane %v12002_v58, 2  ;;  %v14439_v53 = vrot.slane %v11999_v36, 2  ;;  %v3485_v22 = vmax.bf16 %v11933_v1, %v11855_v39 }
 0x4f5   : > { %v3215_v60 = vmax.bf16 %v3183_v61, %v14437_v13  ;;  %v12262_v27 = vmax.bf16 %v4305_v34, %v4235_v17  ;;  %v4019_v15 = vsel %vm1117_vm5, 4286644096, %v3980_v47  ;;  %v4044_v51 = vsel %vm1117_vm5, %v3980_v47, 4286644096 }
 0x4f6   : > { %v3441_v49 = vsel %vm3393_vm12, %v14439_v53, %v14438_v16  ;;  %v3486_v21 = vmax.bf16 %v11878_v59, %v11933_v1  ;;  %v4159_v41 = vshrl.u32 %v4019_v15, 16  ;;  %v4161_v26 = vshll.u32 %v4019_v15, 16 }
 0x4f7   : > { %v4165_v56 = vshll.u32 %v4044_v51, 16  ;;  %v4306_v58 = vrot.slane %v4019_v15, 1  ;;  %v4307_v18 = vrot.slane %v4044_v51, 1  ;;  %v4455_v35 = vshrl.u32 %v4044_v51, 16 }
 0x4f8   : > { %v4562_v33 = vrot.slane %v4019_v15, 2  ;;  %v4163_v39 = vrot.slane %v4161_v26, 1  ;;  %v4452_v14 = vrot.slane %v4159_v41, 1  ;;  %v4453_v46 = vrot.slane %v4161_v26, 2 }
 0x4f9   : > { %v4167_v34 = vrot.slane %v4165_v56, 1  ;;  %v4308_v12 = vsel %vm3135_vm11, %v4306_v58, %v4307_v18  ;;  %v4457_v50 = vrot.slane %v4455_v35, 1  ;;  %v4458_v29 = vrot.slane %v4165_v56, 2 }
 0x4fa   : > { %v4563_v30 = vrot.slane %v4044_v51, 2  ;;  %v4164_v1 = vor.u32 %v4163_v39, %v4159_v41  ;;  %v4454_v61 = vor.u32 %v4453_v46, %v4452_v14  ;;  %v3525_v4 = vmax.bf16 %v3512_v42, %v12228_v7 }
 0x4fb   : > { %v3392_v32 = vmax.bf16 %v3360_v6, %v3215_v60  ;;  %v4459_v17 = vor.u32 %v4458_v29, %v4457_v50  ;;  %v3499_v13 = vmax.bf16 %v3485_v22, %v11878_v59  ;;  %v3500_v16 = vmax.bf16 %v3486_v21, %v12228_v7 }
 0x4fc   : > { %v12273_v47 = vsel %vm3393_vm12, %v4562_v33, %v4563_v30  ;;  %v4168_v53 = vsel %vm1283_vm3, %v4164_v1, %v4167_v34  ;;  %9005 = vmatprep.mubr.msk.bf16.mxu0 %vm567_vm1, %v3525_v4  ;;  %v3981_v26 = vrot.slane %v3525_v4, 7  ;;  %v3487_v51 = vmax.bf16 %v12228_v7, %v11878_v59 }
 0x4fd   : > { %v3473_v56 = vmax.bf16 %v3441_v49, %v3392_v32  ;;  %v4236_v41 = vmax.bf16 %v4168_v53, %v4019_v15  ;;  %v12282_v6 = vsel %vm3216_vm13, %v4454_v61, %v4459_v17  ;;  %v3513_v42 = vmax.bf16 %v3499_v13, %v12228_v7 }
 0x4fe   : > { %v12287_v60 = vsel %vm616_vm0, %v11873_v11, 0  ;;  %v4022_v22 = vsel %vm1117_vm5, 4286644096, %v3981_v26  ;;  %v4045_v21 = vsel %vm1117_vm5, %v3981_v26, 4286644096  ;;  %v12302_v26 = vsel %vm1283_vm3, %v11922_v0, %v11912_v55 }
 0x4ff   : > { %v3514_v58 = vmax.bf16 %v3500_v16, %v3473_v56  ;;  %v12291_v18 = vmax.bf16 %v3487_v51, %v3473_v56  ;;  %v12293_v49 = vmax.bf16 %v4308_v12, %v4236_v41  ;;  %v4169_v59 = vshrl.u32 %v4022_v22, 16 }
 0x500   : > { %v4171_v15 = vshll.u32 %v4022_v22, 16  ;;  %v4175_v35 = vshll.u32 %v4045_v21, 16  ;;  %v4309_v33 = vrot.slane %v4022_v22, 1  ;;  %v4310_v39 = vrot.slane %v4045_v21, 1 }
 0x501   : > { %v4464_v34 = vshrl.u32 %v4045_v21, 16  ;;  %v4565_v7 = vrot.slane %v4022_v22, 2  ;;  %v4461_v50 = vrot.slane %v4169_v59, 1  ;;  %v4566_v4 = vrot.slane %v4045_v21, 2 }
 0x502   : > { %v4173_v14 = vrot.slane %v4171_v15, 1  ;;  %v4177_v46 = vrot.slane %v4175_v35, 1  ;;  %v4311_v29 = vsel %vm3135_vm11, %v4309_v33, %v4310_v39  ;;  %v4462_v30 = vrot.slane %v4171_v15, 2 }
 0x503   : > { %v4466_v1 = vrot.slane %v4464_v34, 1  ;;  %v4467_v61 = vrot.slane %v4175_v35, 2  ;;  %v3526_v32 = vmax.bf16 %v3513_v42, %v3473_v56  ;;  %v3983_v17 = vrot.slane %v3514_v58, 7 }
 0x504   : > { %v4174_v12 = vor.u32 %v4173_v14, %v4169_v59  ;;  %v4463_v13 = vor.u32 %v4462_v30, %v4461_v50  ;;  %v3984_v53 = vrot.slane %v12291_v18, 7  ;;  %v12306_v41 = vsel %vm3393_vm12, %v4565_v7, %v4566_v4 }
 0x505   : > { %v4468_v16 = vor.u32 %v4467_v61, %v4466_v1  ;;  %9006 = vmatmul.mubr.msk.bf16.gmra.mrb[56].mxu0 %vm567_vm1, %v3526_v32  ;;  %v3982_v59 = vrot.slane %v3526_v32, 7  ;;  %v12310_v56 = vsel %vm1117_vm5, 4286644096, %v3983_v17  ;;  %v12317_v55 = vsel %vm1117_vm5, %v3983_v17, 4286644096 }
 0x506   : > { %v4178_v51 = vsel %vm1283_vm3, %v4174_v12, %v4177_v46  ;;  %9009 = vmatprep.mubr.msk.bf16.mxu0 %vm567_vm1, %v3514_v58  ;;  %14440 = vst [vmem:[#allocation50_spill] sm:$0xff] %v12317_v55  ;;  %v4189_v0 = vshrl.u32 %v12310_v56, 16  ;;  %v4191_v33 = vshll.u32 %v12310_v56, 16  ;;  %v4195_v39 = vshll.u32 %v12317_v55, 16 }
 0x507   : > { %v4237_v42 = vmax.bf16 %v4178_v51, %v4022_v22  ;;  %v12313_v21 = vsel %vm3216_vm13, %v4463_v13, %v4468_v16  ;;  %v4025_v15 = vsel %vm1117_vm5, 4286644096, %v3982_v59  ;;  %v4046_v35 = vsel %vm1117_vm5, %v3982_v59, 4286644096 }
 0x508   : > { %v4179_v22 = vshrl.u32 %v4025_v15, 16  ;;  %v4181_v7 = vshll.u32 %v4025_v15, 16  ;;  %v4185_v14 = vshll.u32 %v4046_v35, 16  ;;  %v4312_v46 = vrot.slane %v4025_v15, 1 }
 0x509   : > { %v12324_v34 = vmax.bf16 %v4311_v29, %v4237_v42  ;;  %v4313_v58 = vrot.slane %v4046_v35, 1  ;;  %v4473_v50 = vshrl.u32 %v4046_v35, 16  ;;  %v4568_v30 = vrot.slane %v4025_v15, 2 }
 0x50a   : > { %v4183_v61 = vrot.slane %v4181_v7, 1  ;;  %v4187_v12 = vrot.slane %v4185_v14, 1  ;;  %v4470_v4 = vrot.slane %v4179_v22, 1  ;;  %v4471_v17 = vrot.slane %v4181_v7, 2 }
 0x50b   : > { %v4314_v32 = vsel %vm3135_vm11, %v4312_v46, %v4313_v58  ;;  %v4475_v13 = vrot.slane %v4473_v50, 1  ;;  %v4476_v16 = vrot.slane %v4185_v14, 2  ;;  %v4569_v51 = vrot.slane %v4046_v35, 2  ;;  %v14441_v35 = vld [vmem:[#allocation22_spill] sm:$0xff] }
 0x50c   : > { %v4184_v29 = vor.u32 %v4183_v61, %v4179_v22  ;;  %v4193_v59 = vrot.slane %v4191_v33, 1  ;;  %v4197_v42 = vrot.slane %v4195_v39, 1  ;;  %v4472_v11 = vor.u32 %v4471_v17, %v4470_v4 }
 0x50d   : > { %v4477_v36 = vor.u32 %v4476_v16, %v4475_v13  ;;  %v4315_v28 = vrot.slane %v12310_v56, 1  ;;  %v4316_v3 = vrot.slane %v12317_v55, 1  ;;  %9010 = vmatmul.mubr.msk.bf16.gmra.mrb[60].mxu0 %vm567_vm1, %v12291_v18  ;;  %v12335_v46 = vsel %vm3393_vm12, %v4568_v30, %v4569_v51 }
 0x50e   : > { %v4188_v1 = vsel %vm1283_vm3, %v4184_v29, %v4187_v12  ;;  %v4194_v7 = vor.u32 %v4193_v59, %v4189_v0  ;;  %v12337_v14 = vrot.slane %v4189_v0, 1  ;;  %9015 = vmatprep.mubr.msk.bf16.mxu0 %vm567_vm1, %v14441_v35  ;;  %v12347_v61 = vrot.slane %v4191_v33, 2  ;;  %v8442_v59 = vld [vmem:[%s14220_s7 + $0xc] sm:$0xf] }
 0x50f   : > { %v4238_v22 = vmax.bf16 %v4188_v1, %v4025_v15  ;;  %v12342_v58 = vsel %vm3216_vm13, %v4472_v11, %v4477_v36  ;;  %v12345_v50 = vsel %vm3135_vm11, %v4315_v28, %v4316_v3  ;;  %v4482_v30 = vshrl.u32 %v12317_v55, 16  ;;  %v14448_v28 = vld [vmem:[#allocation32_spill] sm:$0xff] }
 0x510   : > { %v12350_v18 = vsel %vm1283_vm3, %v4194_v7, %v4197_v42  ;;  %v12353_v12 = vrot.slane %v4195_v39, 2  ;;  %v12366_v15 = vsel %vm1117_vm5, 4286644096, %v3984_v53  ;;  %v12369_v33 = vsel %vm1117_vm5, %v3984_v53, 4286644096 }
 0x511   : > { %v12356_v4 = vmax.bf16 %v4314_v32, %v4238_v22  ;;  %v12363_v11 = vrot.slane %v4482_v30, 1  ;;  %14442 = vst [vmem:[#allocation22_spill] sm:$0xff] %v12369_v33  ;;  %v4059_v39 = vshrl.u32 %v11890_v62, 16  ;;  %v4199_v32 = vshrl.u32 %v12366_v15, 16  ;;  %v14445_v30 = vld [vmem:[#allocation21_spill] sm:$0xff] }
 0x512   : > { %v4201_v17 = vshll.u32 %v12366_v15, 16  ;;  %v4205_v13 = vshll.u32 %v12369_v33, 16  ;;  %v4491_v53 = vshrl.u32 %v12369_v33, 16  ;;  %v4061_v3 = vshll.u32 %v11890_v62, 16 }
 0x513   : > { %v12385_v35 = vrot.slane %v4199_v32, 1  ;;  %v14454_v1 = vrot.slane %v11945_v43, 1  ;;  %v14457_v33 = vshll.u32 %v11886_v54, 16 }
 0x514   : > { %v4203_v42 = vrot.slane %v4201_v17, 1  ;;  %v4207_v7 = vrot.slane %v4205_v13, 1  ;;  %v12387_v22 = vrot.slane %v4201_v17, 2  ;;  %v12391_v0 = vrot.slane %v4491_v53, 1 }
 0x515   : > { %14443 = vst [vmem:[#allocation51_spill] sm:$0xff] %v12385_v35  ;;  %9016 = vmatmul.mubr.msk.bf16.vlgmr.msra.gmra.mrb[32].mxu0 %vm567_vm1, %v14445_v30  ;;  %v12393_v29 = vrot.slane %v4205_v13, 2  ;;  %v14449_v17 = vshll.u32 %v11899_v24, 16  ;;  %v4225_v30 = vmax.bf16 %v12302_v26, %v11886_v54  ;;  %v14450_v53 = vrot.slane %v11895_v23, 1 }
 0x516   : > { %14444 = vst [vmem:[#allocation52_spill] sm:$0xff] %v12387_v22  ;;  %14446 = vst [vmem:[#allocation21_spill] sm:$0xff] %v12391_v0  ;;  %9048 = vmatpush3.bf16.msra.mxu0 %v12287_v60  ;;  %9019 = vmatprep.mubr.msk.bf16.mxu0 %vm567_vm1, %v14448_v28  ;;  %v4204_v16 = vor.u32 %v4203_v42, %v4199_v32  ;;  %v14451_v13 = vrot.slane %v11886_v54, 1  ;;  %v4063_v28 = vrot.slane %v4061_v3, 1  ;;  %v4276_v32 = vrot.slane %v11890_v62, 1 }
 0x517   : > { %14447 = vst [vmem:[#allocation53_spill] sm:$0xff] %v12393_v29  ;;  %v4067_v36 = vrot.slane %v14449_v17, 1  ;;  %9555 = vmatprep.subr.msk.bf16.mxu0 %vm616_vm0, %v8442_v59  ;;  %v4277_v42 = vrot.slane %v11899_v24, 1  ;;  %v14453_v26 = vrot.slane %v11948_v52, 1  ;;  %v4354_v55 = vrot.slane %v14457_v33, 2 }
 0x518   : > { %v4275_v51 = vsel %vm3135_vm11, %v14451_v13, %v14450_v53  ;;  %v12415_v17 = vsel %vm1283_vm3, %v4204_v16, %v4207_v7  ;;  %v14455_v13 = vshrl.u32 %v11886_v54, 16  ;;  %v4064_v0 = vor.u32 %v4063_v28, %v4059_v39 }
 0x519   : > { %14452 = vst [vmem:[#allocation32_spill] sm:$0xff] %v12415_v17  ;;  %v4281_v22 = vsel %vm3135_vm11, %v14454_v1, %v14453_v26  ;;  %v4337_v53 = vmax.bf16 %v4275_v51, %v4225_v30  ;;  %v4278_v29 = vsel %vm3135_vm11, %v4276_v32, %v4277_v42  ;;  %v14456_v16 = vmax.bf16 %v11994_v40, %v11945_v43  ;;  %v14459_v32 = vld [vmem:[#allocation26_spill] sm:$0xff]  ;;  %v14460_v42 = vld [vmem:[#allocation24_spill] sm:$0xff]  ;;  %v14461_v40 = vld [vmem:[#allocation31_spill] sm:$0xff] }
 0x51a   : > { %v4353_v35 = vrot.slane %v14455_v13, 1  ;;  %v4360_v1 = vor.u32 %v11914_v38, %v11924_v5  ;;  %v4362_v51 = vrot.slane %v4059_v39, 1  ;;  %v4363_v30 = vrot.slane %v4061_v3, 2  ;;  %v14462_v5 = vld [vmem:[#allocation38_spill] sm:$0xff]  ;;  %v14464_v3 = vld [vmem:[#allocation23_spill] sm:$0xff] }
 0x51b   : > { %v4339_v7 = vmax.bf16 %v4281_v22, %v14456_v16  ;;  %v4068_v26 = vsel %vm1283_vm3, %v4064_v0, %v4067_v36  ;;  %v4365_v13 = vshrl.u32 %v11899_v24, 16  ;;  %v14458_v28 = vshll.u32 %v11899_v24, 16  ;;  %v14463_v36 = vld [vmem:[#allocation37_spill] sm:$0xff] }
 0x51c   : > { %v4373_v17 = vor.u32 %v14460_v42, %v14459_v32  ;;  %v4226_v33 = vmax.bf16 %v4068_v26, %v11890_v62  ;;  %v4355_v22 = vor.u32 %v4354_v55, %v4353_v35  ;;  %v4364_v16 = vor.u32 %v4363_v30, %v4362_v51 }
 0x51d   : > { %v4368_v60 = vrot.slane %v14458_v28, 2  ;;  %9020 = vmatmul.mubr.msk.bf16.gmra.mrb[36].mxu0 %vm567_vm1, %v14461_v40  ;;  %v4529_v38 = vrot.slane %v11886_v54, 2  ;;  %v4367_v0 = vrot.slane %v4365_v13, 1  ;;  %v14465_v39 = vor.u32 %v14463_v36, %v14464_v3  ;;  %v14466_v36 = vld [vmem:[#allocation43_spill] sm:$0xff] }
 0x51e   : > { %9023 = vmatprep.mubr.msk.bf16.mxu0 %vm567_vm1, %v14462_v5  ;;  %v4530_v32 = vrot.slane %v11895_v23, 2  ;;  %v4532_v42 = vrot.slane %v11890_v62, 2  ;;  %v4338_v40 = vmax.bf16 %v4278_v29, %v4226_v33  ;;  %v4361_v26 = vsel %vm3216_vm13, %v4355_v22, %v4360_v1  ;;  %v14469_v23 = vld [vmem:[#allocation34_spill] sm:$0xff]  ;;  %v14470_v29 = vld [vmem:[#allocation45_spill] sm:$0xff] }
 0x51f   : > { %v4379_v28 = vsel %vm3216_vm13, %v4373_v17, %v14465_v39  ;;  %v4533_v35 = vrot.slane %v11899_v24, 2  ;;  %v4369_v54 = vor.u32 %v4368_v60, %v4367_v0  ;;  %v4513_v51 = vmax.bf16 %v4361_v26, %v4337_v53  ;;  %v14467_v17 = vld [vmem:[#allocation35_spill] sm:$0xff]  ;;  %v14473_v24 = vld [vmem:[#allocation44_spill] sm:$0xff]  ;;  %v14476_v0 = vld [vmem:[#allocation49_spill] sm:$0xff] }
 0x520   : > { %v4515_v55 = vmax.bf16 %v4379_v28, %v4339_v7  ;;  %v4531_v30 = vsel %vm3393_vm12, %v4529_v38, %v4530_v32  ;;  %v4535_v13 = vrot.slane %v11945_v43, 2  ;;  %v14468_v3 = vmax.bf16 %v14466_v36, %v14467_v17  ;;  %v14471_v7 = vld [vmem:[#allocation46_spill] sm:$0xff]  ;;  %v14475_v38 = vld [vmem:[#allocation48_spill] sm:$0xff]  ;;  %v14478_v32 = vld [vmem:[#allocation47_spill] sm:$0xff] }
 0x521   : > { %v4534_v5 = vsel %vm3393_vm12, %v4532_v42, %v4533_v35  ;;  %v12462_v62 = vsel %vm616_vm0, %v8442_v59, 0  ;;  %v14472_v1 = vmax.bf16 %v14470_v29, %v14471_v7  ;;  %v4370_v53 = vsel %vm3216_vm13, %v4364_v16, %v4369_v54 }
 0x522   : > { %v4596_v39 = vmax.bf16 %v14469_v23, %v14468_v3  ;;  %v14474_v43 = vrot.slane %v11948_v52, 2  ;;  %v4593_v22 = vmax.bf16 %v4531_v30, %v4513_v51  ;;  %v14477_v28 = vmax.bf16 %v14475_v38, %v14476_v0 }
 0x523   : > { %v12468_v60 = vmax.bf16 %v14473_v24, %v14472_v1  ;;  %v4514_v59 = vmax.bf16 %v4370_v53, %v4338_v40  ;;  %v14479_v35 = vmax.bf16 %v12152_v48, %v12155_v10  ;;  %v14480_v16 = vmax.bf16 %v12172_v2, %v12169_v19  ;;  %v14483_v10 = vld [vmem:[#allocation33_spill] sm:$0xff] }
 0x524   : > { %v4537_v33 = vsel %vm3393_vm12, %v4535_v13, %v14474_v43  ;;  %v12478_v42 = vmax.bf16 %v14478_v32, %v14477_v28  ;;  %v14481_v51 = vmax.bf16 %v12199_v20, %v12204_v37  ;;  %v14482_v48 = vmax.bf16 %v12220_v44, %v12222_v45  ;;  %v14485_v37 = vld [vmem:[#allocation40_spill] sm:$0xff] }
 0x525   : > { %v4595_v26 = vmax.bf16 %v4537_v33, %v4515_v55  ;;  %v4599_v36 = vmax.bf16 %v12148_v63, %v14479_v35  ;;  %v4600_v52 = vmax.bf16 %v12162_v57, %v14480_v16  ;;  %v4612_v54 = vmax.bf16 %v12468_v60, %v4596_v39  ;;  %9024 = vmatmul.mubr.msk.bf16.gmra.mrb[40].mxu0 %vm567_vm1, %v14483_v10  ;;  %v14487_v35 = vld [vmem:[#allocation39_spill] sm:$0xff] }
 0x526   : > { %v12493_v30 = vmax.bf16 %v12184_v9, %v14481_v51  ;;  %v4613_v40 = vmax.bf16 %v12478_v42, %v12468_v60  ;;  %v12501_v63 = vmax.bf16 %v12215_v25, %v14482_v48  ;;  %v4594_v57 = vmax.bf16 %v4534_v5, %v4514_v59  ;;  %9027 = vmatprep.mubr.msk.bf16.mxu0 %vm567_vm1, %v14485_v37 }
 0x527   : > { %v4611_v19 = vmax.bf16 %v4596_v39, %v4595_v26  ;;  %v4614_v2 = vmax.bf16 %v4599_v36, %v12478_v42  ;;  %v14484_v9 = vmax.bf16 %v12245_v31, %v12262_v27  ;;  %v4626_v44 = vmax.bf16 %v4612_v54, %v12478_v42  ;;  %v14490_v54 = vld [vmem:[#allocation42_spill] sm:$0xff] }
 0x528   : > { %v4627_v25 = vmax.bf16 %v4613_v40, %v4599_v36  ;;  %v4615_v45 = vmax.bf16 %v4600_v52, %v4599_v36  ;;  %v14486_v55 = vmax.bf16 %v12282_v6, %v12293_v49  ;;  %v4609_v5 = vmax.bf16 %v4594_v57, %v4593_v22 }
 0x529   : > { %v12510_v20 = vmax.bf16 %v12248_v8, %v14484_v9  ;;  %v4610_v17 = vmax.bf16 %v4595_v26, %v4594_v57  ;;  %v4625_v31 = vmax.bf16 %v4611_v19, %v12468_v60  ;;  %v4628_v27 = vmax.bf16 %v4614_v2, %v4600_v52 }
 0x52a   : > { %v12519_v13 = vmax.bf16 %v12273_v47, %v14486_v55  ;;  %v4640_v8 = vmax.bf16 %v4626_v44, %v4599_v36  ;;  %v4641_v3 = vmax.bf16 %v4627_v25, %v4600_v52  ;;  %v4629_v23 = vmax.bf16 %v4615_v45, %v12493_v30 }
 0x52b   : > { %v4616_v29 = vmax.bf16 %v12493_v30, %v4600_v52  ;;  %v12524_v7 = vmax.bf16 %v4609_v5, %v4595_v26  ;;  %v4624_v1 = vmax.bf16 %v4610_v17, %v4596_v39  ;;  %v4639_v24 = vmax.bf16 %v4625_v31, %v12478_v42 }
 0x52c   : > { %v4642_v6 = vmax.bf16 %v4628_v27, %v12493_v30  ;;  %v12528_v47 = vmax.bf16 %v4640_v8, %v4600_v52  ;;  %v12531_v49 = vmax.bf16 %v4641_v3, %v12493_v30  ;;  %v4643_v53 = vmax.bf16 %v4629_v23, %v12501_v63 }
 0x52d   : > { %v12535_v43 = vmax.bf16 %v4616_v29, %v12501_v63  ;;  %v12538_v33 = vmax.bf16 %v12524_v7, %v4596_v39  ;;  %v4924_v22 = vrot.slane %v12524_v7, 7  ;;  %v4638_v38 = vmax.bf16 %v4624_v1, %v12468_v60  ;;  %9028 = vmatmul.mubr.msk.bf16.gmra.mrb[44].mxu0 %vm567_vm1, %v14487_v35 }
 0x52e   : > { %v12542_v0 = vmax.bf16 %v4639_v24, %v4599_v36  ;;  %v4929_v28 = vrot.slane %v12528_v47, 7  ;;  %v14293_v32 = vrot.slane %v12531_v49, 7  ;;  %v12547_v59 = vmax.bf16 %v4642_v6, %v12501_v63  ;;  %9031 = vmatprep.mubr.msk.bf16.mxu0 %vm567_vm1, %v14490_v54 }
 0x52f   : > { %v12550_v26 = vmax.bf16 %v4643_v53, %v12510_v20  ;;  %v4925_v39 = vrot.slane %v12538_v33, 7  ;;  %v12556_v16 = vsel %vm1117_vm5, 4286644096, %v4924_v22  ;;  %v12559_v36 = vsel %vm1117_vm5, %v4924_v22, 4286644096 }
 0x530   : > { %14488 = vst [vmem:[#allocation26_spill] sm:$0xff] %v12556_v16  ;;  %14489 = vst [vmem:[#allocation24_spill] sm:$0xff] %v12559_v36  ;;  %v12563_v52 = vmax.bf16 %v12538_v33, %v12468_v60  ;;  %v14292_v51 = vshrl.u32 %v12556_v16, 16  ;;  %v14291_v40 = vshll.u32 %v12556_v16, 16  ;;  %v5010_v48 = vshll.u32 %v12559_v36, 16 }
 0x531   : > { %v12572_v57 = vsel %vm1117_vm5, 4286644096, %v4925_v39  ;;  %v12575_v19 = vsel %vm1117_vm5, %v4925_v39, 4286644096  ;;  %v5311_v2 = vshrl.u32 %v12559_v36, 16  ;;  %v12590_v5 = vmax.bf16 %v4638_v38, %v12478_v42  ;;  %v14495_v38 = vld [vmem:[#allocation41_spill] sm:$0xff] }
 0x532   : > { %v5008_v9 = vrot.slane %v14291_v40, 1  ;;  %v12581_v37 = vrot.slane %v5010_v48, 1  ;;  %v12584_v25 = vrot.slane %v5010_v48, 2  ;;  %v4926_v55 = vrot.slane %v12563_v52, 7  ;;  %v14497_v48 = vld [vmem:[#allocation30_spill] sm:$0xff] }
 0x533   : > { %v12586_v45 = vrot.slane %v5311_v2, 1  ;;  %v4928_v17 = vrot.slane %v12542_v0, 7  ;;  %v12598_v27 = vsel %vm1117_vm5, 4286644096, %v4929_v28  ;;  %v12601_v8 = vsel %vm1117_vm5, %v4929_v28, 4286644096 }
 0x534   : > { %14491 = vst [vmem:[#allocation31_spill] sm:$0xff] %v12584_v25  ;;  %v12595_v31 = vor.u32 %v5008_v9, %v14292_v51  ;;  %v12606_v3 = vsel %vm1117_vm5, 4286644096, %v14293_v32  ;;  %v12609_v42 = vsel %vm1117_vm5, 4286644096, %v4926_v55  ;;  %v4927_v29 = vrot.slane %v12590_v5, 7 }
 0x535   : > { %14492 = vst [vmem:[#allocation38_spill] sm:$0xff] %v12586_v45  ;;  %14493 = vst [vmem:[#allocation37_spill] sm:$0xff] %v12609_v42  ;;  %v12612_v23 = vsel %vm1117_vm5, %v4926_v55, 4286644096  ;;  %v5024_v24 = vshrl.u32 %v12609_v42, 16  ;;  %v5026_v6 = vshll.u32 %v12609_v42, 16  ;;  %9032 = vmatmul.mubr.msk.bf16.gmra.mrb[48].mxu0 %vm567_vm1, %v14495_v38 }
 0x536   : > { %14494 = vst [vmem:[#allocation23_spill] sm:$0xff] %v12612_v23  ;;  %v5030_v53 = vshll.u32 %v12612_v23, 16  ;;  %v5329_v35 = vshrl.u32 %v12612_v23, 16  ;;  %v12626_v54 = vsel %vm1117_vm5, 4286644096, %v4927_v29  ;;  %9035 = vmatprep.mubr.msk.bf16.mxu0 %vm567_vm1, %v14497_v48  ;;  %v14508_v25 = vld [vmem:[#allocation29_spill] sm:$0xff] }
 0x537   : > { %14496 = vst [vmem:[#allocation43_spill] sm:$0xff] %v12626_v54  ;;  %v5028_v2 = vrot.slane %v5026_v6, 1  ;;  %v12630_v55 = vrot.slane %v5024_v24, 1  ;;  %v12632_v40 = vrot.slane %v5026_v6, 2  ;;  %v12639_v22 = vsel %vm1117_vm5, %v4927_v29, 4286644096 }
 0x538   : > { %v5032_v9 = vrot.slane %v5030_v53, 1  ;;  %v12634_v51 = vrot.slane %v5329_v35, 1  ;;  %v12636_v38 = vrot.slane %v5030_v53, 2  ;;  %14502 = vst [vmem:[#allocation44_spill] sm:$0xff] %v12639_v22  ;;  %v5034_v39 = vshrl.u32 %v12626_v54, 16 }
 0x539   : > { %14498 = vst [vmem:[#allocation35_spill] sm:$0xff] %v12630_v55  ;;  %14499 = vst [vmem:[#allocation34_spill] sm:$0xff] %v12632_v40  ;;  %v5029_v28 = vor.u32 %v5028_v2, %v5024_v24  ;;  %v5036_v10 = vshll.u32 %v12626_v54, 16  ;;  %v5040_v48 = vshll.u32 %v12639_v22, 16  ;;  %v5237_v60 = vrot.slane %v12626_v54, 1 }
 0x53a   : > { %14500 = vst [vmem:[#allocation45_spill] sm:$0xff] %v12634_v51  ;;  %14501 = vst [vmem:[#allocation46_spill] sm:$0xff] %v12636_v38  ;;  %v5238_v35 = vrot.slane %v12639_v22, 1  ;;  %v12648_v44 = vrot.slane %v5034_v39, 1  ;;  %v5338_v53 = vshrl.u32 %v12639_v22, 16 }
 0x53b   : > { %v12652_v29 = vsel %vm1283_vm3, %v5029_v28, %v5032_v9  ;;  %v5038_v32 = vrot.slane %v5036_v10, 1  ;;  %v5042_v24 = vrot.slane %v5040_v48, 1  ;;  %v12654_v2 = vrot.slane %v5036_v10, 2 }
 0x53c   : > { %14503 = vst [vmem:[#allocation48_spill] sm:$0xff] %v12648_v44  ;;  %14504 = vst [vmem:[#allocation49_spill] sm:$0xff] %v12652_v29  ;;  %v5239_v40 = vsel %vm3135_vm11, %v5237_v60, %v5238_v35  ;;  %v12659_v55 = vrot.slane %v5338_v53, 1  ;;  %v12661_v6 = vrot.slane %v5040_v48, 2  ;;  %v4953_v60 = vsel %vm1117_vm5, 4286644096, %v4928_v17 }
 0x53d   : > { %14505 = vst [vmem:[#allocation47_spill] sm:$0xff] %v12654_v2  ;;  %v5039_v51 = vor.u32 %v5038_v32, %v5034_v39  ;;  %9036 = vmatmul.mubr.msk.bf16.gmra.mrb[52].mxu0 %vm567_vm1, %v14508_v25  ;;  %v4992_v35 = vsel %vm1117_vm5, %v4928_v17, 4286644096  ;;  %v5056_v48 = vshll.u32 %v12598_v27, 16  ;;  %v14509_v32 = vld [vmem:[#allocation27_spill] sm:$0xff]  ;;  %v5044_v53 = vshrl.u32 %v4953_v60, 16 }
 0x53e   : > { %14506 = vst [vmem:[#allocation33_spill] sm:$0xff] %v12659_v55  ;;  %14507 = vst [vmem:[#allocation40_spill] sm:$0xff] %v12661_v6  ;;  %9039 = vmatprep.mubr.msk.bf16.mxu0 %vm567_vm1, %v14509_v32  ;;  %v5046_v28 = vshll.u32 %v4953_v60, 16  ;;  %v5050_v9 = vshll.u32 %v4992_v35, 16  ;;  %v5240_v25 = vrot.slane %v4953_v60, 1  ;;  %v5241_v1 = vrot.slane %v4992_v35, 1 }
 0x53f   : > { %v5043_v39 = vsel %vm1283_vm3, %v5039_v51, %v5042_v24  ;;  %v5347_v22 = vshrl.u32 %v4992_v35, 16  ;;  %v5344_v2 = vrot.slane %v5044_v53, 1  ;;  %v5496_v24 = vrot.slane %v4953_v60, 2 }
 0x540   : > { %v5183_v38 = vmax.bf16 %v5043_v39, %v12626_v54  ;;  %v5048_v10 = vrot.slane %v5046_v28, 1  ;;  %v5052_v44 = vrot.slane %v5050_v9, 1  ;;  %v5345_v55 = vrot.slane %v5046_v28, 2 }
 0x541   : > { %v5242_v6 = vsel %vm3135_vm11, %v5240_v25, %v5241_v1  ;;  %v5349_v45 = vrot.slane %v5347_v22, 1  ;;  %v5350_v32 = vrot.slane %v5050_v9, 2  ;;  %v5497_v42 = vrot.slane %v4992_v35, 2 }
 0x542   : > { %v12678_v17 = vmax.bf16 %v5239_v40, %v5183_v38  ;;  %v5049_v29 = vor.u32 %v5048_v10, %v5044_v53  ;;  %v5346_v51 = vor.u32 %v5345_v55, %v5344_v2  ;;  %v5058_v36 = vrot.slane %v5056_v48, 1  ;;  %v14511_v38 = vld [vmem:[#allocation28_spill] sm:$0xff] }
 0x543   : > { %v5351_v23 = vor.u32 %v5350_v32, %v5349_v45  ;;  %v5060_v39 = vshll.u32 %v12601_v8, 16  ;;  %v5243_v54 = vrot.slane %v12598_v27, 1  ;;  %v12685_v28 = vsel %vm3393_vm12, %v5496_v24, %v5497_v42 }
 0x544   : > { %v5053_v16 = vsel %vm1283_vm3, %v5049_v29, %v5052_v44  ;;  %v5244_v40 = vrot.slane %v12601_v8, 1  ;;  %v14510_v1 = vshrl.u32 %v12598_v27, 16  ;;  %v14513_v44 = vld [vmem:[#allocation36_spill] sm:$0xff]  ;;  %v5354_v29 = vrot.slane %v5056_v48, 2 }
 0x545   : > { %9040 = vmatmul.mubr.msk.bf16.gmra.mrb[56].mxu0 %vm567_vm1, %v14511_v38  ;;  %v5184_v55 = vmax.bf16 %v5053_v16, %v4953_v60  ;;  %v12693_v45 = vsel %vm3216_vm13, %v5346_v51, %v5351_v23  ;;  %v5062_v10 = vrot.slane %v5060_v39, 1  ;;  %v5356_v35 = vshrl.u32 %v12601_v8, 16 }
 0x546   : > { %v5353_v22 = vrot.slane %v14510_v1, 1  ;;  %v14512_v2 = vmov %v14510_v1  ;;  %9043 = vmatprep.mubr.msk.bf16.mxu0 %vm567_vm1, %v14513_v44  ;;  %v5245_v42 = vsel %vm3135_vm11, %v5243_v54, %v5244_v40  ;;  %v5359_v53 = vrot.slane %v5060_v39, 2 }
 0x547   : > { %v5059_v9 = vor.u32 %v5058_v36, %v14512_v2  ;;  %v12701_v25 = vmax.bf16 %v5242_v6, %v5184_v55  ;;  %v5499_v23 = vrot.slane %v12598_v27, 2  ;;  %v5500_v60 = vrot.slane %v12601_v8, 2 }
 0x548   : > { %v5355_v32 = vor.u32 %v5354_v29, %v5353_v22  ;;  %v5358_v51 = vrot.slane %v5356_v35, 1  ;;  %v14514_v24 = vrot.slane %v12531_v49, 7  ;;  %v5064_v39 = vshrl.u32 %v12606_v3, 16 }
 0x549   : > { %v5063_v16 = vsel %vm1283_vm3, %v5059_v9, %v5062_v10  ;;  %v12713_v6 = vsel %vm3393_vm12, %v5499_v23, %v5500_v60  ;;  %v5066_v40 = vshll.u32 %v12606_v3, 16  ;;  %v5246_v22 = vrot.slane %v12606_v3, 1 }
 0x54a   : > { %v5185_v36 = vmax.bf16 %v5063_v16, %v12598_v27  ;;  %v4994_v54 = vsel %vm1117_vm5, %v14514_v24, 4286644096  ;;  %v5360_v8 = vor.u32 %v5359_v53, %v5358_v51  ;;  %v5362_v2 = vrot.slane %v5064_v39, 1  ;;  %v14515_v16 = vld [vmem:[#allocation25_spill] sm:$0xff] }
 0x54b   : > { %v5070_v27 = vshll.u32 %v4994_v54, 16  ;;  %v5068_v38 = vrot.slane %v5066_v40, 1  ;;  %v5247_v55 = vrot.slane %v4994_v54, 1  ;;  %v5363_v9 = vrot.slane %v5066_v40, 2 }
 0x54c   : > { %v12717_v1 = vmax.bf16 %v5245_v42, %v5185_v36  ;;  %v12721_v10 = vsel %vm3216_vm13, %v5355_v32, %v5360_v8  ;;  %v5365_v29 = vshrl.u32 %v4994_v54, 16  ;;  %v5502_v32 = vrot.slane %v12606_v3, 2 }
 0x54d   : > { %v5072_v44 = vrot.slane %v5070_v27, 1  ;;  %v5368_v35 = vrot.slane %v5070_v27, 2  ;;  %9044 = vmatmul.mubr.msk.bf16.gmra.mrb[60].mxu0 %vm567_vm1, %v14515_v16  ;;  %v5069_v53 = vor.u32 %v5068_v38, %v5064_v39  ;;  %v5248_v23 = vsel %vm3135_vm11, %v5246_v22, %v5247_v55 }
 0x54e   : > { %v5364_v60 = vor.u32 %v5363_v9, %v5362_v2  ;;  %9049 = vmatprep.mubr.msk.bf16.mxu0 %vm567_vm1, %v12524_v7  ;;  %v5367_v36 = vrot.slane %v5365_v29, 1  ;;  %v5503_v51 = vrot.slane %v4994_v54, 2  ;;  %v4931_v24 = vrot.slane %v12547_v59, 7 }
 0x54f   : > { %v5073_v40 = vsel %vm1283_vm3, %v5069_v53, %v5072_v44  ;;  %v4932_v8 = vrot.slane %v12550_v26, 7  ;;  %v4644_v27 = vmax.bf16 %v12535_v43, %v12510_v20  ;;  %v14516_v39 = vmax.bf16 %v12313_v21, %v12324_v34 }
 0x550   : > { %v5186_v7 = vmax.bf16 %v5073_v40, %v12606_v3  ;;  %v5369_v38 = vor.u32 %v5368_v35, %v5367_v36  ;;  %v12744_v54 = vsel %vm3393_vm12, %v5502_v32, %v5503_v51  ;;  %v4962_v55 = vsel %vm1117_vm5, 4286644096, %v4931_v24 }
 0x551   : > { %v12740_v22 = vmax.bf16 %v12306_v41, %v14516_v39  ;;  %v4995_v2 = vsel %vm1117_vm5, %v4931_v24, 4286644096  ;;  %v5074_v9 = vshrl.u32 %v4962_v55, 16  ;;  %v5076_v44 = vshll.u32 %v4962_v55, 16 }
 0x552   : > { %v5249_v29 = vrot.slane %v4962_v55, 1  ;;  %v12748_v43 = vmax.bf16 %v5248_v23, %v5186_v7  ;;  %v12751_v21 = vsel %vm3216_vm13, %v5364_v60, %v5369_v38  ;;  %v5080_v41 = vshll.u32 %v4995_v2, 16 }
 0x553   : > { %v5250_v34 = vrot.slane %v4995_v2, 1  ;;  %v5078_v16 = vrot.slane %v5076_v44, 1  ;;  %v5371_v3 = vrot.slane %v5074_v9, 1  ;;  %v5372_v35 = vrot.slane %v5076_v44, 2 }
 0x554   : > { %v5374_v53 = vshrl.u32 %v4995_v2, 16  ;;  %v5082_v32 = vrot.slane %v5080_v41, 1  ;;  %v5377_v24 = vrot.slane %v5080_v41, 2  ;;  %v5505_v39 = vrot.slane %v4962_v55, 2 }
 0x555   : > { %v5251_v51 = vsel %vm3135_vm11, %v5249_v29, %v5250_v34  ;;  %9050 = vmatmul.mubr.msk.bf16.vlgmr.msra.gmra.mrb[32].mxu0 %vm567_vm1, %v12538_v33  ;;  %v5079_v23 = vor.u32 %v5078_v16, %v5074_v9  ;;  %v5373_v40 = vor.u32 %v5372_v35, %v5371_v3  ;;  %v5506_v7 = vrot.slane %v4995_v2, 2 }
 0x556   : > { %v5376_v60 = vrot.slane %v5374_v53, 1  ;;  %9082 = vmatpush3.bf16.msra.mxu0 %v12462_v62  ;;  %9053 = vmatprep.mubr.msk.bf16.mxu0 %vm567_vm1, %v12563_v52  ;;  %v4965_v38 = vsel %vm1117_vm5, 4286644096, %v4932_v8  ;;  %v4996_v44 = vsel %vm1117_vm5, %v4932_v8, 4286644096  ;;  %v12764_v29 = vmax.bf16 %v4644_v27, %v12519_v13 }
 0x557   : > { %v5083_v41 = vsel %vm1283_vm3, %v5079_v23, %v5082_v32  ;;  %v5084_v9 = vshrl.u32 %v4965_v38, 16  ;;  %v5086_v34 = vshll.u32 %v4965_v38, 16  ;;  %v12768_v3 = vsel %vm3393_vm12, %v5505_v39, %v5506_v7 }
 0x558   : > { %v5378_v33 = vor.u32 %v5377_v24, %v5376_v60  ;;  %v5187_v16 = vmax.bf16 %v5083_v41, %v4962_v55  ;;  %v5090_v62 = vshll.u32 %v4996_v44, 16  ;;  %v5252_v35 = vrot.slane %v4965_v38, 1 }
 0x559   : > { %v5088_v2 = vrot.slane %v5086_v34, 1  ;;  %v5253_v53 = vrot.slane %v4996_v44, 1  ;;  %v5380_v8 = vrot.slane %v5084_v9, 1  ;;  %v5381_v42 = vrot.slane %v5086_v34, 2 }
 0x55a   : > { %v12771_v52 = vsel %vm3216_vm13, %v5373_v40, %v5378_v33  ;;  %v12773_v36 = vmax.bf16 %v5251_v51, %v5187_v16  ;;  %v5092_v27 = vrot.slane %v5090_v62, 1  ;;  %v5383_v32 = vshrl.u32 %v4996_v44, 16 }
 0x55b   : > { %v5089_v24 = vor.u32 %v5088_v2, %v5084_v9  ;;  %v5254_v23 = vsel %vm3135_vm11, %v5252_v35, %v5253_v53  ;;  %v5386_v55 = vrot.slane %v5090_v62, 2  ;;  %v5508_v60 = vrot.slane %v4965_v38, 2 }
 0x55c   : > { %v5382_v7 = vor.u32 %v5381_v42, %v5380_v8  ;;  %v5385_v41 = vrot.slane %v5383_v32, 1  ;;  %v5509_v40 = vrot.slane %v4996_v44, 2  ;;  %v4933_v33 = vrot.slane %v12764_v29, 7 }
 0x55d   : > { %9054 = vmatmul.mubr.msk.bf16.gmra.mrb[36].mxu0 %vm567_vm1, %v12590_v5  ;;  %v5093_v51 = vsel %vm1283_vm3, %v5089_v24, %v5092_v27  ;;  %v4617_v9 = vmax.bf16 %v12501_v63, %v12493_v30  ;;  %v14517_v34 = vmax.bf16 %v12342_v58, %v12356_v4  ;;  %v4618_v62 = vmax.bf16 %v12510_v20, %v12501_v63 }
 0x55e   : > { %9057 = vmatprep.mubr.msk.bf16.mxu0 %vm567_vm1, %v12542_v0  ;;  %v5188_v42 = vmax.bf16 %v5093_v51, %v4965_v38  ;;  %v5387_v44 = vor.u32 %v5386_v55, %v5385_v41  ;;  %v12793_v5 = vsel %vm3393_vm12, %v5508_v60, %v5509_v40  ;;  %v4968_v35 = vsel %vm1117_vm5, 4286644096, %v4933_v33 }
 0x55f   : > { %v12788_v16 = vmax.bf16 %v12335_v46, %v14517_v34  ;;  %v4997_v30 = vsel %vm1117_vm5, %v4933_v33, 4286644096  ;;  %v4631_v58 = vmax.bf16 %v4617_v9, %v12510_v20  ;;  %v14518_v46 = vmax.bf16 %v12350_v18, %v12310_v56 }
 0x560   : > { %v12804_v0 = vmax.bf16 %v5254_v23, %v5188_v42  ;;  %v12807_v38 = vsel %vm3216_vm13, %v5382_v7, %v5387_v44  ;;  %v5094_v2 = vshrl.u32 %v4968_v35, 16  ;;  %v5096_v53 = vshll.u32 %v4968_v35, 16 }
 0x561   : > { %v4351_v4 = vmax.bf16 %v12345_v50, %v14518_v46  ;;  %v5100_v8 = vshll.u32 %v4997_v30, 16  ;;  %v5255_v63 = vrot.slane %v4968_v35, 1  ;;  %v5256_v27 = vrot.slane %v4997_v30, 1 }
 0x562   : > { %v5392_v32 = vshrl.u32 %v4997_v30, 16  ;;  %v5098_v55 = vrot.slane %v5096_v53, 1  ;;  %v5389_v60 = vrot.slane %v5094_v2, 1  ;;  %v5390_v41 = vrot.slane %v5096_v53, 2 }
 0x563   : > { %v5102_v18 = vrot.slane %v5100_v8, 1  ;;  %v5257_v50 = vsel %vm3135_vm11, %v5255_v63, %v5256_v27  ;;  %v5395_v40 = vrot.slane %v5100_v8, 2  ;;  %v5511_v33 = vrot.slane %v4968_v35, 2 }
 0x564   : > { %v5394_v23 = vrot.slane %v5392_v32, 1  ;;  %v5099_v51 = vor.u32 %v5098_v55, %v5094_v2  ;;  %v5391_v7 = vor.u32 %v5390_v41, %v5389_v60  ;;  %v5512_v9 = vrot.slane %v4997_v30, 2  ;;  %v14527_v41 = vld [vmem:[#allocation51_spill] sm:$0xff] }
 0x565   : > { %9058 = vmatmul.mubr.msk.bf16.gmra.mrb[40].mxu0 %vm567_vm1, %v12528_v47  ;;  %v4645_v42 = vmax.bf16 %v4631_v58, %v12519_v13  ;;  %v4632_v44 = vmax.bf16 %v4618_v62, %v12519_v13  ;;  %v14519_v46 = vor.u32 %v12353_v12, %v12363_v11  ;;  %v14520_v53 = vor.u32 %v12347_v61, %v12337_v14  ;;  %v14521_v58 = vld [vmem:[#allocation50_spill] sm:$0xff] }
 0x566   : > { %v5396_v34 = vor.u32 %v5395_v40, %v5394_v23  ;;  %9061 = vmatprep.mubr.msk.bf16.mxu0 %vm567_vm1, %v12531_v49  ;;  %v5103_v30 = vsel %vm1283_vm3, %v5099_v51, %v5102_v18  ;;  %v12827_v47 = vsel %vm3393_vm12, %v5511_v33, %v5512_v9  ;;  %v14522_v63 = vrot.slane %v14521_v58, 2 }
 0x567   : > { %v4487_v8 = vsel %vm3216_vm13, %v14520_v53, %v14519_v46  ;;  %v14523_v62 = vrot.slane %v12310_v56, 2  ;;  %v5189_v11 = vmax.bf16 %v5103_v30, %v4968_v35  ;;  %v4658_v61 = vmax.bf16 %v4645_v42, %v12740_v22  ;;  %v14528_v35 = vld [vmem:[#allocation52_spill] sm:$0xff]  ;;  %v14532_v42 = vld [vmem:[#allocation21_spill] sm:$0xff] }
 0x568   : > { %v4527_v2 = vmax.bf16 %v4487_v8, %v4351_v4  ;;  %v12835_v14 = vsel %vm3216_vm13, %v5391_v7, %v5396_v34  ;;  %v4646_v49 = vmax.bf16 %v4632_v44, %v12740_v22  ;;  %v4619_v32 = vmax.bf16 %v12519_v13, %v12510_v20  ;;  %v14524_v4 = vld [vmem:[#allocation22_spill] sm:$0xff]  ;;  %v14529_v7 = vld [vmem:[#allocation32_spill] sm:$0xff]  ;;  %v14531_v34 = vld [vmem:[#allocation53_spill] sm:$0xff] }
 0x569   : > { %v4573_v12 = vsel %vm3393_vm12, %v14523_v62, %v14522_v63  ;;  %v14525_v55 = vrot.slane %v14524_v4, 1  ;;  %v14526_v60 = vrot.slane %v12366_v15, 1  ;;  %v4490_v18 = vor.u32 %v14528_v35, %v14527_v41 }
 0x56a   : > { %v12839_v27 = vmax.bf16 %v4573_v12, %v4527_v2  ;;  %v12850_v23 = vmax.bf16 %v5257_v50, %v5189_v11  ;;  %v4934_v40 = vrot.slane %v4658_v61, 7  ;;  %v12853_v51 = vmax.bf16 %v4646_v49, %v12788_v16 }
 0x56b   : > { %v4320_v56 = vsel %vm3135_vm11, %v14526_v60, %v14525_v55  ;;  %v14530_v33 = vmax.bf16 %v14529_v7, %v12366_v15  ;;  %v12861_v20 = vmax.bf16 %v4619_v32, %v12740_v22  ;;  %v14533_v44 = vor.u32 %v14531_v34, %v14532_v42 }
 0x56c   : > { %v4574_v50 = vrot.slane %v12366_v15, 2  ;;  %v4620_v53 = vmax.bf16 %v12740_v22, %v12519_v13  ;;  %v4971_v30 = vsel %vm1117_vm5, 4286644096, %v4934_v40  ;;  %v4998_v2 = vsel %vm1117_vm5, %v4934_v40, 4286644096 }
 0x56d   : > { %v12858_v9 = vmax.bf16 %v4320_v56, %v14530_v33  ;;  %v12867_v46 = vsel %vm3216_vm13, %v4490_v18, %v14533_v44  ;;  %v4935_v58 = vrot.slane %v12853_v51, 7  ;;  %v5104_v63 = vshrl.u32 %v4971_v30, 16  ;;  %9062 = vmatmul.mubr.msk.bf16.gmra.mrb[44].mxu0 %vm567_vm1, %v12547_v59 }
 0x56e   : > { %v5106_v62 = vshll.u32 %v4971_v30, 16  ;;  %v5110_v12 = vshll.u32 %v4998_v2, 16  ;;  %v5258_v11 = vrot.slane %v4971_v30, 1  ;;  %v5259_v15 = vrot.slane %v4998_v2, 1  ;;  %9065 = vmatprep.mubr.msk.bf16.mxu0 %vm567_vm1, %v12550_v26 }
 0x56f   : > { %v5401_v49 = vshrl.u32 %v4998_v2, 16  ;;  %v5514_v32 = vrot.slane %v4971_v30, 2  ;;  %v5515_v55 = vrot.slane %v4998_v2, 2  ;;  %v5398_v41 = vrot.slane %v5104_v63, 1 }
 0x570   : > { %v5108_v60 = vrot.slane %v5106_v62, 1  ;;  %v5112_v56 = vrot.slane %v5110_v12, 1  ;;  %v5399_v35 = vrot.slane %v5106_v62, 2  ;;  %v5260_v18 = vsel %vm3135_vm11, %v5258_v11, %v5259_v15 }
 0x571   : > { %v5403_v40 = vrot.slane %v5401_v49, 1  ;;  %v5404_v7 = vrot.slane %v5110_v12, 2  ;;  %v12883_v33 = vsel %vm3393_vm12, %v5514_v32, %v5515_v55  ;;  %v4974_v42 = vsel %vm1117_vm5, 4286644096, %v4935_v58 }
 0x572   : > { %v5109_v34 = vor.u32 %v5108_v60, %v5104_v63  ;;  %v5400_v59 = vor.u32 %v5399_v35, %v5398_v41  ;;  %v4999_v44 = vsel %vm1117_vm5, %v4935_v58, 4286644096  ;;  %v5114_v8 = vshrl.u32 %v4974_v42, 16 }
 0x573   : > { %v5405_v2 = vor.u32 %v5404_v7, %v5403_v40  ;;  %v5116_v26 = vshll.u32 %v4974_v42, 16  ;;  %v5120_v24 = vshll.u32 %v4999_v44, 16  ;;  %v5261_v62 = vrot.slane %v4974_v42, 1 }
 0x574   : > { %v5113_v39 = vsel %vm1283_vm3, %v5109_v34, %v5112_v56  ;;  %v5262_v48 = vrot.slane %v4999_v44, 1  ;;  %v5410_v11 = vshrl.u32 %v4999_v44, 16  ;;  %v5407_v55 = vrot.slane %v5114_v8, 1 }
 0x575   : > { %v5190_v15 = vmax.bf16 %v5113_v39, %v4971_v30  ;;  %v12889_v12 = vsel %vm3216_vm13, %v5400_v59, %v5405_v2  ;;  %v5118_v49 = vrot.slane %v5116_v26, 1  ;;  %v5122_v63 = vrot.slane %v5120_v24, 1  ;;  %9066 = vmatmul.mubr.msk.bf16.gmra.mrb[48].mxu0 %vm567_vm1, %v12764_v29 }
 0x576   : > { %v5263_v32 = vsel %vm3135_vm11, %v5261_v62, %v5262_v48  ;;  %v5408_v60 = vrot.slane %v5116_v26, 2  ;;  %v5412_v58 = vrot.slane %v5410_v11, 1  ;;  %v5413_v35 = vrot.slane %v5120_v24, 2  ;;  %9069 = vmatprep.mubr.msk.bf16.mxu0 %vm567_vm1, %v4658_v61 }
 0x577   : > { %v12894_v41 = vmax.bf16 %v5260_v18, %v5190_v15  ;;  %v5119_v56 = vor.u32 %v5118_v49, %v5114_v8  ;;  %v5517_v40 = vrot.slane %v4974_v42, 2  ;;  %v5518_v30 = vrot.slane %v4999_v44, 2 }
 0x578   : > { %v5409_v39 = vor.u32 %v5408_v60, %v5407_v55  ;;  %v4647_v7 = vmax.bf16 %v12861_v20, %v12788_v16  ;;  %v4528_v48 = vmax.bf16 %v12867_v46, %v12858_v9  ;;  %v5414_v18 = vor.u32 %v5413_v35, %v5412_v58 }
 0x579   : > { %v5123_v29 = vsel %vm1283_vm3, %v5119_v56, %v5122_v63  ;;  %v14534_v8 = vrot.slane %v14524_v4, 2  ;;  %v12908_v61 = vsel %vm3393_vm12, %v5517_v40, %v5518_v30  ;;  %v4634_v9 = vmax.bf16 %v4620_v53, %v12788_v16 }
 0x57a   : > { %v5191_v59 = vmax.bf16 %v5123_v29, %v4974_v42  ;;  %v4660_v44 = vmax.bf16 %v4647_v7, %v12839_v27  ;;  %v12912_v2 = vsel %vm3216_vm13, %v5409_v39, %v5414_v18  ;;  %v4621_v4 = vmax.bf16 %v12788_v16, %v12740_v22 }
 0x57b   : > { %v4576_v24 = vsel %vm3393_vm12, %v4574_v50, %v14534_v8  ;;  %v4622_v46 = vmax.bf16 %v12839_v27, %v12788_v16  ;;  %v12927_v26 = vsel %vm1283_vm3, %v12595_v31, %v12581_v37  ;;  %v14312_v62 = vshrl.u32 %v12572_v57, 16 }
 0x57c   : > { %v4608_v20 = vmax.bf16 %v4576_v24, %v4528_v48  ;;  %v12922_v50 = vmax.bf16 %v5263_v32, %v5191_v59  ;;  %v4936_v42 = vrot.slane %v4660_v44, 7  ;;  %v4648_v11 = vmax.bf16 %v4634_v9, %v12839_v27 }
 0x57d   : > { %v4635_v13 = vmax.bf16 %v4621_v4, %v12839_v27  ;;  %v14311_v22 = vshll.u32 %v12572_v57, 16  ;;  %v14535_v37 = vshll.u32 %v12575_v19, 16  ;;  %9070 = vmatmul.mubr.msk.bf16.gmra.mrb[52].mxu0 %vm567_vm1, %v12853_v51 }
 0x57e   : > { %v12932_v53 = vmax.bf16 %v4622_v46, %v4608_v20  ;;  %v4977_v15 = vsel %vm1117_vm5, 4286644096, %v4936_v42  ;;  %v5000_v49 = vsel %vm1117_vm5, %v4936_v42, 4286644096  ;;  %9073 = vmatprep.mubr.msk.bf16.mxu0 %vm567_vm1, %v4660_v44  ;;  %v4661_v59 = vmax.bf16 %v4648_v11, %v4608_v20  ;;  %v14537_v42 = vld [vmem:[#allocation26_spill] sm:$0xff] }
 0x57f   : > { %v12941_v31 = vrot.slane %v14535_v37, 1  ;;  %v5124_v63 = vshrl.u32 %v4977_v15, 16  ;;  %v5126_v27 = vshll.u32 %v4977_v15, 16  ;;  %v5130_v32 = vshll.u32 %v5000_v49, 16 }
 0x580   : > { %v5264_v55 = vrot.slane %v4977_v15, 1  ;;  %v5265_v60 = vrot.slane %v5000_v49, 1  ;;  %v5419_v58 = vshrl.u32 %v5000_v49, 16  ;;  %v5520_v56 = vrot.slane %v4977_v15, 2 }
 0x581   : > { %v5521_v35 = vrot.slane %v5000_v49, 2  ;;  %v5128_v40 = vrot.slane %v5126_v27, 1  ;;  %v5132_v39 = vrot.slane %v5130_v32, 1  ;;  %v5416_v30 = vrot.slane %v5124_v63, 1 }
 0x582   : > { %v5417_v7 = vrot.slane %v5126_v27, 2  ;;  %v5266_v48 = vsel %vm3135_vm11, %v5264_v55, %v5265_v60  ;;  %v5421_v29 = vrot.slane %v5419_v58, 1  ;;  %v5422_v18 = vrot.slane %v5130_v32, 2  ;;  %v14538_v55 = vld [vmem:[#allocation24_spill] sm:$0xff] }
 0x583   : > { %v12948_v51 = vsel %vm3393_vm12, %v5520_v56, %v5521_v35  ;;  %v5129_v8 = vor.u32 %v5128_v40, %v5124_v63  ;;  %v4649_v9 = vmax.bf16 %v4635_v13, %v4608_v20  ;;  %v4939_v4 = vrot.slane %v12932_v53, 7 }
 0x584   : > { %14536 = vst [vmem:[#allocation39_spill] sm:$0xff] %v12948_v51  ;;  %v5418_v24 = vor.u32 %v5417_v7, %v5416_v30  ;;  %v5423_v44 = vor.u32 %v5422_v18, %v5421_v29  ;;  %v5018_v46 = vrot.slane %v14311_v22, 1  ;;  %v4937_v27 = vrot.slane %v4661_v59, 7 }
 0x585   : > { %v5133_v37 = vsel %vm1283_vm3, %v5129_v8, %v5132_v39  ;;  %v4938_v32 = vrot.slane %v4649_v9, 7  ;;  %v14539_v60 = vrot.slane %v14538_v55, 1  ;;  %v14540_v63 = vrot.slane %v14537_v42, 1  ;;  %9074 = vmatmul.mubr.msk.bf16.gmra.mrb[56].mxu0 %vm567_vm1, %v4661_v59 }
 0x586   : > { %v5192_v20 = vmax.bf16 %v5133_v37, %v4977_v15  ;;  %v12964_v13 = vsel %vm3216_vm13, %v5418_v24, %v5423_v44  ;;  %v12967_v58 = vsel %vm1117_vm5, 4286644096, %v4939_v4  ;;  %v12970_v56 = vsel %vm1117_vm5, %v4939_v4, 4286644096  ;;  %9077 = vmatprep.mubr.msk.bf16.mxu0 %vm567_vm1, %v4649_v9 }
 0x587   : > { %v12961_v11 = vsel %vm3135_vm11, %v14540_v63, %v14539_v60  ;;  %14541 = vst [vmem:[#allocation42_spill] sm:$0xff] %v12967_v58  ;;  %14542 = vst [vmem:[#allocation41_spill] sm:$0xff] %v12970_v56  ;;  %v4980_v35 = vsel %vm1117_vm5, 4286644096, %v4937_v27  ;;  %v5001_v40 = vsel %vm1117_vm5, %v4937_v27, 4286644096  ;;  %v12980_v15 = vor.u32 %v5018_v46, %v14312_v62 }
 0x588   : > { %v12976_v39 = vsel %vm1117_vm5, 4286644096, %v4938_v32  ;;  %v12982_v30 = vmax.bf16 %v5266_v48, %v5192_v20  ;;  %v5134_v7 = vshrl.u32 %v4980_v35, 16  ;;  %v5136_v29 = vshll.u32 %v4980_v35, 16 }
 0x589   : > { %v5140_v18 = vshll.u32 %v5001_v40, 16  ;;  %v5267_v8 = vrot.slane %v4980_v35, 1  ;;  %v5268_v24 = vrot.slane %v5001_v40, 1  ;;  %v5428_v59 = vshrl.u32 %v5001_v40, 16 }
 0x58a   : > { %14543 = vst [vmem:[#allocation30_spill] sm:$0xff] %v12982_v30  ;;  %v5523_v44 = vrot.slane %v4980_v35, 2  ;;  %v5138_v37 = vrot.slane %v5136_v29, 1  ;;  %v5425_v60 = vrot.slane %v5134_v7, 1  ;;  %v5426_v63 = vrot.slane %v5136_v29, 2 }
 0x58b   : > { %v5142_v27 = vrot.slane %v5140_v18, 1  ;;  %v5269_v46 = vsel %vm3135_vm11, %v5267_v8, %v5268_v24  ;;  %v5430_v48 = vrot.slane %v5428_v59, 1  ;;  %v5431_v20 = vrot.slane %v5140_v18, 2 }
 0x58c   : > { %v5139_v16 = vor.u32 %v5138_v37, %v5134_v7  ;;  %v5524_v34 = vrot.slane %v5001_v40, 2  ;;  %v12989_v22 = vsel %vm1117_vm5, %v4938_v32, 4286644096  ;;  %v5144_v9 = vshrl.u32 %v12976_v39, 16 }
 0x58d   : > { %14544 = vst [vmem:[#allocation29_spill] sm:$0xff] %v12989_v22  ;;  %v5427_v62 = vor.u32 %v5426_v63, %v5425_v60  ;;  %v5432_v49 = vor.u32 %v5431_v20, %v5430_v48  ;;  %v5146_v51 = vshll.u32 %v12976_v39, 16  ;;  %v5150_v4 = vshll.u32 %v12989_v22, 16  ;;  %9078 = vmatmul.mubr.msk.bf16.gmra.mrb[60].mxu0 %vm567_vm1, %v12932_v53 }
 0x58e   : > { %v5143_v30 = vsel %vm1283_vm3, %v5139_v16, %v5142_v27  ;;  %v12996_v8 = vsel %vm3393_vm12, %v5523_v44, %v5524_v34  ;;  %v5270_v29 = vrot.slane %v12976_v39, 1  ;;  %v5271_v40 = vrot.slane %v12989_v22, 1 }
 0x58f   : > { %v5193_v7 = vmax.bf16 %v5143_v30, %v4980_v35  ;;  %v13001_v32 = vsel %vm3216_vm13, %v5427_v62, %v5432_v49  ;;  %v5148_v18 = vrot.slane %v5146_v51, 1  ;;  %v5152_v24 = vrot.slane %v5150_v4, 1 }
 0x590   : > { %v13006_v59 = vsel %vm3135_vm11, %v5270_v29, %v5271_v40  ;;  %v13008_v16 = vrot.slane %v5144_v9, 1  ;;  %v13010_v34 = vrot.slane %v5146_v51, 2  ;;  %v5437_v44 = vshrl.u32 %v12989_v22, 16 }
 0x591   : > { %14545 = vst [vmem:[#allocation27_spill] sm:$0xff] %v13006_v59  ;;  %v13013_v37 = vmax.bf16 %v5269_v46, %v5193_v7  ;;  %v5149_v35 = vor.u32 %v5148_v18, %v5144_v9  ;;  %v13015_v30 = vrot.slane %v5150_v4, 2  ;;  %v5154_v60 = vshrl.u32 %v12967_v58, 16 }
 0x592   : > { %14546 = vst [vmem:[#allocation28_spill] sm:$0xff] %v13008_v16  ;;  %14547 = vst [vmem:[#allocation36_spill] sm:$0xff] %v13010_v34  ;;  %v13020_v53 = vrot.slane %v5437_v44, 1  ;;  %v5156_v4 = vshll.u32 %v12967_v58, 16  ;;  %v5160_v63 = vshll.u32 %v12970_v56, 16  ;;  %v5446_v44 = vshrl.u32 %v12970_v56, 16 }
 0x593   : > { %14548 = vst [vmem:[#allocation25_spill] sm:$0xff] %v13015_v30  ;;  %v13027_v46 = vsel %vm1283_vm3, %v5149_v35, %v5152_v24  ;;  %v13037_v18 = vrot.slane %v5154_v60, 1  ;;  %v5023_v27 = vsel %vm1283_vm3, %v12980_v15, %v12941_v31  ;;  %v5231_v29 = vrot.slane %v12572_v57, 1  ;;  %v14578_v30 = vld [vmem:[#allocation45_spill] sm:$0xff] }
 0x594   : > { %14549 = vst [vmem:[#allocation50_spill] sm:$0xff] %v13020_v53  ;;  %v5158_v40 = vrot.slane %v5156_v4, 1  ;;  %v5162_v7 = vrot.slane %v5160_v63, 1  ;;  %v13039_v24 = vrot.slane %v5156_v4, 2  ;;  %v13042_v35 = vrot.slane %v5160_v63, 2  ;;  %v14554_v4 = vld [vmem:[#allocation23_spill] sm:$0xff] }
 0x595   : > { %14550 = vst [vmem:[#allocation22_spill] sm:$0xff] %v13037_v18  ;;  %v5181_v9 = vmax.bf16 %v5023_v27, %v12572_v57  ;;  %v5232_v20 = vrot.slane %v12575_v19, 1  ;;  %v13051_v48 = vrot.slane %v5446_v44, 1  ;;  %v14555_v51 = vrot.slane %v14554_v4, 1  ;;  %v14561_v44 = vld [vmem:[#allocation49_spill] sm:$0xff] }
 0x596   : > { %14551 = vst [vmem:[#allocation51_spill] sm:$0xff] %v13039_v24  ;;  %14552 = vst [vmem:[#allocation52_spill] sm:$0xff] %v13042_v35  ;;  %v5159_v49 = vor.u32 %v5158_v40, %v5154_v60  ;;  %v14556_v24 = vld [vmem:[#allocation37_spill] sm:$0xff]  ;;  %v14558_v62 = vmax.bf16 %v12927_v26, %v14537_v42  ;;  %v14559_v15 = vshrl.u32 %v14537_v42, 16  ;;  %v14563_v16 = vshll.u32 %v14537_v42, 16  ;;  %v14569_v26 = vld [vmem:[#allocation35_spill] sm:$0xff] }
 0x597   : > { %14553 = vst [vmem:[#allocation32_spill] sm:$0xff] %v13051_v48  ;;  %v14557_v63 = vrot.slane %v14556_v24, 1  ;;  %v5233_v40 = vsel %vm3135_vm11, %v5231_v29, %v5232_v20  ;;  %v14562_v56 = vmax.bf16 %v14561_v44, %v14556_v24  ;;  %v14566_v20 = vshrl.u32 %v12572_v57, 16  ;;  %v14574_v48 = vld [vmem:[#allocation47_spill] sm:$0xff] }
 0x598   : > { %v5292_v31 = vmax.bf16 %v12961_v11, %v14558_v62  ;;  %v5308_v27 = vrot.slane %v14559_v15, 1  ;;  %v13065_v60 = vsel %vm1283_vm3, %v5159_v49, %v5162_v7  ;;  %v5293_v62 = vmax.bf16 %v5233_v40, %v5181_v9  ;;  %v14565_v15 = vld [vmem:[#allocation31_spill] sm:$0xff]  ;;  %v14571_v11 = vld [vmem:[#allocation40_spill] sm:$0xff]  ;;  %v14572_v9 = vld [vmem:[#allocation33_spill] sm:$0xff] }
 0x599   : > { %v5236_v18 = vsel %vm3135_vm11, %v14557_v63, %v14555_v51  ;;  %14560 = vst [vmem:[#allocation53_spill] sm:$0xff] %v13065_v60  ;;  %v5309_v51 = vrot.slane %v14563_v16, 2  ;;  %v14564_v63 = vld [vmem:[#allocation38_spill] sm:$0xff]  ;;  %v5317_v29 = vrot.slane %v14566_v20, 1  ;;  %v14567_v44 = vshll.u32 %v12572_v57, 16 }
 0x59a   : > { %v5294_v22 = vmax.bf16 %v5236_v18, %v14562_v56  ;;  %v5315_v49 = vor.u32 %v14565_v15, %v14564_v63  ;;  %v5320_v18 = vshrl.u32 %v12575_v19, 16  ;;  %v14568_v16 = vshll.u32 %v12575_v19, 16  ;;  %v14570_v60 = vld [vmem:[#allocation34_spill] sm:$0xff]  ;;  %v14575_v63 = vld [vmem:[#allocation48_spill] sm:$0xff] }
 0x59b   : > { %v5310_v7 = vor.u32 %v5309_v51, %v5308_v27  ;;  %v5318_v56 = vrot.slane %v14567_v44, 2  ;;  %v5328_v58 = vor.u32 %v14570_v60, %v14569_v26  ;;  %v14573_v40 = vor.u32 %v14571_v11, %v14572_v9 }
 0x59c   : > { %v5323_v34 = vrot.slane %v14568_v16, 2  ;;  %v14576_v27 = vor.u32 %v14574_v48, %v14575_v63  ;;  %v5484_v15 = vrot.slane %v14537_v42, 2  ;;  %v5322_v35 = vrot.slane %v5320_v18, 1  ;;  %v14577_v16 = vld [vmem:[#allocation46_spill] sm:$0xff] }
 0x59d   : > { %v5316_v20 = vsel %vm3216_vm13, %v5310_v7, %v5315_v49  ;;  %v5319_v44 = vor.u32 %v5318_v56, %v5317_v29  ;;  %v14579_v59 = vor.u32 %v14577_v16, %v14578_v30  ;;  %v5485_v11 = vrot.slane %v14538_v55, 2  ;;  %v14580_v29 = vld [vmem:[#allocation44_spill] sm:$0xff]  ;;  %v14582_v56 = vld [vmem:[#allocation43_spill] sm:$0xff] }
 0x59e   : > { %v5343_v51 = vsel %vm3216_vm13, %v14576_v27, %v14573_v40  ;;  %v5468_v26 = vmax.bf16 %v5316_v20, %v5292_v31  ;;  %v5487_v48 = vrot.slane %v12572_v57, 2  ;;  %v5324_v9 = vor.u32 %v5323_v34, %v5322_v35 }
 0x59f   : > { %v5471_v53 = vmax.bf16 %v5343_v51, %v12678_v17  ;;  %v5334_v60 = vsel %vm3216_vm13, %v5328_v58, %v14579_v59  ;;  %v5488_v42 = vrot.slane %v12575_v19, 2  ;;  %v5490_v49 = vrot.slane %v14556_v24, 2 }
 0x5a0   : > { %v5470_v40 = vmax.bf16 %v5334_v60, %v5294_v22  ;;  %v5486_v7 = vsel %vm3393_vm12, %v5484_v15, %v5485_v11  ;;  %v14581_v17 = vrot.slane %v14580_v29, 2  ;;  %v14583_v18 = vrot.slane %v14582_v56, 2 }
 0x5a1   : > { %v14584_v58 = vmax.bf16 %v12693_v45, %v12701_v25  ;;  %v14585_v57 = vmax.bf16 %v12721_v10, %v12717_v1  ;;  %v5325_v22 = vsel %vm3216_vm13, %v5319_v44, %v5324_v9  ;;  %v5489_v59 = vsel %vm3393_vm12, %v5487_v48, %v5488_v42 }
 0x5a2   : > { %v5495_v30 = vsel %vm3393_vm12, %v14583_v18, %v14581_v17  ;;  %v14586_v34 = vrot.slane %v14554_v4, 2  ;;  %v5548_v35 = vmax.bf16 %v5486_v7, %v5468_v26  ;;  %v5469_v31 = vmax.bf16 %v5325_v22, %v5293_v62  ;;  %v14593_v17 = vld [vmem:[#allocation30_spill] sm:$0xff]  ;;  %v14595_v18 = vld [vmem:[#allocation39_spill] sm:$0xff] }
 0x5a3   : > { %v5552_v55 = vmax.bf16 %v12685_v28, %v14584_v58  ;;  %v5553_v19 = vmax.bf16 %v12713_v6, %v14585_v57  ;;  %v5551_v27 = vmax.bf16 %v5495_v30, %v5471_v53  ;;  %v14587_v28 = vmax.bf16 %v12751_v21, %v12748_v43 }
 0x5a4   : > { %v5492_v24 = vsel %vm3393_vm12, %v5490_v49, %v14586_v34  ;;  %v14588_v25 = vmax.bf16 %v12771_v52, %v12773_v36  ;;  %v14589_v1 = vmax.bf16 %v12807_v38, %v12804_v0  ;;  %v14590_v62 = vmax.bf16 %v12835_v14, %v12850_v23 }
 0x5a5   : > { %v5550_v63 = vmax.bf16 %v5492_v24, %v5470_v40  ;;  %v5554_v45 = vmax.bf16 %v12744_v54, %v14587_v28  ;;  %v5568_v4 = vmax.bf16 %v5553_v19, %v5552_v55  ;;  %v5549_v51 = vmax.bf16 %v5489_v59, %v5469_v31  ;;  %v14600_v28 = vld [vmem:[#allocation50_spill] sm:$0xff] }
 0x5a6   : > { %v5555_v6 = vmax.bf16 %v12768_v3, %v14588_v25  ;;  %v5556_v10 = vmax.bf16 %v12793_v5, %v14589_v1  ;;  %v5557_v53 = vmax.bf16 %v12827_v47, %v14590_v62  ;;  %v5567_v21 = vmax.bf16 %v5552_v55, %v5551_v27  ;;  %v14602_v25 = vld [vmem:[#allocation36_spill] sm:$0xff] }
 0x5a7   : > { %v5566_v43 = vmax.bf16 %v5551_v27, %v5550_v63  ;;  %v5569_v54 = vmax.bf16 %v5554_v45, %v5553_v19  ;;  %v5582_v15 = vmax.bf16 %v5568_v4, %v5554_v45  ;;  %v14591_v36 = vmax.bf16 %v12889_v12, %v12894_v41  ;;  %v14608_v4 = vld [vmem:[#allocation41_spill] sm:$0xff] }
 0x5a8   : > { %v5570_v52 = vmax.bf16 %v5555_v6, %v5554_v45  ;;  %v14592_v5 = vmax.bf16 %v12912_v2, %v12922_v50  ;;  %v5564_v38 = vmax.bf16 %v5549_v51, %v5548_v35  ;;  %v5565_v14 = vmax.bf16 %v5550_v63, %v5549_v51 }
 0x5a9   : > { %v5558_v3 = vmax.bf16 %v12883_v33, %v14591_v36  ;;  %v5580_v23 = vmax.bf16 %v5566_v43, %v5552_v55  ;;  %v5581_v47 = vmax.bf16 %v5567_v21, %v5553_v19  ;;  %v5596_v20 = vmax.bf16 %v5582_v15, %v5555_v6  ;;  %v14612_v15 = vld [vmem:[#allocation53_spill] sm:$0xff] }
 0x5aa   : > { %v5559_v0 = vmax.bf16 %v12908_v61, %v14592_v5  ;;  %v5583_v44 = vmax.bf16 %v5569_v54, %v5555_v6  ;;  %v5584_v16 = vmax.bf16 %v5570_v52, %v5556_v10  ;;  %v5571_v60 = vmax.bf16 %v5556_v10, %v5555_v6  ;;  %v14614_v5 = vld [vmem:[#allocation22_spill] sm:$0xff] }
 0x5ab   : > { %v5578_v26 = vmax.bf16 %v5564_v38, %v5550_v63  ;;  %v5579_v11 = vmax.bf16 %v5565_v14, %v5551_v27  ;;  %v5594_v48 = vmax.bf16 %v5580_v23, %v5553_v19  ;;  %v5595_v12 = vmax.bf16 %v5581_v47, %v5554_v45  ;;  %v14598_v63 = vld [vmem:[#allocation27_spill] sm:$0xff] }
 0x5ac   : > { %v5609_v41 = vmax.bf16 %v5596_v20, %v5556_v10  ;;  %v5597_v33 = vmax.bf16 %v5583_v44, %v5556_v10  ;;  %v5598_v9 = vmax.bf16 %v5584_v16, %v5557_v53  ;;  %v5585_v40 = vmax.bf16 %v5571_v60, %v5557_v53  ;;  %v14615_v38 = vld [vmem:[#allocation51_spill] sm:$0xff]  ;;  %v14616_v16 = vld [vmem:[#allocation52_spill] sm:$0xff] }
 0x5ad   : > { %v5592_v42 = vmax.bf16 %v5578_v26, %v5551_v27  ;;  %9083 = vmatprep.mubr.msk.bf16.mxu0 %vm567_vm1, %v5578_v26  ;;  %v5593_v61 = vmax.bf16 %v5579_v11, %v5552_v55  ;;  %v5607_v2 = vmax.bf16 %v5594_v48, %v5554_v45  ;;  %v5608_v50 = vmax.bf16 %v5595_v12, %v5555_v6  ;;  %v14603_v6 = vld [vmem:[#allocation28_spill] sm:$0xff] }
 0x5ae   : > { %v5610_v49 = vmax.bf16 %v5597_v33, %v5557_v53  ;;  %v5611_v7 = vmax.bf16 %v5598_v9, %v5558_v3  ;;  %v5599_v29 = vmax.bf16 %v5585_v40, %v5558_v3  ;;  %v14594_v56 = vmax.bf16 %v12964_v13, %v14593_v17  ;;  %v14599_v13 = vld [vmem:[#allocation25_spill] sm:$0xff]  ;;  %v14617_v60 = vld [vmem:[#allocation32_spill] sm:$0xff] }
 0x5af   : > { %9084 = vmatmul.mubr.msk.bf16.vlgmr.msra.gmra.mrb[32].mxu0 %vm567_vm1, %v5592_v42  ;;  %v5605_v58 = vmax.bf16 %v5592_v42, %v5552_v55  ;;  %v5606_v57 = vmax.bf16 %v5593_v61, %v5553_v19  ;;  %v5572_v22 = vmax.bf16 %v5557_v53, %v5556_v10  ;;  %v14596_v59 = vmax.bf16 %v13001_v32, %v13013_v37  ;;  %v14605_v37 = vld [vmem:[#allocation29_spill] sm:$0xff] }
 0x5b0   : > { %v5560_v30 = vmax.bf16 %v14595_v18, %v14594_v56  ;;  %v5612_v24 = vmax.bf16 %v5599_v29, %v5559_v0  ;;  %v5573_v35 = vmax.bf16 %v5558_v3, %v5557_v53  ;;  %v14597_v31 = vmax.bf16 %v13027_v46, %v12976_v39  ;;  %v14610_v53 = vld [vmem:[#allocation42_spill] sm:$0xff] }
 0x5b1   : > { %v5561_v34 = vmax.bf16 %v12996_v8, %v14596_v59  ;;  %v14601_v45 = vor.u32 %v14599_v13, %v14600_v28  ;;  %v14604_v55 = vor.u32 %v14602_v25, %v14603_v6  ;;  %9087 = vmatprep.mubr.msk.bf16.mxu0 %vm567_vm1, %v5605_v58  ;;  %v5586_v32 = vmax.bf16 %v5572_v22, %v5558_v3 }
 0x5b2   : > { %v5306_v27 = vmax.bf16 %v14598_v63, %v14597_v31  ;;  %v14606_v8 = vrot.slane %v14605_v37, 2  ;;  %v14607_v1 = vrot.slane %v12976_v39, 2  ;;  %v5574_v46 = vmax.bf16 %v5559_v0, %v5558_v3 }
 0x5b3   : > { %v5442_v19 = vsel %vm3216_vm13, %v14604_v55, %v14601_v45  ;;  %v14609_v62 = vrot.slane %v14608_v4, 1  ;;  %v14611_v51 = vrot.slane %v14610_v53, 1  ;;  %v5587_v21 = vmax.bf16 %v5573_v35, %v5559_v0 }
 0x5b4   : > { %v5528_v10 = vsel %vm3393_vm12, %v14607_v1, %v14606_v8  ;;  %v5482_v54 = vmax.bf16 %v5442_v19, %v5306_v27  ;;  %v14613_v36 = vmax.bf16 %v14612_v15, %v14610_v53  ;;  %v5445_v14 = vor.u32 %v14615_v38, %v14614_v5 }
 0x5b5   : > { %v5275_v43 = vsel %vm3135_vm11, %v14611_v51, %v14609_v62  ;;  %v5600_v23 = vmax.bf16 %v5586_v32, %v5559_v0  ;;  %v5588_v39 = vmax.bf16 %v5574_v46, %v5560_v30  ;;  %v5529_v47 = vrot.slane %v14610_v53, 2 }
 0x5b6   : > { %v5307_v52 = vmax.bf16 %v5275_v43, %v14613_v36  ;;  %v5575_v3 = vmax.bf16 %v5560_v30, %v5559_v0  ;;  %v5601_v20 = vmax.bf16 %v5587_v21, %v5560_v30  ;;  %v5562_v44 = vmax.bf16 %v5528_v10, %v5482_v54 }
 0x5b7   : > { %v14618_v26 = vor.u32 %v14616_v16, %v14617_v60  ;;  %v5576_v48 = vmax.bf16 %v5561_v34, %v5560_v30  ;;  %v5613_v12 = vmax.bf16 %v5600_v23, %v5560_v30  ;;  %v5602_v33 = vmax.bf16 %v5588_v39, %v5561_v34  ;;  %9088 = vmatmul.mubr.msk.bf16.gmra.mrb[36].mxu0 %vm567_vm1, %v5606_v57 }
 0x5b8   : > { %v14619_v40 = vrot.slane %v14608_v4, 2  ;;  %v5614_v61 = vmax.bf16 %v5601_v20, %v5561_v34  ;;  %v5589_v29 = vmax.bf16 %v5575_v3, %v5561_v34  ;;  %v5577_v56 = vmax.bf16 %v5562_v44, %v5561_v34  ;;  %9091 = vmatprep.mubr.msk.bf16.mxu0 %vm567_vm1, %v5607_v2  ;;  %v13213_v2 = vld [vmem:[%s14221_s8] ss:$0 sm:$0xff] }
 0x5b9   : > { %v5451_v11 = vsel %vm3216_vm13, %v5445_v14, %v14618_v26  ;;  %v5590_v17 = vmax.bf16 %v5576_v48, %v5562_v44  ;;  %v5615_v0 = vmax.bf16 %v5602_v33, %v5562_v44 }
 0x5ba   : > { %v5483_v9 = vmax.bf16 %v5451_v11, %v5307_v52  ;;  %v5531_v42 = vsel %vm3393_vm12, %v5529_v47, %v14619_v40  ;;  %v5603_v58 = vmax.bf16 %v5589_v29, %v5562_v44 }
 0x5bc   : > { %v5563_v18 = vmax.bf16 %v5531_v42, %v5483_v9 }
 0x5be   : > { %v5604_v22 = vmax.bf16 %v5590_v17, %v5563_v18  ;;  %v5591_v59 = vmax.bf16 %v5577_v56, %v5563_v18  ;;  %v5616_v30 = vmax.bf16 %v5603_v58, %v5563_v18 }
 0x5bf   : > { %9092 = vmatmul.mubr.msk.bf16.gmra.mrb[40].mxu0 %vm567_vm1, %v5608_v50 }
 0x5c0   : > { %9095 = vmatprep.mubr.msk.bf16.mxu0 %vm567_vm1, %v5609_v41  ;;  %v9595_v41 = vld [vmem:[%s14222_s9 + $0xc] sm:$0xff]  }
 0x5c1   : > { %9115 = vmatprep.subr.bf16.mxu1 %v9595_v41 }
 0x5c2   : > { %9116 = vmatpush3.bf16.msra.mxu1 %v9595_v41 }
 0x5c7   : > { %9096 = vmatmul.mubr.msk.bf16.gmra.mrb[44].mxu0 %vm567_vm1, %v5610_v49 }
 0x5c8   : > { %9099 = vmatprep.mubr.msk.bf16.mxu0 %vm567_vm1, %v5611_v7 }
 0x5cf   : > { %9100 = vmatmul.mubr.msk.bf16.gmra.mrb[48].mxu0 %vm567_vm1, %v5612_v24 }
 0x5d0   : > { %9103 = vmatprep.mubr.msk.bf16.mxu0 %vm567_vm1, %v5613_v12 }
 0x5d7   : > { %9104 = vmatmul.mubr.msk.bf16.gmra.mrb[52].mxu0 %vm567_vm1, %v5614_v61 }
 0x5d8   : > { %9107 = vmatprep.mubr.msk.bf16.mxu0 %vm567_vm1, %v5615_v0 }
 0x5df   : > { %9108 = vmatmul.mubr.msk.bf16.gmra.mrb[56].mxu0 %vm567_vm1, %v5616_v30 }
 0x5e0   : > { %9111 = vmatprep.mubr.msk.bf16.mxu0 %vm567_vm1, %v5604_v22 }
 0x5e7   : > { %9112 = vmatmul.mubr.msk.bf16.gmra.mrb[60].mxu0 %vm567_vm1, %v5591_v59  ;;  %v9596_v59 = vld [vmem:[%s14222_s9 + $0x14] ss:$0 sps:$4 sm:$0xff]  }
 0x5e8   : > { %9556 = vmatprep.subr.msk.bf16.mxu1 %vm616_vm0, %v9596_v59 }
 0x682   : > { %v9085_v50 = vpop.f32.mrb[32].mxu0 }
 0x683   : > { %v13216_v49 = vadd.f32 %v9085_v50, %v13213_v2  ;;  %v5704_v7 = vpop.f32.mrb[33].mxu0 }
 0x684   : > { %v13219_v57 = vadd.f32 %v13213_v2, %v5704_v7  ;;  %v9086_v34 = vpop.f32.mrb[34].mxu0 }
 0x685   : > { %v5904_v24 = vsub.f32 0.0, %v13216_v49  ;;  %v13223_v35 = vadd.f32 %v9086_v34, %v13213_v2  ;;  %v5707_v31 = vpop.f32.mrb[35].mxu0 }
 0x686   : > { %v5902_v63 = vsub.f32 0.0, %v13219_v57  ;;  %v13227_v27 = vadd.f32 %v13213_v2, %v5707_v31 }
 0x687   : > { %v5938_v13 = vmul.f32 1.442695, %v5904_v24  ;;  %v5905_v28 = vsub.f32 0.0, %v13223_v35 }
 0x688   : > { %v5934_v45 = vmul.f32 1.442695, %v5902_v63  ;;  %v5903_v25 = vsub.f32 0.0, %v13227_v27 }
 0x689   : > { %9985 = vpow2.f32 %v5938_v13  ;;  %v5940_v6 = vmul.f32 1.442695, %v5905_v28 }
 0x68a   : > { %9987 = vpow2.f32 %v5934_v45  ;;  %v5936_v55 = vmul.f32 1.442695, %v5903_v25  ;;  %v9089_v19 = vpop.f32.mrb[36].mxu0 }
 0x68b   : > { %9989 = vpow2.f32 %v5940_v6  ;;  %v13232_v32 = vadd.f32 %v9089_v19, %v13213_v2  ;;  %v5720_v37 = vpop.f32.mrb[37].mxu0 }
 0x68c   : > { %9991 = vpow2.f32 %v5936_v55  ;;  %v13235_v8 = vadd.f32 %v13213_v2, %v5720_v37  ;;  %v9090_v1 = vpop.f32.mrb[38].mxu0 }
 0x68d   : > { %v5908_v10 = vsub.f32 0.0, %v13232_v32  ;;  %v13239_v46 = vadd.f32 %v9090_v1, %v13213_v2  ;;  %v5723_v4 = vpop.f32.mrb[39].mxu0 }
 0x68e   : > { %v5906_v62 = vsub.f32 0.0, %v13235_v8  ;;  %v13243_v53 = vadd.f32 %v13213_v2, %v5723_v4 }
 0x68f   : > { %v5946_v51 = vmul.f32 1.442695, %v5908_v10  ;;  %v5909_v43 = vsub.f32 0.0, %v13239_v46 }
 0x690   : > { %v5942_v21 = vmul.f32 1.442695, %v5906_v62  ;;  %v5907_v54 = vsub.f32 0.0, %v13243_v53  ;;  %v6591_v62 = vsel %vm616_vm0, %v9596_v59, 0 }
 0x691   : > { %9993 = vpow2.f32 %v5946_v51  ;;  %v5948_v15 = vmul.f32 1.442695, %v5909_v43  ;;  %9118 = vmatpush3.bf16.msra.mxu1 %v6591_v62 }
 0x692   : > { %9995 = vpow2.f32 %v5942_v21  ;;  %v5944_v36 = vmul.f32 1.442695, %v5907_v54  ;;  %v9093_v52 = vpop.f32.mrb[40].mxu0 }
 0x693   : > { %v9986_v5 = vpop.eup %9985  ;;  %9997 = vpow2.f32 %v5948_v15  ;;  %v13248_v38 = vadd.f32 %v9093_v52, %v13213_v2  ;;  %v5736_v14 = vpop.f32.mrb[41].mxu0 }
 0x694   : > { %v9988_v23 = vpop.eup %9987  ;;  %v6000_v39 = vadd.f32 1.0, %v9986_v5  ;;  %9999 = vpow2.f32 %v5944_v36  ;;  %v13251_v47 = vadd.f32 %v13213_v2, %v5736_v14  ;;  %v9094_v3 = vpop.f32.mrb[42].mxu0 }
 0x695   : > { %v9990_v20 = vpop.eup %9989  ;;  %v5998_v44 = vadd.f32 1.0, %v9988_v23  ;;  %v5912_v16 = vsub.f32 0.0, %v13248_v38  ;;  %v13255_v60 = vadd.f32 %v9094_v3, %v13213_v2  ;;  %v5739_v26 = vpop.f32.mrb[43].mxu0 }
 0x696   : > { %v9992_v11 = vpop.eup %9991  ;;  %10001 = vrcp.f32 %v6000_v39  ;;  %v6001_v48 = vadd.f32 1.0, %v9990_v20  ;;  %v5910_v12 = vsub.f32 0.0, %v13251_v47  ;;  %v13259_v33 = vadd.f32 %v13213_v2, %v5739_v26 }
 0x697   : > { %10003 = vrcp.f32 %v5998_v44  ;;  %v5999_v9 = vadd.f32 1.0, %v9992_v11  ;;  %v5954_v40 = vmul.f32 1.442695, %v5912_v16  ;;  %v5913_v42 = vsub.f32 0.0, %v13255_v60 }
 0x698   : > { %10005 = vrcp.f32 %v6001_v48  ;;  %v5950_v61 = vmul.f32 1.442695, %v5910_v12  ;;  %v5911_v29 = vsub.f32 0.0, %v13259_v33 }
 0x699   : > { %10007 = vrcp.f32 %v5999_v9  ;;  %v5956_v17 = vmul.f32 1.442695, %v5913_v42 }
 0x69a   : > { %10009 = vpow2.f32 %v5954_v40  ;;  %v5952_v56 = vmul.f32 1.442695, %v5911_v29  ;;  %v9097_v0 = vpop.f32.mrb[44].mxu0 }
 0x69b   : > { %v9994_v18 = vpop.eup %9993  ;;  %10011 = vpow2.f32 %v5950_v61  ;;  %v13264_v58 = vadd.f32 %v9097_v0, %v13213_v2  ;;  %v5752_v22 = vpop.f32.mrb[45].mxu0 }
 0x69c   : > { %v9996_v30 = vpop.eup %9995  ;;  %v6004_v41 = vadd.f32 1.0, %v9994_v18  ;;  %10013 = vpow2.f32 %v5956_v17  ;;  %v13270_v50 = vadd.f32 %v13213_v2, %v5752_v22  ;;  %v9098_v7 = vpop.f32.mrb[46].mxu0 }
 0x69d   : > { %v9998_v34 = vpop.eup %9997  ;;  %v6002_v24 = vadd.f32 1.0, %v9996_v30  ;;  %10015 = vpow2.f32 %v5952_v56  ;;  %v5916_v31 = vsub.f32 0.0, %v13264_v58  ;;  %v13274_v63 = vadd.f32 %v9098_v7, %v13213_v2  ;;  %v5755_v13 = vpop.f32.mrb[47].mxu0 }
 0x69e   : > { %v10000_v28 = vpop.eup %9999  ;;  %10017 = vrcp.f32 %v6004_v41  ;;  %v6005_v45 = vadd.f32 1.0, %v9998_v34  ;;  %v5914_v25 = vsub.f32 0.0, %v13270_v50  ;;  %v13279_v6 = vadd.f32 %v13213_v2, %v5755_v13 }
 0x69f   : > { %10019 = vrcp.f32 %v6002_v24  ;;  %v6003_v55 = vadd.f32 1.0, %v10000_v28  ;;  %v5962_v19 = vmul.f32 1.442695, %v5916_v31  ;;  %v5917_v37 = vsub.f32 0.0, %v13274_v63 }
 0x6a0   : > { %v10002_v1 = vpop.eup %10001  ;;  %10021 = vrcp.f32 %v6005_v45  ;;  %v5958_v10 = vmul.f32 1.442695, %v5914_v25  ;;  %v5915_v4 = vsub.f32 0.0, %v13279_v6 }
 0x6a1   : > { %v10004_v51 = vpop.eup %10003  ;;  %10023 = vrcp.f32 %v6003_v55  ;;  %v5964_v43 = vmul.f32 1.442695, %v5917_v37  ;;  %v6064_v52 = vmul.f32 %v10002_v1, %v13216_v49 }
 0x6a2   : > { %v10006_v21 = vpop.eup %10005  ;;  %10025 = vpow2.f32 %v5962_v19  ;;  %v5960_v54 = vmul.f32 1.442695, %v5915_v4  ;;  %v9101_v15 = vpop.f32.mrb[48].mxu0  ;;  %v6062_v3 = vmul.f32 %v10004_v51, %v13219_v57 }
 0x6a3   : > { %v10008_v36 = vpop.eup %10007  ;;  %v6065_v5 = vmul.f32 %v10006_v21, %v13223_v35  ;;  %10027 = vpow2.f32 %v5958_v10  ;;  %v13287_v14 = vadd.f32 %v9101_v15, %v13213_v2  ;;  %v5768_v23 = vpop.f32.mrb[49].mxu0 }
 0x6a4   : > { %v10010_v39 = vpop.eup %10009  ;;  %v6063_v20 = vmul.f32 %v10008_v36, %v13227_v27  ;;  %10029 = vpow2.f32 %v5964_v43  ;;  %v13292_v44 = vadd.f32 %v13213_v2, %v5768_v23  ;;  %v9102_v16 = vpop.f32.mrb[50].mxu0 }
 0x6a5   : > { %v10012_v26 = vpop.eup %10011  ;;  %v6008_v11 = vadd.f32 1.0, %v10010_v39  ;;  %10031 = vpow2.f32 %v5960_v54  ;;  %v5920_v49 = vsub.f32 0.0, %v13287_v14  ;;  %v13296_v35 = vadd.f32 %v9102_v16, %v13213_v2  ;;  %v5771_v48 = vpop.f32.mrb[51].mxu0 }
 0x6a6   : > { %v10014_v12 = vpop.eup %10013  ;;  %v6006_v9 = vadd.f32 1.0, %v10012_v26  ;;  %v5918_v57 = vsub.f32 0.0, %v13292_v44  ;;  %v13300_v27 = vadd.f32 %v13213_v2, %v5771_v48  ;;  %v13302_v40 = vpack.c.bf16 %v6065_v5, %v6064_v52 }
 0x6a7   : > { %v10016_v42 = vpop.eup %10015  ;;  %10033 = vrcp.f32 %v6008_v11  ;;  %v6009_v61 = vadd.f32 1.0, %v10014_v12  ;;  %v5970_v29 = vmul.f32 1.442695, %v5920_v49  ;;  %v5921_v17 = vsub.f32 0.0, %v13296_v35 }
 0x6a8   : > { %v10018_v56 = vpop.eup %10017  ;;  %10035 = vrcp.f32 %v6006_v9  ;;  %v6007_v0 = vadd.f32 1.0, %v10016_v42  ;;  %v5966_v18 = vmul.f32 1.442695, %v5918_v57  ;;  %v5919_v22 = vsub.f32 0.0, %v13300_v27  ;;  %6288 = vrot.lane.b32.xlu1 %v13302_v40, %s10377_s22 }
 0x6a9   : > { %v10020_v59 = vpop.eup %10019  ;;  %10037 = vrcp.f32 %v6009_v61  ;;  %v5972_v30 = vmul.f32 1.442695, %v5921_v17  ;;  %v13308_v41 = vpack.c.bf16 %v6063_v20, %v6062_v3  ;;  %v13311_v34 = vmul.f32 %v10018_v56, %v13232_v32 }
 0x6aa   : > { %v10022_v7 = vpop.eup %10021  ;;  %10039 = vrcp.f32 %v6007_v0  ;;  %v5968_v24 = vmul.f32 1.442695, %v5919_v22  ;;  %v9105_v31 = vpop.f32.mrb[52].mxu0  ;;  %v6118_v13 = vshrl.u32 %v13302_v40, 16  ;;  %v13315_v45 = vmul.f32 %v10020_v59, %v13235_v8 }
 0x6ab   : > { %v10024_v28 = vpop.eup %10023  ;;  %v6069_v25 = vmul.f32 %v10022_v7, %v13239_v46  ;;  %10041 = vpow2.f32 %v5970_v29  ;;  %6286 = vrot.lane.b32.xlu0 %v13308_v41, %s10377_s22  ;;  %v13321_v55 = vadd.f32 %v9105_v31, %v13213_v2  ;;  %v5784_v32 = vpop.f32.mrb[53].mxu0  ;;  %v6121_v10 = vshll.u32 %v13302_v40, 16 }
 0x6ac   : > { %v10026_v19 = vpop.eup %10025  ;;  %10043 = vpow2.f32 %v5966_v18  ;;  %v13324_v37 = vadd.f32 %v13213_v2, %v5784_v32  ;;  %v9106_v1 = vpop.f32.mrb[54].mxu0  ;;  %v6120_v8 = vrot.slane %v6118_v13, 7  ;;  %v6067_v9 = vmul.f32 %v10024_v28, %v13243_v53 }
 0x6ad   : > { %v10028_v4 = vpop.eup %10027  ;;  %v6012_v62 = vadd.f32 1.0, %v10026_v19  ;;  %10045 = vpow2.f32 %v5972_v30  ;;  %v5924_v46 = vsub.f32 0.0, %v13321_v55  ;;  %v13329_v51 = vadd.f32 %v9106_v1, %v13213_v2  ;;  %v5787_v43 = vpop.f32.mrb[55].mxu0 }
 0x6ae   : > { %v10030_v21 = vpop.eup %10029  ;;  %v6010_v54 = vadd.f32 1.0, %v10028_v4  ;;  %10047 = vpow2.f32 %v5968_v24  ;;  %v5922_v15 = vsub.f32 0.0, %v13324_v37  ;;  %v13333_v36 = vadd.f32 %v13213_v2, %v5787_v43  ;;  %v14630_v24 = vld [vmem:[#allocation12_spill] sm:$0xff] }
 0x6af   : > { %v10032_v52 = vpop.eup %10031  ;;  %10049 = vrcp.f32 %v6012_v62  ;;  %v6013_v5 = vadd.f32 1.0, %v10030_v21  ;;  %v5978_v23 = vmul.f32 1.442695, %v5924_v46  ;;  %v5925_v39 = vsub.f32 0.0, %v13329_v51 }
 0x6b0   : > { %10051 = vrcp.f32 %v6010_v54  ;;  %v6011_v3 = vadd.f32 1.0, %v10032_v52  ;;  %v5974_v20 = vmul.f32 1.442695, %v5922_v15  ;;  %v5923_v16 = vsub.f32 0.0, %v13333_v36 }
 0x6b1   : > { %v10034_v26 = vpop.eup %10033  ;;  %10053 = vrcp.f32 %v6013_v5  ;;  %v5980_v11 = vmul.f32 1.442695, %v5925_v39  ;;  %v6352_v49 = vrot.slane %v6121_v10, 1  ;;  %v6123_v48 = vor.u32 %v6121_v10, %v6120_v8 }
 0x6b2   : > { %v10036_v12 = vpop.eup %10035  ;;  %10055 = vrcp.f32 %v6011_v3  ;;  %v5976_v57 = vmul.f32 1.442695, %v5923_v16  ;;  %v6111_v40 = vshrl.u32 %v13308_v41, 16  ;;  %v9109_v42 = vpop.f32.mrb[56].mxu0  ;;  %v13340_v29 = vmul.f32 %v10034_v26, %v13248_v38 }
 0x6b3   : > { %v10038_v61 = vpop.eup %10037  ;;  %10057 = vpow2.f32 %v5978_v23  ;;  %v6353_v17 = vor.u32 %v6352_v49, %v6118_v13  ;;  %v6239_v0 = vsel %vm10823_vm7, 0, %v6123_v48  ;;  %v5800_v18 = vpop.f32.mrb[57].mxu0  ;;  %v13345_v59 = vmul.f32 %v10036_v12, %v13251_v47 }
 0x6b4   : > { %v10040_v22 = vpop.eup %10039  ;;  %v13348_v53 = vmul.f32 %v10038_v61, %v13255_v60  ;;  %10059 = vpow2.f32 %v5974_v20  ;;  %6255 = vst.msk [vmem:[#allocation2 + $0x10] sm:$0xff] %vm567_vm1, %v6239_v0  ;;  %v6114_v30 = vshll.u32 %v13308_v41, 16  ;;  %v9110_v38 = vpop.f32.mrb[58].mxu0  ;;  %v6113_v13 = vrot.slane %v6111_v40, 7 }
 0x6b5   : > { %v10042_v7 = vpop.eup %10041  ;;  %10061 = vpow2.f32 %v5980_v11  ;;  %v6399_v31 = vsel %vm10637_vm4, %v6353_v17, 0  ;;  %v13355_v28 = vpack.c.bf16 %v6069_v25, %v13311_v34  ;;  %v5803_v47 = vpop.f32.mrb[59].mxu0  ;;  %v13358_v60 = vmul.f32 %v10040_v22, %v13259_v33 }
 0x6b6   : > { %v10044_v32 = vpop.eup %10043  ;;  %v6016_v19 = vadd.f32 1.0, %v10042_v7  ;;  %10063 = vpow2.f32 %v5976_v57  ;;  %6432 = vrot.lane.b32.xlu1 %v6399_v31, %s10378_s23  ;;  %v6350_v41 = vrot.slane %v6114_v30, 1  ;;  %v13362_v8 = vadd.f32 %v9109_v42, %v13213_v2 }
 0x6b7   : > { %v10046_v1 = vpop.eup %10045  ;;  %v6014_v10 = vadd.f32 1.0, %v10044_v32  ;;  %v13365_v4 = vpack.c.bf16 %v6067_v9, %v13315_v45  ;;  %v13368_v34 = vadd.f32 %v13213_v2, %v5800_v18  ;;  %v13371_v46 = vadd.f32 %v9110_v38, %v13213_v2  ;;  %v13378_v45 = vld [vmem:[%s14222_s9] sm:$0xff]  }
 0x6b8   : > { %v10048_v25 = vpop.eup %10047  ;;  %10065 = vrcp.f32 %v6016_v19  ;;  %v6017_v33 = vadd.f32 1.0, %v10046_v1  ;;  %v6351_v62 = vor.u32 %v6350_v41, %v6111_v40  ;;  %v5928_v54 = vsub.f32 0.0, %v13362_v8  ;;  %9151 = vmatprep.subr.bf16.mxu1 %v13378_v45 }
 0x6b9   : > { %v10050_v43 = vpop.eup %10049  ;;  %10067 = vrcp.f32 %v6014_v10  ;;  %v6015_v21 = vadd.f32 1.0, %v10048_v25  ;;  %v5926_v15 = vsub.f32 0.0, %v13368_v34  ;;  %v13382_v23 = vor.u32 %v6114_v30, %v6113_v13 }
 0x6ba   : > { %v10052_v52 = vpop.eup %10051  ;;  %10069 = vrcp.f32 %v6017_v33  ;;  %v6398_v5 = vsel %vm10637_vm4, %v6351_v62, 0  ;;  %6292 = vrot.lane.b32.xlu1 %v13355_v28, %s10377_s22  ;;  %v5929_v39 = vsub.f32 0.0, %v13371_v46  ;;  %v9113_v3 = vpop.f32.mrb[60].mxu0  ;;  %v13388_v16 = vmul.f32 %v10050_v43, %v13264_v58 }
 0x6bb   : > { %v10054_v20 = vpop.eup %10053  ;;  %10071 = vrcp.f32 %v6015_v21  ;;  %6430 = vrot.lane.b32.xlu0 %v6398_v5, %s10378_s23  ;;  %v5986_v26 = vmul.f32 1.442695, %v5928_v54  ;;  %v5982_v11 = vmul.f32 1.442695, %v5926_v15  ;;  %v5816_v49 = vpop.f32.mrb[61].mxu0  ;;  %v13393_v12 = vmul.f32 %v10052_v52, %v13270_v50 }
 0x6bc   : > { %v10056_v48 = vpop.eup %10055  ;;  %v5988_v9 = vmul.f32 1.442695, %v5929_v39  ;;  %v13396_v57 = vadd.f32 %v13213_v2, %v5803_v47  ;;  %v6132_v40 = vshrl.u32 %v13355_v28, 16  ;;  %v9114_v58 = vpop.f32.mrb[62].mxu0  ;;  %v13400_v61 = vmul.f32 %v10054_v20, %v13274_v63 }
 0x6bd   : > { %v10058_v42 = vpop.eup %10057  ;;  %10073 = vpow2.f32 %v5986_v26  ;;  %v6135_v17 = vshll.u32 %v13355_v28, 16  ;;  %v6125_v0 = vshrl.u32 %v13365_v4, 16  ;;  %v5819_v18 = vpop.f32.mrb[63].mxu0  ;;  %v6128_v13 = vshll.u32 %v13365_v4, 16 }
 0x6be   : > { %v10060_v22 = vpop.eup %10059  ;;  %v6020_v50 = vadd.f32 1.0, %v10058_v42  ;;  %10075 = vpow2.f32 %v5982_v11  ;;  %v5927_v30 = vsub.f32 0.0, %v13396_v57  ;;  %v6134_v38 = vrot.slane %v6132_v40, 7 }
 0x6bf   : > { %v10062_v7 = vpop.eup %10061  ;;  %v6018_v31 = vadd.f32 1.0, %v10060_v22  ;;  %6290 = vrot.lane.b32.xlu0 %v13365_v4, %s10377_s22  ;;  %10077 = vpow2.f32 %v5988_v9  ;;  %v6356_v63 = vrot.slane %v6135_v17, 1  ;;  %v6354_v10 = vrot.slane %v6128_v13, 1 }
 0x6c0   : > { %v10064_v47 = vpop.eup %10063  ;;  %10079 = vrcp.f32 %v6020_v50  ;;  %v6021_v28 = vadd.f32 1.0, %v10062_v7  ;;  %v5984_v32 = vmul.f32 1.442695, %v5927_v30  ;;  %v6137_v19 = vor.u32 %v6135_v17, %v6134_v38 }
 0x6c1   : > { %10081 = vrcp.f32 %v6018_v31  ;;  %v6019_v41 = vadd.f32 1.0, %v10064_v47  ;;  %v6357_v1 = vor.u32 %v6356_v63, %v6132_v40  ;;  %v6127_v62 = vrot.slane %v6125_v0, 7 }
 0x6c2   : > { %v10066_v25 = vpop.eup %10065  ;;  %10083 = vrcp.f32 %v6021_v28  ;;  %v6241_v33 = vsel %vm10823_vm7, 0, %v6137_v19  ;;  %v6099_v43 = vpack.c.bf16 %v13348_v53, %v13340_v29  ;;  %v13413_v4 = vmul.f32 %v10056_v48, %v13279_v6 }
 0x6c3   : > { %v10068_v21 = vpop.eup %10067  ;;  %10085 = vrcp.f32 %v6019_v41  ;;  %v6401_v54 = vsel %vm10637_vm4, %v6357_v1, 0  ;;  %6257 = vst.msk [vmem:[#allocation2 + $0x20] sm:$0xff] %vm567_vm1, %v6241_v33  ;;  %v6355_v15 = vor.u32 %v6354_v10, %v6125_v0  ;;  %v13419_v5 = vmul.f32 %v10066_v25, %v13287_v14 }
 0x6c4   : > { %v10070_v52 = vpop.eup %10069  ;;  %10087 = vpow2.f32 %v5984_v32  ;;  %6436 = vrot.lane.b32.xlu1 %v6401_v54, %s10378_s23  ;;  %v6130_v39 = vor.u32 %v6128_v13, %v6127_v62  ;;  %v13423_v29 = vadd.f32 %v9113_v3, %v13213_v2  ;;  %v13426_v53 = vmul.f32 %v10068_v21, %v13292_v44 }
 0x6c5   : > { %v10072_v6 = vpop.eup %10071  ;;  %v6400_v20 = vsel %vm10637_vm4, %v6355_v15, 0  ;;  %v6098_v26 = vpack.c.bf16 %v13358_v60, %v13345_v59  ;;  %v13433_v14 = vadd.f32 %v13213_v2, %v5816_v49  ;;  %v6081_v11 = vmul.f32 %v10070_v52, %v13296_v35 }
 0x6c6   : > { %6434 = vrot.lane.b32.xlu0 %v6400_v20, %s10378_s23  ;;  %v6240_v3 = vsel %vm10823_vm7, 0, %v6130_v39  ;;  %v5932_v48 = vsub.f32 0.0, %v13423_v29  ;;  %v13441_v44 = vadd.f32 %v9114_v58, %v13213_v2  ;;  %v13446_v60 = vadd.f32 %v13213_v2, %v5819_v18 }
 0x6c7   : > { %v10074_v9 = vpop.eup %10073  ;;  %6256 = vst.msk [vmem:[#allocation2 + $0x18] sm:$0xff] %vm567_vm1, %v6240_v3  ;;  %v5930_v59 = vsub.f32 0.0, %v13433_v14  ;;  %v6146_v49 = vshrl.u32 %v6099_v43, 16  ;;  %v6149_v35 = vshll.u32 %v6099_v43, 16  ;;  %v6079_v42 = vmul.f32 %v10072_v6, %v13300_v27 }
 0x6c8   : > { %v10076_v40 = vpop.eup %10075  ;;  %v6024_v17 = vadd.f32 1.0, %v10074_v9  ;;  %6296 = vrot.lane.b32.xlu1 %v6099_v43, %s10377_s22  ;;  %v5994_v0 = vmul.f32 1.442695, %v5932_v48  ;;  %v5933_v58 = vsub.f32 0.0, %v13441_v44  ;;  %v5931_v30 = vsub.f32 0.0, %v13446_v60 }
 0x6c9   : > { %v10078_v22 = vpop.eup %10077  ;;  %v6022_v50 = vadd.f32 1.0, %v10076_v40  ;;  %v6360_v38 = vrot.slane %v6149_v35, 1  ;;  %v6139_v7 = vshrl.u32 %v6098_v26, 16  ;;  %v5990_v18 = vmul.f32 1.442695, %v5930_v59 }
 0x6ca   : > { %v10080_v31 = vpop.eup %10079  ;;  %10089 = vrcp.f32 %v6024_v17  ;;  %v6025_v2 = vadd.f32 1.0, %v10078_v22  ;;  %6294 = vrot.lane.b32.xlu0 %v6098_v26, %s10377_s22  ;;  %v6148_v63 = vrot.slane %v6146_v49, 7  ;;  %v5996_v47 = vmul.f32 1.442695, %v5933_v58 }
 0x6cb   : > { %v10082_v27 = vpop.eup %10081  ;;  %v13454_v13 = vmul.f32 %v10080_v31, %v13321_v55  ;;  %10091 = vrcp.f32 %v6022_v50  ;;  %v6361_v28 = vor.u32 %v6360_v38, %v6146_v49  ;;  %v5992_v19 = vmul.f32 1.442695, %v5931_v30 }
 0x6cc   : > { %v10084_v32 = vpop.eup %10083  ;;  %10093 = vrcp.f32 %v6025_v2  ;;  %v6151_v41 = vor.u32 %v6149_v35, %v6148_v63  ;;  %v6142_v1 = vshll.u32 %v6098_v26, 16  ;;  %v13457_v25 = vmul.f32 %v10082_v27, %v13324_v37 }
 0x6cd   : > { %v10086_v10 = vpop.eup %10085  ;;  %10095 = vpow2.f32 %v5994_v0  ;;  %v6403_v33 = vsel %vm10637_vm4, %v6361_v28, 0  ;;  %v6141_v62 = vrot.slane %v6139_v7, 7  ;;  %v13462_v55 = vmul.f32 %v10084_v32, %v13329_v51 }
 0x6ce   : > { %v10088_v43 = vpop.eup %10087  ;;  %10097 = vpow2.f32 %v5990_v18  ;;  %6440 = vrot.lane.b32.xlu1 %v6403_v33, %s10378_s23  ;;  %v6243_v21 = vsel %vm10823_vm7, 0, %v6151_v41  ;;  %v6358_v54 = vrot.slane %v6142_v1, 1  ;;  %v6101_v52 = vpack.c.bf16 %v13400_v61, %v13388_v16 }
 0x6cf   : > { %v6023_v15 = vadd.f32 1.0, %v10088_v43  ;;  %10099 = vpow2.f32 %v5996_v47  ;;  %6259 = vst.msk [vmem:[#allocation2 + $0x30] sm:$0xff] %vm567_vm1, %v6243_v21  ;;  %v6144_v37 = vor.u32 %v6142_v1, %v6141_v62  ;;  %v6100_v51 = vpack.c.bf16 %v13413_v4, %v13393_v12 }
 0x6d0   : > { %10101 = vpow2.f32 %v5992_v19  ;;  %v6359_v39 = vor.u32 %v6358_v54, %v6139_v7  ;;  %v13473_v6 = vpack.c.bf16 %v6081_v11, %v13419_v5  ;;  %v6160_v26 = vshrl.u32 %v6101_v52, 16 }
 0x6d1   : > { %10103 = vrcp.f32 %v6023_v15  ;;  %v6242_v20 = vsel %vm10823_vm7, 0, %v6144_v37  ;;  %v6163_v3 = vshll.u32 %v6101_v52, 16  ;;  %v6153_v16 = vshrl.u32 %v6100_v51, 16 }
 0x6d2   : > { %v6402_v48 = vsel %vm10637_vm4, %v6359_v39, 0  ;;  %6258 = vst.msk [vmem:[#allocation2 + $0x28] sm:$0xff] %vm567_vm1, %v6242_v20  ;;  %6300 = vrot.lane.b32.xlu1 %v6101_v52, %s10377_s22  ;;  %v6156_v61 = vshll.u32 %v6100_v51, 16  ;;  %v13482_v12 = vpack.c.bf16 %v6079_v42, %v13426_v53  ;;  %v6162_v5 = vrot.slane %v6160_v26, 7 }
 0x6d3   : > { %6438 = vrot.lane.b32.xlu0 %v6402_v48, %s10378_s23  ;;  %v6364_v4 = vrot.slane %v6163_v3, 1  ;;  %v6174_v11 = vshrl.u32 %v13473_v6, 16  ;;  %v6177_v9 = vshll.u32 %v13473_v6, 16  ;;  %v6083_v49 = vmul.f32 %v10086_v10, %v13333_v36 }
 0x6d4   : > { %v10090_v59 = vpop.eup %10089  ;;  %v6362_v35 = vrot.slane %v6156_v61, 1  ;;  %v6155_v40 = vrot.slane %v6153_v16, 7  ;;  %v6167_v17 = vshrl.u32 %v13482_v12, 16  ;;  %v6165_v22 = vor.u32 %v6163_v3, %v6162_v5 }
 0x6d5   : > { %v10092_v0 = vpop.eup %10091  ;;  %v6365_v58 = vor.u32 %v6364_v4, %v6160_v26  ;;  %v6368_v53 = vrot.slane %v6177_v9, 1  ;;  %v6170_v42 = vshll.u32 %v13482_v12, 16  ;;  %v6088_v30 = vmul.f32 %v10090_v59, %v13362_v8 }
 0x6d6   : > { %v10094_v50 = vpop.eup %10093  ;;  %v6363_v38 = vor.u32 %v6362_v35, %v6153_v16  ;;  %v6158_v7 = vor.u32 %v6156_v61, %v6155_v40  ;;  %v6176_v31 = vrot.slane %v6174_v11, 7  ;;  %v6086_v18 = vmul.f32 %v10092_v0, %v13368_v34 }
 0x6d7   : > { %v10096_v2 = vpop.eup %10095  ;;  %v6089_v36 = vmul.f32 %v10094_v50, %v13371_v46  ;;  %6298 = vrot.lane.b32.xlu0 %v6100_v51, %s10377_s22  ;;  %v6405_v63 = vsel %vm10637_vm4, %v6365_v58, 0  ;;  %v6245_v27 = vsel %vm10823_vm7, 0, %v6165_v22  ;;  %v6369_v41 = vor.u32 %v6368_v53, %v6174_v11 }
 0x6d8   : > { %v10098_v47 = vpop.eup %10097  ;;  %v6028_v28 = vadd.f32 1.0, %v10096_v2  ;;  %6444 = vrot.lane.b32.xlu1 %v6405_v63, %s10378_s23  ;;  %6261 = vst.msk [vmem:[#allocation2 + $0x40] sm:$0xff] %vm567_vm1, %v6245_v27  ;;  %v6404_v8 = vsel %vm10637_vm4, %v6363_v38, 0  ;;  %v6244_v34 = vsel %vm10823_vm7, 0, %v6158_v7  ;;  %v6179_v46 = vor.u32 %v6177_v9, %v6176_v31 }
 0x6d9   : > { %v10100_v32 = vpop.eup %10099  ;;  %v6026_v19 = vadd.f32 1.0, %v10098_v47  ;;  %6260 = vst.msk [vmem:[#allocation2 + $0x38] sm:$0xff] %vm567_vm1, %v6244_v34  ;;  %v6366_v1 = vrot.slane %v6170_v42, 1  ;;  %v6169_v10 = vrot.slane %v6167_v17, 7  ;;  %v6105_v21 = vpack.c.bf16 %v13462_v55, %v13454_v13 }
 0x6da   : > { %v10102_v33 = vpop.eup %10101  ;;  %10105 = vrcp.f32 %v6028_v28  ;;  %v6029_v62 = vadd.f32 1.0, %v10100_v32  ;;  %v6247_v43 = vsel %vm10823_vm7, 0, %v6179_v46  ;;  %v6104_v51 = vpack.c.bf16 %v6083_v49, %v13457_v25 }
 0x6db   : > { %v10104_v54 = vpop.eup %10103  ;;  %10107 = vrcp.f32 %v6026_v19  ;;  %v6027_v15 = vadd.f32 1.0, %v10102_v33  ;;  %6442 = vrot.lane.b32.xlu0 %v6404_v8, %s10378_s23  ;;  %6263 = vst.msk [vmem:[#allocation2 + $0x50] sm:$0xff] %vm567_vm1, %v6247_v43  ;;  %v6367_v37 = vor.u32 %v6366_v1, %v6167_v17  ;;  %v6172_v52 = vor.u32 %v6170_v42, %v6169_v10 }
 0x6dc   : > { %v6087_v39 = vmul.f32 %v10104_v54, %v13396_v57  ;;  %10109 = vrcp.f32 %v6029_v62  ;;  %6304 = vrot.lane.b32.xlu1 %v13473_v6, %s10377_s22  ;;  %v6188_v20 = vshrl.u32 %v6105_v21, 16  ;;  %v6407_v13 = vsel %vm10637_vm4, %v6369_v41, 0  ;;  %v8521_v54 = vld [vmem:[%s14224_s11 + $0x4] sm:$0xf] }
 0x6dd   : > { %10111 = vrcp.f32 %v6027_v15  ;;  %v6246_v55 = vsel %vm10823_vm7, 0, %v6172_v52  ;;  %v6191_v26 = vshll.u32 %v6105_v21, 16  ;;  %v6181_v48 = vshrl.u32 %v6104_v51, 16  ;;  %9559 = vmatprep.subr.msk.bf16.mxu0 %vm616_vm0, %v8521_v54 }
 0x6de   : > { %6262 = vst.msk [vmem:[#allocation2 + $0x48] sm:$0xff] %vm567_vm1, %v6246_v55  ;;  %v6190_v3 = vrot.slane %v6188_v20, 7  ;;  %v6184_v57 = vshll.u32 %v6104_v51, 16  ;;  %v6107_v16 = vpack.c.bf16 %v6089_v36, %v6088_v30  ;;  %v6406_v25 = vsel %vm10637_vm4, %v6367_v37, 0 }
 0x6df   : > { %6302 = vrot.lane.b32.xlu0 %v13482_v12, %s10377_s22  ;;  %v6372_v6 = vrot.slane %v6191_v26, 1  ;;  %v6106_v61 = vpack.c.bf16 %v6087_v39, %v6086_v18  ;;  %v6238_v4 = vsel %vm10823_vm7, 0, %v13382_v23  ;;  %v6183_v9 = vrot.slane %v6181_v48, 7 }
 0x6e0   : > { %6448 = vrot.lane.b32.xlu1 %v6407_v13, %s10378_s23  ;;  %v6193_v5 = vor.u32 %v6191_v26, %v6190_v3  ;;  %v6370_v11 = vrot.slane %v6184_v57, 1  ;;  %v6202_v59 = vshrl.u32 %v6107_v16, 16  ;;  %6254 = vst.msk [vmem:[#allocation2 + $0x8] sm:$0xff] %vm567_vm1, %v6238_v4  ;;  %v6205_v35 = vshll.u32 %v6107_v16, 16  ;;  %v14622_v3 = vld [vmem:[#allocation3_spill] sm:$0xff] }
 0x6e1   : > { %v6373_v49 = vor.u32 %v6372_v6, %v6188_v20  ;;  %v6195_v12 = vshrl.u32 %v6106_v61, 16  ;;  %v6186_v17 = vor.u32 %v6184_v57, %v6183_v9  ;;  %v6198_v23 = vshll.u32 %v6106_v61, 16  ;;  %v14624_v57 = vld [vmem:[#allocation5_spill] sm:$0xff]  ;;  %v14629_v4 = vld [vmem:[#allocation11_spill] sm:$0xff] }
 0x6e2   : > { %v6249_v40 = vsel %vm10823_vm7, 0, %v6193_v5  ;;  %v6204_v0 = vrot.slane %v6202_v59, 7  ;;  %v6371_v53 = vor.u32 %v6370_v11, %v6181_v48  ;;  %v6376_v7 = vrot.slane %v6205_v35, 1  ;;  %v14623_v48 = vld [vmem:[#allocation4_spill] sm:$0xff]  ;;  %v14627_v6 = vld [vmem:[#allocation9_spill] sm:$0xff]  ;;  %v14632_v11 = vld [vmem:[#allocation14_spill] sm:$0xff] }
 0x6e3   : > { %6446 = vrot.lane.b32.xlu0 %v6406_v25, %s10378_s23  ;;  %6265 = vst.msk [vmem:[#allocation2 + $0x60] sm:$0xff] %vm567_vm1, %v6249_v40  ;;  %v6197_v58 = vrot.slane %v6195_v12, 7  ;;  %v6248_v42 = vsel %vm10823_vm7, 0, %v6186_v17  ;;  %v6409_v38 = vsel %vm10637_vm4, %v6373_v49, 0  ;;  %v6374_v46 = vrot.slane %v6198_v23, 1  ;;  %v14626_v25 = vld [vmem:[#allocation8_spill] sm:$0xff] }
 0x6e4   : > { %v10106_v22 = vpop.eup %10105  ;;  %6308 = vrot.lane.b32.xlu1 %v6105_v21, %s10377_s22  ;;  %v6207_v50 = vor.u32 %v6205_v35, %v6204_v0  ;;  %6264 = vst.msk [vmem:[#allocation2 + $0x58] sm:$0xff] %vm567_vm1, %v6248_v42  ;;  %v6408_v34 = vsel %vm10637_vm4, %v6371_v53, 0  ;;  %v7579_v39 = vsel %vm616_vm0, %v8521_v54, 0  ;;  %v14631_v5 = vld [vmem:[#allocation13_spill] sm:$0xff]  ;;  %v14633_v9 = vld [vmem:[#allocation15_spill] sm:$0xff]  ;;  %v14635_v49 = vld [vmem:[#allocation18_spill] sm:$0xff] }
 0x6e5   : > { %v10108_v30 = vpop.eup %10107  ;;  %v6200_v31 = vor.u32 %v6198_v23, %v6197_v58  ;;  %v6092_v63 = vmul.f32 %v10106_v22, %v13423_v29  ;;  %v6377_v29 = vor.u32 %v6376_v7, %v6202_v59  ;;  %9224 = vmatpush3.bf16.msra.mxu0 %v7579_v39  ;;  %v14634_v59 = vld [vmem:[#allocation16_spill] sm:$0xff]  ;;  %v14636_v35 = vld [vmem:[#allocation19_spill] sm:$0xff]  ;;  %v9598_v42 = vld [vmem:[%s14222_s9 + $0x8] ss:$0 sps:$4 sm:$0xff]  }
 0x6e6   : > { %v10110_v2 = vpop.eup %10109  ;;  %v6251_v18 = vsel %vm10823_vm7, 0, %v6207_v50  ;;  %v6090_v28 = vmul.f32 %v10108_v30, %v13433_v14  ;;  %v6375_v14 = vor.u32 %v6374_v46, %v6195_v12  ;;  %v14637_v40 = vld [vmem:[#allocation20_spill] sm:$0xff]  ;;  %v6812_v7 = vsel %vm616_vm0, %v9598_v42, 0 }
 0x6e7   : > { %v10112_v36 = vpop.eup %10111  ;;  %v6093_v27 = vmul.f32 %v10110_v2, %v13441_v44  ;;  %6306 = vrot.lane.b32.xlu0 %v6104_v51, %s10377_s22  ;;  %6267 = vst.msk [vmem:[#allocation2 + $0x70] sm:$0xff] %vm567_vm1, %v6251_v18  ;;  %v6250_v47 = vsel %vm10823_vm7, 0, %v6200_v31  ;;  %v6411_v10 = vsel %vm10637_vm4, %v6377_v29, 0  ;;  %v13622_v31 = vld [vmem:[%s14222_s9 + $0x18] sm:$0xff]  }
 0x6e8   : > { %v6091_v8 = vmul.f32 %v10112_v36, %v13446_v60  ;;  %6452 = vrot.lane.b32.xlu1 %v6409_v38, %s10378_s23  ;;  %6266 = vst.msk [vmem:[#allocation2 + $0x68] sm:$0xff] %vm567_vm1, %v6250_v47  ;;  %v6410_v15 = vsel %vm10637_vm4, %v6375_v14, 0 }
 0x6e9   : > { %v6109_v44 = vpack.c.bf16 %v6093_v27, %v6092_v63 }
 0x6ea   : > { %v6108_v32 = vpack.c.bf16 %v6091_v8, %v6090_v28 }
 0x6eb   : > { %6450 = vrot.lane.b32.xlu0 %v6408_v34, %s10378_s23  ;;  %v6216_v19 = vshrl.u32 %v6109_v44, 16  ;;  %v6219_v41 = vshll.u32 %v6109_v44, 16 }
 0x6ec   : > { %6312 = vrot.lane.b32.xlu1 %v6107_v16, %s10377_s22  ;;  %v6209_v1 = vshrl.u32 %v6108_v32, 16  ;;  %v6212_v60 = vshll.u32 %v6108_v32, 16  ;;  %v14625_v16 = vld [vmem:[#allocation6_spill] sm:$0xff] }
 0x6ed   : > { %v6380_v33 = vrot.slane %v6219_v41, 1  ;;  %v6218_v62 = vrot.slane %v6216_v19, 7 }
 0x6ee   : > { %v6211_v43 = vrot.slane %v6209_v1, 7  ;;  %v6378_v37 = vrot.slane %v6212_v60, 1 }
 0x6ef   : > { %6310 = vrot.lane.b32.xlu0 %v6106_v61, %s10377_s22  ;;  %v6221_v21 = vor.u32 %v6219_v41, %v6218_v62  ;;  %v6381_v51 = vor.u32 %v6380_v33, %v6216_v19  ;;  %v14628_v61 = vld [vmem:[#allocation10_spill] sm:$0xff] }
 0x6f0   : > { %6456 = vrot.lane.b32.xlu1 %v6411_v10, %s10378_s23  ;;  %v6214_v52 = vor.u32 %v6212_v60, %v6211_v43  ;;  %v6379_v55 = vor.u32 %v6378_v37, %v6209_v1 }
 0x6f1   : > { %v6253_v20 = vsel %vm10823_vm7, 0, %v6221_v21  ;;  %v6413_v26 = vsel %vm10637_vm4, %v6381_v51, 0 }
 0x6f2   : > { %v6252_v13 = vsel %vm10823_vm7, 0, %v6214_v52  ;;  %6269 = vst.msk [vmem:[#allocation2 + $0x80] sm:$0xff] %vm567_vm1, %v6253_v20  ;;  %v6412_v56 = vsel %vm10637_vm4, %v6379_v55, 0 }
 0x6f3   : > { %6454 = vrot.lane.b32.xlu0 %v6410_v15, %s10378_s23  ;;  %6268 = vst.msk [vmem:[#allocation2 + $0x78] sm:$0xff] %vm567_vm1, %v6252_v13 }
 0x6f4   : > { %6316 = vrot.lane.b32.xlu1 %v6109_v44, %s10377_s22 }
 0x6f7   : > { %6314 = vrot.lane.b32.xlu0 %v6108_v32, %s10377_s22 }
 0x6f8   : > { %6460 = vrot.lane.b32.xlu1 %v6413_v26, %s10378_s23 }
 0x6fb   : > { %6458 = vrot.lane.b32.xlu0 %v6412_v56, %s10378_s23 }
 0x6fc   : > { %7500 = vrot.lane.b32.xlu1 %v14622_v3, %s10380_s15 }
 0x6ff   : > { %7498 = vrot.lane.b32.xlu0 %v14623_v48, %s10380_s15 }
 0x700   : > { %7504 = vrot.lane.b32.xlu1 %v14624_v57, %s10380_s15 }
 0x703   : > { %7502 = vrot.lane.b32.xlu0 %v14625_v16, %s10380_s15 }
 0x704   : > { %7508 = vrot.lane.b32.xlu1 %v14626_v25, %s10380_s15 }
 0x707   : > { %7506 = vrot.lane.b32.xlu0 %v14627_v6, %s10380_s15  ;;  %v6494_v6 = vld [vmem:[#allocation2] sm:$0xff] }
 0x708   : > { %7512 = vrot.lane.b32.xlu1 %v14628_v61, %s10380_s15 }
 0x70b   : > { %7510 = vrot.lane.b32.xlu0 %v14629_v4, %s10380_s15  ;;  %v7495_v4 = vld [vmem:[%s14224_s11] sm:$0xf] }
 0x70c   : > { %7516 = vrot.lane.b32.xlu1 %v14630_v24, %s10380_s15  ;;  %9560 = vmatprep.subr.msk.bf16.mxu0 %vm616_vm0, %v7495_v4  ;;  %v7791_v24 = vsel %vm616_vm0, %v7495_v4, 0 }
 0x70f   : > { %7514 = vrot.lane.b32.xlu0 %v14631_v5, %s10380_s15 }
 0x710   : > { %7520 = vrot.lane.b32.xlu1 %v14632_v11, %s10380_s15 }
 0x713   : > { %7518 = vrot.lane.b32.xlu0 %v14633_v9, %s10380_s15  ;;  %v9600_v9 = vld [vmem:[%s14222_s9 + $0x20] ss:$0 sps:$4 sm:$0xff]  }
 0x714   : > { %7524 = vrot.lane.b32.xlu1 %v14634_v59, %s10380_s15  ;;  %v7053_v59 = vsel %vm616_vm0, %v9600_v9, 0 }
 0x717   : > { %7522 = vrot.lane.b32.xlu0 %v14635_v49, %s10380_s15 }
 0x718   : > { %7528 = vrot.lane.b32.xlu1 %v14636_v35, %s10380_s15 }
 0x71a   : > { %v6289_v12 = vpop.permute.xlu1 %6288 }
 0x71b   : > { %7526 = vrot.lane.b32.xlu0 %v14637_v40, %s10380_s15  ;;  %6335 = vst.msk [vmem:[#allocation2 + $0x10] sm:$0xff] %vm1217_vm9, %v6289_v12  ;;  %s14046_s15 = scalar_lea.vmem %s14226_s13, %s8558_s30 }
 0x71d   : > { %v6287_v17 = vpop.permute.xlu0 %6286 }
 0x71e   : > { %6334 = vst.msk [vmem:[#allocation2 + $0x8] sm:$0xff] %vm1217_vm9, %v6287_v17 }
 0x728   : > { %v6433_v0 = vpop.permute.xlu1 %6432 }
 0x729   : > { %6479 = vst.msk [vmem:[#allocation2 + $0x10] sm:$0xff] %vm1365_vm10, %v6433_v0 }
 0x72c   : > { %v6293_v23 = vpop.permute.xlu1 %6292 }
 0x72d   : > { %v6431_v58 = vpop.permute.xlu0 %6430  ;;  %6337 = vst.msk [vmem:[#allocation2 + $0x20] sm:$0xff] %vm1217_vm9, %v6293_v23 }
 0x72e   : > { %6478 = vst.msk [vmem:[#allocation2 + $0x8] sm:$0xff] %vm1365_vm10, %v6431_v58 }
 0x730   : > { %v13610_v30 = vld [vmem:[#allocation2 + $0x10] sm:$0xff] }
 0x731   : > { %v6291_v22 = vpop.permute.xlu0 %6290 }
 0x732   : > { %6336 = vst.msk [vmem:[#allocation2 + $0x18] sm:$0xff] %vm1217_vm9, %v6291_v22 }
 0x735   : > { %v13603_v53 = vld [vmem:[#allocation2 + $0x8] sm:$0xff] }
 0x736   : > { %v6437_v50 = vpop.permute.xlu1 %6436  ;;  %9119 = vmatprep.mubr.msk.bf16.mxu1 %vm443_vm8, %v13603_v53 }
 0x737   : > { %6481 = vst.msk [vmem:[#allocation2 + $0x20] sm:$0xff] %vm1365_vm10, %v6437_v50  ;;  %9120 = vmatmul.mubr.msk.bf16.vlgmr.msra.gmra.mrb[64].mxu1 %vm443_vm8, %v13610_v30  ;;  %v6990_v50 = vld [vmem:[#allocation2 + $0x88] sm:$0xff] }
 0x738   : > { %v6435_v38 = vpop.permute.xlu0 %6434  ;;  %9152 = vmatpush3.bf16.msra.mxu1 %v13378_v45 }
 0x739   : > { %6480 = vst.msk [vmem:[#allocation2 + $0x18] sm:$0xff] %vm1365_vm10, %v6435_v38  ;;  %9557 = vmatprep.subr.msk.bf16.mxu1 %vm616_vm0, %v9598_v42 }
 0x73a   : > { %v6297_v2 = vpop.permute.xlu1 %6296 }
 0x73b   : > { %6339 = vst.msk [vmem:[#allocation2 + $0x30] sm:$0xff] %vm1217_vm9, %v6297_v2 }
 0x73c   : > { %v6295_v18 = vpop.permute.xlu0 %6294  ;;  %9154 = vmatpush3.bf16.msra.mxu1 %v6812_v7 }
 0x73d   : > { %6338 = vst.msk [vmem:[#allocation2 + $0x28] sm:$0xff] %vm1217_vm9, %v6295_v18  ;;  %9187 = vmatprep.subr.bf16.mxu1 %v13622_v31 }
 0x73e   : > { %v13632_v63 = vld [vmem:[#allocation2 + $0x20] sm:$0xff] }
 0x740   : > { %v6441_v45 = vpop.permute.xlu1 %6440  ;;  %v13627_v36 = vld [vmem:[#allocation2 + $0x18] sm:$0xff] }
 0x741   : > { %6483 = vst.msk [vmem:[#allocation2 + $0x30] sm:$0xff] %vm1365_vm10, %v6441_v45  ;;  %9123 = vmatprep.mubr.msk.bf16.mxu1 %vm443_vm8, %v13627_v36 }
 0x742   : > { %9124 = vmatmul.mubr.msk.bf16.gmra.mrb[68].mxu1 %vm443_vm8, %v13632_v63 }
 0x744   : > { %v6301_v27 = vpop.permute.xlu1 %6300 }
 0x745   : > { %v6439_v47 = vpop.permute.xlu0 %6438  ;;  %6341 = vst.msk [vmem:[#allocation2 + $0x40] sm:$0xff] %vm1217_vm9, %v6301_v27 }
 0x746   : > { %6482 = vst.msk [vmem:[#allocation2 + $0x28] sm:$0xff] %vm1365_vm10, %v6439_v47 }
 0x748   : > { %v13645_v29 = vld [vmem:[#allocation2 + $0x30] sm:$0xff] }
 0x749   : > { %v6299_v28 = vpop.permute.xlu0 %6298 }
 0x74a   : > { %6340 = vst.msk [vmem:[#allocation2 + $0x38] sm:$0xff] %vm1217_vm9, %v6299_v28  ;;  %v6445_v8 = vpop.permute.xlu1 %6444 }
 0x74b   : > { %6485 = vst.msk [vmem:[#allocation2 + $0x40] sm:$0xff] %vm1365_vm10, %v6445_v8 }
 0x74d   : > { %v6443_v34 = vpop.permute.xlu0 %6442  ;;  %v13640_v46 = vld [vmem:[#allocation2 + $0x28] sm:$0xff] }
 0x74e   : > { %6484 = vst.msk [vmem:[#allocation2 + $0x38] sm:$0xff] %vm1365_vm10, %v6443_v34  ;;  %9127 = vmatprep.mubr.msk.bf16.mxu1 %vm443_vm8, %v13640_v46  ;;  %v6305_v44 = vpop.permute.xlu1 %6304 }
 0x74f   : > { %9128 = vmatmul.mubr.msk.bf16.gmra.mrb[72].mxu1 %vm443_vm8, %v13645_v29  ;;  %6343 = vst.msk [vmem:[#allocation2 + $0x50] sm:$0xff] %vm1217_vm9, %v6305_v44 }
 0x751   : > { %v6303_v32 = vpop.permute.xlu0 %6302 }
 0x752   : > { %6342 = vst.msk [vmem:[#allocation2 + $0x48] sm:$0xff] %vm1217_vm9, %v6303_v32  ;;  %v6449_v19 = vpop.permute.xlu1 %6448  ;;  %v13657_v1 = vld [vmem:[#allocation2 + $0x40] sm:$0xff] }
 0x753   : > { %6487 = vst.msk [vmem:[#allocation2 + $0x50] sm:$0xff] %vm1365_vm10, %v6449_v19 }
 0x755   : > { %v6447_v41 = vpop.permute.xlu0 %6446  ;;  %v13652_v14 = vld [vmem:[#allocation2 + $0x38] sm:$0xff] }
 0x756   : > { %6486 = vst.msk [vmem:[#allocation2 + $0x48] sm:$0xff] %vm1365_vm10, %v6447_v41  ;;  %9131 = vmatprep.mubr.msk.bf16.mxu1 %vm443_vm8, %v13652_v14  ;;  %v6309_v60 = vpop.permute.xlu1 %6308 }
 0x757   : > { %9132 = vmatmul.mubr.msk.bf16.gmra.mrb[76].mxu1 %vm443_vm8, %v13657_v1  ;;  %6345 = vst.msk [vmem:[#allocation2 + $0x60] sm:$0xff] %vm1217_vm9, %v6309_v60 }
 0x759   : > { %v6307_v10 = vpop.permute.xlu0 %6306 }
 0x75a   : > { %6344 = vst.msk [vmem:[#allocation2 + $0x58] sm:$0xff] %vm1217_vm9, %v6307_v10  ;;  %v6453_v33 = vpop.permute.xlu1 %6452  ;;  %v13669_v21 = vld [vmem:[#allocation2 + $0x50] sm:$0xff] }
 0x75b   : > { %6489 = vst.msk [vmem:[#allocation2 + $0x60] sm:$0xff] %vm1365_vm10, %v6453_v33 }
 0x75d   : > { %v6451_v62 = vpop.permute.xlu0 %6450  ;;  %v13664_v43 = vld [vmem:[#allocation2 + $0x48] sm:$0xff] }
 0x75e   : > { %6488 = vst.msk [vmem:[#allocation2 + $0x58] sm:$0xff] %vm1365_vm10, %v6451_v62  ;;  %9135 = vmatprep.mubr.msk.bf16.mxu1 %vm443_vm8, %v13664_v43  ;;  %v6313_v54 = vpop.permute.xlu1 %6312 }
 0x75f   : > { %9136 = vmatmul.mubr.msk.bf16.gmra.mrb[80].mxu1 %vm443_vm8, %v13669_v21  ;;  %6347 = vst.msk [vmem:[#allocation2 + $0x70] sm:$0xff] %vm1217_vm9, %v6313_v54 }
 0x761   : > { %v6311_v15 = vpop.permute.xlu0 %6310 }
 0x762   : > { %6346 = vst.msk [vmem:[#allocation2 + $0x68] sm:$0xff] %vm1217_vm9, %v6311_v15  ;;  %v6457_v37 = vpop.permute.xlu1 %6456  ;;  %v13681_v51 = vld [vmem:[#allocation2 + $0x60] sm:$0xff] }
 0x763   : > { %6491 = vst.msk [vmem:[#allocation2 + $0x70] sm:$0xff] %vm1365_vm10, %v6457_v37 }
 0x765   : > { %v6455_v52 = vpop.permute.xlu0 %6454  ;;  %v13676_v39 = vld [vmem:[#allocation2 + $0x58] sm:$0xff] }
 0x766   : > { %6490 = vst.msk [vmem:[#allocation2 + $0x68] sm:$0xff] %vm1365_vm10, %v6455_v52  ;;  %9139 = vmatprep.mubr.msk.bf16.mxu1 %vm443_vm8, %v13676_v39  ;;  %v6317_v20 = vpop.permute.xlu1 %6316 }
 0x767   : > { %9140 = vmatmul.mubr.msk.bf16.gmra.mrb[84].mxu1 %vm443_vm8, %v13681_v51  ;;  %6349 = vst.msk [vmem:[#allocation2 + $0x80] sm:$0xff] %vm1217_vm9, %v6317_v20 }
 0x769   : > { %v6315_v13 = vpop.permute.xlu0 %6314 }
 0x76a   : > { %6348 = vst.msk [vmem:[#allocation2 + $0x78] sm:$0xff] %vm1217_vm9, %v6315_v13  ;;  %v6461_v55 = vpop.permute.xlu1 %6460  ;;  %v13693_v3 = vld [vmem:[#allocation2 + $0x70] sm:$0xff] }
 0x76b   : > { %6493 = vst.msk [vmem:[#allocation2 + $0x80] sm:$0xff] %vm1365_vm10, %v6461_v55 }
 0x76d   : > { %v6459_v26 = vpop.permute.xlu0 %6458  ;;  %v13688_v56 = vld [vmem:[#allocation2 + $0x68] sm:$0xff] }
 0x76e   : > { %6492 = vst.msk [vmem:[#allocation2 + $0x78] sm:$0xff] %vm1365_vm10, %v6459_v26  ;;  %9143 = vmatprep.mubr.msk.bf16.mxu1 %vm443_vm8, %v13688_v56  ;;  %v7501_v57 = vpop.permute.xlu1 %7500 }
 0x76f   : > { %9144 = vmatmul.mubr.msk.bf16.gmra.mrb[88].mxu1 %vm443_vm8, %v13693_v3 }
 0x771   : > { %v7499_v48 = vpop.permute.xlu0 %7498 }
 0x772   : > { %9225 = vmatprep.mubr.msk.bf16.mxu0 %vm567_vm1, %v7499_v48  ;;  %v13704_v61 = vld [vmem:[#allocation2 + $0x80] sm:$0xff]  ;;  %v7505_v5 = vpop.permute.xlu1 %7504 }
 0x773   : > { %9226 = vmatmul.mubr.msk.bf16.vlgmr.msra.gmra.mrb[64].mxu0 %vm567_vm1, %v7501_v57 }
 0x774   : > { %9258 = vmatpush3.bf16.msra.mxu0 %v7791_v24 }
 0x775   : > { %v7503_v16 = vpop.permute.xlu0 %7502  ;;  %v13699_v25 = vld [vmem:[#allocation2 + $0x78] sm:$0xff] }
 0x776   : > { %9147 = vmatprep.mubr.msk.bf16.mxu1 %vm443_vm8, %v13699_v25  ;;  %9229 = vmatprep.mubr.msk.bf16.mxu0 %vm567_vm1, %v7503_v16  ;;  %v7509_v49 = vpop.permute.xlu1 %7508 }
 0x777   : > { %9148 = vmatmul.mubr.msk.bf16.gmra.mrb[92].mxu1 %vm443_vm8, %v13704_v61 }
 0x778   : > { %9155 = vmatprep.mubr.msk.bf16.mxu1 %vm443_vm8, %v6494_v6 }
 0x779   : > { %v7507_v11 = vpop.permute.xlu0 %7506 }
 0x77a   : > { %v7513_v12 = vpop.permute.xlu1 %7512 }
 0x77b   : > { %9230 = vmatmul.mubr.msk.bf16.gmra.mrb[68].mxu0 %vm567_vm1, %v7505_v5 }
 0x77c   : > { %9233 = vmatprep.mubr.msk.bf16.mxu0 %vm567_vm1, %v7507_v11 }
 0x77d   : > { %v7511_v35 = vpop.permute.xlu0 %7510 }
 0x77e   : > { %v7517_v17 = vpop.permute.xlu1 %7516 }
 0x77f   : > { %9156 = vmatmul.mubr.msk.bf16.vlgmr.msra.gmra.mrb[64].mxu1 %vm443_vm8, %v13603_v53 }
 0x780   : > { %9188 = vmatpush3.bf16.msra.mxu1 %v13622_v31  ;;  %9159 = vmatprep.mubr.msk.bf16.mxu1 %vm443_vm8, %v13610_v30 }
 0x781   : > { %9558 = vmatprep.subr.msk.bf16.mxu1 %vm616_vm0, %v9600_v9  ;;  %v7515_v40 = vpop.permute.xlu0 %7514 }
 0x782   : > { %v7521_v23 = vpop.permute.xlu1 %7520 }
 0x783   : > { %9234 = vmatmul.mubr.msk.bf16.gmra.mrb[72].mxu0 %vm567_vm1, %v7509_v49 }
 0x784   : > { %9237 = vmatprep.mubr.msk.bf16.mxu0 %vm567_vm1, %v7511_v35  ;;  %9190 = vmatpush3.bf16.msra.mxu1 %v7053_v59 }
 0x785   : > { %v7519_v0 = vpop.permute.xlu0 %7518 }
 0x786   : > { %v7525_v22 = vpop.permute.xlu1 %7524 }
 0x787   : > { %9160 = vmatmul.mubr.msk.bf16.gmra.mrb[68].mxu1 %vm443_vm8, %v13627_v36 }
 0x788   : > { %9163 = vmatprep.mubr.msk.bf16.mxu1 %vm443_vm8, %v13632_v63 }
 0x789   : > { %v7523_v58 = vpop.permute.xlu0 %7522 }
 0x78a   : > { %v7529_v42 = vpop.permute.xlu1 %7528 }
 0x78b   : > { %9238 = vmatmul.mubr.msk.bf16.gmra.mrb[76].mxu0 %vm567_vm1, %v7513_v12 }
 0x78c   : > { %9241 = vmatprep.mubr.msk.bf16.mxu0 %vm567_vm1, %v7515_v40 }
 0x78d   : > { %v7527_v53 = vpop.permute.xlu0 %7526 }
 0x78f   : > { %9164 = vmatmul.mubr.msk.bf16.gmra.mrb[72].mxu1 %vm443_vm8, %v13640_v46 }
 0x790   : > { %9167 = vmatprep.mubr.msk.bf16.mxu1 %vm443_vm8, %v13645_v29 }
 0x793   : > { %9242 = vmatmul.mubr.msk.bf16.gmra.mrb[80].mxu0 %vm567_vm1, %v7517_v17 }
 0x794   : > { %9245 = vmatprep.mubr.msk.bf16.mxu0 %vm567_vm1, %v7519_v0 }
 0x797   : > { %9168 = vmatmul.mubr.msk.bf16.gmra.mrb[76].mxu1 %vm443_vm8, %v13652_v14 }
 0x798   : > { %9171 = vmatprep.mubr.msk.bf16.mxu1 %vm443_vm8, %v13657_v1 }
 0x79b   : > { %9246 = vmatmul.mubr.msk.bf16.gmra.mrb[84].mxu0 %vm567_vm1, %v7521_v23 }
 0x79c   : > { %9249 = vmatprep.mubr.msk.bf16.mxu0 %vm567_vm1, %v7523_v58 }
 0x79f   : > { %9172 = vmatmul.mubr.msk.bf16.gmra.mrb[80].mxu1 %vm443_vm8, %v13664_v43 }
 0x7a0   : > { %9175 = vmatprep.mubr.msk.bf16.mxu1 %vm443_vm8, %v13669_v21 }
 0x7a3   : > { %9250 = vmatmul.mubr.msk.bf16.gmra.mrb[88].mxu0 %vm567_vm1, %v7525_v22 }
 0x7a4   : > { %9253 = vmatprep.mubr.msk.bf16.mxu0 %vm567_vm1, %v7527_v53 }
 0x7a7   : > { %9176 = vmatmul.mubr.msk.bf16.gmra.mrb[84].mxu1 %vm443_vm8, %v13676_v39 }
 0x7a8   : > { %9179 = vmatprep.mubr.msk.bf16.mxu1 %vm443_vm8, %v13681_v51 }
 0x7ab   : > { %9254 = vmatmul.mubr.msk.bf16.gmra.mrb[92].mxu0 %vm567_vm1, %v7529_v42 }
 0x7af   : > { %9180 = vmatmul.mubr.msk.bf16.gmra.mrb[88].mxu1 %vm443_vm8, %v13688_v56 }
 0x7b0   : > { %9183 = vmatprep.mubr.msk.bf16.mxu1 %vm443_vm8, %v13693_v3 }
 0x7b7   : > { %9184 = vmatmul.mubr.msk.bf16.gmra.mrb[92].mxu1 %vm443_vm8, %v13699_v25 }
 0x7b8   : > { %9191 = vmatprep.mubr.msk.bf16.mxu1 %vm443_vm8, %v13610_v30  ;;  %v13797_v30 = vld [vmem:[%s14223_s10] ss:$0 sm:$0xff] }
 0x7bf   : > { %9192 = vmatmul.mubr.msk.bf16.vlgmr.msra.gmra.mrb[64].mxu1 %vm443_vm8, %v13627_v36 }
 0x7c0   : > { %9195 = vmatprep.mubr.msk.bf16.mxu1 %vm443_vm8, %v13632_v63 }
 0x7c7   : > { %9196 = vmatmul.mubr.msk.bf16.gmra.mrb[68].mxu1 %vm443_vm8, %v13640_v46 }
 0x7c8   : > { %9199 = vmatprep.mubr.msk.bf16.mxu1 %vm443_vm8, %v13645_v29 }
 0x7cf   : > { %9200 = vmatmul.mubr.msk.bf16.gmra.mrb[72].mxu1 %vm443_vm8, %v13652_v14 }
 0x7d0   : > { %9203 = vmatprep.mubr.msk.bf16.mxu1 %vm443_vm8, %v13657_v1 }
 0x7d7   : > { %9204 = vmatmul.mubr.msk.bf16.gmra.mrb[76].mxu1 %vm443_vm8, %v13664_v43 }
 0x7d8   : > { %9207 = vmatprep.mubr.msk.bf16.mxu1 %vm443_vm8, %v13669_v21 }
 0x7df   : > { %9208 = vmatmul.mubr.msk.bf16.gmra.mrb[80].mxu1 %vm443_vm8, %v13676_v39 }
 0x7e0   : > { %9211 = vmatprep.mubr.msk.bf16.mxu1 %vm443_vm8, %v13681_v51 }
 0x7e7   : > { %9212 = vmatmul.mubr.msk.bf16.gmra.mrb[84].mxu1 %vm443_vm8, %v13688_v56 }
 0x7e8   : > { %9215 = vmatprep.mubr.msk.bf16.mxu1 %vm443_vm8, %v13693_v3 }
 0x7ef   : > { %9216 = vmatmul.mubr.msk.bf16.gmra.mrb[88].mxu1 %vm443_vm8, %v13699_v25 }
 0x7f0   : > { %9219 = vmatprep.mubr.msk.bf16.mxu1 %vm443_vm8, %v13704_v61 }
 0x7f7   : > { %9220 = vmatmul.mubr.msk.bf16.gmra.mrb[92].mxu1 %vm443_vm8, %v6990_v50 }
 0x892   : > { %v9193_v38 = vpop.f32.mrb[64].mxu1 }
 0x893   : > { %v13800_v7 = vadd.f32 %v9193_v38, %v13797_v30  ;;  %v7089_v31 = vpop.f32.mrb[65].mxu1 }
 0x894   : > { %v13803_v2 = vadd.f32 %v13797_v30, %v7089_v31  ;;  %v9194_v18 = vpop.f32.mrb[66].mxu1 }
 0x895   : > { %v7289_v45 = vsub.f32 0.0, %v13800_v7  ;;  %v13807_v36 = vadd.f32 %v9194_v18, %v13797_v30  ;;  %v7092_v63 = vpop.f32.mrb[67].mxu1 }
 0x896   : > { %v7287_v27 = vsub.f32 0.0, %v13803_v2  ;;  %v13811_v47 = vadd.f32 %v13797_v30, %v7092_v63 }
 0x897   : > { %v7323_v28 = vmul.f32 1.442695, %v7289_v45  ;;  %v7290_v8 = vsub.f32 0.0, %v13807_v36 }
 0x898   : > { %v7319_v34 = vmul.f32 1.442695, %v7287_v27  ;;  %v7288_v46 = vsub.f32 0.0, %v13811_v47 }
 0x899   : > { %10113 = vpow2.f32 %v7323_v28  ;;  %v7325_v29 = vmul.f32 1.442695, %v7290_v8 }
 0x89a   : > { %10115 = vpow2.f32 %v7319_v34  ;;  %v7321_v44 = vmul.f32 1.442695, %v7288_v46  ;;  %v9197_v32 = vpop.f32.mrb[68].mxu1 }
 0x89b   : > { %10117 = vpow2.f32 %v7325_v29  ;;  %v13816_v19 = vadd.f32 %v9197_v32, %v13797_v30  ;;  %v7105_v41 = vpop.f32.mrb[69].mxu1 }
 0x89c   : > { %10119 = vpow2.f32 %v7321_v44  ;;  %v13819_v14 = vadd.f32 %v13797_v30, %v7105_v41  ;;  %v9198_v1 = vpop.f32.mrb[70].mxu1 }
 0x89d   : > { %v7293_v60 = vsub.f32 0.0, %v13816_v19  ;;  %v13823_v10 = vadd.f32 %v9198_v1, %v13797_v30  ;;  %v7108_v33 = vpop.f32.mrb[71].mxu1 }
 0x89e   : > { %v7291_v62 = vsub.f32 0.0, %v13819_v14  ;;  %v13827_v43 = vadd.f32 %v13797_v30, %v7108_v33 }
 0x89f   : > { %v7331_v21 = vmul.f32 1.442695, %v7293_v60  ;;  %v7294_v54 = vsub.f32 0.0, %v13823_v10 }
 0x8a0   : > { %v7327_v15 = vmul.f32 1.442695, %v7291_v62  ;;  %v7292_v37 = vsub.f32 0.0, %v13827_v43 }
 0x8a1   : > { %10121 = vpow2.f32 %v7331_v21  ;;  %v7333_v52 = vmul.f32 1.442695, %v7294_v54 }
 0x8a2   : > { %10123 = vpow2.f32 %v7327_v15  ;;  %v7329_v39 = vmul.f32 1.442695, %v7292_v37  ;;  %v9201_v51 = vpop.f32.mrb[72].mxu1 }
 0x8a3   : > { %v10114_v20 = vpop.eup %10113  ;;  %10125 = vpow2.f32 %v7333_v52  ;;  %v13832_v13 = vadd.f32 %v9201_v51, %v13797_v30  ;;  %v7121_v55 = vpop.f32.mrb[73].mxu1 }
 0x8a4   : > { %v10116_v26 = vpop.eup %10115  ;;  %v7385_v56 = vadd.f32 1.0, %v10114_v20  ;;  %10127 = vpow2.f32 %v7329_v39  ;;  %v13835_v3 = vadd.f32 %v13797_v30, %v7121_v55  ;;  %v9202_v48 = vpop.f32.mrb[74].mxu1 }
 0x8a5   : > { %v10118_v57 = vpop.eup %10117  ;;  %v7383_v16 = vadd.f32 1.0, %v10116_v26  ;;  %v7297_v25 = vsub.f32 0.0, %v13832_v13  ;;  %v13839_v6 = vadd.f32 %v9202_v48, %v13797_v30  ;;  %v7124_v61 = vpop.f32.mrb[75].mxu1 }
 0x8a6   : > { %v10120_v4 = vpop.eup %10119  ;;  %10129 = vrcp.f32 %v7385_v56  ;;  %v7386_v24 = vadd.f32 1.0, %v10118_v57  ;;  %v7295_v5 = vsub.f32 0.0, %v13835_v3  ;;  %v13843_v11 = vadd.f32 %v13797_v30, %v7124_v61 }
 0x8a7   : > { %10131 = vrcp.f32 %v7383_v16  ;;  %v7384_v9 = vadd.f32 1.0, %v10120_v4  ;;  %v7339_v59 = vmul.f32 1.442695, %v7297_v25  ;;  %v7298_v49 = vsub.f32 0.0, %v13839_v6 }
 0x8a8   : > { %10133 = vrcp.f32 %v7386_v24  ;;  %v7335_v35 = vmul.f32 1.442695, %v7295_v5  ;;  %v7296_v12 = vsub.f32 0.0, %v13843_v11 }
 0x8a9   : > { %10135 = vrcp.f32 %v7384_v9  ;;  %v7341_v40 = vmul.f32 1.442695, %v7298_v49 }
 0x8aa   : > { %10137 = vpow2.f32 %v7339_v59  ;;  %v7337_v17 = vmul.f32 1.442695, %v7296_v12  ;;  %v9205_v0 = vpop.f32.mrb[76].mxu1 }
 0x8ab   : > { %v10122_v23 = vpop.eup %10121  ;;  %10139 = vpow2.f32 %v7335_v35  ;;  %v13848_v58 = vadd.f32 %v9205_v0, %v13797_v30  ;;  %v7137_v22 = vpop.f32.mrb[77].mxu1 }
 0x8ac   : > { %v10124_v53 = vpop.eup %10123  ;;  %v7389_v42 = vadd.f32 1.0, %v10122_v23  ;;  %10141 = vpow2.f32 %v7341_v40  ;;  %v13851_v50 = vadd.f32 %v13797_v30, %v7137_v22  ;;  %v9206_v38 = vpop.f32.mrb[78].mxu1 }
 0x8ad   : > { %v10126_v31 = vpop.eup %10125  ;;  %v7387_v18 = vadd.f32 1.0, %v10124_v53  ;;  %10143 = vpow2.f32 %v7337_v17  ;;  %v7301_v45 = vsub.f32 0.0, %v13848_v58  ;;  %v13855_v63 = vadd.f32 %v9206_v38, %v13797_v30  ;;  %v7140_v27 = vpop.f32.mrb[79].mxu1 }
 0x8ae   : > { %v10128_v28 = vpop.eup %10127  ;;  %10145 = vrcp.f32 %v7389_v42  ;;  %v7390_v8 = vadd.f32 1.0, %v10126_v31  ;;  %v7299_v34 = vsub.f32 0.0, %v13851_v50  ;;  %v13859_v46 = vadd.f32 %v13797_v30, %v7140_v27 }
 0x8af   : > { %10147 = vrcp.f32 %v7387_v18  ;;  %v7388_v29 = vadd.f32 1.0, %v10128_v28  ;;  %v7347_v44 = vmul.f32 1.442695, %v7301_v45  ;;  %v7302_v32 = vsub.f32 0.0, %v13855_v63 }
 0x8b0   : > { %v10130_v41 = vpop.eup %10129  ;;  %10149 = vrcp.f32 %v7390_v8  ;;  %v7343_v1 = vmul.f32 1.442695, %v7299_v34  ;;  %v7300_v60 = vsub.f32 0.0, %v13859_v46 }
 0x8b1   : > { %v10132_v33 = vpop.eup %10131  ;;  %10151 = vrcp.f32 %v7388_v29  ;;  %v7349_v62 = vmul.f32 1.442695, %v7302_v32  ;;  %v7449_v52 = vmul.f32 %v10130_v41, %v13800_v7 }
 0x8b2   : > { %v10134_v21 = vpop.eup %10133  ;;  %10153 = vpow2.f32 %v7347_v44  ;;  %v7345_v54 = vmul.f32 1.442695, %v7300_v60  ;;  %v9209_v15 = vpop.f32.mrb[80].mxu1  ;;  %v7447_v26 = vmul.f32 %v10132_v33, %v13803_v2 }
 0x8b3   : > { %v10136_v37 = vpop.eup %10135  ;;  %v7450_v39 = vmul.f32 %v10134_v21, %v13807_v36  ;;  %10155 = vpow2.f32 %v7343_v1  ;;  %v13866_v51 = vadd.f32 %v9209_v15, %v13797_v30  ;;  %v7153_v20 = vpop.f32.mrb[81].mxu1 }
 0x8b4   : > { %v10138_v55 = vpop.eup %10137  ;;  %v7448_v56 = vmul.f32 %v10136_v37, %v13811_v47  ;;  %10157 = vpow2.f32 %v7349_v62  ;;  %v13871_v48 = vadd.f32 %v13797_v30, %v7153_v20  ;;  %v9210_v57 = vpop.f32.mrb[82].mxu1 }
 0x8b5   : > { %v10140_v16 = vpop.eup %10139  ;;  %v7480_v25 = vpack.c.bf16 %v7450_v39, %v7449_v52  ;;  %v7393_v7 = vadd.f32 1.0, %v10138_v55  ;;  %10159 = vpow2.f32 %v7345_v54  ;;  %v7305_v36 = vsub.f32 0.0, %v13866_v51  ;;  %v7156_v61 = vpop.f32.mrb[83].mxu1 }
 0x8b6   : > { %v10142_v4 = vpop.eup %10141  ;;  %v7479_v24 = vpack.c.bf16 %v7448_v56, %v7447_v26  ;;  %v7391_v5 = vadd.f32 1.0, %v10140_v16  ;;  %v7303_v9 = vsub.f32 0.0, %v13871_v48  ;;  %v13876_v2 = vadd.f32 %v9210_v57, %v13797_v30 }
 0x8b7   : > { %v10144_v47 = vpop.eup %10143  ;;  %10161 = vrcp.f32 %v7393_v7  ;;  %v7394_v59 = vadd.f32 1.0, %v10142_v4  ;;  %v7355_v49 = vmul.f32 1.442695, %v7305_v36  ;;  %v13879_v35 = vadd.f32 %v13797_v30, %v7156_v61 }
 0x8b8   : > { %v10146_v12 = vpop.eup %10145  ;;  %10163 = vrcp.f32 %v7391_v5  ;;  %v7392_v40 = vadd.f32 1.0, %v10144_v47  ;;  %v7351_v17 = vmul.f32 1.442695, %v7303_v9  ;;  %v7306_v0 = vsub.f32 0.0, %v13876_v2  ;;  %9259 = vmatprep.mubr.msk.bf16.mxu0 %vm567_vm1, %v7479_v24 }
 0x8b9   : > { %v10148_v23 = vpop.eup %10147  ;;  %10165 = vrcp.f32 %v7394_v59  ;;  %v7304_v22 = vsub.f32 0.0, %v13879_v35  ;;  %9260 = vmatmul.mubr.msk.bf16.vlgmr.msra.gmra.mrb[64].mxu0 %vm567_vm1, %v7480_v25  ;;  %v7453_v42 = vmul.f32 %v10146_v12, %v13816_v19 }
 0x8ba   : > { %v10150_v53 = vpop.eup %10149  ;;  %10167 = vrcp.f32 %v7392_v40  ;;  %v7357_v38 = vmul.f32 1.442695, %v7306_v0  ;;  %v9213_v31 = vpop.f32.mrb[84].mxu1  ;;  %v7451_v29 = vmul.f32 %v10148_v23, %v13819_v14 }
 0x8bb   : > { %v10152_v18 = vpop.eup %10151  ;;  %v7454_v45 = vmul.f32 %v10150_v53, %v13823_v10  ;;  %10169 = vpow2.f32 %v7355_v49  ;;  %v7353_v27 = vmul.f32 1.442695, %v7304_v22  ;;  %v13888_v28 = vadd.f32 %v9213_v31, %v13797_v30  ;;  %v7169_v8 = vpop.f32.mrb[85].mxu1 }
 0x8bc   : > { %v10154_v34 = vpop.eup %10153  ;;  %v7452_v44 = vmul.f32 %v10152_v18, %v13827_v43  ;;  %10171 = vpow2.f32 %v7351_v17  ;;  %v13893_v19 = vadd.f32 %v13797_v30, %v7169_v8  ;;  %v9214_v32 = vpop.f32.mrb[86].mxu1 }
 0x8bd   : > { %v10156_v41 = vpop.eup %10155  ;;  %v7482_v1 = vpack.c.bf16 %v7454_v45, %v7453_v42  ;;  %v7397_v60 = vadd.f32 1.0, %v10154_v34  ;;  %10173 = vpow2.f32 %v7357_v38  ;;  %v7309_v10 = vsub.f32 0.0, %v13888_v28  ;;  %v7172_v33 = vpop.f32.mrb[87].mxu1 }
 0x8be   : > { %v10158_v62 = vpop.eup %10157  ;;  %v7481_v21 = vpack.c.bf16 %v7452_v44, %v7451_v29  ;;  %v7395_v54 = vadd.f32 1.0, %v10156_v41  ;;  %10175 = vpow2.f32 %v7353_v27  ;;  %v7307_v14 = vsub.f32 0.0, %v13893_v19 }
 0x8bf   : > { %v10160_v15 = vpop.eup %10159  ;;  %10177 = vrcp.f32 %v7397_v60  ;;  %v7398_v43 = vadd.f32 1.0, %v10158_v62  ;;  %v7363_v37 = vmul.f32 1.442695, %v7309_v10  ;;  %v13898_v52 = vadd.f32 %v9214_v32, %v13797_v30 }
 0x8c0   : > { %10179 = vrcp.f32 %v7395_v54  ;;  %v7396_v39 = vadd.f32 1.0, %v10160_v15  ;;  %v7359_v20 = vmul.f32 1.442695, %v7307_v14  ;;  %v13901_v55 = vadd.f32 %v13797_v30, %v7172_v33  ;;  %9263 = vmatprep.mubr.msk.bf16.mxu0 %vm567_vm1, %v7481_v21 }
 0x8c1   : > { %v10162_v26 = vpop.eup %10161  ;;  %10181 = vrcp.f32 %v7398_v43  ;;  %v7310_v56 = vsub.f32 0.0, %v13898_v52  ;;  %9264 = vmatmul.mubr.msk.bf16.gmra.mrb[68].mxu0 %vm567_vm1, %v7482_v1 }
 0x8c2   : > { %v10164_v57 = vpop.eup %10163  ;;  %v7457_v16 = vmul.f32 %v10162_v26, %v13832_v13  ;;  %10183 = vrcp.f32 %v7396_v39  ;;  %v7308_v25 = vsub.f32 0.0, %v13901_v55  ;;  %v9217_v7 = vpop.f32.mrb[88].mxu1 }
 0x8c3   : > { %v10166_v36 = vpop.eup %10165  ;;  %v7455_v61 = vmul.f32 %v10164_v57, %v13835_v3  ;;  %10185 = vpow2.f32 %v7363_v37  ;;  %v7365_v4 = vmul.f32 1.442695, %v7310_v56  ;;  %v13910_v24 = vadd.f32 %v9217_v7, %v13797_v30  ;;  %v7185_v5 = vpop.f32.mrb[89].mxu1 }
 0x8c4   : > { %v10168_v9 = vpop.eup %10167  ;;  %v7458_v47 = vmul.f32 %v10166_v36, %v13839_v6  ;;  %10187 = vpow2.f32 %v7359_v20  ;;  %v7361_v59 = vmul.f32 1.442695, %v7308_v25  ;;  %v13914_v13 = vadd.f32 %v13797_v30, %v7185_v5  ;;  %v9218_v49 = vpop.f32.mrb[90].mxu1 }
 0x8c5   : > { %v10170_v12 = vpop.eup %10169  ;;  %v7456_v40 = vmul.f32 %v10168_v9, %v13843_v11  ;;  %10189 = vpow2.f32 %v7365_v4  ;;  %v7313_v3 = vsub.f32 0.0, %v13910_v24  ;;  %v13919_v17 = vadd.f32 %v9218_v49, %v13797_v30  ;;  %v7188_v0 = vpop.f32.mrb[91].mxu1 }
 0x8c6   : > { %v10172_v23 = vpop.eup %10171  ;;  %v7484_v22 = vpack.c.bf16 %v7458_v47, %v7457_v16  ;;  %v7401_v53 = vadd.f32 1.0, %v10170_v12  ;;  %10191 = vpow2.f32 %v7361_v59  ;;  %v7311_v6 = vsub.f32 0.0, %v13914_v13 }
 0x8c7   : > { %v10174_v42 = vpop.eup %10173  ;;  %v7483_v38 = vpack.c.bf16 %v7456_v40, %v7455_v61  ;;  %v7399_v31 = vadd.f32 1.0, %v10172_v23  ;;  %v7314_v18 = vsub.f32 0.0, %v13919_v17  ;;  %v7371_v27 = vmul.f32 1.442695, %v7313_v3 }
 0x8c8   : > { %v10176_v45 = vpop.eup %10175  ;;  %10193 = vrcp.f32 %v7401_v53  ;;  %v7402_v11 = vadd.f32 1.0, %v10174_v42  ;;  %v13924_v8 = vadd.f32 %v13797_v30, %v7188_v0  ;;  %v7367_v44 = vmul.f32 1.442695, %v7311_v6 }
 0x8c9   : > { %v10178_v34 = vpop.eup %10177  ;;  %10195 = vrcp.f32 %v7399_v31  ;;  %v7400_v29 = vadd.f32 1.0, %v10176_v45  ;;  %9267 = vmatprep.mubr.msk.bf16.mxu0 %vm567_vm1, %v7483_v38  ;;  %v7373_v41 = vmul.f32 1.442695, %v7314_v18 }
 0x8ca   : > { %v10180_v32 = vpop.eup %10179  ;;  %10197 = vrcp.f32 %v7402_v11  ;;  %v7312_v1 = vsub.f32 0.0, %v13924_v8  ;;  %9268 = vmatmul.mubr.msk.bf16.gmra.mrb[72].mxu0 %vm567_vm1, %v7484_v22  ;;  %v9221_v60 = vpop.f32.mrb[92].mxu1  ;;  %v7461_v33 = vmul.f32 %v10178_v34, %v13848_v58 }
 0x8cb   : > { %v10182_v10 = vpop.eup %10181  ;;  %v7459_v62 = vmul.f32 %v10180_v32, %v13851_v50  ;;  %10199 = vrcp.f32 %v7400_v29  ;;  %v13932_v21 = vadd.f32 %v9221_v60, %v13797_v30  ;;  %v7201_v54 = vpop.f32.mrb[93].mxu1 }
 0x8cc   : > { %v10184_v14 = vpop.eup %10183  ;;  %v7462_v15 = vmul.f32 %v10182_v10, %v13855_v63  ;;  %10201 = vpow2.f32 %v7371_v27  ;;  %v7369_v43 = vmul.f32 1.442695, %v7312_v1  ;;  %v13936_v37 = vadd.f32 %v13797_v30, %v7201_v54  ;;  %v9222_v39 = vpop.f32.mrb[94].mxu1 }
 0x8cd   : > { %v10186_v20 = vpop.eup %10185  ;;  %v7460_v26 = vmul.f32 %v10184_v14, %v13859_v46  ;;  %10203 = vpow2.f32 %v7367_v44  ;;  %v7317_v58 = vsub.f32 0.0, %v13932_v21  ;;  %v13941_v50 = vadd.f32 %v9222_v39, %v13797_v30  ;;  %v7204_v56 = vpop.f32.mrb[95].mxu1 }
 0x8ce   : > { %v10188_v57 = vpop.eup %10187  ;;  %v7486_v16 = vpack.c.bf16 %v7462_v15, %v7461_v33  ;;  %v7405_v25 = vadd.f32 1.0, %v10186_v20  ;;  %10205 = vpow2.f32 %v7373_v41  ;;  %v7315_v63 = vsub.f32 0.0, %v13936_v37 }
 0x8cf   : > { %v10190_v7 = vpop.eup %10189  ;;  %v7485_v36 = vpack.c.bf16 %v7460_v26, %v7459_v62  ;;  %v7403_v61 = vadd.f32 1.0, %v10188_v57  ;;  %10207 = vpow2.f32 %v7369_v43  ;;  %v7379_v5 = vmul.f32 1.442695, %v7317_v58 }
 0x8d0   : > { %v10192_v4 = vpop.eup %10191  ;;  %10209 = vrcp.f32 %v7405_v25  ;;  %v7406_v46 = vadd.f32 1.0, %v10190_v7  ;;  %v7318_v9 = vsub.f32 0.0, %v13941_v50  ;;  %v7375_v59 = vmul.f32 1.442695, %v7315_v63 }
 0x8d1   : > { %10211 = vrcp.f32 %v7403_v61  ;;  %v7404_v47 = vadd.f32 1.0, %v10192_v4  ;;  %v13946_v49 = vadd.f32 %v13797_v30, %v7204_v56  ;;  %9271 = vmatprep.mubr.msk.bf16.mxu0 %vm567_vm1, %v7485_v36 }
 0x8d2   : > { %v10194_v12 = vpop.eup %10193  ;;  %10213 = vrcp.f32 %v7406_v46  ;;  %v7381_v40 = vmul.f32 1.442695, %v7318_v9  ;;  %9272 = vmatmul.mubr.msk.bf16.gmra.mrb[76].mxu0 %vm567_vm1, %v7486_v16 }
 0x8d3   : > { %v10196_v3 = vpop.eup %10195  ;;  %10215 = vrcp.f32 %v7404_v47  ;;  %v7316_v0 = vsub.f32 0.0, %v13946_v49  ;;  %v7465_v53 = vmul.f32 %v10194_v12, %v13866_v51 }
 0x8d4   : > { %v10198_v23 = vpop.eup %10197  ;;  %10217 = vpow2.f32 %v7379_v5  ;;  %v7463_v38 = vmul.f32 %v10196_v3, %v13871_v48 }
 0x8d5   : > { %v10200_v22 = vpop.eup %10199  ;;  %v7466_v6 = vmul.f32 %v10198_v23, %v13876_v2  ;;  %10219 = vpow2.f32 %v7375_v59  ;;  %v7377_v30 = vmul.f32 1.442695, %v7316_v0  ;;  %v13978_v59 = vld [vmem:[%s14225_s12] ss:$0 sm:$0xff] }
 0x8d6   : > { %v10202_v42 = vpop.eup %10201  ;;  %v7464_v31 = vmul.f32 %v10200_v22, %v13879_v35  ;;  %10221 = vpow2.f32 %v7381_v40 }
 0x8d7   : > { %v10204_v18 = vpop.eup %10203  ;;  %v7488_v45 = vpack.c.bf16 %v7466_v6, %v7465_v53  ;;  %v7409_v11 = vadd.f32 1.0, %v10202_v42  ;;  %10223 = vpow2.f32 %v7377_v30 }
 0x8d8   : > { %v10206_v27 = vpop.eup %10205  ;;  %v7487_v34 = vpack.c.bf16 %v7464_v31, %v7463_v38  ;;  %v7407_v29 = vadd.f32 1.0, %v10204_v18 }
 0x8d9   : > { %v10208_v44 = vpop.eup %10207  ;;  %10225 = vrcp.f32 %v7409_v11  ;;  %v7410_v51 = vadd.f32 1.0, %v10206_v27 }
 0x8da   : > { %v10210_v32 = vpop.eup %10209  ;;  %10227 = vrcp.f32 %v7407_v29  ;;  %v7408_v2 = vadd.f32 1.0, %v10208_v44  ;;  %9275 = vmatprep.mubr.msk.bf16.mxu0 %vm567_vm1, %v7487_v34 }
 0x8db   : > { %v10212_v41 = vpop.eup %10211  ;;  %10229 = vrcp.f32 %v7410_v51  ;;  %9276 = vmatmul.mubr.msk.bf16.gmra.mrb[80].mxu0 %vm567_vm1, %v7488_v45  ;;  %v7469_v1 = vmul.f32 %v10210_v32, %v13888_v28 }
 0x8dc   : > { %v10214_v48 = vpop.eup %10213  ;;  %10231 = vrcp.f32 %v7408_v2  ;;  %v7467_v33 = vmul.f32 %v10212_v41, %v13893_v19 }
 0x8dd   : > { %v10216_v35 = vpop.eup %10215  ;;  %v7470_v60 = vmul.f32 %v10214_v48, %v13898_v52 }
 0x8de   : > { %v10218_v10 = vpop.eup %10217  ;;  %v7468_v62 = vmul.f32 %v10216_v35, %v13901_v55 }
 0x8df   : > { %v10220_v54 = vpop.eup %10219  ;;  %v7490_v14 = vpack.c.bf16 %v7470_v60, %v7469_v1  ;;  %v7413_v15 = vadd.f32 1.0, %v10218_v10 }
 0x8e0   : > { %v10222_v43 = vpop.eup %10221  ;;  %v7489_v39 = vpack.c.bf16 %v7468_v62, %v7467_v33  ;;  %v7411_v20 = vadd.f32 1.0, %v10220_v54 }
 0x8e1   : > { %v10224_v26 = vpop.eup %10223  ;;  %10233 = vrcp.f32 %v7413_v15  ;;  %v7414_v58 = vadd.f32 1.0, %v10222_v43 }
 0x8e2   : > { %10235 = vrcp.f32 %v7411_v20  ;;  %v7412_v56 = vadd.f32 1.0, %v10224_v26  ;;  %9279 = vmatprep.mubr.msk.bf16.mxu0 %vm567_vm1, %v7489_v39 }
 0x8e3   : > { %v10226_v28 = vpop.eup %10225  ;;  %10237 = vrcp.f32 %v7414_v58  ;;  %9280 = vmatmul.mubr.msk.bf16.gmra.mrb[84].mxu0 %vm567_vm1, %v7490_v14 }
 0x8e4   : > { %v10228_v19 = vpop.eup %10227  ;;  %10239 = vrcp.f32 %v7412_v56  ;;  %v7473_v57 = vmul.f32 %v10226_v28, %v13910_v24 }
 0x8e5   : > { %v10230_v52 = vpop.eup %10229  ;;  %v7471_v25 = vmul.f32 %v10228_v19, %v13914_v13 }
 0x8e6   : > { %v10232_v55 = vpop.eup %10231  ;;  %v7474_v16 = vmul.f32 %v10230_v52, %v13919_v17 }
 0x8e7   : > { %v7472_v63 = vmul.f32 %v10232_v55, %v13924_v8 }
 0x8e8   : > { %v7492_v7 = vpack.c.bf16 %v7474_v16, %v7473_v57 }
 0x8e9   : > { %v7491_v36 = vpack.c.bf16 %v7472_v63, %v7471_v25 }
 0x8eb   : > { %v10234_v61 = vpop.eup %10233  ;;  %9283 = vmatprep.mubr.msk.bf16.mxu0 %vm567_vm1, %v7491_v36 }
 0x8ec   : > { %v10236_v4 = vpop.eup %10235  ;;  %9284 = vmatmul.mubr.msk.bf16.gmra.mrb[88].mxu0 %vm567_vm1, %v7492_v7  ;;  %v7477_v9 = vmul.f32 %v10234_v61, %v13932_v21 }
 0x8ed   : > { %v10238_v46 = vpop.eup %10237  ;;  %v7475_v17 = vmul.f32 %v10236_v4, %v13936_v37 }
 0x8ee   : > { %v10240_v5 = vpop.eup %10239  ;;  %v7478_v24 = vmul.f32 %v10238_v46, %v13941_v50 }
 0x8ef   : > { %v7476_v13 = vmul.f32 %v10240_v5, %v13946_v49 }
 0x8f0   : > { %v7494_v47 = vpack.c.bf16 %v7478_v24, %v7477_v9 }
 0x8f1   : > { %v7493_v8 = vpack.c.bf16 %v7476_v13, %v7475_v17 }
 0x8f3   : > { %9287 = vmatprep.mubr.msk.bf16.mxu0 %vm567_vm1, %v7493_v8 }
 0x8f4   : > { %9288 = vmatmul.mubr.msk.bf16.gmra.mrb[92].mxu0 %vm567_vm1, %v7494_v47 }
 0x98c   : > { %v9261_v12 = vpop.f32.mrb[64].mxu0 }
 0x98d   : > { %v13981_v21 = vadd.f32 %v9261_v12, %v13978_v59  ;;  %v7827_v50 = vpop.f32.mrb[65].mxu0 }
 0x98e   : > { %v13984_v37 = vadd.f32 %v13978_v59, %v7827_v50  ;;  %v9262_v49 = vpop.f32.mrb[66].mxu0 }
 0x98f   : > { %v7995_v40 = vsub.f32 0.0, %v13981_v21  ;;  %v13988_v3 = vadd.f32 %v9262_v49, %v13978_v59  ;;  %v7830_v0 = vpop.f32.mrb[67].mxu0 }
 0x990   : > { %v7993_v23 = vsub.f32 0.0, %v13984_v37  ;;  %v13992_v22 = vadd.f32 %v13978_v59, %v7830_v0 }
 0x991   : > { %v8029_v53 = vmul.f32 1.442695, %v7995_v40  ;;  %v7996_v6 = vsub.f32 0.0, %v13988_v3 }
 0x992   : > { %v8025_v30 = vmul.f32 1.442695, %v7993_v23  ;;  %v7994_v42 = vsub.f32 0.0, %v13992_v22 }
 0x993   : > { %10241 = vpow2.f32 %v8029_v53  ;;  %v8031_v38 = vmul.f32 1.442695, %v7996_v6 }
 0x994   : > { %10243 = vpow2.f32 %v8025_v30  ;;  %v8027_v31 = vmul.f32 1.442695, %v7994_v42  ;;  %v9265_v18 = vpop.f32.mrb[68].mxu0 }
 0x995   : > { %10245 = vpow2.f32 %v8031_v38  ;;  %v13997_v45 = vadd.f32 %v9265_v18, %v13978_v59  ;;  %v7843_v11 = vpop.f32.mrb[69].mxu0 }
 0x996   : > { %10247 = vpow2.f32 %v8027_v31  ;;  %v14000_v27 = vadd.f32 %v13978_v59, %v7843_v11  ;;  %v9266_v34 = vpop.f32.mrb[70].mxu0 }
 0x997   : > { %v7999_v29 = vsub.f32 0.0, %v13997_v45  ;;  %v14004_v44 = vadd.f32 %v9266_v34, %v13978_v59  ;;  %v7846_v51 = vpop.f32.mrb[71].mxu0 }
 0x998   : > { %v7997_v32 = vsub.f32 0.0, %v14000_v27  ;;  %v14008_v2 = vadd.f32 %v13978_v59, %v7846_v51 }
 0x999   : > { %v8037_v41 = vmul.f32 1.442695, %v7999_v29  ;;  %v8000_v48 = vsub.f32 0.0, %v14004_v44 }
 0x99a   : > { %v8033_v35 = vmul.f32 1.442695, %v7997_v32  ;;  %v7998_v1 = vsub.f32 0.0, %v14008_v2 }
 0x99b   : > { %10249 = vpow2.f32 %v8037_v41  ;;  %v8039_v60 = vmul.f32 1.442695, %v8000_v48 }
 0x99c   : > { %10251 = vpow2.f32 %v8033_v35  ;;  %v8035_v10 = vmul.f32 1.442695, %v7998_v1 }
 0x99d   : > { %v10242_v33 = vpop.eup %10241  ;;  %10253 = vpow2.f32 %v8039_v60  ;;  %v9269_v62 = vpop.f32.mrb[72].mxu0 }
 0x99e   : > { %v10244_v54 = vpop.eup %10243  ;;  %v8091_v14 = vadd.f32 1.0, %v10242_v33  ;;  %10255 = vpow2.f32 %v8035_v10  ;;  %v14013_v15 = vadd.f32 %v9269_v62, %v13978_v59  ;;  %v7859_v43 = vpop.f32.mrb[73].mxu0 }
 0x99f   : > { %v10246_v39 = vpop.eup %10245  ;;  %v8089_v20 = vadd.f32 1.0, %v10244_v54  ;;  %v14016_v26 = vadd.f32 %v13978_v59, %v7859_v43  ;;  %v9270_v58 = vpop.f32.mrb[74].mxu0 }
 0x9a0   : > { %v10248_v56 = vpop.eup %10247  ;;  %10257 = vrcp.f32 %v8091_v14  ;;  %v8092_v28 = vadd.f32 1.0, %v10246_v39  ;;  %v8003_v19 = vsub.f32 0.0, %v14013_v15  ;;  %v14020_v52 = vadd.f32 %v9270_v58, %v13978_v59  ;;  %v7862_v55 = vpop.f32.mrb[75].mxu0 }
 0x9a1   : > { %10259 = vrcp.f32 %v8089_v20  ;;  %v8090_v57 = vadd.f32 1.0, %v10248_v56  ;;  %v8001_v16 = vsub.f32 0.0, %v14016_v26  ;;  %v14024_v25 = vadd.f32 %v13978_v59, %v7862_v55 }
 0x9a2   : > { %10261 = vrcp.f32 %v8092_v28  ;;  %v8045_v63 = vmul.f32 1.442695, %v8003_v19  ;;  %v8004_v7 = vsub.f32 0.0, %v14020_v52 }
 0x9a3   : > { %10263 = vrcp.f32 %v8090_v57  ;;  %v8041_v36 = vmul.f32 1.442695, %v8001_v16  ;;  %v8002_v61 = vsub.f32 0.0, %v14024_v25 }
 0x9a4   : > { %10265 = vpow2.f32 %v8045_v63  ;;  %v8047_v4 = vmul.f32 1.442695, %v8004_v7 }
 0x9a5   : > { %v10250_v46 = vpop.eup %10249  ;;  %10267 = vpow2.f32 %v8041_v36  ;;  %v8043_v5 = vmul.f32 1.442695, %v8002_v61  ;;  %v9273_v9 = vpop.f32.mrb[76].mxu0 }
 0x9a6   : > { %v10252_v24 = vpop.eup %10251  ;;  %v8095_v17 = vadd.f32 1.0, %v10250_v46  ;;  %10269 = vpow2.f32 %v8047_v4  ;;  %v14029_v13 = vadd.f32 %v9273_v9, %v13978_v59  ;;  %v7875_v47 = vpop.f32.mrb[77].mxu0 }
 0x9a7   : > { %v10254_v8 = vpop.eup %10253  ;;  %v8093_v12 = vadd.f32 1.0, %v10252_v24  ;;  %10271 = vpow2.f32 %v8043_v5  ;;  %v14033_v50 = vadd.f32 %v13978_v59, %v7875_v47  ;;  %v9274_v49 = vpop.f32.mrb[78].mxu0 }
 0x9a8   : > { %v10256_v40 = vpop.eup %10255  ;;  %10273 = vrcp.f32 %v8095_v17  ;;  %v8096_v0 = vadd.f32 1.0, %v10254_v8  ;;  %v8007_v23 = vsub.f32 0.0, %v14029_v13  ;;  %v14037_v53 = vadd.f32 %v9274_v49, %v13978_v59  ;;  %v7878_v6 = vpop.f32.mrb[79].mxu0 }
 0x9a9   : > { %10275 = vrcp.f32 %v8093_v12  ;;  %v8094_v30 = vadd.f32 1.0, %v10256_v40  ;;  %v8005_v42 = vsub.f32 0.0, %v14033_v50  ;;  %v14041_v38 = vadd.f32 %v13978_v59, %v7878_v6 }
 0x9aa   : > { %v10258_v31 = vpop.eup %10257  ;;  %10277 = vrcp.f32 %v8096_v0  ;;  %v8053_v18 = vmul.f32 1.442695, %v8007_v23  ;;  %v8008_v11 = vsub.f32 0.0, %v14037_v53 }
 0x9ab   : > { %v10260_v34 = vpop.eup %10259  ;;  %v8155_v29 = vmul.f32 %v10258_v31, %v13981_v21  ;;  %10279 = vrcp.f32 %v8094_v30  ;;  %v8049_v51 = vmul.f32 1.442695, %v8005_v42  ;;  %v8006_v32 = vsub.f32 0.0, %v14041_v38 }
 0x9ac   : > { %v10262_v41 = vpop.eup %10261  ;;  %v8153_v48 = vmul.f32 %v10260_v34, %v13984_v37  ;;  %10281 = vpow2.f32 %v8053_v18  ;;  %v8055_v35 = vmul.f32 1.442695, %v8008_v11 }
 0x9ad   : > { %v10264_v1 = vpop.eup %10263  ;;  %8187 = vst.msk [vmem:[%s14046_s15 + $0x10] sm:$0xff] %vm567_vm1, %v8155_v29  ;;  %v8156_v60 = vmul.f32 %v10262_v41, %v13988_v3  ;;  %10283 = vpow2.f32 %v8049_v51  ;;  %v8051_v10 = vmul.f32 1.442695, %v8006_v32 }
 0x9ae   : > { %v10266_v33 = vpop.eup %10265  ;;  %8185 = vst.msk [vmem:[%s14046_s15] sm:$0xff] %vm567_vm1, %v8153_v48  ;;  %v8154_v21 = vmul.f32 %v10264_v1, %v13992_v22  ;;  %10285 = vpow2.f32 %v8055_v35  ;;  %v9277_v62 = vpop.f32.mrb[80].mxu0 }
 0x9af   : > { %v10268_v54 = vpop.eup %10267  ;;  %8188 = vst.msk [vmem:[%s14046_s15 + $0x18] sm:$0xff] %vm567_vm1, %v8156_v60  ;;  %v8099_v37 = vadd.f32 1.0, %v10266_v33  ;;  %10287 = vpow2.f32 %v8051_v10  ;;  %v14061_v14 = vadd.f32 %v9277_v62, %v13978_v59  ;;  %v7891_v43 = vpop.f32.mrb[81].mxu0 }
 0x9b0   : > { %v10270_v39 = vpop.eup %10269  ;;  %8186 = vst.msk [vmem:[%s14046_s15 + $0x8] sm:$0xff] %vm567_vm1, %v8154_v21  ;;  %v8097_v3 = vadd.f32 1.0, %v10268_v54  ;;  %v14066_v20 = vadd.f32 %v13978_v59, %v7891_v43  ;;  %v9278_v58 = vpop.f32.mrb[82].mxu0 }
 0x9b1   : > { %v10272_v22 = vpop.eup %10271  ;;  %10289 = vrcp.f32 %v8099_v37  ;;  %v8100_v56 = vadd.f32 1.0, %v10270_v39  ;;  %v8011_v28 = vsub.f32 0.0, %v14061_v14  ;;  %v14070_v19 = vadd.f32 %v9278_v58, %v13978_v59  ;;  %v7894_v55 = vpop.f32.mrb[83].mxu0 }
 0x9b2   : > { %v10274_v57 = vpop.eup %10273  ;;  %10291 = vrcp.f32 %v8097_v3  ;;  %v8098_v16 = vadd.f32 1.0, %v10272_v22  ;;  %v8009_v63 = vsub.f32 0.0, %v14066_v20  ;;  %v14074_v7 = vadd.f32 %v13978_v59, %v7894_v55 }
 0x9b3   : > { %v10276_v36 = vpop.eup %10275  ;;  %v8159_v61 = vmul.f32 %v10274_v57, %v13997_v45  ;;  %10293 = vrcp.f32 %v8100_v56  ;;  %v8061_v4 = vmul.f32 1.442695, %v8011_v28  ;;  %v8012_v46 = vsub.f32 0.0, %v14070_v19 }
 0x9b4   : > { %v10278_v5 = vpop.eup %10277  ;;  %v8157_v9 = vmul.f32 %v10276_v36, %v14000_v27  ;;  %10295 = vrcp.f32 %v8098_v16  ;;  %v8057_v24 = vmul.f32 1.442695, %v8009_v63  ;;  %v8010_v17 = vsub.f32 0.0, %v14074_v7 }
 0x9b5   : > { %v10280_v47 = vpop.eup %10279  ;;  %8191 = vst.msk [vmem:[%s14046_s15 + $0x30] sm:$0xff] %vm567_vm1, %v8159_v61  ;;  %v8160_v8 = vmul.f32 %v10278_v5, %v14004_v44  ;;  %10297 = vpow2.f32 %v8061_v4  ;;  %v8063_v45 = vmul.f32 1.442695, %v8012_v46 }
 0x9b6   : > { %v10282_v12 = vpop.eup %10281  ;;  %8189 = vst.msk [vmem:[%s14046_s15 + $0x20] sm:$0xff] %vm567_vm1, %v8157_v9  ;;  %v8158_v49 = vmul.f32 %v10280_v47, %v14008_v2  ;;  %10299 = vpow2.f32 %v8057_v24  ;;  %v8059_v27 = vmul.f32 1.442695, %v8010_v17  ;;  %v9281_v40 = vpop.f32.mrb[84].mxu0 }
 0x9b7   : > { %v10284_v0 = vpop.eup %10283  ;;  %8192 = vst.msk [vmem:[%s14046_s15 + $0x38] sm:$0xff] %vm567_vm1, %v8160_v8  ;;  %v8103_v23 = vadd.f32 1.0, %v10282_v12  ;;  %10301 = vpow2.f32 %v8063_v45  ;;  %v14089_v6 = vadd.f32 %v9281_v40, %v13978_v59  ;;  %v7907_v44 = vpop.f32.mrb[85].mxu0 }
 0x9b8   : > { %v10286_v30 = vpop.eup %10285  ;;  %8190 = vst.msk [vmem:[%s14046_s15 + $0x28] sm:$0xff] %vm567_vm1, %v8158_v49  ;;  %v8101_v42 = vadd.f32 1.0, %v10284_v0  ;;  %10303 = vpow2.f32 %v8059_v27  ;;  %v14094_v31 = vadd.f32 %v13978_v59, %v7907_v44  ;;  %v9282_v2 = vpop.f32.mrb[86].mxu0 }
 0x9b9   : > { %v10288_v18 = vpop.eup %10287  ;;  %10305 = vrcp.f32 %v8103_v23  ;;  %v8104_v11 = vadd.f32 1.0, %v10286_v30  ;;  %v8015_v34 = vsub.f32 0.0, %v14089_v6  ;;  %v14098_v29 = vadd.f32 %v9282_v2, %v13978_v59  ;;  %v7910_v51 = vpop.f32.mrb[87].mxu0 }
 0x9ba   : > { %10307 = vrcp.f32 %v8101_v42  ;;  %v8102_v32 = vadd.f32 1.0, %v10288_v18  ;;  %v8013_v41 = vsub.f32 0.0, %v14094_v31  ;;  %v14102_v48 = vadd.f32 %v13978_v59, %v7910_v51 }
 0x9bb   : > { %v10290_v35 = vpop.eup %10289  ;;  %10309 = vrcp.f32 %v8104_v11  ;;  %v8069_v1 = vmul.f32 1.442695, %v8015_v34  ;;  %v8016_v60 = vsub.f32 0.0, %v14098_v29 }
 0x9bc   : > { %v10292_v10 = vpop.eup %10291  ;;  %v8163_v33 = vmul.f32 %v10290_v35, %v14013_v15  ;;  %10311 = vrcp.f32 %v8102_v32  ;;  %v8065_v21 = vmul.f32 1.442695, %v8013_v41  ;;  %v8014_v62 = vsub.f32 0.0, %v14102_v48 }
 0x9bd   : > { %v10294_v54 = vpop.eup %10293  ;;  %v8161_v37 = vmul.f32 %v10292_v10, %v14016_v26  ;;  %10313 = vpow2.f32 %v8069_v1  ;;  %v8071_v43 = vmul.f32 1.442695, %v8016_v60 }
 0x9be   : > { %v10296_v39 = vpop.eup %10295  ;;  %8195 = vst.msk [vmem:[%s14046_s15 + $0x50] sm:$0xff] %vm567_vm1, %v8163_v33  ;;  %v8164_v3 = vmul.f32 %v10294_v54, %v14020_v52  ;;  %10315 = vpow2.f32 %v8065_v21  ;;  %v8067_v58 = vmul.f32 1.442695, %v8014_v62 }
 0x9bf   : > { %v10298_v22 = vpop.eup %10297  ;;  %8193 = vst.msk [vmem:[%s14046_s15 + $0x40] sm:$0xff] %vm567_vm1, %v8161_v37  ;;  %v8162_v15 = vmul.f32 %v10296_v39, %v14024_v25  ;;  %10317 = vpow2.f32 %v8071_v43  ;;  %v9285_v56 = vpop.f32.mrb[88].mxu0 }
 0x9c0   : > { %v10300_v28 = vpop.eup %10299  ;;  %8196 = vst.msk [vmem:[%s14046_s15 + $0x58] sm:$0xff] %vm567_vm1, %v8164_v3  ;;  %v8107_v26 = vadd.f32 1.0, %v10298_v22  ;;  %10319 = vpow2.f32 %v8067_v58  ;;  %v14117_v55 = vadd.f32 %v9285_v56, %v13978_v59  ;;  %v7923_v57 = vpop.f32.mrb[89].mxu0 }
 0x9c1   : > { %v10302_v16 = vpop.eup %10301  ;;  %8194 = vst.msk [vmem:[%s14046_s15 + $0x48] sm:$0xff] %vm567_vm1, %v8162_v15  ;;  %v8105_v52 = vadd.f32 1.0, %v10300_v28  ;;  %v14122_v63 = vadd.f32 %v13978_v59, %v7923_v57  ;;  %v9286_v36 = vpop.f32.mrb[90].mxu0 }
 0x9c2   : > { %v10304_v25 = vpop.eup %10303  ;;  %10321 = vrcp.f32 %v8107_v26  ;;  %v8108_v61 = vadd.f32 1.0, %v10302_v16  ;;  %v8019_v4 = vsub.f32 0.0, %v14117_v55  ;;  %v14126_v46 = vadd.f32 %v9286_v36, %v13978_v59  ;;  %v7926_v5 = vpop.f32.mrb[91].mxu0 }
 0x9c3   : > { %v10306_v9 = vpop.eup %10305  ;;  %10323 = vrcp.f32 %v8105_v52  ;;  %v8106_v24 = vadd.f32 1.0, %v10304_v25  ;;  %v8017_v17 = vsub.f32 0.0, %v14122_v63  ;;  %v14130_v47 = vadd.f32 %v13978_v59, %v7926_v5 }
 0x9c4   : > { %v10308_v8 = vpop.eup %10307  ;;  %v8167_v45 = vmul.f32 %v10306_v9, %v14029_v13  ;;  %10325 = vrcp.f32 %v8108_v61  ;;  %v8077_v12 = vmul.f32 1.442695, %v8019_v4  ;;  %v8020_v49 = vsub.f32 0.0, %v14126_v46 }
 0x9c5   : > { %v10310_v27 = vpop.eup %10309  ;;  %v8165_v40 = vmul.f32 %v10308_v8, %v14033_v50  ;;  %10327 = vrcp.f32 %v8106_v24  ;;  %v8073_v0 = vmul.f32 1.442695, %v8017_v17  ;;  %v8018_v23 = vsub.f32 0.0, %v14130_v47 }
 0x9c6   : > { %v10312_v44 = vpop.eup %10311  ;;  %8199 = vst.msk [vmem:[%s14046_s15 + $0x70] sm:$0xff] %vm567_vm1, %v8167_v45  ;;  %v8168_v30 = vmul.f32 %v10310_v27, %v14037_v53  ;;  %10329 = vpow2.f32 %v8077_v12  ;;  %v8079_v13 = vmul.f32 1.442695, %v8020_v49 }
 0x9c7   : > { %v10314_v42 = vpop.eup %10313  ;;  %8197 = vst.msk [vmem:[%s14046_s15 + $0x60] sm:$0xff] %vm567_vm1, %v8165_v40  ;;  %v8166_v2 = vmul.f32 %v10312_v44, %v14041_v38  ;;  %10331 = vpow2.f32 %v8073_v0  ;;  %v8075_v50 = vmul.f32 1.442695, %v8018_v23  ;;  %v9289_v18 = vpop.f32.mrb[92].mxu0 }
 0x9c8   : > { %v10316_v11 = vpop.eup %10315  ;;  %8200 = vst.msk [vmem:[%s14046_s15 + $0x78] sm:$0xff] %vm567_vm1, %v8168_v30  ;;  %v8111_v34 = vadd.f32 1.0, %v10314_v42  ;;  %10333 = vpow2.f32 %v8079_v13  ;;  %v14145_v51 = vadd.f32 %v9289_v18, %v13978_v59  ;;  %v7939_v53 = vpop.f32.mrb[93].mxu0 }
 0x9c9   : > { %v10318_v32 = vpop.eup %10317  ;;  %8198 = vst.msk [vmem:[%s14046_s15 + $0x68] sm:$0xff] %vm567_vm1, %v8166_v2  ;;  %v8109_v41 = vadd.f32 1.0, %v10316_v11  ;;  %10335 = vpow2.f32 %v8075_v50  ;;  %v14150_v35 = vadd.f32 %v13978_v59, %v7939_v53  ;;  %v9290_v38 = vpop.f32.mrb[94].mxu0 }
 0x9ca   : > { %v10320_v1 = vpop.eup %10319  ;;  %10337 = vrcp.f32 %v8111_v34  ;;  %v8112_v60 = vadd.f32 1.0, %v10318_v32  ;;  %v8023_v10 = vsub.f32 0.0, %v14145_v51  ;;  %v14154_v33 = vadd.f32 %v9290_v38, %v13978_v59  ;;  %v7942_v21 = vpop.f32.mrb[95].mxu0 }
 0x9cb   : > { %10339 = vrcp.f32 %v8109_v41  ;;  %v8110_v62 = vadd.f32 1.0, %v10320_v1  ;;  %v8021_v54 = vsub.f32 0.0, %v14150_v35  ;;  %v14158_v37 = vadd.f32 %v13978_v59, %v7942_v21 }
 0x9cc   : > { %v10322_v43 = vpop.eup %10321  ;;  %10341 = vrcp.f32 %v8112_v60  ;;  %v8085_v39 = vmul.f32 1.442695, %v8023_v10  ;;  %v8024_v3 = vsub.f32 0.0, %v14154_v33 }
 0x9cd   : > { %v10324_v58 = vpop.eup %10323  ;;  %v8171_v22 = vmul.f32 %v10322_v43, %v14061_v14  ;;  %10343 = vrcp.f32 %v8110_v62  ;;  %v8081_v15 = vmul.f32 1.442695, %v8021_v54  ;;  %v8022_v56 = vsub.f32 0.0, %v14158_v37 }
 0x9ce   : > { %v10326_v28 = vpop.eup %10325  ;;  %v8169_v26 = vmul.f32 %v10324_v58, %v14066_v20  ;;  %10345 = vpow2.f32 %v8085_v39  ;;  %v8087_v59 = vmul.f32 1.442695, %v8024_v3 }
 0x9cf   : > { %v10328_v57 = vpop.eup %10327  ;;  %8203 = vst.msk [vmem:[%s14046_s15 + $0x90] sm:$0xff] %vm567_vm1, %v8171_v22  ;;  %v8172_v16 = vmul.f32 %v10326_v28, %v14070_v19  ;;  %10347 = vpow2.f32 %v8081_v15  ;;  %v8083_v52 = vmul.f32 1.442695, %v8022_v56 }
 0x9d0   : > { %v10330_v36 = vpop.eup %10329  ;;  %8201 = vst.msk [vmem:[%s14046_s15 + $0x80] sm:$0xff] %vm567_vm1, %v8169_v26  ;;  %v8170_v14 = vmul.f32 %v10328_v57, %v14074_v7  ;;  %10349 = vpow2.f32 %v8087_v59 }
 0x9d1   : > { %v10332_v25 = vpop.eup %10331  ;;  %8204 = vst.msk [vmem:[%s14046_s15 + $0x98] sm:$0xff] %vm567_vm1, %v8172_v16  ;;  %v8115_v20 = vadd.f32 1.0, %v10330_v36  ;;  %10351 = vpow2.f32 %v8083_v52 }
 0x9d2   : > { %v10334_v61 = vpop.eup %10333  ;;  %8202 = vst.msk [vmem:[%s14046_s15 + $0x88] sm:$0xff] %vm567_vm1, %v8170_v14  ;;  %v8113_v4 = vadd.f32 1.0, %v10332_v25 }
 0x9d3   : > { %v10336_v5 = vpop.eup %10335  ;;  %10353 = vrcp.f32 %v8115_v20  ;;  %v8116_v19 = vadd.f32 1.0, %v10334_v61 }
 0x9d4   : > { %v10338_v9 = vpop.eup %10337  ;;  %10355 = vrcp.f32 %v8113_v4  ;;  %v8114_v24 = vadd.f32 1.0, %v10336_v5 }
 0x9d5   : > { %v10340_v7 = vpop.eup %10339  ;;  %v8175_v17 = vmul.f32 %v10338_v9, %v14089_v6  ;;  %10357 = vrcp.f32 %v8116_v19 }
 0x9d6   : > { %v10342_v8 = vpop.eup %10341  ;;  %v8173_v45 = vmul.f32 %v10340_v7, %v14094_v31  ;;  %10359 = vrcp.f32 %v8114_v24 }
 0x9d7   : > { %v10344_v12 = vpop.eup %10343  ;;  %8207 = vst.msk [vmem:[%s14046_s15 + $0xb0] sm:$0xff] %vm567_vm1, %v8175_v17  ;;  %v8176_v49 = vmul.f32 %v10342_v8, %v14098_v29 }
 0x9d8   : > { %v10346_v27 = vpop.eup %10345  ;;  %8205 = vst.msk [vmem:[%s14046_s15 + $0xa0] sm:$0xff] %vm567_vm1, %v8173_v45  ;;  %v8174_v40 = vmul.f32 %v10344_v12, %v14102_v48 }
 0x9d9   : > { %v10348_v0 = vpop.eup %10347  ;;  %8208 = vst.msk [vmem:[%s14046_s15 + $0xb8] sm:$0xff] %vm567_vm1, %v8176_v49  ;;  %v8119_v23 = vadd.f32 1.0, %v10346_v27 }
 0x9da   : > { %v10350_v6 = vpop.eup %10349  ;;  %8206 = vst.msk [vmem:[%s14046_s15 + $0xa8] sm:$0xff] %vm567_vm1, %v8174_v40  ;;  %v8117_v31 = vadd.f32 1.0, %v10348_v0 }
 0x9db   : > { %v10352_v44 = vpop.eup %10351  ;;  %10361 = vrcp.f32 %v8119_v23  ;;  %v8120_v30 = vadd.f32 1.0, %v10350_v6 }
 0x9dc   : > { %10363 = vrcp.f32 %v8117_v31  ;;  %v8118_v29 = vadd.f32 1.0, %v10352_v44 }
 0x9dd   : > { %v10354_v13 = vpop.eup %10353  ;;  %10365 = vrcp.f32 %v8120_v30 }
 0x9de   : > { %v10356_v48 = vpop.eup %10355  ;;  %v8179_v42 = vmul.f32 %v10354_v13, %v14117_v55  ;;  %10367 = vrcp.f32 %v8118_v29 }
 0x9df   : > { %v10358_v2 = vpop.eup %10357  ;;  %v8177_v50 = vmul.f32 %v10356_v48, %v14122_v63 }
 0x9e0   : > { %v10360_v18 = vpop.eup %10359  ;;  %8211 = vst.msk [vmem:[%s14046_s15 + $0xd0] sm:$0xff] %vm567_vm1, %v8179_v42  ;;  %v8180_v11 = vmul.f32 %v10358_v2, %v14126_v46 }
 0x9e1   : > { %8209 = vst.msk [vmem:[%s14046_s15 + $0xc0] sm:$0xff] %vm567_vm1, %v8177_v50  ;;  %v8178_v34 = vmul.f32 %v10360_v18, %v14130_v47 }
 0x9e2   : > { %8212 = vst.msk [vmem:[%s14046_s15 + $0xd8] sm:$0xff] %vm567_vm1, %v8180_v11 }
 0x9e3   : > { %8210 = vst.msk [vmem:[%s14046_s15 + $0xc8] sm:$0xff] %vm567_vm1, %v8178_v34 }
 0x9e5   : > { %v10362_v55 = vpop.eup %10361 }
 0x9e6   : > { %v10364_v53 = vpop.eup %10363  ;;  %v8183_v63 = vmul.f32 %v10362_v55, %v14145_v51 }
 0x9e7   : > { %v10366_v32 = vpop.eup %10365  ;;  %v8181_v41 = vmul.f32 %v10364_v53, %v14150_v35 }
 0x9e8   : > { %v10368_v38 = vpop.eup %10367  ;;  %8215 = vst.msk [vmem:[%s14046_s15 + $0xf0] sm:$0xff] %vm567_vm1, %v8183_v63  ;;  %v8184_v46 = vmul.f32 %v10366_v32, %v14154_v33 }
 0x9e9   : > { %8213 = vst.msk [vmem:[%s14046_s15 + $0xe0] sm:$0xff] %vm567_vm1, %v8181_v41  ;;  %v8182_v47 = vmul.f32 %v10368_v38, %v14158_v37 }
 0x9ea   : > { %8216 = vst.msk [vmem:[%s14046_s15 + $0xf8] sm:$0xff] %vm567_vm1, %v8184_v46 }
 0x9eb   : > { %8214 = vst.msk [vmem:[%s14046_s15 + $0xe8] sm:$0xff] %vm567_vm1, %v8182_v47 }
 0x9ec PF: > { %s23_s25 = sadd.s32 1, %s10375_s25  }
 0x9ed   : > { %p20_p4 = scmp.ge.s32.totalorder %s23_s25, 4  }
 0x9ef   :  { %22 = sbr.rel (!%p20_p4) target bundleno = 1 (0x1), region = 113 }

</bundles_post_ra>
